<compile_context>
chip_gen: v7x
topology: tpu7x:2x2x1
jax: 0.10.0
libtpu: 0.0.40
codegen_flags: <defaults>
</compile_context>

<pallas_src>
import functools

import jax
import jax.numpy as jnp
from jax.experimental import pallas as pl
from jax.experimental.pallas import tpu as pltpu

LN_EPS = 1e-5  # PyTorch nn.LayerNorm default eps

N_CROSS_PARAMS = 15   # g1,b1,gc,bc,wq,wk,wv,wo,bo,g2,b2,wf1,bf1,wf2,bf2
N_SELF_PARAMS = 13    # g1,b1,   wq,wk,wv,wo,bo,g2,b2,wf1,bf1,wf2,bf2

# Abramowitz & Stegun 7.1.26 erf constants (max abs error 1.5e-7).
_ERF_P = 0.3275911
_ERF_A1 = 0.254829592
_ERF_A2 = -0.284496736
_ERF_A3 = 1.421413741
_ERF_A4 = -1.453152027
_ERF_A5 = 1.061405429
_INV_SQRT2 = 0.7071067811865476


def _erf(x):
    """erf via A&S 7.1.26 — only exp/mul/add/div/where, guaranteed Mosaic-lowerable."""
    a = jnp.where(x >= 0.0, x, -x)
    t = 1.0 / (1.0 + _ERF_P * a)
    poly = ((((_ERF_A5 * t + _ERF_A4) * t + _ERF_A3) * t + _ERF_A2) * t + _ERF_A1) * t
    r = 1.0 - poly * jnp.exp(-(a * a))
    return jnp.where(x >= 0.0, r, -r)


def _gelu_exact(x):
    """Exact (erf) GELU, matching torch.nn.functional.gelu default."""
    return 0.5 * x * (1.0 + _erf(x * _INV_SQRT2))


def _layernorm(x, g, b):
    m = jnp.mean(x, axis=-1, keepdims=True)
    v = jnp.mean((x - m) ** 2, axis=-1, keepdims=True)
    return (x - m) * jax.lax.rsqrt(v + LN_EPS) * g + b


def _attn_ff(x, xn, ctx_n, scale,
             wq, wk, wv, wo, bo, g2, b2, wf1, bf1, wf2, bf2):
    """One Perceiver block (normed query xn / normed context ctx_n already given):
       x = x + to_out(softmax(Q K^T * scale) V)   (PreNorm attention + residual)
       x = x + FF_GEGLU(LN(x))                    (PreNorm feed-forward + residual)
    """
    q = jnp.dot(xn, wq, preferred_element_type=jnp.float32)      # (N, dh)
    k = jnp.dot(ctx_n, wk, preferred_element_type=jnp.float32)   # (M, dh)
    v = jnp.dot(ctx_n, wv, preferred_element_type=jnp.float32)   # (M, dh)

    # sim = q @ k.T (contract over head dim)
    sim = jax.lax.dot_general(q, k, (((1,), (1,)), ((), ())),
                              preferred_element_type=jnp.float32) * scale  # (N, M)
    sim = sim - jnp.max(sim, axis=-1, keepdims=True)
    e = jnp.exp(sim)
    attn = e * pl.reciprocal(jnp.sum(e, axis=-1, keepdims=True), approx=True)

    out = jnp.dot(attn, v, preferred_element_type=jnp.float32)             # (N, dh)
    out = jnp.dot(out, wo, preferred_element_type=jnp.float32) + bo        # (N, Dl)
    x = x + out  # residual

    # PreNorm feed-forward (GEGLU, mult=4); split at 128 lanes is tile-aligned.
    xn2 = _layernorm(x, g2, b2)
    h = jnp.dot(xn2, wf1, preferred_element_type=jnp.float32) + bf1        # (N, 8*Dl)
    half = h.shape[-1] // 2
    h = h[:, :half] * _gelu_exact(h[:, half:])
    h = jnp.dot(h, wf2, preferred_element_type=jnp.float32) + bf2
    return x + h  # residual


def perceiver_kernel(n_layers, self_per_cross, cross_scale, latent_scale, *refs):
    """Fully fused Perceiver forward for one batch element (one grid step)."""
    tok_ref, lat_ref = refs[0], refs[1]
    cp = refs[2:2 + N_CROSS_PARAMS]
    sp = refs[2 + N_CROSS_PARAMS:2 + N_CROSS_PARAMS + N_SELF_PARAMS]
    o_ref = refs[2 + N_CROSS_PARAMS + N_SELF_PARAMS]

    (cg1, cb1, cgc, cbc, cwq, cwk, cwv, cwo, cbo,
     cg2, cb2, cwf1, cbf1, cwf2, cbf2) = cp
    (sg1, sb1, swq, swk, swv, swo, sbo,
     sg2, sb2, swf1, sbf1, swf2, sbf2) = sp

    tokens = tok_ref[0]      # (M, C)  input tokens for this batch element
    x = lat_ref[...]         # (N, Dl) latents (same initial value for every batch)

    for li in range(n_layers):
        # --- cross-attention block (context = input tokens, own context LN) ---
        xn = _layernorm(x, cg1[li], cb1[li])
        cn = _layernorm(tokens, cgc[li], cbc[li])
        x = _attn_ff(x, xn, cn, cross_scale,
                     cwq[li], cwk[li], cwv[li], cwo[li], cbo[li],
                     cg2[li], cb2[li], cwf1[li], cbf1[li], cwf2[li], cbf2[li])

        # --- latent self-attention chain: k/v come from the SAME normed latents
        #     as q (PreNorm(Attention) with context=None in the reference). ---
        for sj in range(self_per_cross):
            si = li * self_per_cross + sj
            xn = _layernorm(x, sg1[si], sb1[si])
            x = _attn_ff(x, xn, xn, latent_scale,
                         swq[si], swk[si], swv[si], swo[si], sbo[si],
                         sg2[si], sb2[si], swf1[si], sbf1[si], swf2[si], sbf2[si])

    o_ref[0] = x


def _const_spec(shape):
    """Whole-array block, constant index map -> array stays VMEM-resident (no re-DMA)."""
    zeros = (0,) * len(shape)
    return pl.BlockSpec(shape, lambda b: zeros)


def perceiver_forward(data, latents, cross_params, self_params,
                      cross_dim_head, latent_dim_head, n_layers, self_per_cross):
    # data: (B, C, H, W) NCHW, as in PyTorch -> tokens (B, H*W, C)
    B, C, H, W = data.shape
    M = H * W
    tokens = jnp.transpose(data, (0, 2, 3, 1)).reshape(B, M, C)
    N, Dl = latents.shape

    cross_scale = float(cross_dim_head) ** -0.5
    latent_scale = float(latent_dim_head) ** -0.5

    weights = list(cross_params) + list(self_params)

    in_specs = ([pl.BlockSpec((1, M, C), lambda b: (b, 0, 0)),   # tokens: per-batch
                 _const_spec(latents.shape)]                     # latents: shared
                + [_const_spec(w.shape) for w in weights])       # stacked weights

    kernel = functools.partial(perceiver_kernel, n_layers, self_per_cross,
                               cross_scale, latent_scale)

    return pl.pallas_call(
        kernel,
        out_shape=jax.ShapeDtypeStruct((B, N, Dl), latents.dtype),
        grid_spec=pltpu.PrefetchScalarGridSpec(
            num_scalar_prefetch=0,
            grid=(B,),
            in_specs=in_specs,
            out_specs=pl.BlockSpec((1, N, Dl), lambda b: (b, 0, 0)),
        ),
        compiler_params=pltpu.CompilerParams(
            dimension_semantics=("parallel",)),   # v7x: one batch element per TC
    )(tokens, latents, *weights)


# ----------------------------- pure-JAX reference ----------------------------

def perceiver_reference(data, latents, cross_params, self_params,
                        cross_dim_head, latent_dim_head, n_layers, self_per_cross):
    """Straightforward JAX implementation of the same forward, for verification."""
    B, C, H, W = data.shape
    tokens = jnp.transpose(data, (0, 2, 3, 1)).reshape(B, H * W, C)
    x = jnp.broadcast_to(latents[None], (B,) + latents.shape)
    cross_scale = float(cross_dim_head) ** -0.5
    latent_scale = float(latent_dim_head) ** -0.5
    hp = jax.lax.Precision.HIGHEST

    def ln(y, g, b):
        m = jnp.mean(y, -1, keepdims=True)
        v = jnp.mean((y - m) ** 2, -1, keepdims=True)
        return (y - m) * jax.lax.rsqrt(v + LN_EPS) * g + b

    def attn_ff(x, xn, cn, scale, wq, wk, wv, wo, bo, g2, b2, wf1, bf1, wf2, bf2):
        q = jnp.einsum('bnd,dh->bnh', xn, wq, precision=hp)
        k = jnp.einsum('bmd,dh->bmh', cn, wk, precision=hp)
        v = jnp.einsum('bmd,dh->bmh', cn, wv, precision=hp)
        sim = jnp.einsum('bnh,bmh->bnm', q, k, precision=hp) * scale
        attn = jax.nn.softmax(sim, axis=-1)
        out = jnp.einsum('bnm,bmh->bnh', attn, v, precision=hp)
        x = x + jnp.einsum('bnh,hd->bnd', out, wo, precision=hp) + bo
        xn2 = ln(x, g2, b2)
        h = jnp.einsum('bnd,de->bne', xn2, wf1, precision=hp) + bf1
        half = h.shape[-1] // 2
        h = h[..., :half] * jax.nn.gelu(h[..., half:], approximate=False)
        return x + jnp.einsum('bnd,de->bne', h, wf2, precision=hp) + bf2

    (cg1, cb1, cgc, cbc, cwq, cwk, cwv, cwo, cbo,
     cg2, cb2, cwf1, cbf1, cwf2, cbf2) = cross_params
    (sg1, sb1, swq, swk, swv, swo, sbo,
     sg2, sb2, swf1, sbf1, swf2, sbf2) = self_params

    for li in range(n_layers):
        xn = ln(x, cg1[li], cb1[li])
        cn = ln(tokens, cgc[li], cbc[li])
        x = attn_ff(x, xn, cn, cross_scale,
                    cwq[li], cwk[li], cwv[li], cwo[li], cbo[li],
                    cg2[li], cb2[li], cwf1[li], cbf1[li], cwf2[li], cbf2[li])
        for sj in range(self_per_cross):
            si = li * self_per_cross + sj
            xn = ln(x, sg1[si], sb1[si])
            x = attn_ff(x, xn, xn, latent_scale,
                        swq[si], swk[si], swv[si], swo[si], sbo[si],
                        sg2[si], sb2[si], swf1[si], sbf1[si], swf2[si], sbf2[si])
    return x


# ----------------------------- parameter setup ------------------------------

def _linear_w(key, fan_in, fan_out):
    # Deterministic stand-in for torch Linear default init (kaiming-uniform-ish).
    bound = 1.0 / (fan_in ** 0.5)
    return jax.random.uniform(key, (fan_in, fan_out), jnp.float32, -bound, bound)


def make_cross_block_params(key, latent_dim, context_dim, dim_head):
    """PreNorm cross-attention (with context LN) + PreNorm FeedForward(GEGLU, mult=4)."""
    ks = jax.random.split(key, 6)
    Dl, Dc, dh = latent_dim, context_dim, dim_head
    g1 = jnp.ones((1, Dl), jnp.float32)
    b1 = jnp.zeros((1, Dl), jnp.float32)
    gc = jnp.ones((1, Dc), jnp.float32)       # context LayerNorm
    bc = jnp.zeros((1, Dc), jnp.float32)
    wq = _linear_w(ks[0], Dl, dh)             # to_q (no bias)
    wk = _linear_w(ks[1], Dc, dh)             # to_kv split into wk / wv (no bias)
    wv = _linear_w(ks[2], Dc, dh)
    wo = _linear_w(ks[3], dh, Dl)             # to_out
    bo = jnp.zeros((1, Dl), jnp.float32)
    g2 = jnp.ones((1, Dl), jnp.float32)
    b2 = jnp.zeros((1, Dl), jnp.float32)
    wf1 = _linear_w(ks[4], Dl, 8 * Dl)        # Linear(dim, dim*4*2) for GEGLU
    bf1 = jnp.zeros((1, 8 * Dl), jnp.float32)
    wf2 = _linear_w(ks[5], 4 * Dl, Dl)        # Linear(dim*4, dim)
    bf2 = jnp.zeros((1, Dl), jnp.float32)
    return (g1, b1, gc, bc, wq, wk, wv, wo, bo, g2, b2, wf1, bf1, wf2, bf2)


def make_self_block_params(key, latent_dim, dim_head):
    """PreNorm self-attention (no context LN; context is the normed latents)."""
    ks = jax.random.split(key, 6)
    Dl, dh = latent_dim, dim_head
    g1 = jnp.ones((1, Dl), jnp.float32)
    b1 = jnp.zeros((1, Dl), jnp.float32)
    wq = _linear_w(ks[0], Dl, dh)
    wk = _linear_w(ks[1], Dl, dh)
    wv = _linear_w(ks[2], Dl, dh)
    wo = _linear_w(ks[3], dh, Dl)
    bo = jnp.zeros((1, Dl), jnp.float32)
    g2 = jnp.ones((1, Dl), jnp.float32)
    b2 = jnp.zeros((1, Dl), jnp.float32)
    wf1 = _linear_w(ks[4], Dl, 8 * Dl)
    bf1 = jnp.zeros((1, 8 * Dl), jnp.float32)
    wf2 = _linear_w(ks[5], 4 * Dl, Dl)
    bf2 = jnp.zeros((1, Dl), jnp.float32)
    return (g1, b1, wq, wk, wv, wo, bo, g2, b2, wf1, bf1, wf2, bf2)


def stack_params(param_tuples):
    """List of per-block param tuples -> tuple of stacked arrays (n_blocks, ...)."""
    return tuple(jnp.stack(ps, axis=0) for ps in zip(*param_tuples))


# --------------------------------- example -----------------------------------

if __name__ == "__main__":
    key = jax.random.PRNGKey(0)

    # Module config (small but consistent with the forward pass)
    B, C, H, W = 2, 4, 16, 16            # batch, input_channels, spatial
    input_axis = 2
    num_latents, latent_dim = 8, 32
    cross_dim_head = latent_dim_head = 32
    cross_heads = latent_heads = 1
    iterative_count = 2
    self_per_cross_attention = 2

    k_data, k_lat, k_layers = jax.random.split(key, 3)

    data = jax.random.normal(k_data, (B, C, H, W), jnp.float32)

    # latents ~ N(0, 0.02) clipped to [-2, 2], as in __init__
    latents = jnp.clip(0.02 * jax.random.normal(k_lat, (num_latents, latent_dim),
                                                jnp.float32), -2.0, 2.0)

    layer_keys = jax.random.split(k_layers, iterative_count)
    cross_blocks, self_blocks = [], []
    for lk in layer_keys:
        sub = jax.random.split(lk, 1 + self_per_cross_attention)
        cross_blocks.append(
            make_cross_block_params(sub[0], latent_dim, C, cross_dim_head))
        for k in sub[1:]:
            self_blocks.append(
                make_self_block_params(k, latent_dim, latent_dim_head))

    cross_params = stack_params(cross_blocks)   # 15 arrays, leading axis = n_cross
    self_params = stack_params(self_blocks)     # 13 arrays, leading axis = n_self

    out = perceiver_forward(data, latents, cross_params, self_params,
                            cross_dim_head, latent_dim_head,
                            iterative_count, self_per_cross_attention)
    out = jax.block_until_ready(out)
    assert out.shape == (B, num_latents, latent_dim), out.shape
    assert jnp.all(jnp.isfinite(out))

    # Correctness check against a plain-JAX reference (loose tolerance: approx
    # EUP reciprocal in the softmax + MXU vs XLA f32 matmul rounding).
    ref = jax.block_until_ready(
        perceiver_reference(data, latents, cross_params, self_params,
                            cross_dim_head, latent_dim_head,
                            iterative_count, self_per_cross_attention))
    rel_err = jnp.max(jnp.abs(out - ref)) / (jnp.max(jnp.abs(ref)) + 1e-6)
    assert rel_err < 5e-2, float(rel_err)

    print("KERNEL_OK")
</pallas_src>

<mosaic_0001>
module attributes {stable_mosaic.version = 11 : i64} {
  func.func @perceiver_kernel(%arg0: i32, %arg1: memref<1x256x4xf32, #tpu.memory_space<vmem>>, %arg2: memref<8x32xf32, #tpu.memory_space<vmem>>, %arg3: memref<2x1x32xf32, #tpu.memory_space<vmem>>, %arg4: memref<2x1x32xf32, #tpu.memory_space<vmem>>, %arg5: memref<2x1x4xf32, #tpu.memory_space<vmem>>, %arg6: memref<2x1x4xf32, #tpu.memory_space<vmem>>, %arg7: memref<2x32x32xf32, #tpu.memory_space<vmem>>, %arg8: memref<2x4x32xf32, #tpu.memory_space<vmem>>, %arg9: memref<2x4x32xf32, #tpu.memory_space<vmem>>, %arg10: memref<2x32x32xf32, #tpu.memory_space<vmem>>, %arg11: memref<2x1x32xf32, #tpu.memory_space<vmem>>, %arg12: memref<2x1x32xf32, #tpu.memory_space<vmem>>, %arg13: memref<2x1x32xf32, #tpu.memory_space<vmem>>, %arg14: memref<2x32x256xf32, #tpu.memory_space<vmem>>, %arg15: memref<2x1x256xf32, #tpu.memory_space<vmem>>, %arg16: memref<2x128x32xf32, #tpu.memory_space<vmem>>, %arg17: memref<2x1x32xf32, #tpu.memory_space<vmem>>, %arg18: memref<4x1x32xf32, #tpu.memory_space<vmem>>, %arg19: memref<4x1x32xf32, #tpu.memory_space<vmem>>, %arg20: memref<4x32x32xf32, #tpu.memory_space<vmem>>, %arg21: memref<4x32x32xf32, #tpu.memory_space<vmem>>, %arg22: memref<4x32x32xf32, #tpu.memory_space<vmem>>, %arg23: memref<4x32x32xf32, #tpu.memory_space<vmem>>, %arg24: memref<4x1x32xf32, #tpu.memory_space<vmem>>, %arg25: memref<4x1x32xf32, #tpu.memory_space<vmem>>, %arg26: memref<4x1x32xf32, #tpu.memory_space<vmem>>, %arg27: memref<4x32x256xf32, #tpu.memory_space<vmem>>, %arg28: memref<4x1x256xf32, #tpu.memory_space<vmem>>, %arg29: memref<4x128x32xf32, #tpu.memory_space<vmem>>, %arg30: memref<4x1x32xf32, #tpu.memory_space<vmem>>, %arg31: memref<1x8x32xf32, #tpu.memory_space<vmem>>) attributes {dimension_semantics = [#tpu.dimension_semantics<parallel>], iteration_bounds = array<i64: 2>, scalar_prefetch = 0 : i64, scratch_operands = 0 : i64, tpu.core_type = #tpu.core_type<tc>, window_params = [{transform_indices = @transform_0, window_bounds = array<i64: 1, 256, 4>}, {pipeline_mode = #tpu.pipeline_mode<synchronous>, transform_indices = @transform_1, window_bounds = array<i64: 8, 32>}, {pipeline_mode = #tpu.pipeline_mode<synchronous>, transform_indices = @transform_2, window_bounds = array<i64: 2, 1, 32>}, {pipeline_mode = #tpu.pipeline_mode<synchronous>, transform_indices = @transform_3, window_bounds = array<i64: 2, 1, 32>}, {pipeline_mode = #tpu.pipeline_mode<synchronous>, transform_indices = @transform_4, window_bounds = array<i64: 2, 1, 4>}, {pipeline_mode = #tpu.pipeline_mode<synchronous>, transform_indices = @transform_5, window_bounds = array<i64: 2, 1, 4>}, {pipeline_mode = #tpu.pipeline_mode<synchronous>, transform_indices = @transform_6, window_bounds = array<i64: 2, 32, 32>}, {pipeline_mode = #tpu.pipeline_mode<synchronous>, transform_indices = @transform_7, window_bounds = array<i64: 2, 4, 32>}, {pipeline_mode = #tpu.pipeline_mode<synchronous>, transform_indices = @transform_8, window_bounds = array<i64: 2, 4, 32>}, {pipeline_mode = #tpu.pipeline_mode<synchronous>, transform_indices = @transform_9, window_bounds = array<i64: 2, 32, 32>}, {pipeline_mode = #tpu.pipeline_mode<synchronous>, transform_indices = @transform_10, window_bounds = array<i64: 2, 1, 32>}, {pipeline_mode = #tpu.pipeline_mode<synchronous>, transform_indices = @transform_11, window_bounds = array<i64: 2, 1, 32>}, {pipeline_mode = #tpu.pipeline_mode<synchronous>, transform_indices = @transform_12, window_bounds = array<i64: 2, 1, 32>}, {pipeline_mode = #tpu.pipeline_mode<synchronous>, transform_indices = @transform_13, window_bounds = array<i64: 2, 32, 256>}, {pipeline_mode = #tpu.pipeline_mode<synchronous>, transform_indices = @transform_14, window_bounds = array<i64: 2, 1, 256>}, {pipeline_mode = #tpu.pipeline_mode<synchronous>, transform_indices = @transform_15, window_bounds = array<i64: 2, 128, 32>}, {pipeline_mode = #tpu.pipeline_mode<synchronous>, transform_indices = @transform_16, window_bounds = array<i64: 2, 1, 32>}, {pipeline_mode = #tpu.pipeline_mode<synchronous>, transform_indices = @transform_17, window_bounds = array<i64: 4, 1, 32>}, {pipeline_mode = #tpu.pipeline_mode<synchronous>, transform_indices = @transform_18, window_bounds = array<i64: 4, 1, 32>}, {pipeline_mode = #tpu.pipeline_mode<synchronous>, transform_indices = @transform_19, window_bounds = array<i64: 4, 32, 32>}, {pipeline_mode = #tpu.pipeline_mode<synchronous>, transform_indices = @transform_20, window_bounds = array<i64: 4, 32, 32>}, {pipeline_mode = #tpu.pipeline_mode<synchronous>, transform_indices = @transform_21, window_bounds = array<i64: 4, 32, 32>}, {pipeline_mode = #tpu.pipeline_mode<synchronous>, transform_indices = @transform_22, window_bounds = array<i64: 4, 32, 32>}, {pipeline_mode = #tpu.pipeline_mode<synchronous>, transform_indices = @transform_23, window_bounds = array<i64: 4, 1, 32>}, {pipeline_mode = #tpu.pipeline_mode<synchronous>, transform_indices = @transform_24, window_bounds = array<i64: 4, 1, 32>}, {pipeline_mode = #tpu.pipeline_mode<synchronous>, transform_indices = @transform_25, window_bounds = array<i64: 4, 1, 32>}, {pipeline_mode = #tpu.pipeline_mode<synchronous>, transform_indices = @transform_26, window_bounds = array<i64: 4, 32, 256>}, {pipeline_mode = #tpu.pipeline_mode<synchronous>, transform_indices = @transform_27, window_bounds = array<i64: 4, 1, 256>}, {pipeline_mode = #tpu.pipeline_mode<synchronous>, transform_indices = @transform_28, window_bounds = array<i64: 4, 128, 32>}, {pipeline_mode = #tpu.pipeline_mode<synchronous>, transform_indices = @transform_29, window_bounds = array<i64: 4, 1, 32>}, {transform_indices = @transform_30, window_bounds = array<i64: 1, 8, 32>}]} {
    %c0 = arith.constant 0 : index
    %c0_0 = arith.constant 0 : index
    %c0_1 = arith.constant 0 : index
    %0 = vector.load %arg1[%c0, %c0_0, %c0_1] : memref<1x256x4xf32, #tpu.memory_space<vmem>>, vector<1x256x4xf32>
    %1 = vector.shape_cast %0 : vector<1x256x4xf32> to vector<256x4xf32>
    %c0_2 = arith.constant 0 : index
    %c0_3 = arith.constant 0 : index
    %2 = vector.load %arg2[%c0_2, %c0_3] : memref<8x32xf32, #tpu.memory_space<vmem>>, vector<8x32xf32>
    %c0_4 = arith.constant 0 : index
    %c0_5 = arith.constant 0 : index
    %c0_6 = arith.constant 0 : index
    %3 = vector.load %arg3[%c0_4, %c0_5, %c0_6] : memref<2x1x32xf32, #tpu.memory_space<vmem>>, vector<1x1x32xf32>
    %4 = vector.shape_cast %3 : vector<1x1x32xf32> to vector<1x32xf32>
    %c0_7 = arith.constant 0 : index
    %c0_8 = arith.constant 0 : index
    %c0_9 = arith.constant 0 : index
    %5 = vector.load %arg4[%c0_7, %c0_8, %c0_9] : memref<2x1x32xf32, #tpu.memory_space<vmem>>, vector<1x1x32xf32>
    %6 = vector.shape_cast %5 : vector<1x1x32xf32> to vector<1x32xf32>
    %cst = arith.constant dense<0.000000e+00> : vector<8xf32>
    %7 = vector.multi_reduction <add>, %2, %cst [1] : vector<8x32xf32> to vector<8xf32>
    %8 = vector.shape_cast %7 : vector<8xf32> to vector<8x1xf32>
    %cst_10 = arith.constant 3.200000e+01 : f32
    %9 = vector.broadcast %cst_10 : f32 to vector<8x1xf32>
    %10 = arith.divf %8, %9 : vector<8x1xf32>
    %11 = vector.broadcast %10 : vector<8x1xf32> to vector<8x32xf32>
    %12 = arith.subf %2, %11 : vector<8x32xf32>
    %13 = arith.mulf %12, %12 : vector<8x32xf32>
    %cst_11 = arith.constant dense<0.000000e+00> : vector<8xf32>
    %14 = vector.multi_reduction <add>, %13, %cst_11 [1] : vector<8x32xf32> to vector<8xf32>
    %15 = vector.shape_cast %14 : vector<8xf32> to vector<8x1xf32>
    %cst_12 = arith.constant 3.200000e+01 : f32
    %16 = vector.broadcast %cst_12 : f32 to vector<8x1xf32>
    %17 = arith.divf %15, %16 : vector<8x1xf32>
    %18 = vector.broadcast %10 : vector<8x1xf32> to vector<8x32xf32>
    %19 = arith.subf %2, %18 : vector<8x32xf32>
    %cst_13 = arith.constant 9.99999974E-6 : f32
    %20 = vector.broadcast %cst_13 : f32 to vector<8x1xf32>
    %21 = arith.addf %17, %20 : vector<8x1xf32>
    %22 = math.rsqrt %21 : vector<8x1xf32>
    %23 = vector.broadcast %22 : vector<8x1xf32> to vector<8x32xf32>
    %24 = arith.mulf %19, %23 : vector<8x32xf32>
    %25 = vector.broadcast %4 : vector<1x32xf32> to vector<8x32xf32>
    %26 = arith.mulf %24, %25 : vector<8x32xf32>
    %27 = vector.broadcast %6 : vector<1x32xf32> to vector<8x32xf32>
    %28 = arith.addf %26, %27 : vector<8x32xf32>
    %c0_14 = arith.constant 0 : index
    %c0_15 = arith.constant 0 : index
    %c0_16 = arith.constant 0 : index
    %29 = vector.load %arg5[%c0_14, %c0_15, %c0_16] : memref<2x1x4xf32, #tpu.memory_space<vmem>>, vector<1x1x4xf32>
    %30 = vector.shape_cast %29 : vector<1x1x4xf32> to vector<1x4xf32>
    %c0_17 = arith.constant 0 : index
    %c0_18 = arith.constant 0 : index
    %c0_19 = arith.constant 0 : index
    %31 = vector.load %arg6[%c0_17, %c0_18, %c0_19] : memref<2x1x4xf32, #tpu.memory_space<vmem>>, vector<1x1x4xf32>
    %32 = vector.shape_cast %31 : vector<1x1x4xf32> to vector<1x4xf32>
    %cst_20 = arith.constant dense<0.000000e+00> : vector<256xf32>
    %33 = vector.multi_reduction <add>, %1, %cst_20 [1] : vector<256x4xf32> to vector<256xf32>
    %34 = vector.shape_cast %33 : vector<256xf32> to vector<256x1xf32>
    %cst_21 = arith.constant 4.000000e+00 : f32
    %35 = vector.broadcast %cst_21 : f32 to vector<256x1xf32>
    %36 = arith.divf %34, %35 : vector<256x1xf32>
    %37 = vector.broadcast %36 : vector<256x1xf32> to vector<256x4xf32>
    %38 = arith.subf %1, %37 : vector<256x4xf32>
    %39 = arith.mulf %38, %38 : vector<256x4xf32>
    %cst_22 = arith.constant dense<0.000000e+00> : vector<256xf32>
    %40 = vector.multi_reduction <add>, %39, %cst_22 [1] : vector<256x4xf32> to vector<256xf32>
    %41 = vector.shape_cast %40 : vector<256xf32> to vector<256x1xf32>
    %cst_23 = arith.constant 4.000000e+00 : f32
    %42 = vector.broadcast %cst_23 : f32 to vector<256x1xf32>
    %43 = arith.divf %41, %42 : vector<256x1xf32>
    %44 = vector.broadcast %36 : vector<256x1xf32> to vector<256x4xf32>
    %45 = arith.subf %1, %44 : vector<256x4xf32>
    %cst_24 = arith.constant 9.99999974E-6 : f32
    %46 = vector.broadcast %cst_24 : f32 to vector<256x1xf32>
    %47 = arith.addf %43, %46 : vector<256x1xf32>
    %48 = math.rsqrt %47 : vector<256x1xf32>
    %49 = vector.broadcast %48 : vector<256x1xf32> to vector<256x4xf32>
    %50 = arith.mulf %45, %49 : vector<256x4xf32>
    %51 = vector.broadcast %30 : vector<1x4xf32> to vector<256x4xf32>
    %52 = arith.mulf %50, %51 : vector<256x4xf32>
    %53 = vector.broadcast %32 : vector<1x4xf32> to vector<256x4xf32>
    %54 = arith.addf %52, %53 : vector<256x4xf32>
    %c0_25 = arith.constant 0 : index
    %c0_26 = arith.constant 0 : index
    %c0_27 = arith.constant 0 : index
    %55 = vector.load %arg7[%c0_25, %c0_26, %c0_27] : memref<2x32x32xf32, #tpu.memory_space<vmem>>, vector<1x32x32xf32>
    %56 = vector.shape_cast %55 : vector<1x32x32xf32> to vector<32x32xf32>
    %c0_28 = arith.constant 0 : index
    %c0_29 = arith.constant 0 : index
    %c0_30 = arith.constant 0 : index
    %57 = vector.load %arg8[%c0_28, %c0_29, %c0_30] : memref<2x4x32xf32, #tpu.memory_space<vmem>>, vector<1x4x32xf32>
    %58 = vector.shape_cast %57 : vector<1x4x32xf32> to vector<4x32xf32>
    %c0_31 = arith.constant 0 : index
    %c0_32 = arith.constant 0 : index
    %c0_33 = arith.constant 0 : index
    %59 = vector.load %arg9[%c0_31, %c0_32, %c0_33] : memref<2x4x32xf32, #tpu.memory_space<vmem>>, vector<1x4x32xf32>
    %60 = vector.shape_cast %59 : vector<1x4x32xf32> to vector<4x32xf32>
    %c0_34 = arith.constant 0 : index
    %c0_35 = arith.constant 0 : index
    %c0_36 = arith.constant 0 : index
    %61 = vector.load %arg10[%c0_34, %c0_35, %c0_36] : memref<2x32x32xf32, #tpu.memory_space<vmem>>, vector<1x32x32xf32>
    %62 = vector.shape_cast %61 : vector<1x32x32xf32> to vector<32x32xf32>
    %c0_37 = arith.constant 0 : index
    %c0_38 = arith.constant 0 : index
    %c0_39 = arith.constant 0 : index
    %63 = vector.load %arg11[%c0_37, %c0_38, %c0_39] : memref<2x1x32xf32, #tpu.memory_space<vmem>>, vector<1x1x32xf32>
    %64 = vector.shape_cast %63 : vector<1x1x32xf32> to vector<1x32xf32>
    %c0_40 = arith.constant 0 : index
    %c0_41 = arith.constant 0 : index
    %c0_42 = arith.constant 0 : index
    %65 = vector.load %arg12[%c0_40, %c0_41, %c0_42] : memref<2x1x32xf32, #tpu.memory_space<vmem>>, vector<1x1x32xf32>
    %66 = vector.shape_cast %65 : vector<1x1x32xf32> to vector<1x32xf32>
    %c0_43 = arith.constant 0 : index
    %c0_44 = arith.constant 0 : index
    %c0_45 = arith.constant 0 : index
    %67 = vector.load %arg13[%c0_43, %c0_44, %c0_45] : memref<2x1x32xf32, #tpu.memory_space<vmem>>, vector<1x1x32xf32>
    %68 = vector.shape_cast %67 : vector<1x1x32xf32> to vector<1x32xf32>
    %c0_46 = arith.constant 0 : index
    %c0_47 = arith.constant 0 : index
    %c0_48 = arith.constant 0 : index
    %69 = vector.load %arg14[%c0_46, %c0_47, %c0_48] : memref<2x32x256xf32, #tpu.memory_space<vmem>>, vector<1x32x256xf32>
    %70 = vector.shape_cast %69 : vector<1x32x256xf32> to vector<32x256xf32>
    %c0_49 = arith.constant 0 : index
    %c0_50 = arith.constant 0 : index
    %c0_51 = arith.constant 0 : index
    %71 = vector.load %arg15[%c0_49, %c0_50, %c0_51] : memref<2x1x256xf32, #tpu.memory_space<vmem>>, vector<1x1x256xf32>
    %72 = vector.shape_cast %71 : vector<1x1x256xf32> to vector<1x256xf32>
    %c0_52 = arith.constant 0 : index
    %c0_53 = arith.constant 0 : index
    %c0_54 = arith.constant 0 : index
    %73 = vector.load %arg16[%c0_52, %c0_53, %c0_54] : memref<2x128x32xf32, #tpu.memory_space<vmem>>, vector<1x128x32xf32>
    %74 = vector.shape_cast %73 : vector<1x128x32xf32> to vector<128x32xf32>
    %c0_55 = arith.constant 0 : index
    %c0_56 = arith.constant 0 : index
    %c0_57 = arith.constant 0 : index
    %75 = vector.load %arg17[%c0_55, %c0_56, %c0_57] : memref<2x1x32xf32, #tpu.memory_space<vmem>>, vector<1x1x32xf32>
    %76 = vector.shape_cast %75 : vector<1x1x32xf32> to vector<1x32xf32>
    %cst_58 = arith.constant dense<0.000000e+00> : vector<8x32xf32>
    %77 = tpu.matmul %28, %56, %cst_58 {dimension_numbers = #tpu.dot_dimension_numbers<[1], [0], [0], [1], [0, 0, 1, 1], [], []>} : vector<8x32xf32>, vector<32x32xf32>, vector<8x32xf32> -> vector<8x32xf32>
    %cst_59 = arith.constant dense<0.000000e+00> : vector<256x32xf32>
    %78 = tpu.matmul %54, %58, %cst_59 {dimension_numbers = #tpu.dot_dimension_numbers<[1], [0], [0], [1], [0, 0, 1, 1], [], []>} : vector<256x4xf32>, vector<4x32xf32>, vector<256x32xf32> -> vector<256x32xf32>
    %cst_60 = arith.constant dense<0.000000e+00> : vector<256x32xf32>
    %79 = tpu.matmul %54, %60, %cst_60 {dimension_numbers = #tpu.dot_dimension_numbers<[1], [0], [0], [1], [0, 0, 1, 1], [], []>} : vector<256x4xf32>, vector<4x32xf32>, vector<256x32xf32> -> vector<256x32xf32>
    %cst_61 = arith.constant dense<0.000000e+00> : vector<8x256xf32>
    %80 = tpu.matmul %77, %78, %cst_61 {dimension_numbers = #tpu.dot_dimension_numbers<[1], [1], [0], [0], [0, 0, 1, 0], [], []>} : vector<8x32xf32>, vector<256x32xf32>, vector<8x256xf32> -> vector<8x256xf32>
    %cst_62 = arith.constant 0.176776692 : f32
    %81 = vector.broadcast %cst_62 : f32 to vector<8x256xf32>
    %82 = arith.mulf %80, %81 : vector<8x256xf32>
    %cst_63 = arith.constant dense<0xFF800000> : vector<8xf32>
    %83 = vector.multi_reduction <maximumf>, %82, %cst_63 [1] : vector<8x256xf32> to vector<8xf32>
    %84 = vector.shape_cast %83 : vector<8xf32> to vector<8x1xf32>
    %85 = vector.broadcast %84 : vector<8x1xf32> to vector<8x256xf32>
    %86 = arith.subf %82, %85 : vector<8x256xf32>
    %87 = math.exp %86 : vector<8x256xf32>
    %cst_64 = arith.constant dense<0.000000e+00> : vector<8xf32>
    %88 = vector.multi_reduction <add>, %87, %cst_64 [1] : vector<8x256xf32> to vector<8xf32>
    %89 = vector.shape_cast %88 : vector<8xf32> to vector<8x1xf32>
    %90 = tpu.reciprocal %89 {approx = true} : vector<8x1xf32> -> vector<8x1xf32>
    %91 = vector.broadcast %90 : vector<8x1xf32> to vector<8x256xf32>
    %92 = arith.mulf %87, %91 : vector<8x256xf32>
    %cst_65 = arith.constant dense<0.000000e+00> : vector<8x32xf32>
    %93 = tpu.matmul %92, %79, %cst_65 {dimension_numbers = #tpu.dot_dimension_numbers<[1], [0], [0], [1], [0, 0, 1, 1], [], []>} : vector<8x256xf32>, vector<256x32xf32>, vector<8x32xf32> -> vector<8x32xf32>
    %cst_66 = arith.constant dense<0.000000e+00> : vector<8x32xf32>
    %94 = tpu.matmul %93, %62, %cst_66 {dimension_numbers = #tpu.dot_dimension_numbers<[1], [0], [0], [1], [0, 0, 1, 1], [], []>} : vector<8x32xf32>, vector<32x32xf32>, vector<8x32xf32> -> vector<8x32xf32>
    %95 = vector.broadcast %64 : vector<1x32xf32> to vector<8x32xf32>
    %96 = arith.addf %94, %95 : vector<8x32xf32>
    %97 = arith.addf %2, %96 : vector<8x32xf32>
    %cst_67 = arith.constant dense<0.000000e+00> : vector<8xf32>
    %98 = vector.multi_reduction <add>, %97, %cst_67 [1] : vector<8x32xf32> to vector<8xf32>
    %99 = vector.shape_cast %98 : vector<8xf32> to vector<8x1xf32>
    %cst_68 = arith.constant 3.200000e+01 : f32
    %100 = vector.broadcast %cst_68 : f32 to vector<8x1xf32>
    %101 = arith.divf %99, %100 : vector<8x1xf32>
    %102 = vector.broadcast %101 : vector<8x1xf32> to vector<8x32xf32>
    %103 = arith.subf %97, %102 : vector<8x32xf32>
    %104 = arith.mulf %103, %103 : vector<8x32xf32>
    %cst_69 = arith.constant dense<0.000000e+00> : vector<8xf32>
    %105 = vector.multi_reduction <add>, %104, %cst_69 [1] : vector<8x32xf32> to vector<8xf32>
    %106 = vector.shape_cast %105 : vector<8xf32> to vector<8x1xf32>
    %cst_70 = arith.constant 3.200000e+01 : f32
    %107 = vector.broadcast %cst_70 : f32 to vector<8x1xf32>
    %108 = arith.divf %106, %107 : vector<8x1xf32>
    %109 = vector.broadcast %101 : vector<8x1xf32> to vector<8x32xf32>
    %110 = arith.subf %97, %109 : vector<8x32xf32>
    %cst_71 = arith.constant 9.99999974E-6 : f32
    %111 = vector.broadcast %cst_71 : f32 to vector<8x1xf32>
    %112 = arith.addf %108, %111 : vector<8x1xf32>
    %113 = math.rsqrt %112 : vector<8x1xf32>
    %114 = vector.broadcast %113 : vector<8x1xf32> to vector<8x32xf32>
    %115 = arith.mulf %110, %114 : vector<8x32xf32>
    %116 = vector.broadcast %66 : vector<1x32xf32> to vector<8x32xf32>
    %117 = arith.mulf %115, %116 : vector<8x32xf32>
    %118 = vector.broadcast %68 : vector<1x32xf32> to vector<8x32xf32>
    %119 = arith.addf %117, %118 : vector<8x32xf32>
    %cst_72 = arith.constant dense<0.000000e+00> : vector<8x256xf32>
    %120 = tpu.matmul %119, %70, %cst_72 {dimension_numbers = #tpu.dot_dimension_numbers<[1], [0], [0], [1], [0, 0, 1, 1], [], []>} : vector<8x32xf32>, vector<32x256xf32>, vector<8x256xf32> -> vector<8x256xf32>
    %121 = vector.broadcast %72 : vector<1x256xf32> to vector<8x256xf32>
    %122 = arith.addf %120, %121 : vector<8x256xf32>
    %123 = vector.extract_strided_slice %122 {offsets = [0, 0], sizes = [8, 128], strides = [1, 1]} : vector<8x256xf32> to vector<8x128xf32>
    %124 = vector.extract_strided_slice %122 {offsets = [0, 128], sizes = [8, 128], strides = [1, 1]} : vector<8x256xf32> to vector<8x128xf32>
    %cst_73 = arith.constant 5.000000e-01 : f32
    %125 = vector.broadcast %cst_73 : f32 to vector<8x128xf32>
    %126 = arith.mulf %125, %124 : vector<8x128xf32>
    %cst_74 = arith.constant 0.707106769 : f32
    %127 = vector.broadcast %cst_74 : f32 to vector<8x128xf32>
    %128 = arith.mulf %124, %127 : vector<8x128xf32>
    %cst_75 = arith.constant 0.000000e+00 : f32
    %129 = vector.broadcast %cst_75 : f32 to vector<8x128xf32>
    %130 = arith.cmpf oge, %128, %129 : vector<8x128xf32>
    %cst_76 = arith.constant 0.000000e+00 : f32
    %131 = vector.broadcast %cst_76 : f32 to vector<8x128xf32>
    %132 = arith.subf %131, %128 : vector<8x128xf32>
    %133 = arith.select %130, %128, %132 : vector<8x128xi1>, vector<8x128xf32>
    %cst_77 = arith.constant 0.327591091 : f32
    %134 = vector.broadcast %cst_77 : f32 to vector<8x128xf32>
    %135 = arith.mulf %134, %133 : vector<8x128xf32>
    %cst_78 = arith.constant 1.000000e+00 : f32
    %136 = vector.broadcast %cst_78 : f32 to vector<8x128xf32>
    %137 = arith.addf %136, %135 : vector<8x128xf32>
    %cst_79 = arith.constant 1.000000e+00 : f32
    %138 = vector.broadcast %cst_79 : f32 to vector<8x128xf32>
    %139 = arith.divf %138, %137 : vector<8x128xf32>
    %cst_80 = arith.constant 1.06140542 : f32
    %140 = vector.broadcast %cst_80 : f32 to vector<8x128xf32>
    %141 = arith.mulf %140, %139 : vector<8x128xf32>
    %cst_81 = arith.constant -1.45315206 : f32
    %142 = vector.broadcast %cst_81 : f32 to vector<8x128xf32>
    %143 = arith.addf %141, %142 : vector<8x128xf32>
    %144 = arith.mulf %143, %139 : vector<8x128xf32>
    %cst_82 = arith.constant 1.42141378 : f32
    %145 = vector.broadcast %cst_82 : f32 to vector<8x128xf32>
    %146 = arith.addf %144, %145 : vector<8x128xf32>
    %147 = arith.mulf %146, %139 : vector<8x128xf32>
    %cst_83 = arith.constant -0.284496725 : f32
    %148 = vector.broadcast %cst_83 : f32 to vector<8x128xf32>
    %149 = arith.addf %147, %148 : vector<8x128xf32>
    %150 = arith.mulf %149, %139 : vector<8x128xf32>
    %cst_84 = arith.constant 0.254829586 : f32
    %151 = vector.broadcast %cst_84 : f32 to vector<8x128xf32>
    %152 = arith.addf %150, %151 : vector<8x128xf32>
    %153 = arith.mulf %152, %139 : vector<8x128xf32>
    %154 = arith.mulf %133, %133 : vector<8x128xf32>
    %cst_85 = arith.constant 0.000000e+00 : f32
    %155 = vector.broadcast %cst_85 : f32 to vector<8x128xf32>
    %156 = arith.subf %155, %154 : vector<8x128xf32>
    %157 = math.exp %156 : vector<8x128xf32>
    %158 = arith.mulf %153, %157 : vector<8x128xf32>
    %cst_86 = arith.constant 1.000000e+00 : f32
    %159 = vector.broadcast %cst_86 : f32 to vector<8x128xf32>
    %160 = arith.subf %159, %158 : vector<8x128xf32>
    %cst_87 = arith.constant 0.000000e+00 : f32
    %161 = vector.broadcast %cst_87 : f32 to vector<8x128xf32>
    %162 = arith.cmpf oge, %128, %161 : vector<8x128xf32>
    %cst_88 = arith.constant 0.000000e+00 : f32
    %163 = vector.broadcast %cst_88 : f32 to vector<8x128xf32>
    %164 = arith.subf %163, %160 : vector<8x128xf32>
    %165 = arith.select %162, %160, %164 : vector<8x128xi1>, vector<8x128xf32>
    %cst_89 = arith.constant 1.000000e+00 : f32
    %166 = vector.broadcast %cst_89 : f32 to vector<8x128xf32>
    %167 = arith.addf %166, %165 : vector<8x128xf32>
    %168 = arith.mulf %126, %167 : vector<8x128xf32>
    %169 = arith.mulf %123, %168 : vector<8x128xf32>
    %cst_90 = arith.constant dense<0.000000e+00> : vector<8x32xf32>
    %170 = tpu.matmul %169, %74, %cst_90 {dimension_numbers = #tpu.dot_dimension_numbers<[1], [0], [0], [1], [0, 0, 1, 1], [], []>} : vector<8x128xf32>, vector<128x32xf32>, vector<8x32xf32> -> vector<8x32xf32>
    %171 = vector.broadcast %76 : vector<1x32xf32> to vector<8x32xf32>
    %172 = arith.addf %170, %171 : vector<8x32xf32>
    %173 = arith.addf %97, %172 : vector<8x32xf32>
    %c0_91 = arith.constant 0 : index
    %c0_92 = arith.constant 0 : index
    %c0_93 = arith.constant 0 : index
    %174 = vector.load %arg18[%c0_91, %c0_92, %c0_93] : memref<4x1x32xf32, #tpu.memory_space<vmem>>, vector<1x1x32xf32>
    %175 = vector.shape_cast %174 : vector<1x1x32xf32> to vector<1x32xf32>
    %c0_94 = arith.constant 0 : index
    %c0_95 = arith.constant 0 : index
    %c0_96 = arith.constant 0 : index
    %176 = vector.load %arg19[%c0_94, %c0_95, %c0_96] : memref<4x1x32xf32, #tpu.memory_space<vmem>>, vector<1x1x32xf32>
    %177 = vector.shape_cast %176 : vector<1x1x32xf32> to vector<1x32xf32>
    %cst_97 = arith.constant dense<0.000000e+00> : vector<8xf32>
    %178 = vector.multi_reduction <add>, %173, %cst_97 [1] : vector<8x32xf32> to vector<8xf32>
    %179 = vector.shape_cast %178 : vector<8xf32> to vector<8x1xf32>
    %cst_98 = arith.constant 3.200000e+01 : f32
    %180 = vector.broadcast %cst_98 : f32 to vector<8x1xf32>
    %181 = arith.divf %179, %180 : vector<8x1xf32>
    %182 = vector.broadcast %181 : vector<8x1xf32> to vector<8x32xf32>
    %183 = arith.subf %173, %182 : vector<8x32xf32>
    %184 = arith.mulf %183, %183 : vector<8x32xf32>
    %cst_99 = arith.constant dense<0.000000e+00> : vector<8xf32>
    %185 = vector.multi_reduction <add>, %184, %cst_99 [1] : vector<8x32xf32> to vector<8xf32>
    %186 = vector.shape_cast %185 : vector<8xf32> to vector<8x1xf32>
    %cst_100 = arith.constant 3.200000e+01 : f32
    %187 = vector.broadcast %cst_100 : f32 to vector<8x1xf32>
    %188 = arith.divf %186, %187 : vector<8x1xf32>
    %189 = vector.broadcast %181 : vector<8x1xf32> to vector<8x32xf32>
    %190 = arith.subf %173, %189 : vector<8x32xf32>
    %cst_101 = arith.constant 9.99999974E-6 : f32
    %191 = vector.broadcast %cst_101 : f32 to vector<8x1xf32>
    %192 = arith.addf %188, %191 : vector<8x1xf32>
    %193 = math.rsqrt %192 : vector<8x1xf32>
    %194 = vector.broadcast %193 : vector<8x1xf32> to vector<8x32xf32>
    %195 = arith.mulf %190, %194 : vector<8x32xf32>
    %196 = vector.broadcast %175 : vector<1x32xf32> to vector<8x32xf32>
    %197 = arith.mulf %195, %196 : vector<8x32xf32>
    %198 = vector.broadcast %177 : vector<1x32xf32> to vector<8x32xf32>
    %199 = arith.addf %197, %198 : vector<8x32xf32>
    %c0_102 = arith.constant 0 : index
    %c0_103 = arith.constant 0 : index
    %c0_104 = arith.constant 0 : index
    %200 = vector.load %arg20[%c0_102, %c0_103, %c0_104] : memref<4x32x32xf32, #tpu.memory_space<vmem>>, vector<1x32x32xf32>
    %201 = vector.shape_cast %200 : vector<1x32x32xf32> to vector<32x32xf32>
    %c0_105 = arith.constant 0 : index
    %c0_106 = arith.constant 0 : index
    %c0_107 = arith.constant 0 : index
    %202 = vector.load %arg21[%c0_105, %c0_106, %c0_107] : memref<4x32x32xf32, #tpu.memory_space<vmem>>, vector<1x32x32xf32>
    %203 = vector.shape_cast %202 : vector<1x32x32xf32> to vector<32x32xf32>
    %c0_108 = arith.constant 0 : index
    %c0_109 = arith.constant 0 : index
    %c0_110 = arith.constant 0 : index
    %204 = vector.load %arg22[%c0_108, %c0_109, %c0_110] : memref<4x32x32xf32, #tpu.memory_space<vmem>>, vector<1x32x32xf32>
    %205 = vector.shape_cast %204 : vector<1x32x32xf32> to vector<32x32xf32>
    %c0_111 = arith.constant 0 : index
    %c0_112 = arith.constant 0 : index
    %c0_113 = arith.constant 0 : index
    %206 = vector.load %arg23[%c0_111, %c0_112, %c0_113] : memref<4x32x32xf32, #tpu.memory_space<vmem>>, vector<1x32x32xf32>
    %207 = vector.shape_cast %206 : vector<1x32x32xf32> to vector<32x32xf32>
    %c0_114 = arith.constant 0 : index
    %c0_115 = arith.constant 0 : index
    %c0_116 = arith.constant 0 : index
    %208 = vector.load %arg24[%c0_114, %c0_115, %c0_116] : memref<4x1x32xf32, #tpu.memory_space<vmem>>, vector<1x1x32xf32>
    %209 = vector.shape_cast %208 : vector<1x1x32xf32> to vector<1x32xf32>
    %c0_117 = arith.constant 0 : index
    %c0_118 = arith.constant 0 : index
    %c0_119 = arith.constant 0 : index
    %210 = vector.load %arg25[%c0_117, %c0_118, %c0_119] : memref<4x1x32xf32, #tpu.memory_space<vmem>>, vector<1x1x32xf32>
    %211 = vector.shape_cast %210 : vector<1x1x32xf32> to vector<1x32xf32>
    %c0_120 = arith.constant 0 : index
    %c0_121 = arith.constant 0 : index
    %c0_122 = arith.constant 0 : index
    %212 = vector.load %arg26[%c0_120, %c0_121, %c0_122] : memref<4x1x32xf32, #tpu.memory_space<vmem>>, vector<1x1x32xf32>
    %213 = vector.shape_cast %212 : vector<1x1x32xf32> to vector<1x32xf32>
    %c0_123 = arith.constant 0 : index
    %c0_124 = arith.constant 0 : index
    %c0_125 = arith.constant 0 : index
    %214 = vector.load %arg27[%c0_123, %c0_124, %c0_125] : memref<4x32x256xf32, #tpu.memory_space<vmem>>, vector<1x32x256xf32>
    %215 = vector.shape_cast %214 : vector<1x32x256xf32> to vector<32x256xf32>
    %c0_126 = arith.constant 0 : index
    %c0_127 = arith.constant 0 : index
    %c0_128 = arith.constant 0 : index
    %216 = vector.load %arg28[%c0_126, %c0_127, %c0_128] : memref<4x1x256xf32, #tpu.memory_space<vmem>>, vector<1x1x256xf32>
    %217 = vector.shape_cast %216 : vector<1x1x256xf32> to vector<1x256xf32>
    %c0_129 = arith.constant 0 : index
    %c0_130 = arith.constant 0 : index
    %c0_131 = arith.constant 0 : index
    %218 = vector.load %arg29[%c0_129, %c0_130, %c0_131] : memref<4x128x32xf32, #tpu.memory_space<vmem>>, vector<1x128x32xf32>
    %219 = vector.shape_cast %218 : vector<1x128x32xf32> to vector<128x32xf32>
    %c0_132 = arith.constant 0 : index
    %c0_133 = arith.constant 0 : index
    %c0_134 = arith.constant 0 : index
    %220 = vector.load %arg30[%c0_132, %c0_133, %c0_134] : memref<4x1x32xf32, #tpu.memory_space<vmem>>, vector<1x1x32xf32>
    %221 = vector.shape_cast %220 : vector<1x1x32xf32> to vector<1x32xf32>
    %cst_135 = arith.constant dense<0.000000e+00> : vector<8x32xf32>
    %222 = tpu.matmul %199, %201, %cst_135 {dimension_numbers = #tpu.dot_dimension_numbers<[1], [0], [0], [1], [0, 0, 1, 1], [], []>} : vector<8x32xf32>, vector<32x32xf32>, vector<8x32xf32> -> vector<8x32xf32>
    %cst_136 = arith.constant dense<0.000000e+00> : vector<8x32xf32>
    %223 = tpu.matmul %199, %203, %cst_136 {dimension_numbers = #tpu.dot_dimension_numbers<[1], [0], [0], [1], [0, 0, 1, 1], [], []>} : vector<8x32xf32>, vector<32x32xf32>, vector<8x32xf32> -> vector<8x32xf32>
    %cst_137 = arith.constant dense<0.000000e+00> : vector<8x32xf32>
    %224 = tpu.matmul %199, %205, %cst_137 {dimension_numbers = #tpu.dot_dimension_numbers<[1], [0], [0], [1], [0, 0, 1, 1], [], []>} : vector<8x32xf32>, vector<32x32xf32>, vector<8x32xf32> -> vector<8x32xf32>
    %cst_138 = arith.constant dense<0.000000e+00> : vector<8x8xf32>
    %225 = tpu.matmul %222, %223, %cst_138 {dimension_numbers = #tpu.dot_dimension_numbers<[1], [1], [0], [0], [0, 0, 1, 0], [], []>} : vector<8x32xf32>, vector<8x32xf32>, vector<8x8xf32> -> vector<8x8xf32>
    %cst_139 = arith.constant 0.176776692 : f32
    %226 = vector.broadcast %cst_139 : f32 to vector<8x8xf32>
    %227 = arith.mulf %225, %226 : vector<8x8xf32>
    %cst_140 = arith.constant dense<0xFF800000> : vector<8xf32>
    %228 = vector.multi_reduction <maximumf>, %227, %cst_140 [1] : vector<8x8xf32> to vector<8xf32>
    %229 = vector.shape_cast %228 : vector<8xf32> to vector<8x1xf32>
    %230 = vector.broadcast %229 : vector<8x1xf32> to vector<8x8xf32>
    %231 = arith.subf %227, %230 : vector<8x8xf32>
    %232 = math.exp %231 : vector<8x8xf32>
    %cst_141 = arith.constant dense<0.000000e+00> : vector<8xf32>
    %233 = vector.multi_reduction <add>, %232, %cst_141 [1] : vector<8x8xf32> to vector<8xf32>
    %234 = vector.shape_cast %233 : vector<8xf32> to vector<8x1xf32>
    %235 = tpu.reciprocal %234 {approx = true} : vector<8x1xf32> -> vector<8x1xf32>
    %236 = vector.broadcast %235 : vector<8x1xf32> to vector<8x8xf32>
    %237 = arith.mulf %232, %236 : vector<8x8xf32>
    %cst_142 = arith.constant dense<0.000000e+00> : vector<8x32xf32>
    %238 = tpu.matmul %237, %224, %cst_142 {dimension_numbers = #tpu.dot_dimension_numbers<[1], [0], [0], [1], [0, 0, 1, 1], [], []>} : vector<8x8xf32>, vector<8x32xf32>, vector<8x32xf32> -> vector<8x32xf32>
    %cst_143 = arith.constant dense<0.000000e+00> : vector<8x32xf32>
    %239 = tpu.matmul %238, %207, %cst_143 {dimension_numbers = #tpu.dot_dimension_numbers<[1], [0], [0], [1], [0, 0, 1, 1], [], []>} : vector<8x32xf32>, vector<32x32xf32>, vector<8x32xf32> -> vector<8x32xf32>
    %240 = vector.broadcast %209 : vector<1x32xf32> to vector<8x32xf32>
    %241 = arith.addf %239, %240 : vector<8x32xf32>
    %242 = arith.addf %173, %241 : vector<8x32xf32>
    %cst_144 = arith.constant dense<0.000000e+00> : vector<8xf32>
    %243 = vector.multi_reduction <add>, %242, %cst_144 [1] : vector<8x32xf32> to vector<8xf32>
    %244 = vector.shape_cast %243 : vector<8xf32> to vector<8x1xf32>
    %cst_145 = arith.constant 3.200000e+01 : f32
    %245 = vector.broadcast %cst_145 : f32 to vector<8x1xf32>
    %246 = arith.divf %244, %245 : vector<8x1xf32>
    %247 = vector.broadcast %246 : vector<8x1xf32> to vector<8x32xf32>
    %248 = arith.subf %242, %247 : vector<8x32xf32>
    %249 = arith.mulf %248, %248 : vector<8x32xf32>
    %cst_146 = arith.constant dense<0.000000e+00> : vector<8xf32>
    %250 = vector.multi_reduction <add>, %249, %cst_146 [1] : vector<8x32xf32> to vector<8xf32>
    %251 = vector.shape_cast %250 : vector<8xf32> to vector<8x1xf32>
    %cst_147 = arith.constant 3.200000e+01 : f32
    %252 = vector.broadcast %cst_147 : f32 to vector<8x1xf32>
    %253 = arith.divf %251, %252 : vector<8x1xf32>
    %254 = vector.broadcast %246 : vector<8x1xf32> to vector<8x32xf32>
    %255 = arith.subf %242, %254 : vector<8x32xf32>
    %cst_148 = arith.constant 9.99999974E-6 : f32
    %256 = vector.broadcast %cst_148 : f32 to vector<8x1xf32>
    %257 = arith.addf %253, %256 : vector<8x1xf32>
    %258 = math.rsqrt %257 : vector<8x1xf32>
    %259 = vector.broadcast %258 : vector<8x1xf32> to vector<8x32xf32>
    %260 = arith.mulf %255, %259 : vector<8x32xf32>
    %261 = vector.broadcast %211 : vector<1x32xf32> to vector<8x32xf32>
    %262 = arith.mulf %260, %261 : vector<8x32xf32>
    %263 = vector.broadcast %213 : vector<1x32xf32> to vector<8x32xf32>
    %264 = arith.addf %262, %263 : vector<8x32xf32>
    %cst_149 = arith.constant dense<0.000000e+00> : vector<8x256xf32>
    %265 = tpu.matmul %264, %215, %cst_149 {dimension_numbers = #tpu.dot_dimension_numbers<[1], [0], [0], [1], [0, 0, 1, 1], [], []>} : vector<8x32xf32>, vector<32x256xf32>, vector<8x256xf32> -> vector<8x256xf32>
    %266 = vector.broadcast %217 : vector<1x256xf32> to vector<8x256xf32>
    %267 = arith.addf %265, %266 : vector<8x256xf32>
    %268 = vector.extract_strided_slice %267 {offsets = [0, 0], sizes = [8, 128], strides = [1, 1]} : vector<8x256xf32> to vector<8x128xf32>
    %269 = vector.extract_strided_slice %267 {offsets = [0, 128], sizes = [8, 128], strides = [1, 1]} : vector<8x256xf32> to vector<8x128xf32>
    %cst_150 = arith.constant 5.000000e-01 : f32
    %270 = vector.broadcast %cst_150 : f32 to vector<8x128xf32>
    %271 = arith.mulf %270, %269 : vector<8x128xf32>
    %cst_151 = arith.constant 0.707106769 : f32
    %272 = vector.broadcast %cst_151 : f32 to vector<8x128xf32>
    %273 = arith.mulf %269, %272 : vector<8x128xf32>
    %cst_152 = arith.constant 0.000000e+00 : f32
    %274 = vector.broadcast %cst_152 : f32 to vector<8x128xf32>
    %275 = arith.cmpf oge, %273, %274 : vector<8x128xf32>
    %cst_153 = arith.constant 0.000000e+00 : f32
    %276 = vector.broadcast %cst_153 : f32 to vector<8x128xf32>
    %277 = arith.subf %276, %273 : vector<8x128xf32>
    %278 = arith.select %275, %273, %277 : vector<8x128xi1>, vector<8x128xf32>
    %cst_154 = arith.constant 0.327591091 : f32
    %279 = vector.broadcast %cst_154 : f32 to vector<8x128xf32>
    %280 = arith.mulf %279, %278 : vector<8x128xf32>
    %cst_155 = arith.constant 1.000000e+00 : f32
    %281 = vector.broadcast %cst_155 : f32 to vector<8x128xf32>
    %282 = arith.addf %281, %280 : vector<8x128xf32>
    %cst_156 = arith.constant 1.000000e+00 : f32
    %283 = vector.broadcast %cst_156 : f32 to vector<8x128xf32>
    %284 = arith.divf %283, %282 : vector<8x128xf32>
    %cst_157 = arith.constant 1.06140542 : f32
    %285 = vector.broadcast %cst_157 : f32 to vector<8x128xf32>
    %286 = arith.mulf %285, %284 : vector<8x128xf32>
    %cst_158 = arith.constant -1.45315206 : f32
    %287 = vector.broadcast %cst_158 : f32 to vector<8x128xf32>
    %288 = arith.addf %286, %287 : vector<8x128xf32>
    %289 = arith.mulf %288, %284 : vector<8x128xf32>
    %cst_159 = arith.constant 1.42141378 : f32
    %290 = vector.broadcast %cst_159 : f32 to vector<8x128xf32>
    %291 = arith.addf %289, %290 : vector<8x128xf32>
    %292 = arith.mulf %291, %284 : vector<8x128xf32>
    %cst_160 = arith.constant -0.284496725 : f32
    %293 = vector.broadcast %cst_160 : f32 to vector<8x128xf32>
    %294 = arith.addf %292, %293 : vector<8x128xf32>
    %295 = arith.mulf %294, %284 : vector<8x128xf32>
    %cst_161 = arith.constant 0.254829586 : f32
    %296 = vector.broadcast %cst_161 : f32 to vector<8x128xf32>
    %297 = arith.addf %295, %296 : vector<8x128xf32>
    %298 = arith.mulf %297, %284 : vector<8x128xf32>
    %299 = arith.mulf %278, %278 : vector<8x128xf32>
    %cst_162 = arith.constant 0.000000e+00 : f32
    %300 = vector.broadcast %cst_162 : f32 to vector<8x128xf32>
    %301 = arith.subf %300, %299 : vector<8x128xf32>
    %302 = math.exp %301 : vector<8x128xf32>
    %303 = arith.mulf %298, %302 : vector<8x128xf32>
    %cst_163 = arith.constant 1.000000e+00 : f32
    %304 = vector.broadcast %cst_163 : f32 to vector<8x128xf32>
    %305 = arith.subf %304, %303 : vector<8x128xf32>
    %cst_164 = arith.constant 0.000000e+00 : f32
    %306 = vector.broadcast %cst_164 : f32 to vector<8x128xf32>
    %307 = arith.cmpf oge, %273, %306 : vector<8x128xf32>
    %cst_165 = arith.constant 0.000000e+00 : f32
    %308 = vector.broadcast %cst_165 : f32 to vector<8x128xf32>
    %309 = arith.subf %308, %305 : vector<8x128xf32>
    %310 = arith.select %307, %305, %309 : vector<8x128xi1>, vector<8x128xf32>
    %cst_166 = arith.constant 1.000000e+00 : f32
    %311 = vector.broadcast %cst_166 : f32 to vector<8x128xf32>
    %312 = arith.addf %311, %310 : vector<8x128xf32>
    %313 = arith.mulf %271, %312 : vector<8x128xf32>
    %314 = arith.mulf %268, %313 : vector<8x128xf32>
    %cst_167 = arith.constant dense<0.000000e+00> : vector<8x32xf32>
    %315 = tpu.matmul %314, %219, %cst_167 {dimension_numbers = #tpu.dot_dimension_numbers<[1], [0], [0], [1], [0, 0, 1, 1], [], []>} : vector<8x128xf32>, vector<128x32xf32>, vector<8x32xf32> -> vector<8x32xf32>
    %316 = vector.broadcast %221 : vector<1x32xf32> to vector<8x32xf32>
    %317 = arith.addf %315, %316 : vector<8x32xf32>
    %318 = arith.addf %242, %317 : vector<8x32xf32>
    %c1 = arith.constant 1 : index
    %c0_168 = arith.constant 0 : index
    %c0_169 = arith.constant 0 : index
    %319 = vector.load %arg18[%c1, %c0_168, %c0_169] : memref<4x1x32xf32, #tpu.memory_space<vmem>>, vector<1x1x32xf32>
    %320 = vector.shape_cast %319 : vector<1x1x32xf32> to vector<1x32xf32>
    %c1_170 = arith.constant 1 : index
    %c0_171 = arith.constant 0 : index
    %c0_172 = arith.constant 0 : index
    %321 = vector.load %arg19[%c1_170, %c0_171, %c0_172] : memref<4x1x32xf32, #tpu.memory_space<vmem>>, vector<1x1x32xf32>
    %322 = vector.shape_cast %321 : vector<1x1x32xf32> to vector<1x32xf32>
    %cst_173 = arith.constant dense<0.000000e+00> : vector<8xf32>
    %323 = vector.multi_reduction <add>, %318, %cst_173 [1] : vector<8x32xf32> to vector<8xf32>
    %324 = vector.shape_cast %323 : vector<8xf32> to vector<8x1xf32>
    %cst_174 = arith.constant 3.200000e+01 : f32
    %325 = vector.broadcast %cst_174 : f32 to vector<8x1xf32>
    %326 = arith.divf %324, %325 : vector<8x1xf32>
    %327 = vector.broadcast %326 : vector<8x1xf32> to vector<8x32xf32>
    %328 = arith.subf %318, %327 : vector<8x32xf32>
    %329 = arith.mulf %328, %328 : vector<8x32xf32>
    %cst_175 = arith.constant dense<0.000000e+00> : vector<8xf32>
    %330 = vector.multi_reduction <add>, %329, %cst_175 [1] : vector<8x32xf32> to vector<8xf32>
    %331 = vector.shape_cast %330 : vector<8xf32> to vector<8x1xf32>
    %cst_176 = arith.constant 3.200000e+01 : f32
    %332 = vector.broadcast %cst_176 : f32 to vector<8x1xf32>
    %333 = arith.divf %331, %332 : vector<8x1xf32>
    %334 = vector.broadcast %326 : vector<8x1xf32> to vector<8x32xf32>
    %335 = arith.subf %318, %334 : vector<8x32xf32>
    %cst_177 = arith.constant 9.99999974E-6 : f32
    %336 = vector.broadcast %cst_177 : f32 to vector<8x1xf32>
    %337 = arith.addf %333, %336 : vector<8x1xf32>
    %338 = math.rsqrt %337 : vector<8x1xf32>
    %339 = vector.broadcast %338 : vector<8x1xf32> to vector<8x32xf32>
    %340 = arith.mulf %335, %339 : vector<8x32xf32>
    %341 = vector.broadcast %320 : vector<1x32xf32> to vector<8x32xf32>
    %342 = arith.mulf %340, %341 : vector<8x32xf32>
    %343 = vector.broadcast %322 : vector<1x32xf32> to vector<8x32xf32>
    %344 = arith.addf %342, %343 : vector<8x32xf32>
    %c1_178 = arith.constant 1 : index
    %c0_179 = arith.constant 0 : index
    %c0_180 = arith.constant 0 : index
    %345 = vector.load %arg20[%c1_178, %c0_179, %c0_180] : memref<4x32x32xf32, #tpu.memory_space<vmem>>, vector<1x32x32xf32>
    %346 = vector.shape_cast %345 : vector<1x32x32xf32> to vector<32x32xf32>
    %c1_181 = arith.constant 1 : index
    %c0_182 = arith.constant 0 : index
    %c0_183 = arith.constant 0 : index
    %347 = vector.load %arg21[%c1_181, %c0_182, %c0_183] : memref<4x32x32xf32, #tpu.memory_space<vmem>>, vector<1x32x32xf32>
    %348 = vector.shape_cast %347 : vector<1x32x32xf32> to vector<32x32xf32>
    %c1_184 = arith.constant 1 : index
    %c0_185 = arith.constant 0 : index
    %c0_186 = arith.constant 0 : index
    %349 = vector.load %arg22[%c1_184, %c0_185, %c0_186] : memref<4x32x32xf32, #tpu.memory_space<vmem>>, vector<1x32x32xf32>
    %350 = vector.shape_cast %349 : vector<1x32x32xf32> to vector<32x32xf32>
    %c1_187 = arith.constant 1 : index
    %c0_188 = arith.constant 0 : index
    %c0_189 = arith.constant 0 : index
    %351 = vector.load %arg23[%c1_187, %c0_188, %c0_189] : memref<4x32x32xf32, #tpu.memory_space<vmem>>, vector<1x32x32xf32>
    %352 = vector.shape_cast %351 : vector<1x32x32xf32> to vector<32x32xf32>
    %c1_190 = arith.constant 1 : index
    %c0_191 = arith.constant 0 : index
    %c0_192 = arith.constant 0 : index
    %353 = vector.load %arg24[%c1_190, %c0_191, %c0_192] : memref<4x1x32xf32, #tpu.memory_space<vmem>>, vector<1x1x32xf32>
    %354 = vector.shape_cast %353 : vector<1x1x32xf32> to vector<1x32xf32>
    %c1_193 = arith.constant 1 : index
    %c0_194 = arith.constant 0 : index
    %c0_195 = arith.constant 0 : index
    %355 = vector.load %arg25[%c1_193, %c0_194, %c0_195] : memref<4x1x32xf32, #tpu.memory_space<vmem>>, vector<1x1x32xf32>
    %356 = vector.shape_cast %355 : vector<1x1x32xf32> to vector<1x32xf32>
    %c1_196 = arith.constant 1 : index
    %c0_197 = arith.constant 0 : index
    %c0_198 = arith.constant 0 : index
    %357 = vector.load %arg26[%c1_196, %c0_197, %c0_198] : memref<4x1x32xf32, #tpu.memory_space<vmem>>, vector<1x1x32xf32>
    %358 = vector.shape_cast %357 : vector<1x1x32xf32> to vector<1x32xf32>
    %c1_199 = arith.constant 1 : index
    %c0_200 = arith.constant 0 : index
    %c0_201 = arith.constant 0 : index
    %359 = vector.load %arg27[%c1_199, %c0_200, %c0_201] : memref<4x32x256xf32, #tpu.memory_space<vmem>>, vector<1x32x256xf32>
    %360 = vector.shape_cast %359 : vector<1x32x256xf32> to vector<32x256xf32>
    %c1_202 = arith.constant 1 : index
    %c0_203 = arith.constant 0 : index
    %c0_204 = arith.constant 0 : index
    %361 = vector.load %arg28[%c1_202, %c0_203, %c0_204] : memref<4x1x256xf32, #tpu.memory_space<vmem>>, vector<1x1x256xf32>
    %362 = vector.shape_cast %361 : vector<1x1x256xf32> to vector<1x256xf32>
    %c1_205 = arith.constant 1 : index
    %c0_206 = arith.constant 0 : index
    %c0_207 = arith.constant 0 : index
    %363 = vector.load %arg29[%c1_205, %c0_206, %c0_207] : memref<4x128x32xf32, #tpu.memory_space<vmem>>, vector<1x128x32xf32>
    %364 = vector.shape_cast %363 : vector<1x128x32xf32> to vector<128x32xf32>
    %c1_208 = arith.constant 1 : index
    %c0_209 = arith.constant 0 : index
    %c0_210 = arith.constant 0 : index
    %365 = vector.load %arg30[%c1_208, %c0_209, %c0_210] : memref<4x1x32xf32, #tpu.memory_space<vmem>>, vector<1x1x32xf32>
    %366 = vector.shape_cast %365 : vector<1x1x32xf32> to vector<1x32xf32>
    %cst_211 = arith.constant dense<0.000000e+00> : vector<8x32xf32>
    %367 = tpu.matmul %344, %346, %cst_211 {dimension_numbers = #tpu.dot_dimension_numbers<[1], [0], [0], [1], [0, 0, 1, 1], [], []>} : vector<8x32xf32>, vector<32x32xf32>, vector<8x32xf32> -> vector<8x32xf32>
    %cst_212 = arith.constant dense<0.000000e+00> : vector<8x32xf32>
    %368 = tpu.matmul %344, %348, %cst_212 {dimension_numbers = #tpu.dot_dimension_numbers<[1], [0], [0], [1], [0, 0, 1, 1], [], []>} : vector<8x32xf32>, vector<32x32xf32>, vector<8x32xf32> -> vector<8x32xf32>
    %cst_213 = arith.constant dense<0.000000e+00> : vector<8x32xf32>
    %369 = tpu.matmul %344, %350, %cst_213 {dimension_numbers = #tpu.dot_dimension_numbers<[1], [0], [0], [1], [0, 0, 1, 1], [], []>} : vector<8x32xf32>, vector<32x32xf32>, vector<8x32xf32> -> vector<8x32xf32>
    %cst_214 = arith.constant dense<0.000000e+00> : vector<8x8xf32>
    %370 = tpu.matmul %367, %368, %cst_214 {dimension_numbers = #tpu.dot_dimension_numbers<[1], [1], [0], [0], [0, 0, 1, 0], [], []>} : vector<8x32xf32>, vector<8x32xf32>, vector<8x8xf32> -> vector<8x8xf32>
    %cst_215 = arith.constant 0.176776692 : f32
    %371 = vector.broadcast %cst_215 : f32 to vector<8x8xf32>
    %372 = arith.mulf %370, %371 : vector<8x8xf32>
    %cst_216 = arith.constant dense<0xFF800000> : vector<8xf32>
    %373 = vector.multi_reduction <maximumf>, %372, %cst_216 [1] : vector<8x8xf32> to vector<8xf32>
    %374 = vector.shape_cast %373 : vector<8xf32> to vector<8x1xf32>
    %375 = vector.broadcast %374 : vector<8x1xf32> to vector<8x8xf32>
    %376 = arith.subf %372, %375 : vector<8x8xf32>
    %377 = math.exp %376 : vector<8x8xf32>
    %cst_217 = arith.constant dense<0.000000e+00> : vector<8xf32>
    %378 = vector.multi_reduction <add>, %377, %cst_217 [1] : vector<8x8xf32> to vector<8xf32>
    %379 = vector.shape_cast %378 : vector<8xf32> to vector<8x1xf32>
    %380 = tpu.reciprocal %379 {approx = true} : vector<8x1xf32> -> vector<8x1xf32>
    %381 = vector.broadcast %380 : vector<8x1xf32> to vector<8x8xf32>
    %382 = arith.mulf %377, %381 : vector<8x8xf32>
    %cst_218 = arith.constant dense<0.000000e+00> : vector<8x32xf32>
    %383 = tpu.matmul %382, %369, %cst_218 {dimension_numbers = #tpu.dot_dimension_numbers<[1], [0], [0], [1], [0, 0, 1, 1], [], []>} : vector<8x8xf32>, vector<8x32xf32>, vector<8x32xf32> -> vector<8x32xf32>
    %cst_219 = arith.constant dense<0.000000e+00> : vector<8x32xf32>
    %384 = tpu.matmul %383, %352, %cst_219 {dimension_numbers = #tpu.dot_dimension_numbers<[1], [0], [0], [1], [0, 0, 1, 1], [], []>} : vector<8x32xf32>, vector<32x32xf32>, vector<8x32xf32> -> vector<8x32xf32>
    %385 = vector.broadcast %354 : vector<1x32xf32> to vector<8x32xf32>
    %386 = arith.addf %384, %385 : vector<8x32xf32>
    %387 = arith.addf %318, %386 : vector<8x32xf32>
    %cst_220 = arith.constant dense<0.000000e+00> : vector<8xf32>
    %388 = vector.multi_reduction <add>, %387, %cst_220 [1] : vector<8x32xf32> to vector<8xf32>
    %389 = vector.shape_cast %388 : vector<8xf32> to vector<8x1xf32>
    %cst_221 = arith.constant 3.200000e+01 : f32
    %390 = vector.broadcast %cst_221 : f32 to vector<8x1xf32>
    %391 = arith.divf %389, %390 : vector<8x1xf32>
    %392 = vector.broadcast %391 : vector<8x1xf32> to vector<8x32xf32>
    %393 = arith.subf %387, %392 : vector<8x32xf32>
    %394 = arith.mulf %393, %393 : vector<8x32xf32>
    %cst_222 = arith.constant dense<0.000000e+00> : vector<8xf32>
    %395 = vector.multi_reduction <add>, %394, %cst_222 [1] : vector<8x32xf32> to vector<8xf32>
    %396 = vector.shape_cast %395 : vector<8xf32> to vector<8x1xf32>
    %cst_223 = arith.constant 3.200000e+01 : f32
    %397 = vector.broadcast %cst_223 : f32 to vector<8x1xf32>
    %398 = arith.divf %396, %397 : vector<8x1xf32>
    %399 = vector.broadcast %391 : vector<8x1xf32> to vector<8x32xf32>
    %400 = arith.subf %387, %399 : vector<8x32xf32>
    %cst_224 = arith.constant 9.99999974E-6 : f32
    %401 = vector.broadcast %cst_224 : f32 to vector<8x1xf32>
    %402 = arith.addf %398, %401 : vector<8x1xf32>
    %403 = math.rsqrt %402 : vector<8x1xf32>
    %404 = vector.broadcast %403 : vector<8x1xf32> to vector<8x32xf32>
    %405 = arith.mulf %400, %404 : vector<8x32xf32>
    %406 = vector.broadcast %356 : vector<1x32xf32> to vector<8x32xf32>
    %407 = arith.mulf %405, %406 : vector<8x32xf32>
    %408 = vector.broadcast %358 : vector<1x32xf32> to vector<8x32xf32>
    %409 = arith.addf %407, %408 : vector<8x32xf32>
    %cst_225 = arith.constant dense<0.000000e+00> : vector<8x256xf32>
    %410 = tpu.matmul %409, %360, %cst_225 {dimension_numbers = #tpu.dot_dimension_numbers<[1], [0], [0], [1], [0, 0, 1, 1], [], []>} : vector<8x32xf32>, vector<32x256xf32>, vector<8x256xf32> -> vector<8x256xf32>
    %411 = vector.broadcast %362 : vector<1x256xf32> to vector<8x256xf32>
    %412 = arith.addf %410, %411 : vector<8x256xf32>
    %413 = vector.extract_strided_slice %412 {offsets = [0, 0], sizes = [8, 128], strides = [1, 1]} : vector<8x256xf32> to vector<8x128xf32>
    %414 = vector.extract_strided_slice %412 {offsets = [0, 128], sizes = [8, 128], strides = [1, 1]} : vector<8x256xf32> to vector<8x128xf32>
    %cst_226 = arith.constant 5.000000e-01 : f32
    %415 = vector.broadcast %cst_226 : f32 to vector<8x128xf32>
    %416 = arith.mulf %415, %414 : vector<8x128xf32>
    %cst_227 = arith.constant 0.707106769 : f32
    %417 = vector.broadcast %cst_227 : f32 to vector<8x128xf32>
    %418 = arith.mulf %414, %417 : vector<8x128xf32>
    %cst_228 = arith.constant 0.000000e+00 : f32
    %419 = vector.broadcast %cst_228 : f32 to vector<8x128xf32>
    %420 = arith.cmpf oge, %418, %419 : vector<8x128xf32>
    %cst_229 = arith.constant 0.000000e+00 : f32
    %421 = vector.broadcast %cst_229 : f32 to vector<8x128xf32>
    %422 = arith.subf %421, %418 : vector<8x128xf32>
    %423 = arith.select %420, %418, %422 : vector<8x128xi1>, vector<8x128xf32>
    %cst_230 = arith.constant 0.327591091 : f32
    %424 = vector.broadcast %cst_230 : f32 to vector<8x128xf32>
    %425 = arith.mulf %424, %423 : vector<8x128xf32>
    %cst_231 = arith.constant 1.000000e+00 : f32
    %426 = vector.broadcast %cst_231 : f32 to vector<8x128xf32>
    %427 = arith.addf %426, %425 : vector<8x128xf32>
    %cst_232 = arith.constant 1.000000e+00 : f32
    %428 = vector.broadcast %cst_232 : f32 to vector<8x128xf32>
    %429 = arith.divf %428, %427 : vector<8x128xf32>
    %cst_233 = arith.constant 1.06140542 : f32
    %430 = vector.broadcast %cst_233 : f32 to vector<8x128xf32>
    %431 = arith.mulf %430, %429 : vector<8x128xf32>
    %cst_234 = arith.constant -1.45315206 : f32
    %432 = vector.broadcast %cst_234 : f32 to vector<8x128xf32>
    %433 = arith.addf %431, %432 : vector<8x128xf32>
    %434 = arith.mulf %433, %429 : vector<8x128xf32>
    %cst_235 = arith.constant 1.42141378 : f32
    %435 = vector.broadcast %cst_235 : f32 to vector<8x128xf32>
    %436 = arith.addf %434, %435 : vector<8x128xf32>
    %437 = arith.mulf %436, %429 : vector<8x128xf32>
    %cst_236 = arith.constant -0.284496725 : f32
    %438 = vector.broadcast %cst_236 : f32 to vector<8x128xf32>
    %439 = arith.addf %437, %438 : vector<8x128xf32>
    %440 = arith.mulf %439, %429 : vector<8x128xf32>
    %cst_237 = arith.constant 0.254829586 : f32
    %441 = vector.broadcast %cst_237 : f32 to vector<8x128xf32>
    %442 = arith.addf %440, %441 : vector<8x128xf32>
    %443 = arith.mulf %442, %429 : vector<8x128xf32>
    %444 = arith.mulf %423, %423 : vector<8x128xf32>
    %cst_238 = arith.constant 0.000000e+00 : f32
    %445 = vector.broadcast %cst_238 : f32 to vector<8x128xf32>
    %446 = arith.subf %445, %444 : vector<8x128xf32>
    %447 = math.exp %446 : vector<8x128xf32>
    %448 = arith.mulf %443, %447 : vector<8x128xf32>
    %cst_239 = arith.constant 1.000000e+00 : f32
    %449 = vector.broadcast %cst_239 : f32 to vector<8x128xf32>
    %450 = arith.subf %449, %448 : vector<8x128xf32>
    %cst_240 = arith.constant 0.000000e+00 : f32
    %451 = vector.broadcast %cst_240 : f32 to vector<8x128xf32>
    %452 = arith.cmpf oge, %418, %451 : vector<8x128xf32>
    %cst_241 = arith.constant 0.000000e+00 : f32
    %453 = vector.broadcast %cst_241 : f32 to vector<8x128xf32>
    %454 = arith.subf %453, %450 : vector<8x128xf32>
    %455 = arith.select %452, %450, %454 : vector<8x128xi1>, vector<8x128xf32>
    %cst_242 = arith.constant 1.000000e+00 : f32
    %456 = vector.broadcast %cst_242 : f32 to vector<8x128xf32>
    %457 = arith.addf %456, %455 : vector<8x128xf32>
    %458 = arith.mulf %416, %457 : vector<8x128xf32>
    %459 = arith.mulf %413, %458 : vector<8x128xf32>
    %cst_243 = arith.constant dense<0.000000e+00> : vector<8x32xf32>
    %460 = tpu.matmul %459, %364, %cst_243 {dimension_numbers = #tpu.dot_dimension_numbers<[1], [0], [0], [1], [0, 0, 1, 1], [], []>} : vector<8x128xf32>, vector<128x32xf32>, vector<8x32xf32> -> vector<8x32xf32>
    %461 = vector.broadcast %366 : vector<1x32xf32> to vector<8x32xf32>
    %462 = arith.addf %460, %461 : vector<8x32xf32>
    %463 = arith.addf %387, %462 : vector<8x32xf32>
    %c1_244 = arith.constant 1 : index
    %c0_245 = arith.constant 0 : index
    %c0_246 = arith.constant 0 : index
    %464 = vector.load %arg3[%c1_244, %c0_245, %c0_246] : memref<2x1x32xf32, #tpu.memory_space<vmem>>, vector<1x1x32xf32>
    %465 = vector.shape_cast %464 : vector<1x1x32xf32> to vector<1x32xf32>
    %c1_247 = arith.constant 1 : index
    %c0_248 = arith.constant 0 : index
    %c0_249 = arith.constant 0 : index
    %466 = vector.load %arg4[%c1_247, %c0_248, %c0_249] : memref<2x1x32xf32, #tpu.memory_space<vmem>>, vector<1x1x32xf32>
    %467 = vector.shape_cast %466 : vector<1x1x32xf32> to vector<1x32xf32>
    %cst_250 = arith.constant dense<0.000000e+00> : vector<8xf32>
    %468 = vector.multi_reduction <add>, %463, %cst_250 [1] : vector<8x32xf32> to vector<8xf32>
    %469 = vector.shape_cast %468 : vector<8xf32> to vector<8x1xf32>
    %cst_251 = arith.constant 3.200000e+01 : f32
    %470 = vector.broadcast %cst_251 : f32 to vector<8x1xf32>
    %471 = arith.divf %469, %470 : vector<8x1xf32>
    %472 = vector.broadcast %471 : vector<8x1xf32> to vector<8x32xf32>
    %473 = arith.subf %463, %472 : vector<8x32xf32>
    %474 = arith.mulf %473, %473 : vector<8x32xf32>
    %cst_252 = arith.constant dense<0.000000e+00> : vector<8xf32>
    %475 = vector.multi_reduction <add>, %474, %cst_252 [1] : vector<8x32xf32> to vector<8xf32>
    %476 = vector.shape_cast %475 : vector<8xf32> to vector<8x1xf32>
    %cst_253 = arith.constant 3.200000e+01 : f32
    %477 = vector.broadcast %cst_253 : f32 to vector<8x1xf32>
    %478 = arith.divf %476, %477 : vector<8x1xf32>
    %479 = vector.broadcast %471 : vector<8x1xf32> to vector<8x32xf32>
    %480 = arith.subf %463, %479 : vector<8x32xf32>
    %cst_254 = arith.constant 9.99999974E-6 : f32
    %481 = vector.broadcast %cst_254 : f32 to vector<8x1xf32>
    %482 = arith.addf %478, %481 : vector<8x1xf32>
    %483 = math.rsqrt %482 : vector<8x1xf32>
    %484 = vector.broadcast %483 : vector<8x1xf32> to vector<8x32xf32>
    %485 = arith.mulf %480, %484 : vector<8x32xf32>
    %486 = vector.broadcast %465 : vector<1x32xf32> to vector<8x32xf32>
    %487 = arith.mulf %485, %486 : vector<8x32xf32>
    %488 = vector.broadcast %467 : vector<1x32xf32> to vector<8x32xf32>
    %489 = arith.addf %487, %488 : vector<8x32xf32>
    %c1_255 = arith.constant 1 : index
    %c0_256 = arith.constant 0 : index
    %c0_257 = arith.constant 0 : index
    %490 = vector.load %arg5[%c1_255, %c0_256, %c0_257] : memref<2x1x4xf32, #tpu.memory_space<vmem>>, vector<1x1x4xf32>
    %491 = vector.shape_cast %490 : vector<1x1x4xf32> to vector<1x4xf32>
    %c1_258 = arith.constant 1 : index
    %c0_259 = arith.constant 0 : index
    %c0_260 = arith.constant 0 : index
    %492 = vector.load %arg6[%c1_258, %c0_259, %c0_260] : memref<2x1x4xf32, #tpu.memory_space<vmem>>, vector<1x1x4xf32>
    %493 = vector.shape_cast %492 : vector<1x1x4xf32> to vector<1x4xf32>
    %cst_261 = arith.constant dense<0.000000e+00> : vector<256xf32>
    %494 = vector.multi_reduction <add>, %1, %cst_261 [1] : vector<256x4xf32> to vector<256xf32>
    %495 = vector.shape_cast %494 : vector<256xf32> to vector<256x1xf32>
    %cst_262 = arith.constant 4.000000e+00 : f32
    %496 = vector.broadcast %cst_262 : f32 to vector<256x1xf32>
    %497 = arith.divf %495, %496 : vector<256x1xf32>
    %498 = vector.broadcast %497 : vector<256x1xf32> to vector<256x4xf32>
    %499 = arith.subf %1, %498 : vector<256x4xf32>
    %500 = arith.mulf %499, %499 : vector<256x4xf32>
    %cst_263 = arith.constant dense<0.000000e+00> : vector<256xf32>
    %501 = vector.multi_reduction <add>, %500, %cst_263 [1] : vector<256x4xf32> to vector<256xf32>
    %502 = vector.shape_cast %501 : vector<256xf32> to vector<256x1xf32>
    %cst_264 = arith.constant 4.000000e+00 : f32
    %503 = vector.broadcast %cst_264 : f32 to vector<256x1xf32>
    %504 = arith.divf %502, %503 : vector<256x1xf32>
    %505 = vector.broadcast %497 : vector<256x1xf32> to vector<256x4xf32>
    %506 = arith.subf %1, %505 : vector<256x4xf32>
    %cst_265 = arith.constant 9.99999974E-6 : f32
    %507 = vector.broadcast %cst_265 : f32 to vector<256x1xf32>
    %508 = arith.addf %504, %507 : vector<256x1xf32>
    %509 = math.rsqrt %508 : vector<256x1xf32>
    %510 = vector.broadcast %509 : vector<256x1xf32> to vector<256x4xf32>
    %511 = arith.mulf %506, %510 : vector<256x4xf32>
    %512 = vector.broadcast %491 : vector<1x4xf32> to vector<256x4xf32>
    %513 = arith.mulf %511, %512 : vector<256x4xf32>
    %514 = vector.broadcast %493 : vector<1x4xf32> to vector<256x4xf32>
    %515 = arith.addf %513, %514 : vector<256x4xf32>
    %c1_266 = arith.constant 1 : index
    %c0_267 = arith.constant 0 : index
    %c0_268 = arith.constant 0 : index
    %516 = vector.load %arg7[%c1_266, %c0_267, %c0_268] : memref<2x32x32xf32, #tpu.memory_space<vmem>>, vector<1x32x32xf32>
    %517 = vector.shape_cast %516 : vector<1x32x32xf32> to vector<32x32xf32>
    %c1_269 = arith.constant 1 : index
    %c0_270 = arith.constant 0 : index
    %c0_271 = arith.constant 0 : index
    %518 = vector.load %arg8[%c1_269, %c0_270, %c0_271] : memref<2x4x32xf32, #tpu.memory_space<vmem>>, vector<1x4x32xf32>
    %519 = vector.shape_cast %518 : vector<1x4x32xf32> to vector<4x32xf32>
    %c1_272 = arith.constant 1 : index
    %c0_273 = arith.constant 0 : index
    %c0_274 = arith.constant 0 : index
    %520 = vector.load %arg9[%c1_272, %c0_273, %c0_274] : memref<2x4x32xf32, #tpu.memory_space<vmem>>, vector<1x4x32xf32>
    %521 = vector.shape_cast %520 : vector<1x4x32xf32> to vector<4x32xf32>
    %c1_275 = arith.constant 1 : index
    %c0_276 = arith.constant 0 : index
    %c0_277 = arith.constant 0 : index
    %522 = vector.load %arg10[%c1_275, %c0_276, %c0_277] : memref<2x32x32xf32, #tpu.memory_space<vmem>>, vector<1x32x32xf32>
    %523 = vector.shape_cast %522 : vector<1x32x32xf32> to vector<32x32xf32>
    %c1_278 = arith.constant 1 : index
    %c0_279 = arith.constant 0 : index
    %c0_280 = arith.constant 0 : index
    %524 = vector.load %arg11[%c1_278, %c0_279, %c0_280] : memref<2x1x32xf32, #tpu.memory_space<vmem>>, vector<1x1x32xf32>
    %525 = vector.shape_cast %524 : vector<1x1x32xf32> to vector<1x32xf32>
    %c1_281 = arith.constant 1 : index
    %c0_282 = arith.constant 0 : index
    %c0_283 = arith.constant 0 : index
    %526 = vector.load %arg12[%c1_281, %c0_282, %c0_283] : memref<2x1x32xf32, #tpu.memory_space<vmem>>, vector<1x1x32xf32>
    %527 = vector.shape_cast %526 : vector<1x1x32xf32> to vector<1x32xf32>
    %c1_284 = arith.constant 1 : index
    %c0_285 = arith.constant 0 : index
    %c0_286 = arith.constant 0 : index
    %528 = vector.load %arg13[%c1_284, %c0_285, %c0_286] : memref<2x1x32xf32, #tpu.memory_space<vmem>>, vector<1x1x32xf32>
    %529 = vector.shape_cast %528 : vector<1x1x32xf32> to vector<1x32xf32>
    %c1_287 = arith.constant 1 : index
    %c0_288 = arith.constant 0 : index
    %c0_289 = arith.constant 0 : index
    %530 = vector.load %arg14[%c1_287, %c0_288, %c0_289] : memref<2x32x256xf32, #tpu.memory_space<vmem>>, vector<1x32x256xf32>
    %531 = vector.shape_cast %530 : vector<1x32x256xf32> to vector<32x256xf32>
    %c1_290 = arith.constant 1 : index
    %c0_291 = arith.constant 0 : index
    %c0_292 = arith.constant 0 : index
    %532 = vector.load %arg15[%c1_290, %c0_291, %c0_292] : memref<2x1x256xf32, #tpu.memory_space<vmem>>, vector<1x1x256xf32>
    %533 = vector.shape_cast %532 : vector<1x1x256xf32> to vector<1x256xf32>
    %c1_293 = arith.constant 1 : index
    %c0_294 = arith.constant 0 : index
    %c0_295 = arith.constant 0 : index
    %534 = vector.load %arg16[%c1_293, %c0_294, %c0_295] : memref<2x128x32xf32, #tpu.memory_space<vmem>>, vector<1x128x32xf32>
    %535 = vector.shape_cast %534 : vector<1x128x32xf32> to vector<128x32xf32>
    %c1_296 = arith.constant 1 : index
    %c0_297 = arith.constant 0 : index
    %c0_298 = arith.constant 0 : index
    %536 = vector.load %arg17[%c1_296, %c0_297, %c0_298] : memref<2x1x32xf32, #tpu.memory_space<vmem>>, vector<1x1x32xf32>
    %537 = vector.shape_cast %536 : vector<1x1x32xf32> to vector<1x32xf32>
    %cst_299 = arith.constant dense<0.000000e+00> : vector<8x32xf32>
    %538 = tpu.matmul %489, %517, %cst_299 {dimension_numbers = #tpu.dot_dimension_numbers<[1], [0], [0], [1], [0, 0, 1, 1], [], []>} : vector<8x32xf32>, vector<32x32xf32>, vector<8x32xf32> -> vector<8x32xf32>
    %cst_300 = arith.constant dense<0.000000e+00> : vector<256x32xf32>
    %539 = tpu.matmul %515, %519, %cst_300 {dimension_numbers = #tpu.dot_dimension_numbers<[1], [0], [0], [1], [0, 0, 1, 1], [], []>} : vector<256x4xf32>, vector<4x32xf32>, vector<256x32xf32> -> vector<256x32xf32>
    %cst_301 = arith.constant dense<0.000000e+00> : vector<256x32xf32>
    %540 = tpu.matmul %515, %521, %cst_301 {dimension_numbers = #tpu.dot_dimension_numbers<[1], [0], [0], [1], [0, 0, 1, 1], [], []>} : vector<256x4xf32>, vector<4x32xf32>, vector<256x32xf32> -> vector<256x32xf32>
    %cst_302 = arith.constant dense<0.000000e+00> : vector<8x256xf32>
    %541 = tpu.matmul %538, %539, %cst_302 {dimension_numbers = #tpu.dot_dimension_numbers<[1], [1], [0], [0], [0, 0, 1, 0], [], []>} : vector<8x32xf32>, vector<256x32xf32>, vector<8x256xf32> -> vector<8x256xf32>
    %cst_303 = arith.constant 0.176776692 : f32
    %542 = vector.broadcast %cst_303 : f32 to vector<8x256xf32>
    %543 = arith.mulf %541, %542 : vector<8x256xf32>
    %cst_304 = arith.constant dense<0xFF800000> : vector<8xf32>
    %544 = vector.multi_reduction <maximumf>, %543, %cst_304 [1] : vector<8x256xf32> to vector<8xf32>
    %545 = vector.shape_cast %544 : vector<8xf32> to vector<8x1xf32>
    %546 = vector.broadcast %545 : vector<8x1xf32> to vector<8x256xf32>
    %547 = arith.subf %543, %546 : vector<8x256xf32>
    %548 = math.exp %547 : vector<8x256xf32>
    %cst_305 = arith.constant dense<0.000000e+00> : vector<8xf32>
    %549 = vector.multi_reduction <add>, %548, %cst_305 [1] : vector<8x256xf32> to vector<8xf32>
    %550 = vector.shape_cast %549 : vector<8xf32> to vector<8x1xf32>
    %551 = tpu.reciprocal %550 {approx = true} : vector<8x1xf32> -> vector<8x1xf32>
    %552 = vector.broadcast %551 : vector<8x1xf32> to vector<8x256xf32>
    %553 = arith.mulf %548, %552 : vector<8x256xf32>
    %cst_306 = arith.constant dense<0.000000e+00> : vector<8x32xf32>
    %554 = tpu.matmul %553, %540, %cst_306 {dimension_numbers = #tpu.dot_dimension_numbers<[1], [0], [0], [1], [0, 0, 1, 1], [], []>} : vector<8x256xf32>, vector<256x32xf32>, vector<8x32xf32> -> vector<8x32xf32>
    %cst_307 = arith.constant dense<0.000000e+00> : vector<8x32xf32>
    %555 = tpu.matmul %554, %523, %cst_307 {dimension_numbers = #tpu.dot_dimension_numbers<[1], [0], [0], [1], [0, 0, 1, 1], [], []>} : vector<8x32xf32>, vector<32x32xf32>, vector<8x32xf32> -> vector<8x32xf32>
    %556 = vector.broadcast %525 : vector<1x32xf32> to vector<8x32xf32>
    %557 = arith.addf %555, %556 : vector<8x32xf32>
    %558 = arith.addf %463, %557 : vector<8x32xf32>
    %cst_308 = arith.constant dense<0.000000e+00> : vector<8xf32>
    %559 = vector.multi_reduction <add>, %558, %cst_308 [1] : vector<8x32xf32> to vector<8xf32>
    %560 = vector.shape_cast %559 : vector<8xf32> to vector<8x1xf32>
    %cst_309 = arith.constant 3.200000e+01 : f32
    %561 = vector.broadcast %cst_309 : f32 to vector<8x1xf32>
    %562 = arith.divf %560, %561 : vector<8x1xf32>
    %563 = vector.broadcast %562 : vector<8x1xf32> to vector<8x32xf32>
    %564 = arith.subf %558, %563 : vector<8x32xf32>
    %565 = arith.mulf %564, %564 : vector<8x32xf32>
    %cst_310 = arith.constant dense<0.000000e+00> : vector<8xf32>
    %566 = vector.multi_reduction <add>, %565, %cst_310 [1] : vector<8x32xf32> to vector<8xf32>
    %567 = vector.shape_cast %566 : vector<8xf32> to vector<8x1xf32>
    %cst_311 = arith.constant 3.200000e+01 : f32
    %568 = vector.broadcast %cst_311 : f32 to vector<8x1xf32>
    %569 = arith.divf %567, %568 : vector<8x1xf32>
    %570 = vector.broadcast %562 : vector<8x1xf32> to vector<8x32xf32>
    %571 = arith.subf %558, %570 : vector<8x32xf32>
    %cst_312 = arith.constant 9.99999974E-6 : f32
    %572 = vector.broadcast %cst_312 : f32 to vector<8x1xf32>
    %573 = arith.addf %569, %572 : vector<8x1xf32>
    %574 = math.rsqrt %573 : vector<8x1xf32>
    %575 = vector.broadcast %574 : vector<8x1xf32> to vector<8x32xf32>
    %576 = arith.mulf %571, %575 : vector<8x32xf32>
    %577 = vector.broadcast %527 : vector<1x32xf32> to vector<8x32xf32>
    %578 = arith.mulf %576, %577 : vector<8x32xf32>
    %579 = vector.broadcast %529 : vector<1x32xf32> to vector<8x32xf32>
    %580 = arith.addf %578, %579 : vector<8x32xf32>
    %cst_313 = arith.constant dense<0.000000e+00> : vector<8x256xf32>
    %581 = tpu.matmul %580, %531, %cst_313 {dimension_numbers = #tpu.dot_dimension_numbers<[1], [0], [0], [1], [0, 0, 1, 1], [], []>} : vector<8x32xf32>, vector<32x256xf32>, vector<8x256xf32> -> vector<8x256xf32>
    %582 = vector.broadcast %533 : vector<1x256xf32> to vector<8x256xf32>
    %583 = arith.addf %581, %582 : vector<8x256xf32>
    %584 = vector.extract_strided_slice %583 {offsets = [0, 0], sizes = [8, 128], strides = [1, 1]} : vector<8x256xf32> to vector<8x128xf32>
    %585 = vector.extract_strided_slice %583 {offsets = [0, 128], sizes = [8, 128], strides = [1, 1]} : vector<8x256xf32> to vector<8x128xf32>
    %cst_314 = arith.constant 5.000000e-01 : f32
    %586 = vector.broadcast %cst_314 : f32 to vector<8x128xf32>
    %587 = arith.mulf %586, %585 : vector<8x128xf32>
    %cst_315 = arith.constant 0.707106769 : f32
    %588 = vector.broadcast %cst_315 : f32 to vector<8x128xf32>
    %589 = arith.mulf %585, %588 : vector<8x128xf32>
    %cst_316 = arith.constant 0.000000e+00 : f32
    %590 = vector.broadcast %cst_316 : f32 to vector<8x128xf32>
    %591 = arith.cmpf oge, %589, %590 : vector<8x128xf32>
    %cst_317 = arith.constant 0.000000e+00 : f32
    %592 = vector.broadcast %cst_317 : f32 to vector<8x128xf32>
    %593 = arith.subf %592, %589 : vector<8x128xf32>
    %594 = arith.select %591, %589, %593 : vector<8x128xi1>, vector<8x128xf32>
    %cst_318 = arith.constant 0.327591091 : f32
    %595 = vector.broadcast %cst_318 : f32 to vector<8x128xf32>
    %596 = arith.mulf %595, %594 : vector<8x128xf32>
    %cst_319 = arith.constant 1.000000e+00 : f32
    %597 = vector.broadcast %cst_319 : f32 to vector<8x128xf32>
    %598 = arith.addf %597, %596 : vector<8x128xf32>
    %cst_320 = arith.constant 1.000000e+00 : f32
    %599 = vector.broadcast %cst_320 : f32 to vector<8x128xf32>
    %600 = arith.divf %599, %598 : vector<8x128xf32>
    %cst_321 = arith.constant 1.06140542 : f32
    %601 = vector.broadcast %cst_321 : f32 to vector<8x128xf32>
    %602 = arith.mulf %601, %600 : vector<8x128xf32>
    %cst_322 = arith.constant -1.45315206 : f32
    %603 = vector.broadcast %cst_322 : f32 to vector<8x128xf32>
    %604 = arith.addf %602, %603 : vector<8x128xf32>
    %605 = arith.mulf %604, %600 : vector<8x128xf32>
    %cst_323 = arith.constant 1.42141378 : f32
    %606 = vector.broadcast %cst_323 : f32 to vector<8x128xf32>
    %607 = arith.addf %605, %606 : vector<8x128xf32>
    %608 = arith.mulf %607, %600 : vector<8x128xf32>
    %cst_324 = arith.constant -0.284496725 : f32
    %609 = vector.broadcast %cst_324 : f32 to vector<8x128xf32>
    %610 = arith.addf %608, %609 : vector<8x128xf32>
    %611 = arith.mulf %610, %600 : vector<8x128xf32>
    %cst_325 = arith.constant 0.254829586 : f32
    %612 = vector.broadcast %cst_325 : f32 to vector<8x128xf32>
    %613 = arith.addf %611, %612 : vector<8x128xf32>
    %614 = arith.mulf %613, %600 : vector<8x128xf32>
    %615 = arith.mulf %594, %594 : vector<8x128xf32>
    %cst_326 = arith.constant 0.000000e+00 : f32
    %616 = vector.broadcast %cst_326 : f32 to vector<8x128xf32>
    %617 = arith.subf %616, %615 : vector<8x128xf32>
    %618 = math.exp %617 : vector<8x128xf32>
    %619 = arith.mulf %614, %618 : vector<8x128xf32>
    %cst_327 = arith.constant 1.000000e+00 : f32
    %620 = vector.broadcast %cst_327 : f32 to vector<8x128xf32>
    %621 = arith.subf %620, %619 : vector<8x128xf32>
    %cst_328 = arith.constant 0.000000e+00 : f32
    %622 = vector.broadcast %cst_328 : f32 to vector<8x128xf32>
    %623 = arith.cmpf oge, %589, %622 : vector<8x128xf32>
    %cst_329 = arith.constant 0.000000e+00 : f32
    %624 = vector.broadcast %cst_329 : f32 to vector<8x128xf32>
    %625 = arith.subf %624, %621 : vector<8x128xf32>
    %626 = arith.select %623, %621, %625 : vector<8x128xi1>, vector<8x128xf32>
    %cst_330 = arith.constant 1.000000e+00 : f32
    %627 = vector.broadcast %cst_330 : f32 to vector<8x128xf32>
    %628 = arith.addf %627, %626 : vector<8x128xf32>
    %629 = arith.mulf %587, %628 : vector<8x128xf32>
    %630 = arith.mulf %584, %629 : vector<8x128xf32>
    %cst_331 = arith.constant dense<0.000000e+00> : vector<8x32xf32>
    %631 = tpu.matmul %630, %535, %cst_331 {dimension_numbers = #tpu.dot_dimension_numbers<[1], [0], [0], [1], [0, 0, 1, 1], [], []>} : vector<8x128xf32>, vector<128x32xf32>, vector<8x32xf32> -> vector<8x32xf32>
    %632 = vector.broadcast %537 : vector<1x32xf32> to vector<8x32xf32>
    %633 = arith.addf %631, %632 : vector<8x32xf32>
    %634 = arith.addf %558, %633 : vector<8x32xf32>
    %c2 = arith.constant 2 : index
    %c0_332 = arith.constant 0 : index
    %c0_333 = arith.constant 0 : index
    %635 = vector.load %arg18[%c2, %c0_332, %c0_333] : memref<4x1x32xf32, #tpu.memory_space<vmem>>, vector<1x1x32xf32>
    %636 = vector.shape_cast %635 : vector<1x1x32xf32> to vector<1x32xf32>
    %c2_334 = arith.constant 2 : index
    %c0_335 = arith.constant 0 : index
    %c0_336 = arith.constant 0 : index
    %637 = vector.load %arg19[%c2_334, %c0_335, %c0_336] : memref<4x1x32xf32, #tpu.memory_space<vmem>>, vector<1x1x32xf32>
    %638 = vector.shape_cast %637 : vector<1x1x32xf32> to vector<1x32xf32>
    %cst_337 = arith.constant dense<0.000000e+00> : vector<8xf32>
    %639 = vector.multi_reduction <add>, %634, %cst_337 [1] : vector<8x32xf32> to vector<8xf32>
    %640 = vector.shape_cast %639 : vector<8xf32> to vector<8x1xf32>
    %cst_338 = arith.constant 3.200000e+01 : f32
    %641 = vector.broadcast %cst_338 : f32 to vector<8x1xf32>
    %642 = arith.divf %640, %641 : vector<8x1xf32>
    %643 = vector.broadcast %642 : vector<8x1xf32> to vector<8x32xf32>
    %644 = arith.subf %634, %643 : vector<8x32xf32>
    %645 = arith.mulf %644, %644 : vector<8x32xf32>
    %cst_339 = arith.constant dense<0.000000e+00> : vector<8xf32>
    %646 = vector.multi_reduction <add>, %645, %cst_339 [1] : vector<8x32xf32> to vector<8xf32>
    %647 = vector.shape_cast %646 : vector<8xf32> to vector<8x1xf32>
    %cst_340 = arith.constant 3.200000e+01 : f32
    %648 = vector.broadcast %cst_340 : f32 to vector<8x1xf32>
    %649 = arith.divf %647, %648 : vector<8x1xf32>
    %650 = vector.broadcast %642 : vector<8x1xf32> to vector<8x32xf32>
    %651 = arith.subf %634, %650 : vector<8x32xf32>
    %cst_341 = arith.constant 9.99999974E-6 : f32
    %652 = vector.broadcast %cst_341 : f32 to vector<8x1xf32>
    %653 = arith.addf %649, %652 : vector<8x1xf32>
    %654 = math.rsqrt %653 : vector<8x1xf32>
    %655 = vector.broadcast %654 : vector<8x1xf32> to vector<8x32xf32>
    %656 = arith.mulf %651, %655 : vector<8x32xf32>
    %657 = vector.broadcast %636 : vector<1x32xf32> to vector<8x32xf32>
    %658 = arith.mulf %656, %657 : vector<8x32xf32>
    %659 = vector.broadcast %638 : vector<1x32xf32> to vector<8x32xf32>
    %660 = arith.addf %658, %659 : vector<8x32xf32>
    %c2_342 = arith.constant 2 : index
    %c0_343 = arith.constant 0 : index
    %c0_344 = arith.constant 0 : index
    %661 = vector.load %arg20[%c2_342, %c0_343, %c0_344] : memref<4x32x32xf32, #tpu.memory_space<vmem>>, vector<1x32x32xf32>
    %662 = vector.shape_cast %661 : vector<1x32x32xf32> to vector<32x32xf32>
    %c2_345 = arith.constant 2 : index
    %c0_346 = arith.constant 0 : index
    %c0_347 = arith.constant 0 : index
    %663 = vector.load %arg21[%c2_345, %c0_346, %c0_347] : memref<4x32x32xf32, #tpu.memory_space<vmem>>, vector<1x32x32xf32>
    %664 = vector.shape_cast %663 : vector<1x32x32xf32> to vector<32x32xf32>
    %c2_348 = arith.constant 2 : index
    %c0_349 = arith.constant 0 : index
    %c0_350 = arith.constant 0 : index
    %665 = vector.load %arg22[%c2_348, %c0_349, %c0_350] : memref<4x32x32xf32, #tpu.memory_space<vmem>>, vector<1x32x32xf32>
    %666 = vector.shape_cast %665 : vector<1x32x32xf32> to vector<32x32xf32>
    %c2_351 = arith.constant 2 : index
    %c0_352 = arith.constant 0 : index
    %c0_353 = arith.constant 0 : index
    %667 = vector.load %arg23[%c2_351, %c0_352, %c0_353] : memref<4x32x32xf32, #tpu.memory_space<vmem>>, vector<1x32x32xf32>
    %668 = vector.shape_cast %667 : vector<1x32x32xf32> to vector<32x32xf32>
    %c2_354 = arith.constant 2 : index
    %c0_355 = arith.constant 0 : index
    %c0_356 = arith.constant 0 : index
    %669 = vector.load %arg24[%c2_354, %c0_355, %c0_356] : memref<4x1x32xf32, #tpu.memory_space<vmem>>, vector<1x1x32xf32>
    %670 = vector.shape_cast %669 : vector<1x1x32xf32> to vector<1x32xf32>
    %c2_357 = arith.constant 2 : index
    %c0_358 = arith.constant 0 : index
    %c0_359 = arith.constant 0 : index
    %671 = vector.load %arg25[%c2_357, %c0_358, %c0_359] : memref<4x1x32xf32, #tpu.memory_space<vmem>>, vector<1x1x32xf32>
    %672 = vector.shape_cast %671 : vector<1x1x32xf32> to vector<1x32xf32>
    %c2_360 = arith.constant 2 : index
    %c0_361 = arith.constant 0 : index
    %c0_362 = arith.constant 0 : index
    %673 = vector.load %arg26[%c2_360, %c0_361, %c0_362] : memref<4x1x32xf32, #tpu.memory_space<vmem>>, vector<1x1x32xf32>
    %674 = vector.shape_cast %673 : vector<1x1x32xf32> to vector<1x32xf32>
    %c2_363 = arith.constant 2 : index
    %c0_364 = arith.constant 0 : index
    %c0_365 = arith.constant 0 : index
    %675 = vector.load %arg27[%c2_363, %c0_364, %c0_365] : memref<4x32x256xf32, #tpu.memory_space<vmem>>, vector<1x32x256xf32>
    %676 = vector.shape_cast %675 : vector<1x32x256xf32> to vector<32x256xf32>
    %c2_366 = arith.constant 2 : index
    %c0_367 = arith.constant 0 : index
    %c0_368 = arith.constant 0 : index
    %677 = vector.load %arg28[%c2_366, %c0_367, %c0_368] : memref<4x1x256xf32, #tpu.memory_space<vmem>>, vector<1x1x256xf32>
    %678 = vector.shape_cast %677 : vector<1x1x256xf32> to vector<1x256xf32>
    %c2_369 = arith.constant 2 : index
    %c0_370 = arith.constant 0 : index
    %c0_371 = arith.constant 0 : index
    %679 = vector.load %arg29[%c2_369, %c0_370, %c0_371] : memref<4x128x32xf32, #tpu.memory_space<vmem>>, vector<1x128x32xf32>
    %680 = vector.shape_cast %679 : vector<1x128x32xf32> to vector<128x32xf32>
    %c2_372 = arith.constant 2 : index
    %c0_373 = arith.constant 0 : index
    %c0_374 = arith.constant 0 : index
    %681 = vector.load %arg30[%c2_372, %c0_373, %c0_374] : memref<4x1x32xf32, #tpu.memory_space<vmem>>, vector<1x1x32xf32>
    %682 = vector.shape_cast %681 : vector<1x1x32xf32> to vector<1x32xf32>
    %cst_375 = arith.constant dense<0.000000e+00> : vector<8x32xf32>
    %683 = tpu.matmul %660, %662, %cst_375 {dimension_numbers = #tpu.dot_dimension_numbers<[1], [0], [0], [1], [0, 0, 1, 1], [], []>} : vector<8x32xf32>, vector<32x32xf32>, vector<8x32xf32> -> vector<8x32xf32>
    %cst_376 = arith.constant dense<0.000000e+00> : vector<8x32xf32>
    %684 = tpu.matmul %660, %664, %cst_376 {dimension_numbers = #tpu.dot_dimension_numbers<[1], [0], [0], [1], [0, 0, 1, 1], [], []>} : vector<8x32xf32>, vector<32x32xf32>, vector<8x32xf32> -> vector<8x32xf32>
    %cst_377 = arith.constant dense<0.000000e+00> : vector<8x32xf32>
    %685 = tpu.matmul %660, %666, %cst_377 {dimension_numbers = #tpu.dot_dimension_numbers<[1], [0], [0], [1], [0, 0, 1, 1], [], []>} : vector<8x32xf32>, vector<32x32xf32>, vector<8x32xf32> -> vector<8x32xf32>
    %cst_378 = arith.constant dense<0.000000e+00> : vector<8x8xf32>
    %686 = tpu.matmul %683, %684, %cst_378 {dimension_numbers = #tpu.dot_dimension_numbers<[1], [1], [0], [0], [0, 0, 1, 0], [], []>} : vector<8x32xf32>, vector<8x32xf32>, vector<8x8xf32> -> vector<8x8xf32>
    %cst_379 = arith.constant 0.176776692 : f32
    %687 = vector.broadcast %cst_379 : f32 to vector<8x8xf32>
    %688 = arith.mulf %686, %687 : vector<8x8xf32>
    %cst_380 = arith.constant dense<0xFF800000> : vector<8xf32>
    %689 = vector.multi_reduction <maximumf>, %688, %cst_380 [1] : vector<8x8xf32> to vector<8xf32>
    %690 = vector.shape_cast %689 : vector<8xf32> to vector<8x1xf32>
    %691 = vector.broadcast %690 : vector<8x1xf32> to vector<8x8xf32>
    %692 = arith.subf %688, %691 : vector<8x8xf32>
    %693 = math.exp %692 : vector<8x8xf32>
    %cst_381 = arith.constant dense<0.000000e+00> : vector<8xf32>
    %694 = vector.multi_reduction <add>, %693, %cst_381 [1] : vector<8x8xf32> to vector<8xf32>
    %695 = vector.shape_cast %694 : vector<8xf32> to vector<8x1xf32>
    %696 = tpu.reciprocal %695 {approx = true} : vector<8x1xf32> -> vector<8x1xf32>
    %697 = vector.broadcast %696 : vector<8x1xf32> to vector<8x8xf32>
    %698 = arith.mulf %693, %697 : vector<8x8xf32>
    %cst_382 = arith.constant dense<0.000000e+00> : vector<8x32xf32>
    %699 = tpu.matmul %698, %685, %cst_382 {dimension_numbers = #tpu.dot_dimension_numbers<[1], [0], [0], [1], [0, 0, 1, 1], [], []>} : vector<8x8xf32>, vector<8x32xf32>, vector<8x32xf32> -> vector<8x32xf32>
    %cst_383 = arith.constant dense<0.000000e+00> : vector<8x32xf32>
    %700 = tpu.matmul %699, %668, %cst_383 {dimension_numbers = #tpu.dot_dimension_numbers<[1], [0], [0], [1], [0, 0, 1, 1], [], []>} : vector<8x32xf32>, vector<32x32xf32>, vector<8x32xf32> -> vector<8x32xf32>
    %701 = vector.broadcast %670 : vector<1x32xf32> to vector<8x32xf32>
    %702 = arith.addf %700, %701 : vector<8x32xf32>
    %703 = arith.addf %634, %702 : vector<8x32xf32>
    %cst_384 = arith.constant dense<0.000000e+00> : vector<8xf32>
    %704 = vector.multi_reduction <add>, %703, %cst_384 [1] : vector<8x32xf32> to vector<8xf32>
    %705 = vector.shape_cast %704 : vector<8xf32> to vector<8x1xf32>
    %cst_385 = arith.constant 3.200000e+01 : f32
    %706 = vector.broadcast %cst_385 : f32 to vector<8x1xf32>
    %707 = arith.divf %705, %706 : vector<8x1xf32>
    %708 = vector.broadcast %707 : vector<8x1xf32> to vector<8x32xf32>
    %709 = arith.subf %703, %708 : vector<8x32xf32>
    %710 = arith.mulf %709, %709 : vector<8x32xf32>
    %cst_386 = arith.constant dense<0.000000e+00> : vector<8xf32>
    %711 = vector.multi_reduction <add>, %710, %cst_386 [1] : vector<8x32xf32> to vector<8xf32>
    %712 = vector.shape_cast %711 : vector<8xf32> to vector<8x1xf32>
    %cst_387 = arith.constant 3.200000e+01 : f32
    %713 = vector.broadcast %cst_387 : f32 to vector<8x1xf32>
    %714 = arith.divf %712, %713 : vector<8x1xf32>
    %715 = vector.broadcast %707 : vector<8x1xf32> to vector<8x32xf32>
    %716 = arith.subf %703, %715 : vector<8x32xf32>
    %cst_388 = arith.constant 9.99999974E-6 : f32
    %717 = vector.broadcast %cst_388 : f32 to vector<8x1xf32>
    %718 = arith.addf %714, %717 : vector<8x1xf32>
    %719 = math.rsqrt %718 : vector<8x1xf32>
    %720 = vector.broadcast %719 : vector<8x1xf32> to vector<8x32xf32>
    %721 = arith.mulf %716, %720 : vector<8x32xf32>
    %722 = vector.broadcast %672 : vector<1x32xf32> to vector<8x32xf32>
    %723 = arith.mulf %721, %722 : vector<8x32xf32>
    %724 = vector.broadcast %674 : vector<1x32xf32> to vector<8x32xf32>
    %725 = arith.addf %723, %724 : vector<8x32xf32>
    %cst_389 = arith.constant dense<0.000000e+00> : vector<8x256xf32>
    %726 = tpu.matmul %725, %676, %cst_389 {dimension_numbers = #tpu.dot_dimension_numbers<[1], [0], [0], [1], [0, 0, 1, 1], [], []>} : vector<8x32xf32>, vector<32x256xf32>, vector<8x256xf32> -> vector<8x256xf32>
    %727 = vector.broadcast %678 : vector<1x256xf32> to vector<8x256xf32>
    %728 = arith.addf %726, %727 : vector<8x256xf32>
    %729 = vector.extract_strided_slice %728 {offsets = [0, 0], sizes = [8, 128], strides = [1, 1]} : vector<8x256xf32> to vector<8x128xf32>
    %730 = vector.extract_strided_slice %728 {offsets = [0, 128], sizes = [8, 128], strides = [1, 1]} : vector<8x256xf32> to vector<8x128xf32>
    %cst_390 = arith.constant 5.000000e-01 : f32
    %731 = vector.broadcast %cst_390 : f32 to vector<8x128xf32>
    %732 = arith.mulf %731, %730 : vector<8x128xf32>
    %cst_391 = arith.constant 0.707106769 : f32
    %733 = vector.broadcast %cst_391 : f32 to vector<8x128xf32>
    %734 = arith.mulf %730, %733 : vector<8x128xf32>
    %cst_392 = arith.constant 0.000000e+00 : f32
    %735 = vector.broadcast %cst_392 : f32 to vector<8x128xf32>
    %736 = arith.cmpf oge, %734, %735 : vector<8x128xf32>
    %cst_393 = arith.constant 0.000000e+00 : f32
    %737 = vector.broadcast %cst_393 : f32 to vector<8x128xf32>
    %738 = arith.subf %737, %734 : vector<8x128xf32>
    %739 = arith.select %736, %734, %738 : vector<8x128xi1>, vector<8x128xf32>
    %cst_394 = arith.constant 0.327591091 : f32
    %740 = vector.broadcast %cst_394 : f32 to vector<8x128xf32>
    %741 = arith.mulf %740, %739 : vector<8x128xf32>
    %cst_395 = arith.constant 1.000000e+00 : f32
    %742 = vector.broadcast %cst_395 : f32 to vector<8x128xf32>
    %743 = arith.addf %742, %741 : vector<8x128xf32>
    %cst_396 = arith.constant 1.000000e+00 : f32
    %744 = vector.broadcast %cst_396 : f32 to vector<8x128xf32>
    %745 = arith.divf %744, %743 : vector<8x128xf32>
    %cst_397 = arith.constant 1.06140542 : f32
    %746 = vector.broadcast %cst_397 : f32 to vector<8x128xf32>
    %747 = arith.mulf %746, %745 : vector<8x128xf32>
    %cst_398 = arith.constant -1.45315206 : f32
    %748 = vector.broadcast %cst_398 : f32 to vector<8x128xf32>
    %749 = arith.addf %747, %748 : vector<8x128xf32>
    %750 = arith.mulf %749, %745 : vector<8x128xf32>
    %cst_399 = arith.constant 1.42141378 : f32
    %751 = vector.broadcast %cst_399 : f32 to vector<8x128xf32>
    %752 = arith.addf %750, %751 : vector<8x128xf32>
    %753 = arith.mulf %752, %745 : vector<8x128xf32>
    %cst_400 = arith.constant -0.284496725 : f32
    %754 = vector.broadcast %cst_400 : f32 to vector<8x128xf32>
    %755 = arith.addf %753, %754 : vector<8x128xf32>
    %756 = arith.mulf %755, %745 : vector<8x128xf32>
    %cst_401 = arith.constant 0.254829586 : f32
    %757 = vector.broadcast %cst_401 : f32 to vector<8x128xf32>
    %758 = arith.addf %756, %757 : vector<8x128xf32>
    %759 = arith.mulf %758, %745 : vector<8x128xf32>
    %760 = arith.mulf %739, %739 : vector<8x128xf32>
    %cst_402 = arith.constant 0.000000e+00 : f32
    %761 = vector.broadcast %cst_402 : f32 to vector<8x128xf32>
    %762 = arith.subf %761, %760 : vector<8x128xf32>
    %763 = math.exp %762 : vector<8x128xf32>
    %764 = arith.mulf %759, %763 : vector<8x128xf32>
    %cst_403 = arith.constant 1.000000e+00 : f32
    %765 = vector.broadcast %cst_403 : f32 to vector<8x128xf32>
    %766 = arith.subf %765, %764 : vector<8x128xf32>
    %cst_404 = arith.constant 0.000000e+00 : f32
    %767 = vector.broadcast %cst_404 : f32 to vector<8x128xf32>
    %768 = arith.cmpf oge, %734, %767 : vector<8x128xf32>
    %cst_405 = arith.constant 0.000000e+00 : f32
    %769 = vector.broadcast %cst_405 : f32 to vector<8x128xf32>
    %770 = arith.subf %769, %766 : vector<8x128xf32>
    %771 = arith.select %768, %766, %770 : vector<8x128xi1>, vector<8x128xf32>
    %cst_406 = arith.constant 1.000000e+00 : f32
    %772 = vector.broadcast %cst_406 : f32 to vector<8x128xf32>
    %773 = arith.addf %772, %771 : vector<8x128xf32>
    %774 = arith.mulf %732, %773 : vector<8x128xf32>
    %775 = arith.mulf %729, %774 : vector<8x128xf32>
    %cst_407 = arith.constant dense<0.000000e+00> : vector<8x32xf32>
    %776 = tpu.matmul %775, %680, %cst_407 {dimension_numbers = #tpu.dot_dimension_numbers<[1], [0], [0], [1], [0, 0, 1, 1], [], []>} : vector<8x128xf32>, vector<128x32xf32>, vector<8x32xf32> -> vector<8x32xf32>
    %777 = vector.broadcast %682 : vector<1x32xf32> to vector<8x32xf32>
    %778 = arith.addf %776, %777 : vector<8x32xf32>
    %779 = arith.addf %703, %778 : vector<8x32xf32>
    %c3 = arith.constant 3 : index
    %c0_408 = arith.constant 0 : index
    %c0_409 = arith.constant 0 : index
    %780 = vector.load %arg18[%c3, %c0_408, %c0_409] : memref<4x1x32xf32, #tpu.memory_space<vmem>>, vector<1x1x32xf32>
    %781 = vector.shape_cast %780 : vector<1x1x32xf32> to vector<1x32xf32>
    %c3_410 = arith.constant 3 : index
    %c0_411 = arith.constant 0 : index
    %c0_412 = arith.constant 0 : index
    %782 = vector.load %arg19[%c3_410, %c0_411, %c0_412] : memref<4x1x32xf32, #tpu.memory_space<vmem>>, vector<1x1x32xf32>
    %783 = vector.shape_cast %782 : vector<1x1x32xf32> to vector<1x32xf32>
    %cst_413 = arith.constant dense<0.000000e+00> : vector<8xf32>
    %784 = vector.multi_reduction <add>, %779, %cst_413 [1] : vector<8x32xf32> to vector<8xf32>
    %785 = vector.shape_cast %784 : vector<8xf32> to vector<8x1xf32>
    %cst_414 = arith.constant 3.200000e+01 : f32
    %786 = vector.broadcast %cst_414 : f32 to vector<8x1xf32>
    %787 = arith.divf %785, %786 : vector<8x1xf32>
    %788 = vector.broadcast %787 : vector<8x1xf32> to vector<8x32xf32>
    %789 = arith.subf %779, %788 : vector<8x32xf32>
    %790 = arith.mulf %789, %789 : vector<8x32xf32>
    %cst_415 = arith.constant dense<0.000000e+00> : vector<8xf32>
    %791 = vector.multi_reduction <add>, %790, %cst_415 [1] : vector<8x32xf32> to vector<8xf32>
    %792 = vector.shape_cast %791 : vector<8xf32> to vector<8x1xf32>
    %cst_416 = arith.constant 3.200000e+01 : f32
    %793 = vector.broadcast %cst_416 : f32 to vector<8x1xf32>
    %794 = arith.divf %792, %793 : vector<8x1xf32>
    %795 = vector.broadcast %787 : vector<8x1xf32> to vector<8x32xf32>
    %796 = arith.subf %779, %795 : vector<8x32xf32>
    %cst_417 = arith.constant 9.99999974E-6 : f32
    %797 = vector.broadcast %cst_417 : f32 to vector<8x1xf32>
    %798 = arith.addf %794, %797 : vector<8x1xf32>
    %799 = math.rsqrt %798 : vector<8x1xf32>
    %800 = vector.broadcast %799 : vector<8x1xf32> to vector<8x32xf32>
    %801 = arith.mulf %796, %800 : vector<8x32xf32>
    %802 = vector.broadcast %781 : vector<1x32xf32> to vector<8x32xf32>
    %803 = arith.mulf %801, %802 : vector<8x32xf32>
    %804 = vector.broadcast %783 : vector<1x32xf32> to vector<8x32xf32>
    %805 = arith.addf %803, %804 : vector<8x32xf32>
    %c3_418 = arith.constant 3 : index
    %c0_419 = arith.constant 0 : index
    %c0_420 = arith.constant 0 : index
    %806 = vector.load %arg20[%c3_418, %c0_419, %c0_420] : memref<4x32x32xf32, #tpu.memory_space<vmem>>, vector<1x32x32xf32>
    %807 = vector.shape_cast %806 : vector<1x32x32xf32> to vector<32x32xf32>
    %c3_421 = arith.constant 3 : index
    %c0_422 = arith.constant 0 : index
    %c0_423 = arith.constant 0 : index
    %808 = vector.load %arg21[%c3_421, %c0_422, %c0_423] : memref<4x32x32xf32, #tpu.memory_space<vmem>>, vector<1x32x32xf32>
    %809 = vector.shape_cast %808 : vector<1x32x32xf32> to vector<32x32xf32>
    %c3_424 = arith.constant 3 : index
    %c0_425 = arith.constant 0 : index
    %c0_426 = arith.constant 0 : index
    %810 = vector.load %arg22[%c3_424, %c0_425, %c0_426] : memref<4x32x32xf32, #tpu.memory_space<vmem>>, vector<1x32x32xf32>
    %811 = vector.shape_cast %810 : vector<1x32x32xf32> to vector<32x32xf32>
    %c3_427 = arith.constant 3 : index
    %c0_428 = arith.constant 0 : index
    %c0_429 = arith.constant 0 : index
    %812 = vector.load %arg23[%c3_427, %c0_428, %c0_429] : memref<4x32x32xf32, #tpu.memory_space<vmem>>, vector<1x32x32xf32>
    %813 = vector.shape_cast %812 : vector<1x32x32xf32> to vector<32x32xf32>
    %c3_430 = arith.constant 3 : index
    %c0_431 = arith.constant 0 : index
    %c0_432 = arith.constant 0 : index
    %814 = vector.load %arg24[%c3_430, %c0_431, %c0_432] : memref<4x1x32xf32, #tpu.memory_space<vmem>>, vector<1x1x32xf32>
    %815 = vector.shape_cast %814 : vector<1x1x32xf32> to vector<1x32xf32>
    %c3_433 = arith.constant 3 : index
    %c0_434 = arith.constant 0 : index
    %c0_435 = arith.constant 0 : index
    %816 = vector.load %arg25[%c3_433, %c0_434, %c0_435] : memref<4x1x32xf32, #tpu.memory_space<vmem>>, vector<1x1x32xf32>
    %817 = vector.shape_cast %816 : vector<1x1x32xf32> to vector<1x32xf32>
    %c3_436 = arith.constant 3 : index
    %c0_437 = arith.constant 0 : index
    %c0_438 = arith.constant 0 : index
    %818 = vector.load %arg26[%c3_436, %c0_437, %c0_438] : memref<4x1x32xf32, #tpu.memory_space<vmem>>, vector<1x1x32xf32>
    %819 = vector.shape_cast %818 : vector<1x1x32xf32> to vector<1x32xf32>
    %c3_439 = arith.constant 3 : index
    %c0_440 = arith.constant 0 : index
    %c0_441 = arith.constant 0 : index
    %820 = vector.load %arg27[%c3_439, %c0_440, %c0_441] : memref<4x32x256xf32, #tpu.memory_space<vmem>>, vector<1x32x256xf32>
    %821 = vector.shape_cast %820 : vector<1x32x256xf32> to vector<32x256xf32>
    %c3_442 = arith.constant 3 : index
    %c0_443 = arith.constant 0 : index
    %c0_444 = arith.constant 0 : index
    %822 = vector.load %arg28[%c3_442, %c0_443, %c0_444] : memref<4x1x256xf32, #tpu.memory_space<vmem>>, vector<1x1x256xf32>
    %823 = vector.shape_cast %822 : vector<1x1x256xf32> to vector<1x256xf32>
    %c3_445 = arith.constant 3 : index
    %c0_446 = arith.constant 0 : index
    %c0_447 = arith.constant 0 : index
    %824 = vector.load %arg29[%c3_445, %c0_446, %c0_447] : memref<4x128x32xf32, #tpu.memory_space<vmem>>, vector<1x128x32xf32>
    %825 = vector.shape_cast %824 : vector<1x128x32xf32> to vector<128x32xf32>
    %c3_448 = arith.constant 3 : index
    %c0_449 = arith.constant 0 : index
    %c0_450 = arith.constant 0 : index
    %826 = vector.load %arg30[%c3_448, %c0_449, %c0_450] : memref<4x1x32xf32, #tpu.memory_space<vmem>>, vector<1x1x32xf32>
    %827 = vector.shape_cast %826 : vector<1x1x32xf32> to vector<1x32xf32>
    %cst_451 = arith.constant dense<0.000000e+00> : vector<8x32xf32>
    %828 = tpu.matmul %805, %807, %cst_451 {dimension_numbers = #tpu.dot_dimension_numbers<[1], [0], [0], [1], [0, 0, 1, 1], [], []>} : vector<8x32xf32>, vector<32x32xf32>, vector<8x32xf32> -> vector<8x32xf32>
    %cst_452 = arith.constant dense<0.000000e+00> : vector<8x32xf32>
    %829 = tpu.matmul %805, %809, %cst_452 {dimension_numbers = #tpu.dot_dimension_numbers<[1], [0], [0], [1], [0, 0, 1, 1], [], []>} : vector<8x32xf32>, vector<32x32xf32>, vector<8x32xf32> -> vector<8x32xf32>
    %cst_453 = arith.constant dense<0.000000e+00> : vector<8x32xf32>
    %830 = tpu.matmul %805, %811, %cst_453 {dimension_numbers = #tpu.dot_dimension_numbers<[1], [0], [0], [1], [0, 0, 1, 1], [], []>} : vector<8x32xf32>, vector<32x32xf32>, vector<8x32xf32> -> vector<8x32xf32>
    %cst_454 = arith.constant dense<0.000000e+00> : vector<8x8xf32>
    %831 = tpu.matmul %828, %829, %cst_454 {dimension_numbers = #tpu.dot_dimension_numbers<[1], [1], [0], [0], [0, 0, 1, 0], [], []>} : vector<8x32xf32>, vector<8x32xf32>, vector<8x8xf32> -> vector<8x8xf32>
    %cst_455 = arith.constant 0.176776692 : f32
    %832 = vector.broadcast %cst_455 : f32 to vector<8x8xf32>
    %833 = arith.mulf %831, %832 : vector<8x8xf32>
    %cst_456 = arith.constant dense<0xFF800000> : vector<8xf32>
    %834 = vector.multi_reduction <maximumf>, %833, %cst_456 [1] : vector<8x8xf32> to vector<8xf32>
    %835 = vector.shape_cast %834 : vector<8xf32> to vector<8x1xf32>
    %836 = vector.broadcast %835 : vector<8x1xf32> to vector<8x8xf32>
    %837 = arith.subf %833, %836 : vector<8x8xf32>
    %838 = math.exp %837 : vector<8x8xf32>
    %cst_457 = arith.constant dense<0.000000e+00> : vector<8xf32>
    %839 = vector.multi_reduction <add>, %838, %cst_457 [1] : vector<8x8xf32> to vector<8xf32>
    %840 = vector.shape_cast %839 : vector<8xf32> to vector<8x1xf32>
    %841 = tpu.reciprocal %840 {approx = true} : vector<8x1xf32> -> vector<8x1xf32>
    %842 = vector.broadcast %841 : vector<8x1xf32> to vector<8x8xf32>
    %843 = arith.mulf %838, %842 : vector<8x8xf32>
    %cst_458 = arith.constant dense<0.000000e+00> : vector<8x32xf32>
    %844 = tpu.matmul %843, %830, %cst_458 {dimension_numbers = #tpu.dot_dimension_numbers<[1], [0], [0], [1], [0, 0, 1, 1], [], []>} : vector<8x8xf32>, vector<8x32xf32>, vector<8x32xf32> -> vector<8x32xf32>
    %cst_459 = arith.constant dense<0.000000e+00> : vector<8x32xf32>
    %845 = tpu.matmul %844, %813, %cst_459 {dimension_numbers = #tpu.dot_dimension_numbers<[1], [0], [0], [1], [0, 0, 1, 1], [], []>} : vector<8x32xf32>, vector<32x32xf32>, vector<8x32xf32> -> vector<8x32xf32>
    %846 = vector.broadcast %815 : vector<1x32xf32> to vector<8x32xf32>
    %847 = arith.addf %845, %846 : vector<8x32xf32>
    %848 = arith.addf %779, %847 : vector<8x32xf32>
    %cst_460 = arith.constant dense<0.000000e+00> : vector<8xf32>
    %849 = vector.multi_reduction <add>, %848, %cst_460 [1] : vector<8x32xf32> to vector<8xf32>
    %850 = vector.shape_cast %849 : vector<8xf32> to vector<8x1xf32>
    %cst_461 = arith.constant 3.200000e+01 : f32
    %851 = vector.broadcast %cst_461 : f32 to vector<8x1xf32>
    %852 = arith.divf %850, %851 : vector<8x1xf32>
    %853 = vector.broadcast %852 : vector<8x1xf32> to vector<8x32xf32>
    %854 = arith.subf %848, %853 : vector<8x32xf32>
    %855 = arith.mulf %854, %854 : vector<8x32xf32>
    %cst_462 = arith.constant dense<0.000000e+00> : vector<8xf32>
    %856 = vector.multi_reduction <add>, %855, %cst_462 [1] : vector<8x32xf32> to vector<8xf32>
    %857 = vector.shape_cast %856 : vector<8xf32> to vector<8x1xf32>
    %cst_463 = arith.constant 3.200000e+01 : f32
    %858 = vector.broadcast %cst_463 : f32 to vector<8x1xf32>
    %859 = arith.divf %857, %858 : vector<8x1xf32>
    %860 = vector.broadcast %852 : vector<8x1xf32> to vector<8x32xf32>
    %861 = arith.subf %848, %860 : vector<8x32xf32>
    %cst_464 = arith.constant 9.99999974E-6 : f32
    %862 = vector.broadcast %cst_464 : f32 to vector<8x1xf32>
    %863 = arith.addf %859, %862 : vector<8x1xf32>
    %864 = math.rsqrt %863 : vector<8x1xf32>
    %865 = vector.broadcast %864 : vector<8x1xf32> to vector<8x32xf32>
    %866 = arith.mulf %861, %865 : vector<8x32xf32>
    %867 = vector.broadcast %817 : vector<1x32xf32> to vector<8x32xf32>
    %868 = arith.mulf %866, %867 : vector<8x32xf32>
    %869 = vector.broadcast %819 : vector<1x32xf32> to vector<8x32xf32>
    %870 = arith.addf %868, %869 : vector<8x32xf32>
    %cst_465 = arith.constant dense<0.000000e+00> : vector<8x256xf32>
    %871 = tpu.matmul %870, %821, %cst_465 {dimension_numbers = #tpu.dot_dimension_numbers<[1], [0], [0], [1], [0, 0, 1, 1], [], []>} : vector<8x32xf32>, vector<32x256xf32>, vector<8x256xf32> -> vector<8x256xf32>
    %872 = vector.broadcast %823 : vector<1x256xf32> to vector<8x256xf32>
    %873 = arith.addf %871, %872 : vector<8x256xf32>
    %874 = vector.extract_strided_slice %873 {offsets = [0, 0], sizes = [8, 128], strides = [1, 1]} : vector<8x256xf32> to vector<8x128xf32>
    %875 = vector.extract_strided_slice %873 {offsets = [0, 128], sizes = [8, 128], strides = [1, 1]} : vector<8x256xf32> to vector<8x128xf32>
    %cst_466 = arith.constant 5.000000e-01 : f32
    %876 = vector.broadcast %cst_466 : f32 to vector<8x128xf32>
    %877 = arith.mulf %876, %875 : vector<8x128xf32>
    %cst_467 = arith.constant 0.707106769 : f32
    %878 = vector.broadcast %cst_467 : f32 to vector<8x128xf32>
    %879 = arith.mulf %875, %878 : vector<8x128xf32>
    %cst_468 = arith.constant 0.000000e+00 : f32
    %880 = vector.broadcast %cst_468 : f32 to vector<8x128xf32>
    %881 = arith.cmpf oge, %879, %880 : vector<8x128xf32>
    %cst_469 = arith.constant 0.000000e+00 : f32
    %882 = vector.broadcast %cst_469 : f32 to vector<8x128xf32>
    %883 = arith.subf %882, %879 : vector<8x128xf32>
    %884 = arith.select %881, %879, %883 : vector<8x128xi1>, vector<8x128xf32>
    %cst_470 = arith.constant 0.327591091 : f32
    %885 = vector.broadcast %cst_470 : f32 to vector<8x128xf32>
    %886 = arith.mulf %885, %884 : vector<8x128xf32>
    %cst_471 = arith.constant 1.000000e+00 : f32
    %887 = vector.broadcast %cst_471 : f32 to vector<8x128xf32>
    %888 = arith.addf %887, %886 : vector<8x128xf32>
    %cst_472 = arith.constant 1.000000e+00 : f32
    %889 = vector.broadcast %cst_472 : f32 to vector<8x128xf32>
    %890 = arith.divf %889, %888 : vector<8x128xf32>
    %cst_473 = arith.constant 1.06140542 : f32
    %891 = vector.broadcast %cst_473 : f32 to vector<8x128xf32>
    %892 = arith.mulf %891, %890 : vector<8x128xf32>
    %cst_474 = arith.constant -1.45315206 : f32
    %893 = vector.broadcast %cst_474 : f32 to vector<8x128xf32>
    %894 = arith.addf %892, %893 : vector<8x128xf32>
    %895 = arith.mulf %894, %890 : vector<8x128xf32>
    %cst_475 = arith.constant 1.42141378 : f32
    %896 = vector.broadcast %cst_475 : f32 to vector<8x128xf32>
    %897 = arith.addf %895, %896 : vector<8x128xf32>
    %898 = arith.mulf %897, %890 : vector<8x128xf32>
    %cst_476 = arith.constant -0.284496725 : f32
    %899 = vector.broadcast %cst_476 : f32 to vector<8x128xf32>
    %900 = arith.addf %898, %899 : vector<8x128xf32>
    %901 = arith.mulf %900, %890 : vector<8x128xf32>
    %cst_477 = arith.constant 0.254829586 : f32
    %902 = vector.broadcast %cst_477 : f32 to vector<8x128xf32>
    %903 = arith.addf %901, %902 : vector<8x128xf32>
    %904 = arith.mulf %903, %890 : vector<8x128xf32>
    %905 = arith.mulf %884, %884 : vector<8x128xf32>
    %cst_478 = arith.constant 0.000000e+00 : f32
    %906 = vector.broadcast %cst_478 : f32 to vector<8x128xf32>
    %907 = arith.subf %906, %905 : vector<8x128xf32>
    %908 = math.exp %907 : vector<8x128xf32>
    %909 = arith.mulf %904, %908 : vector<8x128xf32>
    %cst_479 = arith.constant 1.000000e+00 : f32
    %910 = vector.broadcast %cst_479 : f32 to vector<8x128xf32>
    %911 = arith.subf %910, %909 : vector<8x128xf32>
    %cst_480 = arith.constant 0.000000e+00 : f32
    %912 = vector.broadcast %cst_480 : f32 to vector<8x128xf32>
    %913 = arith.cmpf oge, %879, %912 : vector<8x128xf32>
    %cst_481 = arith.constant 0.000000e+00 : f32
    %914 = vector.broadcast %cst_481 : f32 to vector<8x128xf32>
    %915 = arith.subf %914, %911 : vector<8x128xf32>
    %916 = arith.select %913, %911, %915 : vector<8x128xi1>, vector<8x128xf32>
    %cst_482 = arith.constant 1.000000e+00 : f32
    %917 = vector.broadcast %cst_482 : f32 to vector<8x128xf32>
    %918 = arith.addf %917, %916 : vector<8x128xf32>
    %919 = arith.mulf %877, %918 : vector<8x128xf32>
    %920 = arith.mulf %874, %919 : vector<8x128xf32>
    %cst_483 = arith.constant dense<0.000000e+00> : vector<8x32xf32>
    %921 = tpu.matmul %920, %825, %cst_483 {dimension_numbers = #tpu.dot_dimension_numbers<[1], [0], [0], [1], [0, 0, 1, 1], [], []>} : vector<8x128xf32>, vector<128x32xf32>, vector<8x32xf32> -> vector<8x32xf32>
    %922 = vector.broadcast %827 : vector<1x32xf32> to vector<8x32xf32>
    %923 = arith.addf %921, %922 : vector<8x32xf32>
    %924 = arith.addf %848, %923 : vector<8x32xf32>
    %c0_484 = arith.constant 0 : index
    %c0_485 = arith.constant 0 : index
    %c0_486 = arith.constant 0 : index
    %925 = vector.load %arg31[%c0_484, %c0_485, %c0_486] : memref<1x8x32xf32, #tpu.memory_space<vmem>>, vector<1x8x32xf32>
    %926 = vector.shape_cast %925 : vector<1x8x32xf32> to vector<8x32xf32>
    %927 = vector.shape_cast %924 : vector<8x32xf32> to vector<1x8x32xf32>
    tpu.vector_store %arg31[%c0_484, %c0_485, %c0_486], %927 {strides = array<i32>} : memref<1x8x32xf32, #tpu.memory_space<vmem>>, vector<1x8x32xf32>,
    return
  }
  func.func @transform_0(%arg0: i32) -> (i32, i32, i32) {
    %c0_i32 = arith.constant 0 : i32
    %c0_i32_0 = arith.constant 0 : i32
    %c0_i32_1 = arith.constant 0 : i32
    return %arg0, %c0_i32, %c0_i32_0 : i32, i32, i32
  }
  func.func @transform_1(%arg0: i32) -> (i32, i32) {
    %c0_i32 = arith.constant 0 : i32
    %c0_i32_0 = arith.constant 0 : i32
    %c0_i32_1 = arith.constant 0 : i32
    return %c0_i32, %c0_i32_0 : i32, i32
  }
  func.func @transform_2(%arg0: i32) -> (i32, i32, i32) {
    %c0_i32 = arith.constant 0 : i32
    %c0_i32_0 = arith.constant 0 : i32
    %c0_i32_1 = arith.constant 0 : i32
    %c0_i32_2 = arith.constant 0 : i32
    return %c0_i32, %c0_i32_0, %c0_i32_1 : i32, i32, i32
  }
  func.func @transform_3(%arg0: i32) -> (i32, i32, i32) {
    %c0_i32 = arith.constant 0 : i32
    %c0_i32_0 = arith.constant 0 : i32
    %c0_i32_1 = arith.constant 0 : i32
    %c0_i32_2 = arith.constant 0 : i32
    return %c0_i32, %c0_i32_0, %c0_i32_1 : i32, i32, i32
  }
  func.func @transform_4(%arg0: i32) -> (i32, i32, i32) {
    %c0_i32 = arith.constant 0 : i32
    %c0_i32_0 = arith.constant 0 : i32
    %c0_i32_1 = arith.constant 0 : i32
    %c0_i32_2 = arith.constant 0 : i32
    return %c0_i32, %c0_i32_0, %c0_i32_1 : i32, i32, i32
  }
  func.func @transform_5(%arg0: i32) -> (i32, i32, i32) {
    %c0_i32 = arith.constant 0 : i32
    %c0_i32_0 = arith.constant 0 : i32
    %c0_i32_1 = arith.constant 0 : i32
    %c0_i32_2 = arith.constant 0 : i32
    return %c0_i32, %c0_i32_0, %c0_i32_1 : i32, i32, i32
  }
  func.func @transform_6(%arg0: i32) -> (i32, i32, i32) {
    %c0_i32 = arith.constant 0 : i32
    %c0_i32_0 = arith.constant 0 : i32
    %c0_i32_1 = arith.constant 0 : i32
    %c0_i32_2 = arith.constant 0 : i32
    return %c0_i32, %c0_i32_0, %c0_i32_1 : i32, i32, i32
  }
  func.func @transform_7(%arg0: i32) -> (i32, i32, i32) {
    %c0_i32 = arith.constant 0 : i32
    %c0_i32_0 = arith.constant 0 : i32
    %c0_i32_1 = arith.constant 0 : i32
    %c0_i32_2 = arith.constant 0 : i32
    return %c0_i32, %c0_i32_0, %c0_i32_1 : i32, i32, i32
  }
  func.func @transform_8(%arg0: i32) -> (i32, i32, i32) {
    %c0_i32 = arith.constant 0 : i32
    %c0_i32_0 = arith.constant 0 : i32
    %c0_i32_1 = arith.constant 0 : i32
    %c0_i32_2 = arith.constant 0 : i32
    return %c0_i32, %c0_i32_0, %c0_i32_1 : i32, i32, i32
  }
  func.func @transform_9(%arg0: i32) -> (i32, i32, i32) {
    %c0_i32 = arith.constant 0 : i32
    %c0_i32_0 = arith.constant 0 : i32
    %c0_i32_1 = arith.constant 0 : i32
    %c0_i32_2 = arith.constant 0 : i32
    return %c0_i32, %c0_i32_0, %c0_i32_1 : i32, i32, i32
  }
  func.func @transform_10(%arg0: i32) -> (i32, i32, i32) {
    %c0_i32 = arith.constant 0 : i32
    %c0_i32_0 = arith.constant 0 : i32
    %c0_i32_1 = arith.constant 0 : i32
    %c0_i32_2 = arith.constant 0 : i32
    return %c0_i32, %c0_i32_0, %c0_i32_1 : i32, i32, i32
  }
  func.func @transform_11(%arg0: i32) -> (i32, i32, i32) {
    %c0_i32 = arith.constant 0 : i32
    %c0_i32_0 = arith.constant 0 : i32
    %c0_i32_1 = arith.constant 0 : i32
    %c0_i32_2 = arith.constant 0 : i32
    return %c0_i32, %c0_i32_0, %c0_i32_1 : i32, i32, i32
  }
  func.func @transform_12(%arg0: i32) -> (i32, i32, i32) {
    %c0_i32 = arith.constant 0 : i32
    %c0_i32_0 = arith.constant 0 : i32
    %c0_i32_1 = arith.constant 0 : i32
    %c0_i32_2 = arith.constant 0 : i32
    return %c0_i32, %c0_i32_0, %c0_i32_1 : i32, i32, i32
  }
  func.func @transform_13(%arg0: i32) -> (i32, i32, i32) {
    %c0_i32 = arith.constant 0 : i32
    %c0_i32_0 = arith.constant 0 : i32
    %c0_i32_1 = arith.constant 0 : i32
    %c0_i32_2 = arith.constant 0 : i32
    return %c0_i32, %c0_i32_0, %c0_i32_1 : i32, i32, i32
  }
  func.func @transform_14(%arg0: i32) -> (i32, i32, i32) {
    %c0_i32 = arith.constant 0 : i32
    %c0_i32_0 = arith.constant 0 : i32
    %c0_i32_1 = arith.constant 0 : i32
    %c0_i32_2 = arith.constant 0 : i32
    return %c0_i32, %c0_i32_0, %c0_i32_1 : i32, i32, i32
  }
  func.func @transform_15(%arg0: i32) -> (i32, i32, i32) {
    %c0_i32 = arith.constant 0 : i32
    %c0_i32_0 = arith.constant 0 : i32
    %c0_i32_1 = arith.constant 0 : i32
    %c0_i32_2 = arith.constant 0 : i32
    return %c0_i32, %c0_i32_0, %c0_i32_1 : i32, i32, i32
  }
  func.func @transform_16(%arg0: i32) -> (i32, i32, i32) {
    %c0_i32 = arith.constant 0 : i32
    %c0_i32_0 = arith.constant 0 : i32
    %c0_i32_1 = arith.constant 0 : i32
    %c0_i32_2 = arith.constant 0 : i32
    return %c0_i32, %c0_i32_0, %c0_i32_1 : i32, i32, i32
  }
  func.func @transform_17(%arg0: i32) -> (i32, i32, i32) {
    %c0_i32 = arith.constant 0 : i32
    %c0_i32_0 = arith.constant 0 : i32
    %c0_i32_1 = arith.constant 0 : i32
    %c0_i32_2 = arith.constant 0 : i32
    return %c0_i32, %c0_i32_0, %c0_i32_1 : i32, i32, i32
  }
  func.func @transform_18(%arg0: i32) -> (i32, i32, i32) {
    %c0_i32 = arith.constant 0 : i32
    %c0_i32_0 = arith.constant 0 : i32
    %c0_i32_1 = arith.constant 0 : i32
    %c0_i32_2 = arith.constant 0 : i32
    return %c0_i32, %c0_i32_0, %c0_i32_1 : i32, i32, i32
  }
  func.func @transform_19(%arg0: i32) -> (i32, i32, i32) {
    %c0_i32 = arith.constant 0 : i32
    %c0_i32_0 = arith.constant 0 : i32
    %c0_i32_1 = arith.constant 0 : i32
    %c0_i32_2 = arith.constant 0 : i32
    return %c0_i32, %c0_i32_0, %c0_i32_1 : i32, i32, i32
  }
  func.func @transform_20(%arg0: i32) -> (i32, i32, i32) {
    %c0_i32 = arith.constant 0 : i32
    %c0_i32_0 = arith.constant 0 : i32
    %c0_i32_1 = arith.constant 0 : i32
    %c0_i32_2 = arith.constant 0 : i32
    return %c0_i32, %c0_i32_0, %c0_i32_1 : i32, i32, i32
  }
  func.func @transform_21(%arg0: i32) -> (i32, i32, i32) {
    %c0_i32 = arith.constant 0 : i32
    %c0_i32_0 = arith.constant 0 : i32
    %c0_i32_1 = arith.constant 0 : i32
    %c0_i32_2 = arith.constant 0 : i32
    return %c0_i32, %c0_i32_0, %c0_i32_1 : i32, i32, i32
  }
  func.func @transform_22(%arg0: i32) -> (i32, i32, i32) {
    %c0_i32 = arith.constant 0 : i32
    %c0_i32_0 = arith.constant 0 : i32
    %c0_i32_1 = arith.constant 0 : i32
    %c0_i32_2 = arith.constant 0 : i32
    return %c0_i32, %c0_i32_0, %c0_i32_1 : i32, i32, i32
  }
  func.func @transform_23(%arg0: i32) -> (i32, i32, i32) {
    %c0_i32 = arith.constant 0 : i32
    %c0_i32_0 = arith.constant 0 : i32
    %c0_i32_1 = arith.constant 0 : i32
    %c0_i32_2 = arith.constant 0 : i32
    return %c0_i32, %c0_i32_0, %c0_i32_1 : i32, i32, i32
  }
  func.func @transform_24(%arg0: i32) -> (i32, i32, i32) {
    %c0_i32 = arith.constant 0 : i32
    %c0_i32_0 = arith.constant 0 : i32
    %c0_i32_1 = arith.constant 0 : i32
    %c0_i32_2 = arith.constant 0 : i32
    return %c0_i32, %c0_i32_0, %c0_i32_1 : i32, i32, i32
  }
  func.func @transform_25(%arg0: i32) -> (i32, i32, i32) {
    %c0_i32 = arith.constant 0 : i32
    %c0_i32_0 = arith.constant 0 : i32
    %c0_i32_1 = arith.constant 0 : i32
    %c0_i32_2 = arith.constant 0 : i32
    return %c0_i32, %c0_i32_0, %c0_i32_1 : i32, i32, i32
  }
  func.func @transform_26(%arg0: i32) -> (i32, i32, i32) {
    %c0_i32 = arith.constant 0 : i32
    %c0_i32_0 = arith.constant 0 : i32
    %c0_i32_1 = arith.constant 0 : i32
    %c0_i32_2 = arith.constant 0 : i32
    return %c0_i32, %c0_i32_0, %c0_i32_1 : i32, i32, i32
  }
  func.func @transform_27(%arg0: i32) -> (i32, i32, i32) {
    %c0_i32 = arith.constant 0 : i32
    %c0_i32_0 = arith.constant 0 : i32
    %c0_i32_1 = arith.constant 0 : i32
    %c0_i32_2 = arith.constant 0 : i32
    return %c0_i32, %c0_i32_0, %c0_i32_1 : i32, i32, i32
  }
  func.func @transform_28(%arg0: i32) -> (i32, i32, i32) {
    %c0_i32 = arith.constant 0 : i32
    %c0_i32_0 = arith.constant 0 : i32
    %c0_i32_1 = arith.constant 0 : i32
    %c0_i32_2 = arith.constant 0 : i32
    return %c0_i32, %c0_i32_0, %c0_i32_1 : i32, i32, i32
  }
  func.func @transform_29(%arg0: i32) -> (i32, i32, i32) {
    %c0_i32 = arith.constant 0 : i32
    %c0_i32_0 = arith.constant 0 : i32
    %c0_i32_1 = arith.constant 0 : i32
    %c0_i32_2 = arith.constant 0 : i32
    return %c0_i32, %c0_i32_0, %c0_i32_1 : i32, i32, i32
  }
  func.func @transform_30(%arg0: i32) -> (i32, i32, i32) {
    %c0_i32 = arith.constant 0 : i32
    %c0_i32_0 = arith.constant 0 : i32
    %c0_i32_1 = arith.constant 0 : i32
    return %arg0, %c0_i32, %c0_i32_0 : i32, i32, i32
  }
}

</mosaic_0001>

<bundles_post_ra>
// kernel: tpu_custom_call.1
= control target key start
LH: loop header
LB: loop body
LE: loop exit
PB: predicated region body
PF: predicated region fallthrough
CT: control target
= control target key end

     0   :  { %s9557_s6 = smov 1   ;;  %s9558_s10 = smov 2   ;;  %s11568_s0 = inlined_call_operand.smem [shape: u32[31], index: -1, kind: input, shape index: {}] }
   0x1   :  { %s9599_s5 = sld [smem:[%s11568_s0]]   ;;  %s9559_s14 = smov 3  }
   0x2   :  { %s9604_s9 = sld [smem:[%s11568_s0 + %s9557_s6]]   ;;  %s9560_s18 = smov 4  }
   0x3   :  { %s9609_s13 = sld [smem:[%s11568_s0 + %s9558_s10]]   ;;  %s9561_s22 = smov 5  }
   0x4   :  { %s9614_s17 = sld [smem:[%s11568_s0 + %s9559_s14]]   ;;  %s9562_s26 = smov 6  }
   0x5   :  { %s9619_s21 = sld [smem:[%s11568_s0 + %s9560_s18]]   ;;  %s9563_s30 = smov 7  }
   0x6   :  { %s9624_s25 = sld [smem:[%s11568_s0 + %s9561_s22]]   ;;  %s9564_s4 = smov 8  }
   0x7   :  { %11624 = sst [smem:[#allocation5_spill]] %s9599_s5  ;;  %s9565_s10 = smov 9  }
   0x8   :  { %11625 = sst [smem:[#allocation6_spill]] %s9604_s9  ;;  %s9566_s15 = smov 10  }
   0x9   :  { %s9629_s29 = sld [smem:[%s11568_s0 + %s9562_s26]]   ;;  %s9567_s20 = smov 11  }
   0xa   :  { %s9634_s3 = sld [smem:[%s11568_s0 + %s9563_s30]]   ;;  %s9568_s26 = smov 12  }
   0xb   :  { %s9639_s8 = sld [smem:[%s11568_s0 + %s9564_s4]]   ;;  %s9569_s1 = smov 13  }
   0xc   :  { %s9644_s14 = sld [smem:[%s11568_s0 + %s9565_s10]]   ;;  %s9570_s7 = smov 14  }
   0xd   :  { %s9649_s19 = sld [smem:[%s11568_s0 + %s9566_s15]]   ;;  %s9571_s15 = smov 15  }
   0xe   :  { %s9654_s24 = sld [smem:[%s11568_s0 + %s9567_s20]]   ;;  %s9572_s22 = smov 16  }
   0xf   :  { %s9659_s30 = sld [smem:[%s11568_s0 + %s9568_s26]]   ;;  %s9573_s28 = smov 17  }
  0x10   :  { %11626 = sst [smem:[#allocation7_spill]] %s9634_s3 }
  0x11   :  { %11627 = sst [smem:[#allocation8_spill]] %s9639_s8 }
  0x12   :  { %s9664_s6 = sld [smem:[%s11568_s0 + %s9569_s1]]  }
  0x13   :  { %s9669_s12 = sld [smem:[%s11568_s0 + %s9570_s7]]   ;;  %s9574_s7 = smov 18  }
  0x14   :  { %s9674_s20 = sld [smem:[%s11568_s0 + %s9571_s15]]   ;;  %s9575_s15 = smov 19  }
  0x15   :  { %s9679_s27 = sld [smem:[%s11568_s0 + %s9572_s22]]   ;;  %s9576_s22 = smov 20  }
  0x16   :  { %s9684_s4 = sld [smem:[%s11568_s0 + %s9573_s28]]   ;;  %s9577_s28 = smov 21  }
  0x18   :  { %11628 = sst [smem:[#allocation9_spill]] %s9664_s6 }
  0x19   :  { %11629 = sst [smem:[#allocation10_spill]] %s9669_s12 }
  0x1a   :  { %11630 = sst [smem:[#allocation11_spill]] %s9674_s20 }
  0x1b   :  { %11631 = sst [smem:[#allocation12_spill]] %s9679_s27 }
  0x1c   :  { %11632 = sst [smem:[#allocation13_spill]] %s9684_s4 }
  0x1d   :  { %s9689_s12 = sld [smem:[%s11568_s0 + %s9574_s7]]   ;;  %s9578_s7 = smov 22  }
  0x1e   :  { %s9694_s20 = sld [smem:[%s11568_s0 + %s9575_s15]]   ;;  %s9579_s15 = smov 23  }
  0x1f   :  { %s9699_s27 = sld [smem:[%s11568_s0 + %s9576_s22]]   ;;  %s9580_s22 = smov 24  }
  0x20   :  { %s9704_s4 = sld [smem:[%s11568_s0 + %s9577_s28]]   ;;  %s9581_s28 = smov 25  }
  0x23   :  { %11633 = sst [smem:[#allocation14_spill]] %s9689_s12 }
  0x24   :  { %11634 = sst [smem:[#allocation15_spill]] %s9694_s20 }
  0x25   :  { %11635 = sst [smem:[#allocation16_spill]] %s9699_s27 }
  0x26   :  { %11636 = sst [smem:[#allocation17_spill]] %s9704_s4 }
  0x27   :  { %s9709_s12 = sld [smem:[%s11568_s0 + %s9578_s7]]   ;;  %s9582_s7 = smov 26  }
  0x28   :  { %s9714_s20 = sld [smem:[%s11568_s0 + %s9579_s15]]   ;;  %s9583_s15 = smov 27  }
  0x29   :  { %s9719_s27 = sld [smem:[%s11568_s0 + %s9580_s22]]   ;;  %s9584_s22 = smov 28  }
  0x2a   :  { %s9724_s4 = sld [smem:[%s11568_s0 + %s9581_s28]]   ;;  %s9585_s28 = smov 29  }
  0x2d   :  { %11637 = sst [smem:[#allocation18_spill]] %s9709_s12 }
  0x2e   :  { %11638 = sst [smem:[#allocation19_spill]] %s9714_s20 }
  0x2f   :  { %11639 = sst [smem:[#allocation20_spill]] %s9719_s27 }
  0x30   :  { %11640 = sst [smem:[#allocation21_spill]] %s9724_s4 }
  0x31   :  { %s9729_s12 = sld [smem:[%s11568_s0 + %s9582_s7]]   ;;  %s9586_s7 = smov 30  }
  0x32   :  { %s9734_s20 = sld [smem:[%s11568_s0 + %s9583_s15]]  }
  0x33   :  { %s9739_s27 = sld [smem:[%s11568_s0 + %s9584_s22]]  }
  0x34   :  { %s9744_s4 = sld [smem:[%s11568_s0 + %s9585_s28]]  }
  0x37   :  { %11641 = sst [smem:[#allocation22_spill]] %s9729_s12 }
  0x38   :  { %s9749_s12 = sld [smem:[%s11568_s0 + %s9586_s7]]  }
  0x3a   :  { %11642 = sst [smem:[#allocation23_spill]] %s9744_s4 }
  0x3e   :  { %11643 = sst [smem:[#allocation24_spill]] %s9749_s12 }
  0x3f   :  { %66 = vsyncpa [#allocation3], 0 }
  0x40   :  { %68 = vsyncpa [#allocation3 + $0x1], 0  ;;  %s9751_s15 = smov 0   ;;  %s9753_s16 = smov 0  }
  0x41   :  { %s9755_s18 = smov 0   ;;  %s9757_s22 = smov 0  }
  0x42 LB: > { %s11644_s4 = sld [smem:[#allocation23_spill]]  ;;  %s11645_s8 = sld [smem:[#allocation8_spill]]  ;;  %s9543_s15 = sphi %s9751_s15, %s11728_s15   ;;  %s9555_s22 = sphi %s9757_s22, %s11725_s22   ;;  %s9551_s18 = sphi %s9755_s18, %s11730_s18   ;;  %s9547_s16 = sphi %s9753_s16, %s11729_s16  }
  0x43   : > { %s11646_s6 = sld [smem:[#allocation9_spill]]  ;;  %s11647_s3 = sld [smem:[#allocation7_spill]] }
  0x44   : > { %s11648_s9 = sld [smem:[#allocation6_spill]]  ;;  %11649 = sst [smem:[#allocation25_spill]] %s9543_s15 }
  0x45   : > { %11650 = sst [smem:[#allocation26_spill]] %s9551_s18  ;;  %s9772_s0 = sadd.s32 4294967295, %s9555_s22  }
  0x46   : > { %11651 = sst [smem:[#allocation27_spill]] %s9555_s22  ;;  %s7178_s23 = sadd.s32 4294967294, %s9555_s22  }
  0x47   : > { %11652 = sst [smem:[#allocation28_spill]] %s9772_s0  ;;  %s9776_s26 = sadd.s32 1, %s9555_s22  }
  0x48   : > { %11653 = sst [smem:[#allocation29_spill]] %s9776_s26  ;;  %s716_s28 = sadd.s32 1, %s9551_s18 }
  0x49   : > { %s713_s1 = ssub.s32 %s9555_s22, %s9776_s26  ;;  %p726_p0 = scmp.ne.s32.totalorder %s9551_s18, %s9547_s16 }
  0x4a   : > { %p714_p1 = scmp.eq.s32.totalorder %s713_s1, 0  ;;  %p727_p2 = scmp.eq.s32.totalorder %s9772_s0, 1 }
  0x4b   : > { %p732_p3 = scmp.ne.s32.totalorder %s9547_s16, %s9543_s15  ;;  %p733_p4 = scmp.eq.s32.totalorder %s7178_s23, 1 }
  0x4c   : > { %s9787_s2 = scalar_select %p714_p1, %s9551_s18, %s716_s28  }
  0x4d   : > { %p9789_p5 = por %p727_p2, %p726_p0  ;;  %p9793_p6 = por %p733_p4, %p732_p3 }
  0x4e   : > { %11654 = sst [smem:[#allocation30_spill]] %s9787_s2  ;;  %p7181_p7 = scmp.ge.s32.totalorder %s9555_s22, 1 }
  0x4f   : > { %s11655_s7 = scalar_select %p9789_p5, 1, 0 }
  0x50   : > { %s11657_s10 = scalar_select %p9793_p6, 1, 0 }
  0x51   : > { %11656 = sst [smem:[#allocation31_spill]] %s11655_s7  ;;  %p846_p8 = scmp.lt.s32.totalorder %s9555_s22, 3 }
  0x52   : > { %11658 = sst [smem:[#allocation32_spill]] %s11657_s10 }
  0x53   : > { %p847_p9 = pnand %p7181_p7, %p846_p8 }
  0x55   : > { %850 = sbr.rel (%p847_p9) target bundleno = 14112 (0x3720), region = 140 }
  0x5c   : > { %s11659_s5 = sld [smem:[#allocation5_spill]]  ;;  %p924_p10 = scmp.lt.s32.totalorder %s9772_s0, 1  ;;  %vm995_vm0 = vcmask 31744   ;;  %vm964_vm1 = vcmask 261120   ;;  %vm1697_vm2 = vcmask 1043456   ;;  %vm9588_vm3 = vmmov 0  }
  0x5d   : > { %vm10573_vm4 = vmpackc.low %vm964_vm1, %vm964_vm1  ;;  %s11681_s1 = sld [smem:[#allocation11_spill]]  ;;  %s11687_s2 = sld [smem:[#allocation14_spill]]  ;;  %vm3073_vm6 = vcmask 64512  }
  0x5e   : > { %s925_s11 = scalar_select %p924_p10, %s9772_s0, 1 }
  0x5f   : > { %s11688_s18 = sld [smem:[#allocation17_spill]]  ;;  %s11692_s15 = sld [smem:[#allocation19_spill]] }
  0x60   : > { %s7649_s23 = sshll.u32 %s925_s11, 8  ;;  %s11682_s11 = sld [smem:[#allocation10_spill]] }
  0x61   : > { %s11698_s22 = sld [smem:[#allocation21_spill]] }
  0x62   : > { %s9802_s28 = scalar_lea.vmem %s11659_s5, %s7649_s23  ;;  %s11683_s23 = sld [smem:[#allocation12_spill]] }
  0x63   : > { %v9805_v0 = vld [vmem:[%s9802_s28 + $0x10] sm:$0xff]  ;;  %v9808_v1 = vld [vmem:[%s9802_s28] sm:$0xff]  ;;  %v9811_v2 = vld [vmem:[%s9802_s28 + $0x18] sm:$0xff]  ;;  %s11685_s5 = sld [smem:[#allocation13_spill]] }
  0x64   : > { %v1002_v3 = vsel %vm995_vm0, %v9805_v0, 0.0  ;;  %v996_v4 = vsel %vm995_vm0, %v9808_v1, 0.0  ;;  %v9818_v5 = vld [vmem:[%s9802_s28 + $0x8] sm:$0xff]  ;;  %v1005_v6 = vsel %vm995_vm0, %v9811_v2, 0.0  ;;  %v9828_v9 = vld [vmem:[%s9802_s28 + $0x20] sm:$0xff]  ;;  %v9835_v12 = vld [vmem:[%s9802_s28 + $0x38] sm:$0xff] }
  0x65   : > { %1003 = vadd.xlane.f32.xlu1 %v1002_v3  ;;  %997 = vadd.xlane.f32.xlu0 %v996_v4  ;;  %v999_v7 = vsel %vm995_vm0, %v9818_v5, 0.0  ;;  %v9825_v8 = vld [vmem:[%s9802_s28 + $0x28] sm:$0xff]  ;;  %v1008_v11 = vsel %vm995_vm0, %v9828_v9, 0.0  ;;  %v9838_v13 = vld [vmem:[%s9802_s28 + $0x30] sm:$0xff]  ;;  %v1017_v14 = vsel %vm995_vm0, %v9835_v12, 0.0  ;;  %v9848_v17 = vld [vmem:[%s9802_s28 + $0x40] sm:$0xff]  ;;  %s11689_s26 = smov %s11688_s18  ;;  %s11693_s7 = smov %s11692_s15 }
  0x66   : > { %v1011_v10 = vsel %vm995_vm0, %v9825_v8, 0.0  ;;  %v1014_v15 = vsel %vm995_vm0, %v9838_v13, 0.0  ;;  %v9845_v16 = vld [vmem:[%s9802_s28 + $0x48] sm:$0xff]  ;;  %v1020_v19 = vsel %vm995_vm0, %v9848_v17, 0.0  ;;  %v9855_v20 = vld [vmem:[%s9802_s28 + $0x58] sm:$0xff]  ;;  %v9858_v21 = vld [vmem:[%s9802_s28 + $0x50] sm:$0xff] }
  0x67   : > { %v1023_v18 = vsel %vm995_vm0, %v9845_v16, 0.0  ;;  %v1029_v22 = vsel %vm995_vm0, %v9855_v20, 0.0  ;;  %v1026_v23 = vsel %vm995_vm0, %v9858_v21, 0.0  ;;  %v9865_v24 = vld [vmem:[%s9802_s28 + $0x68] sm:$0xff]  ;;  %v9868_v25 = vld [vmem:[%s9802_s28 + $0x60] sm:$0xff]  ;;  %v9875_v28 = vld [vmem:[%s9802_s28 + $0x78] sm:$0xff] }
  0x68   : > { %v1035_v26 = vsel %vm995_vm0, %v9865_v24, 0.0  ;;  %v1032_v27 = vsel %vm995_vm0, %v9868_v25, 0.0  ;;  %v9878_v29 = vld [vmem:[%s9802_s28 + $0x70] sm:$0xff]  ;;  %v1041_v30 = vsel %vm995_vm0, %v9875_v28, 0.0  ;;  %v9885_v32 = vld [vmem:[%s9802_s28 + $0x88] sm:$0xff]  ;;  %v9888_v33 = vld [vmem:[%s9802_s28 + $0x80] sm:$0xff] }
  0x69   : > { %1006 = vadd.xlane.f32.xlu1 %v1005_v6  ;;  %1000 = vadd.xlane.f32.xlu0 %v999_v7  ;;  %v1038_v31 = vsel %vm995_vm0, %v9878_v29, 0.0  ;;  %v1047_v34 = vsel %vm995_vm0, %v9885_v32, 0.0  ;;  %v1044_v35 = vsel %vm995_vm0, %v9888_v33, 0.0  ;;  %v9895_v36 = vld [vmem:[%s9802_s28 + $0x98] sm:$0xff]  ;;  %v9898_v37 = vld [vmem:[%s9802_s28 + $0x90] sm:$0xff]  ;;  %v9905_v40 = vld [vmem:[%s9802_s28 + $0xa8] sm:$0xff] }
  0x6a   : > { %v1053_v38 = vsel %vm995_vm0, %v9895_v36, 0.0  ;;  %v1050_v39 = vsel %vm995_vm0, %v9898_v37, 0.0  ;;  %v9908_v41 = vld [vmem:[%s9802_s28 + $0xa0] sm:$0xff]  ;;  %v1059_v42 = vsel %vm995_vm0, %v9905_v40, 0.0  ;;  %v9915_v44 = vld [vmem:[%s9802_s28 + $0xb8] sm:$0xff]  ;;  %v9918_v45 = vld [vmem:[%s9802_s28 + $0xb0] sm:$0xff] }
  0x6b   : > { %v1056_v43 = vsel %vm995_vm0, %v9908_v41, 0.0  ;;  %v1065_v46 = vsel %vm995_vm0, %v9915_v44, 0.0  ;;  %v1062_v47 = vsel %vm995_vm0, %v9918_v45, 0.0  ;;  %v9925_v48 = vld [vmem:[%s9802_s28 + $0xc8] sm:$0xff]  ;;  %v9928_v49 = vld [vmem:[%s9802_s28 + $0xc0] sm:$0xff]  ;;  %v9935_v52 = vld [vmem:[%s9802_s28 + $0xd8] sm:$0xff] }
  0x6c   : > { %v1071_v50 = vsel %vm995_vm0, %v9925_v48, 0.0  ;;  %v1068_v51 = vsel %vm995_vm0, %v9928_v49, 0.0  ;;  %v9938_v53 = vld [vmem:[%s9802_s28 + $0xd0] sm:$0xff]  ;;  %v1077_v54 = vsel %vm995_vm0, %v9935_v52, 0.0  ;;  %v9945_v56 = vld [vmem:[%s9802_s28 + $0xe0] sm:$0xff]  ;;  %v9950_v58 = vld [vmem:[%s9802_s28 + $0xe8] sm:$0xff] }
  0x6d   : > { %1012 = vadd.xlane.f32.xlu1 %v1011_v10  ;;  %1009 = vadd.xlane.f32.xlu0 %v1008_v11  ;;  %v1074_v55 = vsel %vm995_vm0, %v9938_v53, 0.0  ;;  %v1080_v57 = vsel %vm995_vm0, %v9945_v56, 0.0  ;;  %v1083_v59 = vsel %vm995_vm0, %v9950_v58, 0.0  ;;  %v9955_v60 = vld [vmem:[%s9802_s28 + $0xf0] sm:$0xff] }
  0x6e   : > { %v1086_v61 = vsel %vm995_vm0, %v9955_v60, 0.0 }
  0x71   : > { %1018 = vadd.xlane.f32.xlu1 %v1017_v14  ;;  %1015 = vadd.xlane.f32.xlu0 %v1014_v15 }
  0x75   : > { %1024 = vadd.xlane.f32.xlu1 %v1023_v18  ;;  %1021 = vadd.xlane.f32.xlu0 %v1020_v19 }
  0x79   : > { %1030 = vadd.xlane.f32.xlu1 %v1029_v22  ;;  %1027 = vadd.xlane.f32.xlu0 %v1026_v23 }
  0x7d   : > { %1036 = vadd.xlane.f32.xlu1 %v1035_v26  ;;  %1033 = vadd.xlane.f32.xlu0 %v1032_v27 }
  0x81   : > { %1042 = vadd.xlane.f32.xlu1 %v1041_v30  ;;  %1039 = vadd.xlane.f32.xlu0 %v1038_v31 }
  0x85   : > { %1048 = vadd.xlane.f32.xlu1 %v1047_v34  ;;  %1045 = vadd.xlane.f32.xlu0 %v1044_v35  ;;  %v9981_v34 = vld [vmem:[%s9802_s28 + $0xf8] sm:$0xff]  ;;  %s11684_s28 = sld [smem:[#allocation15_spill]] }
  0x89   : > { %1054 = vadd.xlane.f32.xlu1 %v1053_v38  ;;  %1051 = vadd.xlane.f32.xlu0 %v1050_v39 }
  0x8d   : > { %1060 = vadd.xlane.f32.xlu1 %v1059_v42  ;;  %1057 = vadd.xlane.f32.xlu0 %v1056_v43 }
  0x91   : > { %1066 = vadd.xlane.f32.xlu1 %v1065_v46  ;;  %1063 = vadd.xlane.f32.xlu0 %v1062_v47  ;;  %v1089_v46 = vsel %vm995_vm0, %v9981_v34, 0.0 }
  0x95   : > { %1072 = vadd.xlane.f32.xlu1 %v1071_v50  ;;  %1069 = vadd.xlane.f32.xlu0 %v1068_v51 }
  0x99   : > { %1078 = vadd.xlane.f32.xlu1 %v1077_v54  ;;  %1075 = vadd.xlane.f32.xlu0 %v1074_v55 }
  0x9d   : > { %1081 = vadd.xlane.f32.xlu1 %v1080_v57 }
  0xa1   : > { %1084 = vadd.xlane.f32.xlu1 %v1083_v59 }
  0xa5   : > { %1087 = vadd.xlane.f32.xlu1 %v1086_v61 }
  0xf2   : > { %v1004_v62 = vpop.xlane.xlu1 %1003  ;;  %v998_v63 = vpop.xlane.xlu0 %997 }
  0xf3   : > { %v1095_v3 = vmul.f32 0.25, %v1004_v62  ;;  %v1093_v4 = vmul.f32 0.25, %v998_v63 }
  0xf5   : > { %v9960_v6 = vsub.f32 %v9808_v1, %v1093_v4  ;;  %v9963_v7 = vsub.f32 %v9805_v0, %v1095_v3 }
  0xf6   : > { %v1007_v10 = vpop.xlane.xlu1 %1006  ;;  %v1001_v11 = vpop.xlane.xlu0 %1000 }
  0xf7   : > { %v1096_v14 = vmul.f32 0.25, %v1007_v10  ;;  %v1094_v15 = vmul.f32 0.25, %v1001_v11  ;;  %v1157_v18 = vmul.f32 %v9960_v6, %v9960_v6  ;;  %v1159_v26 = vmul.f32 %v9963_v7, %v9963_v7 }
  0xf9   : > { %v9968_v19 = vsub.f32 %v9811_v2, %v1096_v14  ;;  %v9971_v22 = vsub.f32 %v9818_v5, %v1094_v15  ;;  %v1189_v1 = vsel %vm995_vm0, %v1157_v18, 0.0  ;;  %v1195_v51 = vsel %vm995_vm0, %v1159_v26, 0.0 }
  0xfa   : > { %v1013_v23 = vpop.xlane.xlu1 %1012  ;;  %1190 = vadd.xlane.f32.xlu0 %v1189_v1  ;;  %v1010_v0 = vpop.xlane.xlu0 %1009 }
  0xfb   : > { %v1098_v27 = vmul.f32 0.25, %v1013_v23  ;;  %v1097_v30 = vmul.f32 0.25, %v1010_v0  ;;  %v1160_v31 = vmul.f32 %v9968_v19, %v9968_v19  ;;  %v1158_v2 = vmul.f32 %v9971_v22, %v9971_v22 }
  0xfd   : > { %v9984_v5 = vsub.f32 %v9828_v9, %v1097_v30  ;;  %v1198_v35 = vsel %vm995_vm0, %v1160_v31, 0.0  ;;  %v1192_v38 = vsel %vm995_vm0, %v1158_v2, 0.0  ;;  %v9989_v39 = vsub.f32 %v9825_v8, %v1098_v27 }
  0xfe   : > { %1199 = vadd.xlane.f32.xlu1 %v1198_v35  ;;  %v1019_v42 = vpop.xlane.xlu1 %1018  ;;  %1193 = vadd.xlane.f32.xlu0 %v1192_v38  ;;  %v1016_v43 = vpop.xlane.xlu0 %1015 }
  0xff   : > { %v1100_v47 = vmul.f32 0.25, %v1019_v42  ;;  %v1099_v50 = vmul.f32 0.25, %v1016_v43  ;;  %v1161_v9 = vmul.f32 %v9984_v5, %v9984_v5  ;;  %v1162_v59 = vmul.f32 %v9989_v39, %v9989_v39 }
 0x101   : > { %v9997_v54 = vsub.f32 %v9835_v12, %v1100_v47  ;;  %v10000_v8 = vsub.f32 %v9838_v13, %v1099_v50  ;;  %v1201_v3 = vsel %vm995_vm0, %v1161_v9, 0.0  ;;  %v1204_v1 = vsel %vm995_vm0, %v1162_v59, 0.0  ;;  %v10039_v9 = vld [vmem:[%s11648_s9] sm:$0xff] }
 0x102   : > { %1090 = vadd.xlane.f32.xlu1 %v1089_v46  ;;  %v1025_v55 = vpop.xlane.xlu1 %1024  ;;  %1196 = vadd.xlane.f32.xlu0 %v1195_v51  ;;  %v1022_v57 = vpop.xlane.xlu0 %1021 }
 0x103   : > { %v1102_v61 = vmul.f32 0.25, %v1025_v55  ;;  %v1101_v62 = vmul.f32 0.25, %v1022_v57  ;;  %v1164_v63 = vmul.f32 %v9997_v54, %v9997_v54  ;;  %v1163_v11 = vmul.f32 %v10000_v8, %v10000_v8 }
 0x105   : > { %v10008_v12 = vsub.f32 %v9845_v16, %v1102_v61  ;;  %v1210_v13 = vsel %vm995_vm0, %v1164_v63, 0.0  ;;  %v10014_v14 = vsub.f32 %v9848_v17, %v1101_v62  ;;  %v1207_v27 = vsel %vm995_vm0, %v1163_v11, 0.0 }
 0x106   : > { %1211 = vadd.xlane.f32.xlu1 %v1210_v13  ;;  %v1031_v4 = vpop.xlane.xlu1 %1030  ;;  %1202 = vadd.xlane.f32.xlu0 %v1201_v3  ;;  %v1028_v10 = vpop.xlane.xlu0 %1027  ;;  %v965_v63 = vsel %vm964_vm1, %v10039_v9, 0.0 }
 0x107   : > { %v1103_v15 = vmul.f32 0.25, %v1028_v10  ;;  %v1166_v18 = vmul.f32 %v10008_v12, %v10008_v12  ;;  %v1104_v17 = vmul.f32 0.25, %v1031_v4  ;;  %v1165_v2 = vmul.f32 %v10014_v14, %v10014_v14 }
 0x109   : > { %v10020_v16 = vsub.f32 %v9858_v21, %v1103_v15  ;;  %v1216_v23 = vsel %vm995_vm0, %v1166_v18, 0.0  ;;  %v10033_v46 = vsub.f32 %v9855_v20, %v1104_v17  ;;  %v1213_v50 = vsel %vm995_vm0, %v1165_v2, 0.0 }
 0x10a   : > { %1217 = vadd.xlane.f32.xlu1 %v1216_v23  ;;  %v1037_v0 = vpop.xlane.xlu1 %1036  ;;  %1205 = vadd.xlane.f32.xlu0 %v1204_v1  ;;  %v1034_v26 = vpop.xlane.xlu0 %1033 }
 0x10b   : > { %v1105_v30 = vmul.f32 0.25, %v1034_v26  ;;  %v1167_v31 = vmul.f32 %v10020_v16, %v10020_v16  ;;  %v1106_v38 = vmul.f32 0.25, %v1037_v0 }
 0x10d   : > { %v10029_v21 = vsub.f32 %v9868_v25, %v1105_v30  ;;  %v1219_v35 = vsel %vm995_vm0, %v1167_v31, 0.0  ;;  %v10046_v57 = vsub.f32 %v9865_v24, %v1106_v38 }
 0x10e   : > { %v1043_v42 = vpop.xlane.xlu1 %1042  ;;  %1208 = vadd.xlane.f32.xlu0 %v1207_v27  ;;  %1220 = vadd.xlane.f32.xlu1 %v1219_v35  ;;  %v1040_v43 = vpop.xlane.xlu0 %1039 }
 0x10f   : > { %v1107_v47 = vmul.f32 0.25, %v1040_v43  ;;  %v1169_v51 = vmul.f32 %v10029_v21, %v10029_v21  ;;  %v1108_v59 = vmul.f32 0.25, %v1043_v42  ;;  %v1170_v15 = vmul.f32 %v10046_v57, %v10046_v57 }
 0x111   : > { %v10042_v25 = vsub.f32 %v9878_v29, %v1107_v47  ;;  %v1225_v55 = vsel %vm995_vm0, %v1169_v51, 0.0  ;;  %v1168_v29 = vmul.f32 %v10033_v46, %v10033_v46  ;;  %v10059_v4 = vsub.f32 %v9875_v28, %v1108_v59 }
 0x112   : > { %v1049_v20 = vpop.xlane.xlu1 %1048  ;;  %1214 = vadd.xlane.f32.xlu0 %v1213_v50  ;;  %1226 = vadd.xlane.f32.xlu1 %v1225_v55  ;;  %v1046_v61 = vpop.xlane.xlu0 %1045  ;;  %v1228_v17 = vsel %vm995_vm0, %v1170_v15, 0.0 }
 0x113   : > { %v1109_v62 = vmul.f32 0.25, %v1046_v61  ;;  %v1171_v3 = vmul.f32 %v10042_v25, %v10042_v25  ;;  %v1110_v18 = vmul.f32 0.25, %v1049_v20  ;;  %v1222_v23 = vsel %vm995_vm0, %v1168_v29, 0.0  ;;  %v1493_v20 = vld [vmem:[%s11647_s3] sm:$0xf] }
 0x114   : > { %v1172_v30 = vmul.f32 %v10059_v4, %v10059_v4  ;;  %8149 = vmatprep.subr.msk.mxu1 %vm1697_vm2, %v1493_v20 }
 0x115   : > { %v10055_v13 = vsub.f32 %v9888_v33, %v1109_v62  ;;  %v1231_v24 = vsel %vm995_vm0, %v1171_v3, 0.0  ;;  %v10074_v31 = vsub.f32 %v9885_v32, %v1110_v18  ;;  %8150 = vmatpush3.msk.msra.mxu1 %vm1697_vm2, %v1493_v20 }
 0x116   : > { %v1055_v10 = vpop.xlane.xlu1 %1054  ;;  %966 = vadd.xlane.f32.xlu0 %v965_v63  ;;  %1232 = vadd.xlane.f32.xlu1 %v1231_v24  ;;  %v1052_v11 = vpop.xlane.xlu0 %1051  ;;  %v1234_v51 = vsel %vm995_vm0, %v1172_v30, 0.0 }
 0x117   : > { %v1111_v1 = vmul.f32 0.25, %v1052_v11  ;;  %v1173_v33 = vmul.f32 %v10055_v13, %v10055_v13  ;;  %v1112_v2 = vmul.f32 0.25, %v1055_v10 }
 0x119   : > { %v10067_v0 = vsub.f32 %v9898_v37, %v1111_v1  ;;  %v1237_v28 = vsel %vm995_vm0, %v1173_v33, 0.0  ;;  %v10084_v32 = vsub.f32 %v9895_v36, %v1112_v2 }
 0x11a   : > { %v1061_v26 = vpop.xlane.xlu1 %1060  ;;  %1223 = vadd.xlane.f32.xlu0 %v1222_v23  ;;  %1238 = vadd.xlane.f32.xlu1 %v1237_v28  ;;  %v1058_v27 = vpop.xlane.xlu0 %1057 }
 0x11b   : > { %v1113_v35 = vmul.f32 0.25, %v1058_v27  ;;  %v1175_v37 = vmul.f32 %v10067_v0, %v10067_v0  ;;  %v1114_v43 = vmul.f32 0.25, %v1061_v26 }
 0x11d   : > { %v10079_v38 = vsub.f32 %v9908_v41, %v1113_v35  ;;  %v1243_v42 = vsel %vm995_vm0, %v1175_v37, 0.0  ;;  %v1174_v41 = vmul.f32 %v10074_v31, %v10074_v31  ;;  %v10097_v63 = vsub.f32 %v9905_v40, %v1114_v43 }
 0x11e   : > { %v1067_v47 = vpop.xlane.xlu1 %1066  ;;  %1229 = vadd.xlane.f32.xlu0 %v1228_v17  ;;  %1244 = vadd.xlane.f32.xlu1 %v1243_v42  ;;  %v1064_v50 = vpop.xlane.xlu0 %1063 }
 0x11f   : > { %v1115_v55 = vmul.f32 0.25, %v1064_v50  ;;  %v1177_v59 = vmul.f32 %v10079_v38, %v10079_v38  ;;  %v1116_v36 = vmul.f32 0.25, %v1067_v47  ;;  %v1240_v10 = vsel %vm995_vm0, %v1174_v41, 0.0 }
 0x120   : > { %v1178_v33 = vmul.f32 %v10097_v63, %v10097_v63 }
 0x121   : > { %v10092_v61 = vsub.f32 %v9918_v45, %v1115_v55  ;;  %v1249_v62 = vsel %vm995_vm0, %v1177_v59, 0.0  ;;  %v1176_v45 = vmul.f32 %v10084_v32, %v10084_v32  ;;  %v10110_v18 = vsub.f32 %v9915_v44, %v1116_v36 }
 0x122   : > { %v1073_v3 = vpop.xlane.xlu1 %1072  ;;  %1235 = vadd.xlane.f32.xlu0 %v1234_v51  ;;  %1250 = vadd.xlane.f32.xlu1 %v1249_v62  ;;  %v1070_v29 = vpop.xlane.xlu0 %1069  ;;  %v1252_v2 = vsel %vm995_vm0, %v1178_v33, 0.0 }
 0x123   : > { %v1117_v24 = vmul.f32 0.25, %v1070_v29  ;;  %v1179_v11 = vmul.f32 %v10092_v61, %v10092_v61  ;;  %v1118_v28 = vmul.f32 0.25, %v1073_v3  ;;  %v1246_v27 = vsel %vm995_vm0, %v1176_v45, 0.0 }
 0x124   : > { %v1180_v35 = vmul.f32 %v10110_v18, %v10110_v18 }
 0x125   : > { %v10106_v15 = vsub.f32 %v9928_v49, %v1117_v24  ;;  %v1255_v40 = vsel %vm995_vm0, %v1179_v11, 0.0  ;;  %v10125_v37 = vsub.f32 %v9925_v48, %v1118_v28 }
 0x126   : > { %v1079_v1 = vpop.xlane.xlu1 %1078  ;;  %1241 = vadd.xlane.f32.xlu0 %v1240_v10  ;;  %1256 = vadd.xlane.f32.xlu1 %v1255_v40  ;;  %v1076_v23 = vpop.xlane.xlu0 %1075  ;;  %v1258_v55 = vsel %vm995_vm0, %v1180_v35, 0.0 }
 0x127   : > { %v1119_v26 = vmul.f32 0.25, %v1076_v23  ;;  %v1181_v49 = vmul.f32 %v10106_v15, %v10106_v15  ;;  %v1120_v42 = vmul.f32 0.25, %v1079_v1  ;;  %v1182_v20 = vmul.f32 %v10125_v37, %v10125_v37 }
 0x129   : > { %v10118_v17 = vsub.f32 %v9938_v53, %v1119_v26  ;;  %v1261_v44 = vsel %vm995_vm0, %v1181_v49, 0.0  ;;  %v10135_v59 = vsub.f32 %v9935_v52, %v1120_v42  ;;  %v1264_v29 = vsel %vm995_vm0, %v1182_v20, 0.0 }
 0x12a   : > { %v1082_v30 = vpop.xlane.xlu1 %1081  ;;  %1247 = vadd.xlane.f32.xlu0 %v1246_v27  ;;  %1262 = vadd.xlane.f32.xlu1 %v1261_v44 }
 0x12b   : > { %v1121_v43 = vmul.f32 0.25, %v1082_v30  ;;  %v1183_v47 = vmul.f32 %v10118_v17, %v10118_v17  ;;  %v1184_v52 = vmul.f32 %v10135_v59, %v10135_v59 }
 0x12d   : > { %v10130_v53 = vsub.f32 %v9945_v56, %v1121_v43  ;;  %v1267_v50 = vsel %vm995_vm0, %v1183_v47, 0.0  ;;  %v1270_v10 = vsel %vm995_vm0, %v1184_v52, 0.0 }
 0x12e   : > { %v1085_v51 = vpop.xlane.xlu1 %1084  ;;  %1253 = vadd.xlane.f32.xlu0 %v1252_v2  ;;  %1268 = vadd.xlane.f32.xlu1 %v1267_v50 }
 0x12f   : > { %v1122_v48 = vmul.f32 0.25, %v1085_v51  ;;  %v1185_v41 = vmul.f32 %v10130_v53, %v10130_v53 }
 0x131   : > { %v1273_v56 = vsel %vm995_vm0, %v1185_v41, 0.0  ;;  %v10143_v36 = vsub.f32 %v9950_v58, %v1122_v48 }
 0x132   : > { %v1088_v62 = vpop.xlane.xlu1 %1087  ;;  %1259 = vadd.xlane.f32.xlu0 %v1258_v55  ;;  %1274 = vadd.xlane.f32.xlu1 %v1273_v56 }
 0x133   : > { %v1123_v3 = vmul.f32 0.25, %v1088_v62  ;;  %v1186_v45 = vmul.f32 %v10143_v36, %v10143_v36 }
 0x135   : > { %v10149_v24 = vsub.f32 %v9955_v60, %v1123_v3  ;;  %v1276_v40 = vsel %vm995_vm0, %v1186_v45, 0.0  ;;  %v10165_v3 = vld [vmem:[%s9619_s21] ss:$0 sm:$0xff] }
 0x136   : > { %1265 = vadd.xlane.f32.xlu0 %v1264_v29 }
 0x137   : > { %v1187_v11 = vmul.f32 %v10149_v24, %v10149_v24 }
 0x139   : > { %v1279_v58 = vsel %vm995_vm0, %v1187_v11, 0.0 }
 0x13a   : > { %1271 = vadd.xlane.f32.xlu0 %v1270_v10  ;;  %1280 = vadd.xlane.f32.xlu1 %v1279_v58  ;;  %v10171_v58 = vld [vmem:[%s9624_s25] ss:$0 sm:$0xff] }
 0x13e   : > { %1277 = vadd.xlane.f32.xlu0 %v1276_v40 }
 0x187   : > { %v1191_v1 = vpop.xlane.xlu0 %1190 }
 0x188   : > { %v1285_v23 = vmul.f32 0.25, %v1191_v1 }
 0x18a   : > { %v1317_v60 = vadd.f32 1e-05, %v1285_v23 }
 0x18b   : > { %v1200_v33 = vpop.xlane.xlu1 %1199  ;;  %v1194_v28 = vpop.xlane.xlu0 %1193 }
 0x18c   : > { %9352 = vrsqrt.f32 %v1317_v60  ;;  %v1288_v26 = vmul.f32 0.25, %v1200_v33  ;;  %v1286_v27 = vmul.f32 0.25, %v1194_v28 }
 0x18e   : > { %v1320_v49 = vadd.f32 1e-05, %v1288_v26  ;;  %v1318_v44 = vadd.f32 1e-05, %v1286_v27 }
 0x18f   : > { %v1091_v30 = vpop.xlane.xlu1 %1090  ;;  %v1197_v2 = vpop.xlane.xlu0 %1196 }
 0x190   : > { %9354 = vrsqrt.f32 %v1320_v49  ;;  %v1124_v35 = vmul.f32 0.25, %v1091_v30  ;;  %v1287_v42 = vmul.f32 0.25, %v1197_v2 }
 0x191   : > { %9356 = vrsqrt.f32 %v1318_v44 }
 0x192   : > { %v10159_v43 = vsub.f32 %v9981_v34, %v1124_v35  ;;  %v1319_v47 = vadd.f32 1e-05, %v1287_v42 }
 0x193   : > { %v1212_v50 = vpop.xlane.xlu1 %1211  ;;  %v1203_v51 = vpop.xlane.xlu0 %1202 }
 0x194   : > { %9358 = vrsqrt.f32 %v1319_v47  ;;  %v1292_v55 = vmul.f32 0.25, %v1212_v50  ;;  %v1289_v48 = vmul.f32 0.25, %v1203_v51  ;;  %v1188_v41 = vmul.f32 %v10159_v43, %v10159_v43 }
 0x196   : > { %v9353_v20 = vpop.eup %9352  ;;  %v1321_v56 = vadd.f32 1e-05, %v1289_v48  ;;  %v1282_v62 = vsel %vm995_vm0, %v1188_v41, 0.0  ;;  %v1324_v29 = vadd.f32 1e-05, %v1292_v55 }
 0x197   : > { %v1218_v52 = vpop.xlane.xlu1 %1217  ;;  %1283 = vadd.xlane.f32.xlu0 %v1282_v62  ;;  %v1206_v34 = vpop.xlane.xlu0 %1205  ;;  %v10168_v10 = vmul.f32 %v9353_v20, %v9960_v6 }
 0x198   : > { %v1294_v11 = vmul.f32 0.25, %v1218_v52  ;;  %v1290_v45 = vmul.f32 0.25, %v1206_v34  ;;  %9360 = vrsqrt.f32 %v1321_v56 }
 0x199   : > { %v1419_v40 = vmul.f32 %v10165_v3, %v10168_v10  ;;  %9362 = vrsqrt.f32 %v1324_v29 }
 0x19a   : > { %v9355_v1 = vpop.eup %9354  ;;  %v1322_v23 = vadd.f32 1e-05, %v1290_v45  ;;  %v1326_v27 = vadd.f32 1e-05, %v1294_v11 }
 0x19b   : > { %v9357_v60 = vpop.eup %9356  ;;  %v1221_v33 = vpop.xlane.xlu1 %1220  ;;  %v10176_v26 = vadd.f32 %v10171_v58, %v1419_v40  ;;  %v10179_v6 = vmul.f32 %v9355_v1, %v9968_v19 }
 0x19c   : > { %v1209_v28 = vpop.xlane.xlu0 %1208  ;;  %v1295_v49 = vmul.f32 0.25, %v1221_v33  ;;  %v10182_v30 = vmul.f32 %v9357_v60, %v9971_v22  ;;  %9364 = vrsqrt.f32 %v1322_v23 }
 0x19d   : > { %v1291_v44 = vmul.f32 0.25, %v1209_v28  ;;  %8151 = vmatprep.mubr.msk.f32.mxu1 %vm995_vm0, %v10176_v26  ;;  %v1422_v55 = vmul.f32 %v10165_v3, %v10179_v6  ;;  %9366 = vrsqrt.f32 %v1326_v27 }
 0x19e   : > { %v9359_v2 = vpop.eup %9358  ;;  %v1327_v35 = vadd.f32 1e-05, %v1295_v49  ;;  %v1420_v47 = vmul.f32 %v10165_v3, %v10182_v30 }
 0x19f   : > { %v1323_v42 = vadd.f32 1e-05, %v1291_v44  ;;  %v1227_v50 = vpop.xlane.xlu1 %1226  ;;  %v10189_v19 = vmul.f32 %v9359_v2, %v9963_v7  ;;  %v10204_v34 = vadd.f32 %v10171_v58, %v1422_v55 }
 0x1a0   : > { %v1215_v51 = vpop.xlane.xlu0 %1214  ;;  %v1297_v22 = vmul.f32 0.25, %v1227_v50  ;;  %v10194_v41 = vadd.f32 %v10171_v58, %v1420_v47 }
 0x1a1   : > { %v1293_v48 = vmul.f32 0.25, %v1215_v51  ;;  %9368 = vrsqrt.f32 %v1323_v42  ;;  %v1421_v20 = vmul.f32 %v10165_v3, %v10189_v19 }
 0x1a2   : > { %9370 = vrsqrt.f32 %v1327_v35  ;;  %8152 = vmatmul.mubr.msk.f32.vlgmr.msra.gmra.mrb[0].mxu1 %vm995_vm0, %v10194_v41  ;;  %v9361_v7 = vpop.eup %9360  ;;  %v1329_v11 = vadd.f32 1e-05, %v1297_v22 }
 0x1a3   : > { %v1325_v56 = vadd.f32 1e-05, %v1293_v48  ;;  %v1233_v62 = vpop.xlane.xlu1 %1232  ;;  %v10201_v52 = vadd.f32 %v10171_v58, %v1421_v20  ;;  %v10207_v1 = vmul.f32 %v9361_v7, %v9984_v5  ;;  %v9363_v23 = vpop.eup %9362 }
 0x1a4   : > { %v967_v29 = vpop.xlane.xlu0 %966  ;;  %v1299_v45 = vmul.f32 0.25, %v1233_v62  ;;  %v10227_v47 = vmul.f32 %v9363_v23, %v9997_v54 }
 0x1a5   : > { %v969_v40 = vmul.f32 0.03125, %v967_v29  ;;  %9372 = vrsqrt.f32 %v1325_v56  ;;  %8154 = vmatprep.mubr.msk.f32.mxu1 %vm995_vm0, %v10201_v52  ;;  %v1423_v28 = vmul.f32 %v10165_v3, %v10207_v1 }
 0x1a6   : > { %v1331_v60 = vadd.f32 1e-05, %v1299_v45  ;;  %8155 = vmatmul.mubr.msk.f32.gmra.mrb[2].mxu1 %vm995_vm0, %v10204_v34  ;;  %v9365_v27 = vpop.eup %9364  ;;  %9374 = vrsqrt.f32 %v1329_v11  ;;  %v1426_v45 = vmul.f32 %v10165_v3, %v10227_v47 }
 0x1a7   : > { %v10212_v33 = vsub.f32 %v10039_v9, %v969_v40  ;;  %v1239_v49 = vpop.xlane.xlu1 %1238  ;;  %v10219_v35 = vadd.f32 %v10171_v58, %v1423_v28  ;;  %v10224_v9 = vmul.f32 %v9365_v27, %v9989_v39  ;;  %v9367_v50 = vpop.eup %9366 }
 0x1a8   : > { %v1224_v44 = vpop.xlane.xlu0 %1223  ;;  %v1301_v5 = vmul.f32 0.25, %v1239_v49  ;;  %9376 = vrsqrt.f32 %v1331_v60  ;;  %v10245_v60 = vmul.f32 %v9367_v50, %v10008_v12 }
 0x1a9   : > { %v1296_v2 = vmul.f32 0.25, %v1224_v44  ;;  %v971_v42 = vmul.f32 %v10212_v33, %v10212_v33  ;;  %8157 = vmatprep.mubr.msk.f32.mxu1 %vm995_vm0, %v10219_v35  ;;  %v1424_v7 = vmul.f32 %v10165_v3, %v10224_v9 }
 0x1aa   : > { %v1333_v51 = vadd.f32 1e-05, %v1301_v5  ;;  %11660 = vst [vmem:[#allocation33_spill] sm:$0xff] %v10245_v60 }
 0x1ab   : > { %v1328_v55 = vadd.f32 1e-05, %v1296_v2  ;;  %v9369_v22 = vpop.eup %9368  ;;  %v1245_v48 = vpop.xlane.xlu1 %1244  ;;  %v972_v20 = vsel %vm964_vm1, %v971_v42, 0.0  ;;  %v10238_v11 = vadd.f32 %v10171_v58, %v1424_v7 }
 0x1ac   : > { %v1230_v56 = vpop.xlane.xlu0 %1229  ;;  %v9371_v39 = vpop.eup %9370  ;;  %v1303_v62 = vmul.f32 0.25, %v1245_v48  ;;  %973 = vadd.xlane.f32.xlu1 %v972_v20  ;;  %v10235_v29 = vmul.f32 %v9369_v22, %v10000_v8 }
 0x1ad   : > { %v1298_v54 = vmul.f32 0.25, %v1230_v56  ;;  %9378 = vrsqrt.f32 %v1328_v55  ;;  %8158 = vmatmul.mubr.msk.f32.gmra.mrb[4].mxu1 %vm995_vm0, %v10238_v11  ;;  %v10250_v49 = vmul.f32 %v9371_v39, %v10020_v16  ;;  %v1428_v16 = vmul.f32 %v10165_v3, %v10245_v60 }
 0x1ae   : > { %9380 = vrsqrt.f32 %v1333_v51  ;;  %v1425_v23 = vmul.f32 %v10165_v3, %v10235_v29  ;;  %v1335_v44 = vadd.f32 1e-05, %v1303_v62  ;;  %v10256_v51 = vadd.f32 %v10171_v58, %v1426_v45 }
 0x1af   : > { %v1330_v40 = vadd.f32 1e-05, %v1298_v54  ;;  %v9373_v28 = vpop.eup %9372  ;;  %v1251_v8 = vpop.xlane.xlu1 %1250  ;;  %11661 = vst [vmem:[#allocation34_spill] sm:$0xff] %v10250_v49 }
 0x1b0   : > { %v1236_v27 = vpop.xlane.xlu0 %1235  ;;  %v1305_v5 = vmul.f32 0.25, %v1251_v8  ;;  %v10253_v42 = vadd.f32 %v10171_v58, %v1425_v23  ;;  %v10259_v12 = vmul.f32 %v9373_v28, %v10014_v14  ;;  %v9375_v50 = vpop.eup %9374  ;;  %v1429_v14 = vmul.f32 %v10165_v3, %v10250_v49 }
 0x1b1   : > { %v1300_v2 = vmul.f32 0.25, %v1236_v27  ;;  %9382 = vrsqrt.f32 %v1330_v40  ;;  %v10275_v45 = vmul.f32 %v9375_v50, %v10029_v21  ;;  %v10278_v23 = vadd.f32 %v10171_v58, %v1428_v16 }
 0x1b2   : > { %8160 = vmatprep.mubr.msk.f32.mxu1 %vm995_vm0, %v10253_v42  ;;  %v1427_v20 = vmul.f32 %v10165_v3, %v10259_v12  ;;  %v9377_v56 = vpop.eup %9376  ;;  %9384 = vrsqrt.f32 %v1335_v44  ;;  %v1337_v7 = vadd.f32 1e-05, %v1305_v5  ;;  %v10283_v44 = vadd.f32 %v10171_v58, %v1429_v14 }
 0x1b3   : > { %v1332_v55 = vadd.f32 1e-05, %v1300_v2  ;;  %8161 = vmatmul.mubr.msk.f32.gmra.mrb[6].mxu1 %vm995_vm0, %v10256_v51  ;;  %v1257_v22 = vpop.xlane.xlu1 %1256  ;;  %11662 = vst [vmem:[#allocation35_spill] sm:$0xff] %v10275_v45  ;;  %v10286_v2 = vmul.f32 %v9377_v56, %v10042_v25 }
 0x1b4   : > { %v1242_v48 = vpop.xlane.xlu0 %1241  ;;  %v1307_v39 = vmul.f32 0.25, %v1257_v22  ;;  %v10272_v54 = vadd.f32 %v10171_v58, %v1427_v20  ;;  %v1431_v22 = vmul.f32 %v10165_v3, %v10275_v45  ;;  %v1491_v45 = vld [vmem:[%s9629_s29 + $0x10] sm:$0xff] }
 0x1b5   : > { %v1302_v62 = vmul.f32 0.25, %v1242_v48  ;;  %9386 = vrsqrt.f32 %v1332_v55  ;;  %11663 = vst [vmem:[#allocation36_spill] sm:$0xff] %v10286_v2 }
 0x1b6   : > { %v1339_v8 = vadd.f32 1e-05, %v1307_v39  ;;  %8163 = vmatprep.mubr.msk.f32.mxu1 %vm995_vm0, %v10272_v54  ;;  %9388 = vrsqrt.f32 %v1337_v7 }
 0x1b7   : > { %v1334_v40 = vadd.f32 1e-05, %v1302_v62  ;;  %v9379_v28 = vpop.eup %9378  ;;  %v1263_v27 = vpop.xlane.xlu1 %1262  ;;  %8164 = vmatmul.mubr.msk.f32.gmra.mrb[8].mxu1 %vm995_vm0, %v10278_v23 }
 0x1b8   : > { %v1248_v5 = vpop.xlane.xlu0 %1247  ;;  %v9381_v55 = vpop.eup %9380  ;;  %v1309_v21 = vmul.f32 0.25, %v1263_v27  ;;  %v10291_v16 = vmul.f32 %v9379_v28, %v10033_v46  ;;  %8166 = vmatprep.mubr.msk.f32.mxu1 %vm995_vm0, %v10283_v44  ;;  %v1433_v46 = vmul.f32 %v10165_v3, %v10286_v2  ;;  %v10308_v27 = vadd.f32 %v10171_v58, %v1431_v22 }
 0x1b9   : > { %v1304_v50 = vmul.f32 0.25, %v1248_v5  ;;  %9390 = vrsqrt.f32 %v1334_v40  ;;  %v10302_v7 = vmul.f32 %v9381_v55, %v10055_v13  ;;  %v1489_v13 = vld [vmem:[%s9629_s29] sm:$0xff] }
 0x1ba   : > { %11664 = vst [vmem:[#allocation37_spill] sm:$0xff] %v10291_v16  ;;  %v1430_v25 = vmul.f32 %v10165_v3, %v10291_v16  ;;  %9392 = vrsqrt.f32 %v1339_v8  ;;  %v1341_v39 = vadd.f32 1e-05, %v1309_v21  ;;  %v1492_v16 = vld [vmem:[%s9629_s29 + $0x18] sm:$0xff] }
 0x1bb   : > { %v1336_v48 = vadd.f32 1e-05, %v1304_v50  ;;  %v9383_v20 = vpop.eup %9382  ;;  %v1269_v14 = vpop.xlane.xlu1 %1268  ;;  %11665 = vst [vmem:[#allocation38_spill] sm:$0xff] %v10302_v7 }
 0x1bc   : > { %v1254_v56 = vpop.xlane.xlu0 %1253  ;;  %v1311_v62 = vmul.f32 0.25, %v1269_v14  ;;  %v10305_v28 = vadd.f32 %v10171_v58, %v1430_v25  ;;  %v10311_v8 = vmul.f32 %v9383_v20, %v10046_v57  ;;  %v9385_v5 = vpop.eup %9384  ;;  %v10321_v57 = vadd.f32 %v10171_v58, %v1433_v46  ;;  %v1490_v14 = vld [vmem:[%s9629_s29 + $0x8] sm:$0xff] }
 0x1bd   : > { %v1306_v40 = vmul.f32 0.25, %v1254_v56  ;;  %9394 = vrsqrt.f32 %v1336_v48  ;;  %v1435_v25 = vmul.f32 %v10165_v3, %v10302_v7  ;;  %v11589_v20 = vmov 0.0|0.0  }
 0x1be   : > { %11666 = vst [vmem:[#allocation39_spill] sm:$0xff] %v10311_v8  ;;  %8167 = vmatmul.mubr.msk.f32.gmra.mrb[10].mxu1 %vm995_vm0, %v10305_v28  ;;  %v1432_v22 = vmul.f32 %v10165_v3, %v10311_v8  ;;  %8808 = vmatprep.subr.bf16.mxu0 %v11589_v20  ;;  %9396 = vrsqrt.f32 %v1341_v39  ;;  %v1343_v56 = vadd.f32 1e-05, %v1311_v62  ;;  %v8809_v49 = vpack.c.bf16 %v1490_v14, %v1489_v13 }
 0x1bf   : > { %v1338_v50 = vadd.f32 1e-05, %v1306_v40  ;;  %v9387_v55 = vpop.eup %9386  ;;  %8169 = vmatprep.mubr.msk.f32.mxu1 %vm995_vm0, %v10308_v27  ;;  %v1275_v21 = vpop.xlane.xlu1 %1274  ;;  %v10338_v39 = vmul.f32 %v9385_v5, %v10067_v0  ;;  %v11667_v0 = vmov 0.0|0.0  }
 0x1c0   : > { %v1260_v48 = vpop.xlane.xlu0 %1259  ;;  %v10328_v2 = vmul.f32 %v9387_v55, %v10059_v4  ;;  %v1313_v8 = vmul.f32 0.25, %v1275_v21  ;;  %v10333_v46 = vadd.f32 %v10171_v58, %v1432_v22  ;;  %v9389_v60 = vpop.eup %9388  ;;  %8810 = vmatpush3.bf16.msra.mxu0 %v8809_v49  ;;  %v11591_v49 = vmov 0.0  }
 0x1c1   : > { %v1308_v40 = vmul.f32 0.25, %v1260_v48  ;;  %9398 = vrsqrt.f32 %v1338_v50  ;;  %v8812_v50 = vpack.c.bf16 %v1492_v16, %v1491_v45  ;;  %8811 = vmatprep.subr.bf16.mxu0 %v11667_v0  ;;  %v10352_v22 = vmul.f32 %v9389_v60, %v10079_v38  ;;  %8146 = vmatprep.mubr.msk.f32.mxu0 %vm9588_vm3, %v11591_v49 }
 0x1c2   : > { %v1434_v20 = vmul.f32 %v10165_v3, %v10328_v2  ;;  %8170 = vmatmul.mubr.msk.f32.gmra.mrb[12].mxu1 %vm995_vm0, %v10333_v46  ;;  %9400 = vrsqrt.f32 %v1343_v56  ;;  %v1345_v48 = vadd.f32 1e-05, %v1313_v8  ;;  %v10357_v16 = vadd.f32 %v10171_v58, %v1435_v25 }
 0x1c3   : > { %v1340_v7 = vadd.f32 1e-05, %v1308_v40  ;;  %v9391_v62 = vpop.eup %9390  ;;  %8172 = vmatprep.mubr.msk.f32.mxu1 %vm995_vm0, %v10321_v57  ;;  %v1439_v40 = vmul.f32 %v10165_v3, %v10352_v22 }
 0x1c4   : > { %v1266_v4 = vpop.xlane.xlu0 %1265  ;;  %v10345_v55 = vadd.f32 %v10171_v58, %v1434_v20  ;;  %v10348_v21 = vmul.f32 %v9391_v62, %v10074_v31  ;;  %v9393_v5 = vpop.eup %9392  ;;  %v1437_v20 = vmul.f32 %v10165_v3, %v10338_v39  ;;  %8813 = vmatpush3.bf16.msra.mxu0 %v8812_v50 }
 0x1c5   : > { %v1310_v13 = vmul.f32 0.25, %v1266_v4  ;;  %9402 = vrsqrt.f32 %v1340_v7 }
 0x1c6   : > { %v1436_v31 = vmul.f32 %v10165_v3, %v10348_v21  ;;  %8173 = vmatmul.mubr.msk.f32.gmra.mrb[14].mxu1 %vm995_vm0, %v10345_v55  ;;  %v10376_v50 = vadd.f32 %v10171_v58, %v1437_v20 }
 0x1c7   : > { %v1342_v45 = vadd.f32 1e-05, %v1310_v13  ;;  %v9395_v8 = vpop.eup %9394  ;;  %v1281_v38 = vpop.xlane.xlu1 %1280  ;;  %8175 = vmatprep.mubr.msk.f32.mxu1 %vm995_vm0, %v10357_v16 }
 0x1c8   : > { %v1272_v60 = vpop.xlane.xlu0 %1271  ;;  %v1315_v7 = vmul.f32 0.25, %v1281_v38  ;;  %v10368_v14 = vadd.f32 %v10171_v58, %v1436_v31  ;;  %v10371_v56 = vmul.f32 %v9395_v8, %v10084_v32  ;;  %v9397_v62 = vpop.eup %9396 }
 0x1c9   : > { %9404 = vrsqrt.f32 %v1342_v45  ;;  %v1312_v25 = vmul.f32 0.25, %v1272_v60  ;;  %v10379_v45 = vmul.f32 %v9393_v5, %v10092_v61  ;;  %v10394_v5 = vadd.f32 %v10171_v58, %v1439_v40 }
 0x1ca   : > { %9406 = vrsqrt.f32 %v1345_v48  ;;  %v1347_v4 = vadd.f32 1e-05, %v1315_v7  ;;  %8176 = vmatmul.mubr.msk.f32.gmra.mrb[16].mxu1 %vm995_vm0, %v10368_v14  ;;  %v1438_v32 = vmul.f32 %v10165_v3, %v10371_v56 }
 0x1cb   : > { %v1344_v13 = vadd.f32 1e-05, %v1312_v25  ;;  %11668 = vst [vmem:[#allocation40_spill] sm:$0xff] %v10379_v45  ;;  %v9399_v38 = vpop.eup %9398  ;;  %8178 = vmatprep.mubr.msk.f32.mxu1 %vm995_vm0, %v10376_v50  ;;  %v1441_v25 = vmul.f32 %v10165_v3, %v10379_v45  ;;  %v7185_v45 = vld [vmem:[%s9609_s13] ss:$0 sm:$0xff] }
 0x1cc   : > { %v1278_v48 = vpop.xlane.xlu0 %1277  ;;  %9408 = vrsqrt.f32 %v1347_v4  ;;  %v10388_v20 = vmul.f32 %v9399_v38, %v10097_v63  ;;  %v10391_v61 = vadd.f32 %v10171_v58, %v1438_v32  ;;  %v9401_v8 = vpop.eup %9400  ;;  %v10401_v4 = vmul.f32 %v9397_v62, %v10106_v15  ;;  %v1494_v38 = vld [vmem:[%s11645_s8] sm:$0xf] }
 0x1cd   : > { %v1314_v31 = vmul.f32 0.25, %v1278_v48  ;;  %9410 = vrsqrt.f32 %v1344_v13  ;;  %8199 = vmatprep.subr.msk.mxu0 %vm1697_vm2, %v1494_v38  ;;  %v10416_v15 = vadd.f32 %v10171_v58, %v1441_v25 }
 0x1ce   : > { %11669 = vst [vmem:[#allocation41_spill] sm:$0xff] %v10388_v20  ;;  %v1440_v7 = vmul.f32 %v10165_v3, %v10388_v20  ;;  %11670 = vst [vmem:[#allocation42_spill] sm:$0xff] %v10401_v4  ;;  %8179 = vmatmul.mubr.msk.f32.gmra.mrb[18].mxu1 %vm995_vm0, %v10391_v61  ;;  %v1443_v32 = vmul.f32 %v10165_v3, %v10401_v4 }
 0x1cf   : > { %v1346_v60 = vadd.f32 1e-05, %v1314_v31  ;;  %v9403_v63 = vpop.eup %9402  ;;  %8181 = vmatprep.mubr.msk.f32.mxu1 %vm995_vm0, %v10394_v5  ;;  %v10423_v31 = vmul.f32 %v9401_v8, %v10118_v17 }
 0x1d0   : > { %v10408_v40 = vadd.f32 %v10171_v58, %v1440_v7  ;;  %v10411_v13 = vmul.f32 %v9403_v63, %v10110_v18  ;;  %v10438_v17 = vadd.f32 %v10171_v58, %v1443_v32 }
 0x1d1   : > { %9412 = vrsqrt.f32 %v1346_v60  ;;  %11672 = vst [vmem:[#allocation44_spill] sm:$0xff] %v10423_v31  ;;  %v1445_v8 = vmul.f32 %v10165_v3, %v10423_v31 }
 0x1d2   : > { %11671 = vst [vmem:[#allocation43_spill] sm:$0xff] %v10411_v13  ;;  %v1442_v62 = vmul.f32 %v10165_v3, %v10411_v13  ;;  %8182 = vmatmul.mubr.msk.f32.gmra.mrb[20].mxu1 %vm995_vm0, %v10408_v40 }
 0x1d3   : > { %v9405_v48 = vpop.eup %9404  ;;  %8184 = vmatprep.mubr.msk.f32.mxu1 %vm995_vm0, %v10416_v15 }
 0x1d4   : > { %v9407_v60 = vpop.eup %9406  ;;  %v10428_v18 = vmul.f32 %v9405_v48, %v10125_v37  ;;  %v10433_v7 = vadd.f32 %v10171_v58, %v1442_v62 }
 0x1d5   : > { %v10443_v49 = vmul.f32 %v9407_v60, %v10130_v53 }
 0x1d6   : > { %11673 = vst [vmem:[#allocation45_spill] sm:$0xff] %v10428_v18  ;;  %v1444_v25 = vmul.f32 %v10165_v3, %v10428_v18  ;;  %v9409_v63 = vpop.eup %9408  ;;  %8185 = vmatmul.mubr.msk.f32.gmra.mrb[22].mxu1 %vm995_vm0, %v10433_v7  ;;  %v10456_v18 = vadd.f32 %v10171_v58, %v1445_v8 }
 0x1d7   : > { %11674 = vst [vmem:[#allocation46_spill] sm:$0xff] %v10443_v49  ;;  %v9411_v37 = vpop.eup %9410  ;;  %8187 = vmatprep.mubr.msk.f32.mxu1 %vm995_vm0, %v10438_v17  ;;  %v1447_v60 = vmul.f32 %v10165_v3, %v10443_v49  ;;  %v10463_v31 = vmul.f32 %v9409_v63, %v10149_v24 }
 0x1d8   : > { %v10448_v48 = vadd.f32 %v10171_v58, %v1444_v25  ;;  %v10453_v62 = vmul.f32 %v9411_v37, %v10135_v59 }
 0x1d9   : > { %11676 = vst [vmem:[#allocation48_spill] sm:$0xff] %v10463_v31  ;;  %v10478_v37 = vadd.f32 %v10171_v58, %v1447_v60  ;;  %v1449_v24 = vmul.f32 %v10165_v3, %v10463_v31 }
 0x1da   : > { %11675 = vst [vmem:[#allocation47_spill] sm:$0xff] %v10453_v62  ;;  %v1446_v53 = vmul.f32 %v10165_v3, %v10453_v62  ;;  %8188 = vmatmul.mubr.msk.f32.gmra.mrb[24].mxu1 %vm995_vm0, %v10448_v48 }
 0x1db   : > { %v9413_v32 = vpop.eup %9412  ;;  %8190 = vmatprep.mubr.msk.f32.mxu1 %vm995_vm0, %v10456_v18  ;;  %v10490_v63 = vadd.f32 %v10171_v58, %v1449_v24 }
 0x1dc   : > { %v10468_v25 = vmul.f32 %v9413_v32, %v10143_v36  ;;  %v10473_v59 = vadd.f32 %v10171_v58, %v1446_v53 }
 0x1de   : > { %11677 = vst [vmem:[#allocation49_spill] sm:$0xff] %v10468_v25  ;;  %v1448_v8 = vmul.f32 %v10165_v3, %v10468_v25  ;;  %8191 = vmatmul.mubr.msk.f32.gmra.mrb[26].mxu1 %vm995_vm0, %v10473_v59 }
 0x1df   : > { %8193 = vmatprep.mubr.msk.f32.mxu1 %vm995_vm0, %v10478_v37 }
 0x1e0   : > { %v10485_v36 = vadd.f32 %v10171_v58, %v1448_v8 }
 0x1e2   : > { %8194 = vmatmul.mubr.msk.f32.gmra.mrb[28].mxu1 %vm995_vm0, %v10485_v36 }
 0x1e3   : > { %8196 = vmatprep.mubr.msk.f32.mxu1 %vm995_vm0, %v10490_v63 }
 0x224   : > { %v1284_v32 = vpop.xlane.xlu0 %1283 }
 0x225   : > { %v1316_v53 = vmul.f32 0.25, %v1284_v32 }
 0x227   : > { %v1348_v60 = vadd.f32 1e-05, %v1316_v53  ;;  %v7186_v53 = vld [vmem:[%s9614_s17] ss:$0 sm:$0xff] }
 0x229   : > { %9414 = vrsqrt.f32 %v1348_v60 }
 0x233   : > { %v9415_v8 = vpop.eup %9414 }
 0x234   : > { %v10497_v31 = vmul.f32 %v9415_v8, %v10159_v43 }
 0x236   : > { %v1450_v24 = vmul.f32 %v10165_v3, %v10497_v31 }
 0x238   : > { %v1488_v25 = vadd.f32 %v10171_v58, %v1450_v24 }
 0x239   : > { %v974_v49 = vpop.xlane.xlu1 %973 }
 0x23a   : > { %v975_v62 = vmul.f32 0.03125, %v974_v49  ;;  %8197 = vmatmul.mubr.msk.f32.gmra.mrb[30].mxu1 %vm995_vm0, %v1488_v25 }
 0x23c   : > { %v976_v4 = vadd.f32 1e-05, %v975_v62 }
 0x23e   : > { %9416 = vrsqrt.f32 %v976_v4 }
 0x248   : > { %v9417_v13 = vpop.eup %9416 }
 0x249   : > { %v978_v32 = vmul.f32 %v9417_v13, %v10212_v33 }
 0x24b   : > { %v985_v60 = vmul.f32 %v7185_v45, %v978_v32 }
 0x24d   : > { %v992_v20 = vadd.f32 %v7186_v53, %v985_v60 }
 0x24f   : > { %8147 = vmatmul.mubr.msk.f32.vlgmr.msra.gmra.mrb[0].mxu0 %vm964_vm1, %v992_v20 }
 0x250   : > { %8201 = vmatprep.mubr.msk.f32.mxu0 %vm995_vm0, %v10176_v26  ;;  %8200 = vmatpush3.msk.msra.mxu0 %vm1697_vm2, %v1494_v38 }
 0x253   : > { %8202 = vmatmul.mubr.msk.f32.vlgmr.msra.gmra.mrb[2].mxu0 %vm995_vm0, %v10194_v41 }
 0x254   : > { %8204 = vmatprep.mubr.msk.f32.mxu0 %vm995_vm0, %v10201_v52 }
 0x257   : > { %8205 = vmatmul.mubr.msk.f32.gmra.mrb[4].mxu0 %vm995_vm0, %v10204_v34 }
 0x258   : > { %8207 = vmatprep.mubr.msk.f32.mxu0 %vm995_vm0, %v10219_v35 }
 0x25b   : > { %8208 = vmatmul.mubr.msk.f32.gmra.mrb[6].mxu0 %vm995_vm0, %v10238_v11 }
 0x25c   : > { %8210 = vmatprep.mubr.msk.f32.mxu0 %vm995_vm0, %v10253_v42 }
 0x25f   : > { %8211 = vmatmul.mubr.msk.f32.gmra.mrb[8].mxu0 %vm995_vm0, %v10256_v51 }
 0x260   : > { %8213 = vmatprep.mubr.msk.f32.mxu0 %vm995_vm0, %v10272_v54 }
 0x263   : > { %8214 = vmatmul.mubr.msk.f32.gmra.mrb[10].mxu0 %vm995_vm0, %v10278_v23 }
 0x264   : > { %8216 = vmatprep.mubr.msk.f32.mxu0 %vm995_vm0, %v10283_v44 }
 0x267   : > { %8217 = vmatmul.mubr.msk.f32.gmra.mrb[12].mxu0 %vm995_vm0, %v10305_v28 }
 0x268   : > { %8219 = vmatprep.mubr.msk.f32.mxu0 %vm995_vm0, %v10308_v27 }
 0x26b   : > { %8220 = vmatmul.mubr.msk.f32.gmra.mrb[14].mxu0 %vm995_vm0, %v10333_v46 }
 0x26c   : > { %8222 = vmatprep.mubr.msk.f32.mxu0 %vm995_vm0, %v10321_v57 }
 0x26f   : > { %8223 = vmatmul.mubr.msk.f32.gmra.mrb[16].mxu0 %vm995_vm0, %v10345_v55 }
 0x270   : > { %8225 = vmatprep.mubr.msk.f32.mxu0 %vm995_vm0, %v10357_v16 }
 0x273   : > { %8226 = vmatmul.mubr.msk.f32.gmra.mrb[18].mxu0 %vm995_vm0, %v10368_v14 }
 0x274   : > { %8228 = vmatprep.mubr.msk.f32.mxu0 %vm995_vm0, %v10376_v50 }
 0x275   : > { %v8153_v43 = vpop.f32.mrb[0].mxu1 }
 0x276   : > { %v1767_v3 = vpop.f32.mrb[1].mxu1 }
 0x277   : > { %v8817_v58 = vpack.c.bf16 %v8153_v43, %v1767_v3  ;;  %8229 = vmatmul.mubr.msk.f32.gmra.mrb[20].mxu0 %vm995_vm0, %v10391_v61 }
 0x278   : > { %8231 = vmatprep.mubr.msk.f32.mxu0 %vm995_vm0, %v10394_v5 }
 0x279   : > { %v8156_v26 = vpop.f32.mrb[2].mxu1 }
 0x27a   : > { %v1777_v41 = vpop.f32.mrb[3].mxu1 }
 0x27b   : > { %v8823_v52 = vpack.c.bf16 %v8156_v26, %v1777_v41  ;;  %8232 = vmatmul.mubr.msk.f32.gmra.mrb[22].mxu0 %vm995_vm0, %v10408_v40  ;;  %v11680_v26 = vmov 0.0  }
 0x27c   : > { %8234 = vmatprep.mubr.msk.f32.mxu0 %vm995_vm0, %v10416_v15 }
 0x27f   : > { %8235 = vmatmul.mubr.msk.f32.gmra.mrb[24].mxu0 %vm995_vm0, %v10433_v7 }
 0x280   : > { %8237 = vmatprep.mubr.msk.f32.mxu0 %vm995_vm0, %v10438_v17  ;;  %v8159_v34 = vpop.f32.mrb[4].mxu1 }
 0x281   : > { %v1787_v33 = vpop.f32.mrb[5].mxu1 }
 0x282   : > { %v8829_v35 = vpack.c.bf16 %v8159_v34, %v1787_v33 }
 0x283   : > { %8238 = vmatmul.mubr.msk.f32.gmra.mrb[26].mxu0 %vm995_vm0, %v10448_v48 }
 0x284   : > { %8240 = vmatprep.mubr.msk.f32.mxu0 %vm995_vm0, %v10456_v18 }
 0x286   : > { %v8162_v11 = vpop.f32.mrb[6].mxu1 }
 0x287   : > { %v1797_v42 = vpop.f32.mrb[7].mxu1  ;;  %8241 = vmatmul.mubr.msk.f32.gmra.mrb[28].mxu0 %vm995_vm0, %v10473_v59 }
 0x288   : > { %v8835_v51 = vpack.c.bf16 %v8162_v11, %v1797_v42  ;;  %8243 = vmatprep.mubr.msk.f32.mxu0 %vm995_vm0, %v10478_v37 }
 0x28a   : > { %v8165_v54 = vpop.f32.mrb[8].mxu1 }
 0x28b   : > { %8244 = vmatmul.mubr.msk.f32.gmra.mrb[30].mxu0 %vm995_vm0, %v10485_v36  ;;  %v1807_v23 = vpop.f32.mrb[9].mxu1 }
 0x28c   : > { %8246 = vmatprep.mubr.msk.f32.mxu0 %vm995_vm0, %v10490_v63  ;;  %v8841_v44 = vpack.c.bf16 %v8165_v54, %v1807_v23 }
 0x28f   : > { %8247 = vmatmul.mubr.msk.f32.gmra.mrb[32].mxu0 %vm995_vm0, %v1488_v25 }
 0x291   : > { %v8168_v28 = vpop.f32.mrb[10].mxu1 }
 0x292   : > { %v1817_v27 = vpop.f32.mrb[11].mxu1 }
 0x293   : > { %v8847_v57 = vpack.c.bf16 %v8168_v28, %v1817_v27 }
 0x295   : > { %v8171_v46 = vpop.f32.mrb[12].mxu1 }
 0x296   : > { %v1827_v55 = vpop.f32.mrb[13].mxu1 }
 0x297   : > { %v8853_v49 = vpack.c.bf16 %v8171_v46, %v1827_v55 }
 0x299   : > { %v8174_v16 = vpop.f32.mrb[14].mxu1 }
 0x29a   : > { %v1837_v14 = vpop.f32.mrb[15].mxu1 }
 0x29b   : > { %v8859_v50 = vpack.c.bf16 %v8174_v16, %v1837_v14 }
 0x29d   : > { %v8177_v45 = vpop.f32.mrb[16].mxu1 }
 0x29e   : > { %v1847_v20 = vpop.f32.mrb[17].mxu1 }
 0x29f   : > { %v8814_v5 = vpack.c.bf16 %v8177_v45, %v1847_v20 }
 0x2a1   : > { %v8180_v4 = vpop.f32.mrb[18].mxu1  ;;  %8816 = vmatprep.subr.msk.bf16.mxu1 %vm10573_vm4, %v8814_v5 }
 0x2a2   : > { %v1857_v40 = vpop.f32.mrb[19].mxu1  ;;  %8819 = vmatpush3.bf16.xpose.msk.msra.mxu1 %vm10573_vm4, %v8817_v58 }
 0x2a3   : > { %v8820_v13 = vpack.c.bf16 %v8180_v4, %v1857_v40 }
 0x2a5   : > { %v8183_v38 = vpop.f32.mrb[20].mxu1  ;;  %8822 = vmatprep.subr.msk.bf16.mxu1 %vm10573_vm4, %v8820_v13 }
 0x2a6   : > { %v1867_v15 = vpop.f32.mrb[21].mxu1 }
 0x2a7   : > { %v8826_v18 = vpack.c.bf16 %v8183_v38, %v1867_v15 }
 0x2a9   : > { %v8186_v7 = vpop.f32.mrb[22].mxu1 }
 0x2aa   : > { %v1877_v17 = vpop.f32.mrb[23].mxu1  ;;  %8825 = vmatpush3.bf16.xpose.msk.msra.mxu1 %vm10573_vm4, %v8823_v52 }
 0x2ab   : > { %v8832_v48 = vpack.c.bf16 %v8186_v7, %v1877_v17  ;;  %8828 = vmatprep.subr.msk.bf16.mxu1 %vm10573_vm4, %v8826_v18 }
 0x2ad   : > { %v8189_v62 = vpop.f32.mrb[24].mxu1 }
 0x2ae   : > { %v1887_v25 = vpop.f32.mrb[25].mxu1 }
 0x2af   : > { %v8838_v59 = vpack.c.bf16 %v8189_v62, %v1887_v25 }
 0x2b1   : > { %v8192_v37 = vpop.f32.mrb[26].mxu1 }
 0x2b2   : > { %v1897_v36 = vpop.f32.mrb[27].mxu1  ;;  %8831 = vmatpush3.bf16.xpose.msk.msra.mxu1 %vm10573_vm4, %v8829_v35 }
 0x2b3   : > { %v8844_v63 = vpack.c.bf16 %v8192_v37, %v1897_v36  ;;  %8834 = vmatprep.subr.msk.bf16.mxu1 %vm10573_vm4, %v8832_v48 }
 0x2b5   : > { %v8195_v8 = vpop.f32.mrb[28].mxu1 }
 0x2b6   : > { %v1907_v24 = vpop.f32.mrb[29].mxu1 }
 0x2b7   : > { %v8850_v32 = vpack.c.bf16 %v8195_v8, %v1907_v24 }
 0x2ba   : > { %8837 = vmatpush3.bf16.xpose.msk.msra.mxu1 %vm10573_vm4, %v8835_v51 }
 0x2bb   : > { %8840 = vmatprep.subr.msk.bf16.mxu1 %vm10573_vm4, %v8838_v59 }
 0x2c2   : > { %8843 = vmatpush3.bf16.xpose.msk.msra.mxu1 %vm10573_vm4, %v8841_v44 }
 0x2c3   : > { %8846 = vmatprep.subr.msk.bf16.mxu1 %vm10573_vm4, %v8844_v63 }
 0x2ca   : > { %8849 = vmatpush3.bf16.xpose.msk.msra.mxu1 %vm10573_vm4, %v8847_v57 }
 0x2cb   : > { %8852 = vmatprep.subr.msk.bf16.mxu1 %vm10573_vm4, %v8850_v32 }
 0x2d2   : > { %8855 = vmatpush3.bf16.xpose.msk.msra.mxu1 %vm10573_vm4, %v8853_v49 }
 0x30d   : > { %v8198_v53 = vpop.f32.mrb[30].mxu1 }
 0x30e   : > { %v1917_v60 = vpop.f32.mrb[31].mxu1 }
 0x30f   : > { %v8856_v43 = vpack.c.bf16 %v8198_v53, %v1917_v60 }
 0x311   : > { %8858 = vmatprep.subr.msk.bf16.mxu1 %vm10573_vm4, %v8856_v43 }
 0x312   : > { %8861 = vmatpush3.bf16.xpose.msk.msra.mxu1 %vm10573_vm4, %v8859_v50 }
 0x313   : > { %8932 = vmatprep.subr.bf16.mxu1 %v11667_v0 }
 0x322   : > { %v1597_v3 = vpop.f32.mrb[0].mxu0 }
 0x323   : > { %v8148_v58 = vpop.f32.mrb[1].mxu0  ;;  %7753 = vmatprep.mubr.msk.f32.mxu1 %vm964_vm1, %v1597_v3 }
 0x324   : > { %7754 = vmatmul.mubr.msk.f32.vlgmr.msra.gmra.mrb[32].mxu1 %vm964_vm1, %v1597_v3 }
 0x325   : > { %8303 = vmatprep.mubr.msk.f32.mxu1 %vm9588_vm3, %v11680_v26 }
 0x326   : > { %v8203_v41 = vpop.f32.mrb[2].mxu0 }
 0x327   : > { %v1995_v52 = vpop.f32.mrb[3].mxu0 }
 0x328   : > { %v8864_v34 = vpack.c.bf16 %v8203_v41, %v1995_v52 }
 0x32a   : > { %v8206_v33 = vpop.f32.mrb[4].mxu0 }
 0x32b   : > { %v2005_v35 = vpop.f32.mrb[5].mxu0 }
 0x32c   : > { %v8868_v11 = vpack.c.bf16 %v8206_v33, %v2005_v35 }
 0x32e   : > { %v8209_v42 = vpop.f32.mrb[6].mxu0 }
 0x32f   : > { %v2015_v51 = vpop.f32.mrb[7].mxu0 }
 0x330   : > { %v8872_v54 = vpack.c.bf16 %v8209_v42, %v2015_v51 }
 0x332   : > { %v8212_v23 = vpop.f32.mrb[8].mxu0 }
 0x333   : > { %v2025_v44 = vpop.f32.mrb[9].mxu0 }
 0x334   : > { %v8876_v28 = vpack.c.bf16 %v8212_v23, %v2025_v44 }
 0x336   : > { %v8215_v27 = vpop.f32.mrb[10].mxu0 }
 0x337   : > { %v2035_v57 = vpop.f32.mrb[11].mxu0 }
 0x338   : > { %v8880_v46 = vpack.c.bf16 %v8215_v27, %v2035_v57 }
 0x33a   : > { %v8218_v55 = vpop.f32.mrb[12].mxu0 }
 0x33b   : > { %v2045_v49 = vpop.f32.mrb[13].mxu0 }
 0x33c   : > { %v8884_v16 = vpack.c.bf16 %v8218_v55, %v2045_v49  ;;  %v1495_v49 = vld [vmem:[%s9644_s14] sm:$0xff] }
 0x33e   : > { %v8221_v14 = vpop.f32.mrb[14].mxu0 }
 0x33f   : > { %v2055_v50 = vpop.f32.mrb[15].mxu0 }
 0x340   : > { %v8888_v45 = vpack.c.bf16 %v8221_v14, %v2055_v50 }
 0x342   : > { %v8224_v20 = vpop.f32.mrb[16].mxu0 }
 0x343   : > { %v2065_v5 = vpop.f32.mrb[17].mxu0 }
 0x344   : > { %v8892_v4 = vpack.c.bf16 %v8224_v20, %v2065_v5  ;;  %v1497_v5 = vld [vmem:[%s9644_s14 + $0x10] sm:$0xff] }
 0x346   : > { %v8227_v40 = vpop.f32.mrb[18].mxu0 }
 0x347   : > { %v2075_v13 = vpop.f32.mrb[19].mxu0 }
 0x348   : > { %v8862_v38 = vpack.c.bf16 %v8227_v40, %v2075_v13 }
 0x34a   : > { %v8230_v15 = vpop.f32.mrb[20].mxu0  ;;  %8863 = vmatprep.subr.bf16.mxu0 %v8862_v38 }
 0x34b   : > { %v2085_v18 = vpop.f32.mrb[21].mxu0  ;;  %8865 = vmatpush3.bf16.msra.mxu0 %v8864_v34 }
 0x34c   : > { %v8866_v7 = vpack.c.bf16 %v8230_v15, %v2085_v18  ;;  %v7289_v18 = vld [vmem:[%s9649_s19] ss:$0 sm:$0xff] }
 0x34e   : > { %v8233_v17 = vpop.f32.mrb[22].mxu0  ;;  %8867 = vmatprep.subr.bf16.mxu0 %v8866_v7 }
 0x34f   : > { %v2095_v48 = vpop.f32.mrb[23].mxu0  ;;  %8869 = vmatpush3.bf16.msra.mxu0 %v8868_v11 }
 0x350   : > { %v8870_v62 = vpack.c.bf16 %v8233_v17, %v2095_v48 }
 0x352   : > { %v8236_v25 = vpop.f32.mrb[24].mxu0  ;;  %8871 = vmatprep.subr.bf16.mxu0 %v8870_v62  ;;  %v9492_v62 = vld [vmem:[%s11648_s9] sm:$0xff]  ;;  %s11686_s9 = sld [smem:[#allocation16_spill]] }
 0x353   : > { %v2105_v59 = vpop.f32.mrb[25].mxu0  ;;  %8873 = vmatpush3.bf16.msra.mxu0 %v8872_v54 }
 0x354   : > { %v8874_v37 = vpack.c.bf16 %v8236_v25, %v2105_v59 }
 0x356   : > { %v8239_v36 = vpop.f32.mrb[26].mxu0  ;;  %8875 = vmatprep.subr.bf16.mxu0 %v8874_v37 }
 0x357   : > { %v2115_v63 = vpop.f32.mrb[27].mxu0  ;;  %8877 = vmatpush3.bf16.msra.mxu0 %v8876_v28 }
 0x358   : > { %v8878_v8 = vpack.c.bf16 %v8239_v36, %v2115_v63 }
 0x35a   : > { %v8242_v24 = vpop.f32.mrb[28].mxu0  ;;  %8879 = vmatprep.subr.bf16.mxu0 %v8878_v8 }
 0x35b   : > { %v2125_v32 = vpop.f32.mrb[29].mxu0  ;;  %8881 = vmatpush3.bf16.msra.mxu0 %v8880_v46 }
 0x35c   : > { %v8882_v53 = vpack.c.bf16 %v8242_v24, %v2125_v32  ;;  %v1503_v32 = vld [vmem:[%s11646_s6 + $0x8] sm:$0xff] }
 0x35e   : > { %v8245_v60 = vpop.f32.mrb[30].mxu0  ;;  %8883 = vmatprep.subr.bf16.mxu0 %v8882_v53  ;;  %v1505_v53 = vld [vmem:[%s11646_s6 + $0x18] sm:$0xff] }
 0x35f   : > { %v2135_v43 = vpop.f32.mrb[31].mxu0  ;;  %8885 = vmatpush3.bf16.msra.mxu0 %v8884_v16  ;;  %v1496_v16 = vld [vmem:[%s9644_s14 + $0x8] sm:$0xff] }
 0x360   : > { %v8886_v3 = vpack.c.bf16 %v8245_v60, %v2135_v43  ;;  %v8895_v20 = vpack.c.bf16 %v1496_v16, %v1495_v49  ;;  %v8900_v60 = vpack.c.bf16 %v1505_v53, %v1503_v32  ;;  %v1502_v43 = vld [vmem:[%s11646_s6] sm:$0xff]  ;;  %v1512_v49 = vld [vmem:[%s11681_s1 + $0x8] sm:$0xff]  ;;  %v2519_v32 = vlaneseq }
 0x362   : > { %v8248_v58 = vpop.f32.mrb[32].mxu0  ;;  %8887 = vmatprep.subr.bf16.mxu0 %v8886_v3  ;;  %v1504_v3 = vld [vmem:[%s11646_s6 + $0x10] sm:$0xff]  ;;  %v2520_v53 = vshrl.u32 %v2519_v32, 7 }
 0x363   : > { %v2145_v41 = vpop.f32.mrb[33].mxu0  ;;  %8889 = vmatpush3.bf16.msra.mxu0 %v8888_v45 }
 0x364   : > { %v8890_v52 = vpack.c.bf16 %v8248_v58, %v2145_v41  ;;  %v8902_v58 = vpack.c.bf16 %v1504_v3, %v1502_v43  ;;  %v1507_v41 = vld [vmem:[%s11646_s6 + $0x28] sm:$0xff]  ;;  %v1510_v43 = vld [vmem:[%s11682_s11] sm:$0x3] }
 0x366   : > { %8891 = vmatprep.subr.bf16.mxu0 %v8890_v52  ;;  %v1509_v52 = vld [vmem:[%s11646_s6 + $0x38] sm:$0xff] }
 0x367   : > { %8893 = vmatpush3.bf16.msra.mxu0 %v8892_v4  ;;  %v1498_v4 = vld [vmem:[%s9644_s14 + $0x18] sm:$0xff] }
 0x368   : > { %8894 = vmatprep.subr.bf16.mxu0 %v11667_v0  ;;  %v8898_v40 = vpack.c.bf16 %v1498_v4, %v1497_v5  ;;  %v1516_v5 = vld [vmem:[%s11681_s1 + $0x28] sm:$0xff] }
 0x3f7   : > { %v2319_v34 = vpop.f32.mrb[32].mxu1 }
 0x3f8   : > { %v2324_v33 = vmul.f32 0.17677669, %v2319_v34  ;;  %v2321_v35 = vpop.f32.mrb[33].mxu1  ;;  %v8904_v34 = vpack.c.bf16 %v1509_v52, %v1507_v41 }
 0x3f9   : > { %v2325_v11 = vmul.f32 0.17677669, %v2321_v35  ;;  %v1508_v35 = vld [vmem:[%s11646_s6 + $0x30] sm:$0xff] }
 0x3fb   : > { %v2326_v42 = vmax.f32 %v2324_v33, %v2325_v11 }
 0x3fd   : > { %2327 = vmax.xlane.f32.xlu0 %v2326_v42 }
 0x48a   : > { %v2328_v51 = vpop.xlane.xlu0 %2327 }
 0x48b   : > { %v2329_v54 = vsub.f32 %v2324_v33, %v2328_v51  ;;  %v2330_v23 = vsub.f32 %v2325_v11, %v2328_v51  ;;  %v1506_v33 = vld [vmem:[%s11646_s6 + $0x20] sm:$0xff] }
 0x48c   : > { %v8906_v11 = vpack.c.bf16 %v1508_v35, %v1506_v33 }
 0x48d   : > { %v2331_v44 = vmul.f32 1.442695, %v2329_v54  ;;  %v2333_v28 = vmul.f32 1.442695, %v2330_v23 }
 0x48f   : > { %9418 = vpow2.f32 %v2331_v44  ;;  %v7291_v44 = vld [vmem:[%s9654_s24] ss:$0 sm:$0xff] }
 0x490   : > { %9420 = vpow2.f32 %v2333_v28 }
 0x499   : > { %v9419_v27 = vpop.eup %9418 }
 0x49a   : > { %v9421_v57 = vpop.eup %9420 }
 0x49b   : > { %v2335_v46 = vadd.f32 %v9421_v57, %v9419_v27 }
 0x49d   : > { %2336 = vadd.xlane.f32.xlu1 %v2335_v46 }
 0x52a   : > { %v2337_v55 = vpop.xlane.xlu1 %2336 }
 0x52b   : > { %9422 = vrcp.f32 %v2337_v55  ;;  %v1511_v55 = vld [vmem:[%s11681_s1] sm:$0xff] }
 0x52c   : > { %v8909_v16 = vpack.c.bf16 %v1512_v49, %v1511_v55 }
 0x535   : > { %v9423_v14 = vpop.eup %9422 }
 0x536   : > { %v2339_v50 = vmul.f32 %v9423_v14, %v9419_v27  ;;  %v2340_v45 = vmul.f32 %v9423_v14, %v9421_v57  ;;  %v7292_v27 = vld [vmem:[%s9659_s30] ss:$0 sm:$0xff]  ;;  %v1513_v14 = vld [vmem:[%s11681_s1 + $0x10] sm:$0xff] }
 0x538   : > { %2405 = vmatprep.mubr.f32.mxu0 %v2340_v45 }
 0x539   : > { %2406 = vmatmul.mubr.f32.vlgmr.msra.gmra.mrb[34].mxu0 %v2339_v50  ;;  %v1514_v50 = vld [vmem:[%s11681_s1 + $0x18] sm:$0xff] }
 0x53a   : > { %8896 = vmatpush3.bf16.msra.mxu0 %v8895_v20  ;;  %8257 = vmatprep.mubr.msk.f32.mxu0 %vm9588_vm3, %v11680_v26  ;;  %v8912_v45 = vpack.c.bf16 %v1514_v50, %v1513_v14  ;;  %v1515_v20 = vld [vmem:[%s11681_s1 + $0x20] sm:$0xff] }
 0x53b   : > { %8897 = vmatprep.subr.bf16.mxu0 %v11667_v0  ;;  %v8915_v4 = vpack.c.bf16 %v1516_v5, %v1515_v20  ;;  %v10675_v5 = vsub.s32 0, %v2520_v53 }
 0x53e   : > { %8899 = vmatpush3.bf16.msra.mxu0 %v8898_v40  ;;  %v1517_v40 = vld [vmem:[%s11681_s1 + $0x30] sm:$0xff] }
 0x53f   : > { %8901 = vmatprep.subr.bf16.mxu0 %v8900_v60  ;;  %v10670_v60 = vsub.s32 1, %v2520_v53 }
 0x541   : > { %v2526_v3 = vrot.slane %v1510_v43, %v10670_v60 }
 0x60c   : > { %v7787_v13 = vpop.f32.mrb[34].mxu0 }
 0x60d   : > { %v7788_v38 = vpop.f32.mrb[35].mxu0 }
 0x60e   : > { %v7789_v15 = vadd.f32 %v7788_v38, %v7787_v13  ;;  %v1518_v13 = vld [vmem:[%s11681_s1 + $0x38] sm:$0xff] }
 0x60f   : > { %v8918_v38 = vpack.c.bf16 %v1518_v13, %v1517_v40  ;;  %v2522_v13 = vrot.slane %v1510_v43, %v10675_v5 }
 0x610   : > { %8258 = vmatmul.mubr.msk.f32.vlgmr.msra.gmra.mrb[36].mxu0 %vm964_vm1, %v7789_v15  ;;  %v1519_v15 = vld [vmem:[%s11681_s1 + $0x40] sm:$0xff] }
 0x611   : > { %2596 = vmatprep.mubr.f32.mxu0 %v11680_v26  ;;  %8903 = vmatpush1.bf16.msra.mxu0 %v8902_v58 }
 0x612   : > { %8905 = vmatprep.subr.bf16.mxu0 %v8904_v34 }
 0x615   : > { %8907 = vmatpush1.bf16.msra.mxu0 %v8906_v11 }
 0x616   : > { %8908 = vmatprep.subr.bf16.mxu0 %v11667_v0 }
 0x6e3   : > { %v2486_v7 = vpop.f32.mrb[36].mxu0 }
 0x6e4   : > { %v2487_v17 = vadd.f32 %v7289_v18, %v2486_v7  ;;  %v8259_v48 = vpop.f32.mrb[37].mxu0  ;;  %v1520_v18 = vld [vmem:[%s11681_s1 + $0x48] sm:$0xff] }
 0x6e5   : > { %v8921_v7 = vpack.c.bf16 %v1520_v18, %v1519_v15  ;;  %v1522_v48 = vld [vmem:[%s11681_s1 + $0x58] sm:$0xff] }
 0x6e6   : > { %v10626_v25 = vadd.f32 %v9492_v62, %v2487_v17  ;;  %v1521_v17 = vld [vmem:[%s11681_s1 + $0x50] sm:$0xff] }
 0x6e7   : > { %v8924_v62 = vpack.c.bf16 %v1522_v48, %v1521_v17 }
 0x6e8   : > { %v2491_v59 = vsel %vm964_vm1, %v10626_v25, 0.0 }
 0x6e9   : > { %2492 = vadd.xlane.f32.xlu0 %v2491_v59  ;;  %v1523_v59 = vld [vmem:[%s11681_s1 + $0x60] sm:$0xff] }
 0x776   : > { %v2493_v37 = vpop.xlane.xlu0 %2492 }
 0x777   : > { %v2494_v36 = vmul.f32 0.03125, %v2493_v37  ;;  %v1524_v37 = vld [vmem:[%s11681_s1 + $0x68] sm:$0xff] }
 0x779   : > { %v2495_v63 = vsub.f32 %v10626_v25, %v2494_v36  ;;  %v8927_v36 = vpack.c.bf16 %v1524_v37, %v1523_v59 }
 0x77b   : > { %v2496_v8 = vmul.f32 %v2495_v63, %v2495_v63 }
 0x77d   : > { %v2497_v24 = vsel %vm964_vm1, %v2496_v8, 0.0  ;;  %v1526_v8 = vld [vmem:[%s11681_s1 + $0x78] sm:$0xff] }
 0x77e   : > { %2498 = vadd.xlane.f32.xlu1 %v2497_v24 }
 0x80b   : > { %v2499_v42 = vpop.xlane.xlu1 %2498 }
 0x80c   : > { %v2500_v51 = vmul.f32 0.03125, %v2499_v42 }
 0x80e   : > { %v2501_v54 = vadd.f32 1e-05, %v2500_v51 }
 0x810   : > { %9424 = vrsqrt.f32 %v2501_v54 }
 0x81a   : > { %v9425_v23 = vpop.eup %9424 }
 0x81b   : > { %v2503_v28 = vmul.f32 %v9425_v23, %v2495_v63  ;;  %v1525_v63 = vld [vmem:[%s11681_s1 + $0x70] sm:$0xff] }
 0x81c   : > { %v8930_v24 = vpack.c.bf16 %v1526_v8, %v1525_v63 }
 0x81d   : > { %v2510_v57 = vmul.f32 %v7291_v44, %v2503_v28 }
 0x81f   : > { %v2517_v46 = vadd.f32 %v7292_v27, %v2510_v57 }
 0x821   : > { %7293 = vmatmul.mubr.msk.f32.vlgmr.msra.gmra.mrb[38].mxu0 %vm964_vm1, %v2517_v46 }
 0x822   : > { %8292 = vmatprep.mubr.msk.f32.mxu0 %vm9588_vm3, %v11680_v26  ;;  %8910 = vmatpush3.bf16.msra.mxu0 %v8909_v16 }
 0x823   : > { %8911 = vmatprep.subr.bf16.mxu0 %v11667_v0 }
 0x826   : > { %8913 = vmatpush3.bf16.msra.mxu0 %v8912_v45 }
 0x827   : > { %8914 = vmatprep.subr.bf16.mxu0 %v11667_v0 }
 0x82a   : > { %8916 = vmatpush3.bf16.msra.mxu0 %v8915_v4 }
 0x82b   : > { %8917 = vmatprep.subr.bf16.mxu0 %v11667_v0 }
 0x82e   : > { %8919 = vmatpush3.bf16.msra.mxu0 %v8918_v38 }
 0x82f   : > { %8920 = vmatprep.subr.bf16.mxu0 %v11667_v0 }
 0x832   : > { %8922 = vmatpush3.bf16.msra.mxu0 %v8921_v7 }
 0x833   : > { %8923 = vmatprep.subr.bf16.mxu0 %v11667_v0 }
 0x836   : > { %8925 = vmatpush3.bf16.msra.mxu0 %v8924_v62  ;;  %v7294_v62 = vld [vmem:[%s11683_s23] ss:$0 sm:$0xff]  ;;  %s11699_s23 = smov %s11698_s22 }
 0x837   : > { %8926 = vmatprep.subr.bf16.mxu0 %v11667_v0 }
 0x83a   : > { %8928 = vmatpush3.bf16.msra.mxu0 %v8927_v36 }
 0x83b   : > { %8929 = vmatprep.subr.bf16.mxu0 %v11667_v0 }
 0x83e   : > { %8931 = vmatpush3.bf16.msra.mxu0 %v8930_v24 }
 0x83f   : > { %8333 = vmatprep.subr.mxu0 %v11680_v26 }
 0x8f4   : > { %v2598_v58 = vpop.f32.mrb[38].mxu0 }
 0x8f5   : > { %v2600_v41 = vpop.f32.mrb[39].mxu0  ;;  %v2599_v7 = vadd.f32 %v2598_v58, %v2522_v13  ;;  %v2738_v58 = vld [vmem:[%s11684_s28] sm:$0xff] }
 0x8f6   : > { %v2601_v52 = vadd.f32 %v2600_v41, %v2526_v3  ;;  %v2739_v41 = vld [vmem:[%s11684_s28 + $0x8] sm:$0xff] }
 0x8f8   : > { %v2604_v34 = vmul.f32 0.70710677, %v2601_v52  ;;  %v2603_v15 = vmul.f32 0.5, %v2601_v52  ;;  %v8933_v52 = vpack.c.bf16 %v2739_v41, %v2738_v58 }
 0x8fa   : > { %vm2605_vm5 = vcmp.ge.f32.partialorder %v2604_v34, 0.0  ;;  %v2606_v33 = vsub.f32 0.0, %v2604_v34  ;;  %8934 = vmatpush3.bf16.msra.mxu1 %v8933_v52 }
 0x8fb   : > { %8935 = vmatprep.subr.bf16.mxu1 %v11667_v0 }
 0x8fc   : > { %v2607_v35 = vsel %vm2605_vm5, %v2604_v34, %v2606_v33  ;;  %v2741_v34 = vld [vmem:[%s11684_s28 + $0x18] sm:$0xff] }
 0x8fd   : > { %v2608_v11 = vmul.f32 0.3275911, %v2607_v35  ;;  %v2621_v51 = vmul.f32 %v2607_v35, %v2607_v35 }
 0x8ff   : > { %v2609_v42 = vadd.f32 1.0, %v2608_v11  ;;  %v2622_v23 = vsub.f32 0.0, %v2621_v51 }
 0x901   : > { %9426 = vrcp.f32 %v2609_v42  ;;  %v2623_v27 = vmul.f32 1.442695, %v2622_v23 }
 0x903   : > { %9428 = vpow2.f32 %v2623_v27  ;;  %v7296_v27 = vld [vmem:[%s11687_s2] ss:$0 sm:$0xff] }
 0x90b   : > { %v9427_v54 = vpop.eup %9426 }
 0x90c   : > { %v2612_v44 = vmul.f32 1.0614054, %v9427_v54 }
 0x90d   : > { %v9429_v45 = vpop.eup %9428 }
 0x90e   : > { %v2613_v28 = vadd.f32 -1.4531521, %v2612_v44  ;;  %v2742_v44 = vld [vmem:[%s11686_s9] sm:$0xff] }
 0x910   : > { %v2614_v57 = vmul.f32 %v9427_v54, %v2613_v28  ;;  %v2743_v28 = vld [vmem:[%s11686_s9 + $0x8] sm:$0xff] }
 0x912   : > { %v2615_v46 = vadd.f32 1.4214138, %v2614_v57 }
 0x914   : > { %v2616_v55 = vmul.f32 %v9427_v54, %v2615_v46  ;;  %v8939_v46 = vpack.c.bf16 %v2743_v28, %v2742_v44 }
 0x916   : > { %v2617_v49 = vadd.f32 -0.28449672, %v2616_v55 }
 0x918   : > { %v2618_v16 = vmul.f32 %v9427_v54, %v2617_v49  ;;  %v2744_v49 = vld [vmem:[%s11686_s9 + $0x10] sm:$0xff] }
 0x91a   : > { %v2619_v14 = vadd.f32 0.2548296, %v2618_v16  ;;  %v2745_v16 = vld [vmem:[%s11686_s9 + $0x18] sm:$0xff] }
 0x91c   : > { %v2620_v50 = vmul.f32 %v9427_v54, %v2619_v14  ;;  %v7295_v54 = vld [vmem:[%s11685_s5] ss:$0 sm:$0xff]  ;;  %v8942_v14 = vpack.c.bf16 %v2745_v16, %v2744_v49 }
 0x91e   : > { %v2625_v20 = vmul.f32 %v9429_v45, %v2620_v50  ;;  %v2746_v50 = vld [vmem:[%s11688_s18] sm:$0xff]  ;;  %v2747_v45 = vld [vmem:[%s11689_s26 + $0x8] sm:$0xff]  ;;  %s11690_s18 = sld [smem:[#allocation18_spill]] }
 0x920   : > { %v2626_v4 = vsub.f32 1.0, %v2625_v20  ;;  %v8945_v20 = vpack.c.bf16 %v2747_v45, %v2746_v50 }
 0x922   : > { %v2627_v40 = vsub.f32 0.0, %v2626_v4 }
 0x924   : > { %v2628_v38 = vsel %vm2605_vm5, %v2626_v4, %v2627_v40  ;;  %v2748_v4 = vld [vmem:[%s11689_s26 + $0x10] sm:$0xff]  ;;  %v2749_v40 = vld [vmem:[%s11689_s26 + $0x18] sm:$0xff]  ;;  %s11691_s10 = smov %s11690_s18 }
 0x925   : > { %v2629_v18 = vadd.f32 1.0, %v2628_v38  ;;  %v8948_v13 = vpack.c.bf16 %v2749_v40, %v2748_v4  ;;  %v2751_v58 = vld [vmem:[%s11691_s10 + $0x8] sm:$0xff]  ;;  %v2752_v41 = vld [vmem:[%s11691_s10 + $0x10] sm:$0xff] }
 0x927   : > { %v2630_v17 = vmul.f32 %v2629_v18, %v2603_v15 }
 0x929   : > { %v2631_v48 = vmul.f32 %v2630_v17, %v2599_v7 }
 0x92b   : > { %8293 = vmatmul.mubr.f32.vlgmr.msra.gmra.mrb[40].mxu0 %v2631_v48 }
 0x92c   : > { %8335 = vmatprep.mubr.msk.f32.mxu0 %vm9588_vm3, %v11680_v26 }
 0x9fe   : > { %v2704_v59 = vpop.f32.mrb[40].mxu0 }
 0x9ff   : > { %v2705_v37 = vadd.f32 %v7294_v62, %v2704_v59  ;;  %v8294_v36 = vpop.f32.mrb[41].mxu0 }
 0xa01   : > { %v10683_v63 = vadd.f32 %v2705_v37, %v10626_v25  ;;  %v2740_v25 = vld [vmem:[%s11684_s28 + $0x10] sm:$0xff] }
 0xa02   : > { %v8936_v33 = vpack.c.bf16 %v2741_v34, %v2740_v25  ;;  %v2753_v25 = vld [vmem:[%s11691_s10 + $0x18] sm:$0xff] }
 0xa03   : > { %v2711_v8 = vsel %vm964_vm1, %v10683_v63, 0.0  ;;  %v8954_v34 = vpack.c.bf16 %v2753_v25, %v2752_v41  ;;  %v2768_v41 = vld [vmem:[%s9739_s27 + $0x10] sm:$0xff] }
 0xa04   : > { %2712 = vadd.xlane.f32.xlu0 %v2711_v8  ;;  %8937 = vmatpush3.bf16.msra.mxu1 %v8936_v33 }
 0xa05   : > { %8938 = vmatprep.subr.bf16.mxu1 %v11667_v0 }
 0xa91   : > { %v2713_v24 = vpop.xlane.xlu0 %2712 }
 0xa92   : > { %v2714_v32 = vmul.f32 0.03125, %v2713_v24 }
 0xa94   : > { %v2715_v53 = vsub.f32 %v10683_v63, %v2714_v32 }
 0xa96   : > { %v2716_v43 = vmul.f32 %v2715_v53, %v2715_v53 }
 0xa98   : > { %v2717_v3 = vsel %vm964_vm1, %v2716_v43, 0.0 }
 0xa99   : > { %2718 = vadd.xlane.f32.xlu1 %v2717_v3  ;;  %v2750_v3 = vld [vmem:[%s11690_s18] sm:$0xff]  ;;  %s11694_s18 = sld [smem:[#allocation22_spill]] }
 0xa9a   : > { %v8951_v52 = vpack.c.bf16 %v2751_v58, %v2750_v3  ;;  %v2767_v3 = vld [vmem:[%s9739_s27 + $0x8] sm:$0xff] }
 0xa9f   : > { %s11695_s12 = smov %s11694_s18  ;;  %v2758_v50 = vld [vmem:[%s11694_s18 + $0x8] sm:$0xff]  ;;  %s11718_s18 = sld [smem:[#allocation28_spill]] }
 0xaa0   : > { %v2760_v45 = vld [vmem:[%s11695_s12 + $0x18] sm:$0xff]  ;;  %v2759_v4 = vld [vmem:[%s11695_s12 + $0x10] sm:$0xff] }
 0xb26   : > { %v2719_v35 = vpop.xlane.xlu1 %2718 }
 0xb27   : > { %v2720_v11 = vmul.f32 0.03125, %v2719_v35 }
 0xb29   : > { %v2721_v42 = vadd.f32 1e-05, %v2720_v11 }
 0xb2b   : > { %9430 = vrsqrt.f32 %v2721_v42 }
 0xb35   : > { %v9431_v51 = vpop.eup %9430 }
 0xb36   : > { %v2723_v23 = vmul.f32 %v9431_v51, %v2715_v53 }
 0xb38   : > { %v2730_v57 = vmul.f32 %v7295_v54, %v2723_v23  ;;  %v7303_v54 = vld [vmem:[%s11692_s15] ss:$0 sm:$0xff]  ;;  %s11696_s15 = sld [smem:[#allocation20_spill]] }
 0xb3a   : > { %v2737_v55 = vadd.f32 %v7296_v27, %v2730_v57 }
 0xb3c   : > { %8304 = vmatmul.mubr.msk.f32.vlgmr.msra.gmra.mrb[34].mxu1 %vm964_vm1, %v2737_v55 }
 0xb3d   : > { %8940 = vmatpush3.bf16.msra.mxu1 %v8939_v46  ;;  %8314 = vmatprep.mubr.msk.f32.mxu1 %vm9588_vm3, %v11680_v26 }
 0xb3e   : > { %8941 = vmatprep.subr.bf16.mxu1 %v11667_v0  ;;  %s11697_s0 = smov %s11696_s15 }
 0xb41   : > { %8943 = vmatpush3.bf16.msra.mxu1 %v8942_v14 }
 0xb42   : > { %8944 = vmatprep.subr.bf16.mxu1 %v11667_v0 }
 0xb44   : > { %8315 = vmatmul.mubr.msk.f32.vlgmr.msra.gmra.mrb[36].mxu1 %vm964_vm1, %v2737_v55 }
 0xb45   : > { %8946 = vmatpush3.bf16.msra.mxu1 %v8945_v20  ;;  %8325 = vmatprep.mubr.msk.f32.mxu1 %vm9588_vm3, %v11680_v26  ;;  %v2757_v20 = vld [vmem:[%s11695_s12] sm:$0xff] }
 0xb46   : > { %8947 = vmatprep.subr.bf16.mxu1 %v11667_v0  ;;  %v8958_v40 = vpack.c.bf16 %v2759_v4, %v2757_v20 }
 0xb49   : > { %8949 = vmatpush3.bf16.msra.mxu1 %v8948_v13  ;;  %v2762_v13 = vld [vmem:[%s11695_s12 + $0x28] sm:$0xff] }
 0xb4a   : > { %8328 = vmatprep.subr.mxu1 %v11680_v26 }
 0xb4c   : > { %8326 = vmatmul.mubr.msk.f32.vlgmr.msra.gmra.mrb[38].mxu1 %vm964_vm1, %v2737_v55 }
 0xb4d   : > { %8330 = vmatprep.mubr.msk.f32.mxu1 %vm9588_vm3, %v11680_v26 }
 0xc0f   : > { %v2852_v38 = vpop.f32.mrb[34].mxu1 }
 0xc10   : > { %v8305_v15 = vpop.f32.mrb[35].mxu1 }
 0xc17   : > { %v2922_v18 = vpop.f32.mrb[36].mxu1 }
 0xc18   : > { %v8316_v7 = vpop.f32.mrb[37].mxu1  ;;  %8329 = vmatpush3.xpose.msk.msra.mxu1 %vm964_vm1, %v2922_v18  ;;  %v2761_v18 = vld [vmem:[%s11695_s12 + $0x20] sm:$0xff] }
 0xc19   : > { %8950 = vmatprep.subr.bf16.mxu1 %v11667_v0  ;;  %v2763_v7 = vld [vmem:[%s11695_s12 + $0x30] sm:$0xff] }
 0xc1b   : > { %8331 = vmatmul.mubr.msk.f32.vlgmr.msra.gmra.mrb[40].mxu1 %vm964_vm1, %v2852_v38  ;;  %v2764_v38 = vld [vmem:[%s11695_s12 + $0x38] sm:$0xff] }
 0xc1c   : > { %8346 = vmatprep.mubr.msk.f32.mxu1 %vm9588_vm3, %v11680_v26  ;;  %8952 = vmatpush3.bf16.msra.mxu1 %v8951_v52  ;;  %v8960_v15 = vpack.c.bf16 %v2764_v38, %v2762_v13  ;;  %v2769_v52 = vld [vmem:[%s9739_s27 + $0x18] sm:$0xff] }
 0xc1d   : > { %8953 = vmatprep.subr.bf16.mxu1 %v11667_v0  ;;  %v8968_v25 = vpack.c.bf16 %v2769_v52, %v2768_v41 }
 0xc1f   : > { %v2992_v17 = vpop.f32.mrb[38].mxu1 }
 0xc20   : > { %v8327_v48 = vpop.f32.mrb[39].mxu1  ;;  %8334 = vmatpush3.msra.mxu0 %v2992_v17  ;;  %8955 = vmatpush3.bf16.msra.mxu1 %v8954_v34  ;;  %v8962_v17 = vpack.c.bf16 %v2763_v7, %v2761_v18  ;;  %v2770_v34 = vld [vmem:[%s9739_s27 + $0x20] sm:$0xff] }
 0xc21   : > { %8964 = vmatprep.subr.bf16.mxu1 %v11667_v0 }
 0xcee   : > { %v3068_v62 = vpop.f32.mrb[40].mxu1 }
 0xcef   : > { %v3072_v59 = vmul.f32 0.17677669, %v3068_v62  ;;  %v8332_v37 = vpop.f32.mrb[41].mxu1 }
 0xcf1   : > { %v3074_v36 = vsel %vm3073_vm6, %v3072_v59, -inf }
 0xcf2   : > { %3075 = vmax.xlane.f32.xlu0 %v3074_v36  ;;  %v7305_v36 = vld [vmem:[%s11696_s15] ss:$0 sm:$0xff]  ;;  %s11719_s15 = sld [smem:[#allocation24_spill]] }
 0xd7f   : > { %v3076_v8 = vpop.xlane.xlu0 %3075 }
 0xd80   : > { %v3077_v24 = vsub.f32 %v3072_v59, %v3076_v8 }
 0xd82   : > { %v3078_v32 = vmul.f32 1.442695, %v3077_v24  ;;  %v7306_v24 = vld [vmem:[%s11698_s22] ss:$0 sm:$0xff]  ;;  %s11717_s22 = sld [smem:[#allocation12_spill]] }
 0xd84   : > { %9432 = vpow2.f32 %v3078_v32 }
 0xd8e   : > { %v9433_v53 = vpop.eup %9432 }
 0xd8f   : > { %v3080_v43 = vsel %vm3073_vm6, %v9433_v53, 0.0 }
 0xd90   : > { %3081 = vadd.xlane.f32.xlu1 %v3080_v43  ;;  %v2766_v43 = vld [vmem:[%s9739_s27] sm:$0xff] }
 0xd91   : > { %v8965_v58 = vpack.c.bf16 %v2767_v3, %v2766_v43 }
 0xe1d   : > { %v3082_v33 = vpop.xlane.xlu1 %3081 }
 0xe1e   : > { %9434 = vrcp.f32 %v3082_v33  ;;  %v2771_v33 = vld [vmem:[%s9739_s27 + $0x28] sm:$0xff] }
 0xe28   : > { %v9435_v35 = vpop.eup %9434 }
 0xe29   : > { %v3084_v11 = vmul.f32 %v9435_v35, %v9433_v53  ;;  %v8971_v35 = vpack.c.bf16 %v2771_v33, %v2770_v34 }
 0xe2b   : > { %8336 = vmatmul.mubr.msk.f32.vlgmr.msra.gmra.mrb[42].mxu0 %vm3073_vm6, %v3084_v11  ;;  %v2772_v11 = vld [vmem:[%s9739_s27 + $0x30] sm:$0xff] }
 0xe2c   : > { %3343 = vmatprep.mubr.f32.mxu0 %v11680_v26 }
 0xefe   : > { %v3154_v42 = vpop.f32.mrb[42].mxu0 }
 0xeff   : > { %v8337_v51 = vpop.f32.mrb[43].mxu0  ;;  %8347 = vmatmul.mubr.msk.f32.vlgmr.msra.gmra.mrb[42].mxu1 %vm964_vm1, %v3154_v42  ;;  %v2773_v42 = vld [vmem:[%s9739_s27 + $0x38] sm:$0xff] }
 0xf00   : > { %8381 = vmatprep.mubr.msk.f32.mxu1 %vm9588_vm3, %v11680_v26  ;;  %8966 = vmatpush3.bf16.msra.mxu1 %v8965_v58  ;;  %v8974_v51 = vpack.c.bf16 %v2773_v42, %v2772_v11 }
 0xf01   : > { %8967 = vmatprep.subr.bf16.mxu1 %v11667_v0 }
 0xf04   : > { %8969 = vmatpush3.bf16.msra.mxu1 %v8968_v25 }
 0xf05   : > { %8970 = vmatprep.subr.bf16.mxu1 %v11667_v0 }
 0xf08   : > { %8972 = vmatpush3.bf16.msra.mxu1 %v8971_v35 }
 0xf09   : > { %8973 = vmatprep.subr.bf16.mxu1 %v11667_v0 }
 0xf0c   : > { %8975 = vmatpush3.bf16.msra.mxu1 %v8974_v51 }
 0xf0d   : > { %8976 = vmatprep.subr.bf16.mxu1 %v11667_v0 }
 0xfd2   : > { %v3233_v23 = vpop.f32.mrb[42].mxu1 }
 0xfd3   : > { %v3234_v44 = vadd.f32 %v7303_v54, %v3233_v23  ;;  %v8348_v28 = vpop.f32.mrb[43].mxu1  ;;  %v2774_v54 = vld [vmem:[%s9739_s27 + $0x40] sm:$0xff]  ;;  %v2775_v23 = vld [vmem:[%s9739_s27 + $0x48] sm:$0xff] }
 0xfd4   : > { %v2776_v28 = vld [vmem:[%s9739_s27 + $0x50] sm:$0xff] }
 0xfd5   : > { %v10738_v27 = vadd.f32 %v3234_v44, %v10683_v63  ;;  %v8956_v63 = vpack.c.bf16 %v2760_v45, %v2758_v50  ;;  %v8977_v44 = vpack.c.bf16 %v2775_v23, %v2774_v54  ;;  %v2781_v50 = vld [vmem:[%s9739_s27 + $0x78] sm:$0xff] }
 0xfd7   : > { %v3238_v57 = vsel %vm964_vm1, %v10738_v27, 0.0  ;;  %8957 = vmatprep.subr.bf16.mxu0 %v8956_v63  ;;  %8978 = vmatpush3.bf16.msra.mxu1 %v8977_v44  ;;  %v2765_v63 = vld [vmem:[%s9734_s20] sm:$0x3] }
 0xfd8   : > { %3239 = vadd.xlane.f32.xlu0 %v3238_v57  ;;  %8959 = vmatpush1.bf16.msra.mxu0 %v8958_v40  ;;  %v2777_v57 = vld [vmem:[%s9739_s27 + $0x58] sm:$0xff]  ;;  %v3273_v20 = vrot.slane %v2765_v63, %v10670_v60  ;;  %v3269_v35 = vrot.slane %v2765_v63, %v10675_v5 }
 0xfd9   : > { %8961 = vmatprep.subr.bf16.mxu0 %v8960_v15  ;;  %8979 = vmatprep.subr.bf16.mxu1 %v11667_v0 }
 0xfdc   : > { %8963 = vmatpush1.bf16.msra.mxu0 %v8962_v17 }
 0xfdd   : > { %8988 = vmatprep.subr.bf16.mxu0 %v11667_v0 }
0x1065   : > { %v3240_v46 = vpop.xlane.xlu0 %3239 }
0x1066   : > { %v3241_v55 = vmul.f32 0.03125, %v3240_v46  ;;  %v8980_v46 = vpack.c.bf16 %v2777_v57, %v2776_v28  ;;  %v7308_v28 = vld [vmem:[%s11644_s4] ss:$0 sm:$0xff] }
0x1068   : > { %v3242_v49 = vsub.f32 %v10738_v27, %v3241_v55  ;;  %8981 = vmatpush3.bf16.msra.mxu1 %v8980_v46  ;;  %v2778_v55 = vld [vmem:[%s9739_s27 + $0x60] sm:$0xff] }
0x1069   : > { %8982 = vmatprep.subr.bf16.mxu1 %v11667_v0 }
0x106a   : > { %v3243_v16 = vmul.f32 %v3242_v49, %v3242_v49 }
0x106c   : > { %v3244_v14 = vsel %vm964_vm1, %v3243_v16, 0.0 }
0x106d   : > { %3245 = vadd.xlane.f32.xlu1 %v3244_v14  ;;  %v2780_v14 = vld [vmem:[%s9739_s27 + $0x70] sm:$0xff] }
0x106e   : > { %v8986_v45 = vpack.c.bf16 %v2781_v50, %v2780_v14 }
0x10fa   : > { %v3246_v48 = vpop.xlane.xlu1 %3245 }
0x10fb   : > { %v3247_v62 = vmul.f32 0.03125, %v3246_v48 }
0x10fd   : > { %v3248_v59 = vadd.f32 1e-05, %v3247_v62 }
0x10ff   : > { %9436 = vrsqrt.f32 %v3248_v59 }
0x1109   : > { %v9437_v37 = vpop.eup %9436 }
0x110a   : > { %v3250_v8 = vmul.f32 %v9437_v37, %v3242_v49  ;;  %v2779_v49 = vld [vmem:[%s9739_s27 + $0x68] sm:$0xff] }
0x110b   : > { %v8983_v16 = vpack.c.bf16 %v2779_v49, %v2778_v55 }
0x110c   : > { %v3257_v32 = vmul.f32 %v7305_v36, %v3250_v8 }
0x110d   : > { %8984 = vmatpush3.bf16.msra.mxu1 %v8983_v16 }
0x110e   : > { %v3264_v53 = vadd.f32 %v7306_v24, %v3257_v32  ;;  %8985 = vmatprep.subr.bf16.mxu1 %v11667_v0 }
0x1110   : > { %7307 = vmatmul.mubr.msk.f32.vlgmr.msra.gmra.mrb[44].mxu0 %vm964_vm1, %v3264_v53 }
0x1111   : > { %8392 = vmatprep.mubr.msk.f32.mxu0 %vm9588_vm3, %v11680_v26  ;;  %8987 = vmatpush3.bf16.msra.mxu1 %v8986_v45 }
0x1112   : > { %9006 = vmatprep.subr.bf16.mxu1 %v11667_v0 }
0x11e3   : > { %v3345_v4 = vpop.f32.mrb[44].mxu0 }
0x11e4   : > { %v3347_v40 = vpop.f32.mrb[45].mxu0  ;;  %v3346_v54 = vadd.f32 %v3345_v4, %v3269_v35  ;;  %v7313_v4 = vld [vmem:[%s11684_s28 + $0x20] sm:$0xff] }
0x11e5   : > { %v3348_v13 = vadd.f32 %v3347_v40, %v3273_v20  ;;  %v7314_v40 = vld [vmem:[%s11684_s28 + $0x28] sm:$0xff] }
0x11e7   : > { %v3351_v38 = vmul.f32 0.70710677, %v3348_v13  ;;  %v3350_v42 = vmul.f32 0.5, %v3348_v13  ;;  %v8989_v13 = vpack.c.bf16 %v7314_v40, %v7313_v4  ;;  %v7326_v4 = vld [vmem:[%s11691_s10 + $0x28] sm:$0xff]  ;;  %v7327_v40 = vld [vmem:[%s11691_s10 + $0x30] sm:$0xff] }
0x11e9   : > { %vm3352_vm7 = vcmp.ge.f32.partialorder %v3351_v38, 0.0  ;;  %v3353_v15 = vsub.f32 0.0, %v3351_v38  ;;  %8990 = vmatpush3.bf16.msra.mxu0 %v8989_v13 }
0x11ea   : > { %8991 = vmatprep.subr.bf16.mxu0 %v11667_v0 }
0x11eb   : > { %v3354_v18 = vsel %vm3352_vm7, %v3351_v38, %v3353_v15  ;;  %v7316_v38 = vld [vmem:[%s11684_s28 + $0x38] sm:$0xff] }
0x11ec   : > { %v3355_v7 = vmul.f32 0.3275911, %v3354_v18  ;;  %v3368_v48 = vmul.f32 %v3354_v18, %v3354_v18 }
0x11ee   : > { %v3356_v17 = vadd.f32 1.0, %v3355_v7  ;;  %v3369_v59 = vsub.f32 0.0, %v3368_v48 }
0x11f0   : > { %9438 = vrcp.f32 %v3356_v17  ;;  %v3370_v8 = vmul.f32 1.442695, %v3369_v59 }
0x11f2   : > { %9440 = vpow2.f32 %v3370_v8  ;;  %v7312_v8 = vld [vmem:[%s11687_s2 + $0x1] ss:$0 sm:$0xff] }
0x11fa   : > { %v9439_v62 = vpop.eup %9438 }
0x11fb   : > { %v3359_v37 = vmul.f32 1.0614054, %v9439_v62 }
0x11fc   : > { %v9441_v52 = vpop.eup %9440 }
0x11fd   : > { %v3360_v36 = vadd.f32 -1.4531521, %v3359_v37  ;;  %v7317_v37 = vld [vmem:[%s11686_s9 + $0x20] sm:$0xff] }
0x11ff   : > { %v3361_v24 = vmul.f32 %v9439_v62, %v3360_v36  ;;  %v7318_v36 = vld [vmem:[%s11686_s9 + $0x28] sm:$0xff] }
0x1201   : > { %v3362_v32 = vadd.f32 1.4214138, %v3361_v24 }
0x1203   : > { %v3363_v53 = vmul.f32 %v9439_v62, %v3362_v32  ;;  %v8995_v32 = vpack.c.bf16 %v7318_v36, %v7317_v37 }
0x1205   : > { %v3364_v43 = vadd.f32 -0.28449672, %v3363_v53 }
0x1207   : > { %v3365_v3 = vmul.f32 %v9439_v62, %v3364_v43  ;;  %v7319_v43 = vld [vmem:[%s11686_s9 + $0x30] sm:$0xff] }
0x1209   : > { %v3366_v58 = vadd.f32 0.2548296, %v3365_v3  ;;  %v7320_v3 = vld [vmem:[%s11686_s9 + $0x38] sm:$0xff] }
0x120b   : > { %v3367_v41 = vmul.f32 %v9439_v62, %v3366_v58  ;;  %v7311_v62 = vld [vmem:[%s11685_s5 + $0x1] ss:$0 sm:$0xff]  ;;  %v8998_v58 = vpack.c.bf16 %v7320_v3, %v7319_v43 }
0x120d   : > { %v3372_v25 = vmul.f32 %v9441_v52, %v3367_v41  ;;  %v7321_v41 = vld [vmem:[%s11689_s26 + $0x20] sm:$0xff]  ;;  %v7322_v52 = vld [vmem:[%s11689_s26 + $0x28] sm:$0xff] }
0x120f   : > { %v3373_v34 = vsub.f32 1.0, %v3372_v25  ;;  %v9001_v25 = vpack.c.bf16 %v7322_v52, %v7321_v41  ;;  %v7333_v41 = vld [vmem:[%s11695_s12 + $0x48] sm:$0xff]  ;;  %v7335_v52 = vld [vmem:[%s11695_s12 + $0x58] sm:$0xff] }
0x1211   : > { %v3374_v33 = vsub.f32 0.0, %v3373_v34 }
0x1213   : > { %v3375_v11 = vsel %vm3352_vm7, %v3373_v34, %v3374_v33  ;;  %v7323_v34 = vld [vmem:[%s11689_s26 + $0x30] sm:$0xff]  ;;  %v7324_v33 = vld [vmem:[%s11689_s26 + $0x38] sm:$0xff] }
0x1214   : > { %v3376_v51 = vadd.f32 1.0, %v3375_v11  ;;  %v9004_v35 = vpack.c.bf16 %v7324_v33, %v7323_v34  ;;  %v7334_v34 = vld [vmem:[%s11695_s12 + $0x50] sm:$0xff] }
0x1216   : > { %v3377_v23 = vmul.f32 %v3376_v51, %v3350_v42 }
0x1218   : > { %v3378_v44 = vmul.f32 %v3377_v23, %v3346_v54 }
0x121a   : > { %8382 = vmatmul.mubr.f32.vlgmr.msra.gmra.mrb[44].mxu1 %v3378_v44 }
0x121b   : > { %8435 = vmatprep.mubr.msk.f32.mxu1 %vm9588_vm3, %v11680_v26 }
0x12ed   : > { %v3451_v57 = vpop.f32.mrb[44].mxu1 }
0x12ee   : > { %v3452_v46 = vadd.f32 %v7308_v28, %v3451_v57  ;;  %v8383_v55 = vpop.f32.mrb[45].mxu1 }
0x12f0   : > { %v10791_v49 = vadd.f32 %v3452_v46, %v10738_v27  ;;  %v7315_v27 = vld [vmem:[%s11684_s28 + $0x30] sm:$0xff] }
0x12f1   : > { %v8992_v15 = vpack.c.bf16 %v7316_v38, %v7315_v27  ;;  %v7328_v27 = vld [vmem:[%s11691_s10 + $0x38] sm:$0xff] }
0x12f2   : > { %v3460_v16 = vsel %vm964_vm1, %v10791_v49, 0.0  ;;  %v9010_v38 = vpack.c.bf16 %v7328_v27, %v7327_v40  ;;  %v7343_v40 = vld [vmem:[%s9739_s27 + $0x90] sm:$0xff] }
0x12f3   : > { %3461 = vadd.xlane.f32.xlu0 %v3460_v16  ;;  %8993 = vmatpush3.bf16.msra.mxu0 %v8992_v15 }
0x12f4   : > { %8994 = vmatprep.subr.bf16.mxu0 %v11667_v0 }
0x1380   : > { %v3462_v14 = vpop.xlane.xlu0 %3461 }
0x1381   : > { %v3463_v50 = vmul.f32 0.03125, %v3462_v14 }
0x1383   : > { %v3464_v45 = vsub.f32 %v10791_v49, %v3463_v50 }
0x1385   : > { %v3465_v63 = vmul.f32 %v3464_v45, %v3464_v45 }
0x1387   : > { %v3466_v20 = vsel %vm964_vm1, %v3465_v63, 0.0 }
0x1388   : > { %3467 = vadd.xlane.f32.xlu1 %v3466_v20  ;;  %v7325_v20 = vld [vmem:[%s11691_s10 + $0x20] sm:$0xff] }
0x1389   : > { %v9007_v13 = vpack.c.bf16 %v7326_v4, %v7325_v20  ;;  %v7342_v20 = vld [vmem:[%s9739_s27 + $0x88] sm:$0xff] }
0x138b   : > { %9008 = vmatpush3.bf16.msra.mxu1 %v9007_v13  ;;  %v7344_v13 = vld [vmem:[%s9739_s27 + $0x98] sm:$0xff] }
0x138c   : > { %9009 = vmatprep.subr.bf16.mxu1 %v11667_v0  ;;  %v9024_v27 = vpack.c.bf16 %v7344_v13, %v7343_v40 }
0x138f   : > { %9011 = vmatpush3.bf16.msra.mxu1 %v9010_v38  ;;  %v7345_v38 = vld [vmem:[%s9739_s27 + $0xa0] sm:$0xff] }
0x1390   : > { %9020 = vmatprep.subr.bf16.mxu1 %v11667_v0 }
0x1415   : > { %v3468_v18 = vpop.xlane.xlu1 %3467 }
0x1416   : > { %v3469_v7 = vmul.f32 0.03125, %v3468_v18 }
0x1418   : > { %v3470_v17 = vadd.f32 1e-05, %v3469_v7 }
0x141a   : > { %9442 = vrsqrt.f32 %v3470_v17 }
0x1424   : > { %v9443_v48 = vpop.eup %9442 }
0x1425   : > { %v3472_v59 = vmul.f32 %v9443_v48, %v3464_v45 }
0x1427   : > { %v3479_v24 = vmul.f32 %v7311_v62, %v3472_v59  ;;  %v7364_v62 = vld [vmem:[%s11693_s7 + $0x1] ss:$0 sm:$0xff] }
0x1429   : > { %v3486_v53 = vadd.f32 %v7312_v8, %v3479_v24 }
0x142b   : > { %8393 = vmatmul.mubr.msk.f32.vlgmr.msra.gmra.mrb[46].mxu0 %vm964_vm1, %v3486_v53 }
0x142c   : > { %8996 = vmatpush3.bf16.msra.mxu0 %v8995_v32  ;;  %8403 = vmatprep.mubr.msk.f32.mxu0 %vm9588_vm3, %v11680_v26 }
0x142d   : > { %8997 = vmatprep.subr.bf16.mxu0 %v11667_v0 }
0x1430   : > { %8999 = vmatpush3.bf16.msra.mxu0 %v8998_v58 }
0x1431   : > { %9000 = vmatprep.subr.bf16.mxu0 %v11667_v0 }
0x1433   : > { %8404 = vmatmul.mubr.msk.f32.vlgmr.msra.gmra.mrb[48].mxu0 %vm964_vm1, %v3486_v53 }
0x1434   : > { %9002 = vmatpush3.bf16.msra.mxu0 %v9001_v25  ;;  %8414 = vmatprep.mubr.msk.f32.mxu0 %vm9588_vm3, %v11680_v26  ;;  %v7332_v25 = vld [vmem:[%s11695_s12 + $0x40] sm:$0xff] }
0x1435   : > { %9003 = vmatprep.subr.bf16.mxu0 %v11667_v0  ;;  %v9014_v33 = vpack.c.bf16 %v7334_v34, %v7332_v25  ;;  %v7340_v25 = vld [vmem:[%s9734_s20 + $0x2] sm:$0x3] }
0x1436   : > { %v4032_v34 = vrot.slane %v7340_v25, %v10670_v60 }
0x1438   : > { %9005 = vmatpush3.bf16.msra.mxu0 %v9004_v35  ;;  %v7337_v35 = vld [vmem:[%s11695_s12 + $0x68] sm:$0xff] }
0x1439   : > { %8417 = vmatprep.subr.mxu0 %v11680_v26 }
0x143b   : > { %8415 = vmatmul.mubr.msk.f32.vlgmr.msra.gmra.mrb[50].mxu0 %vm964_vm1, %v3486_v53 }
0x143c   : > { %8419 = vmatprep.mubr.msk.f32.mxu0 %vm9588_vm3, %v11680_v26 }
0x14fe   : > { %v3612_v11 = vpop.f32.mrb[46].mxu0 }
0x14ff   : > { %v8394_v42 = vpop.f32.mrb[47].mxu0 }
0x1506   : > { %v3682_v51 = vpop.f32.mrb[48].mxu0 }
0x1507   : > { %v8405_v54 = vpop.f32.mrb[49].mxu0  ;;  %8418 = vmatpush3.xpose.msk.msra.mxu0 %vm964_vm1, %v3682_v51  ;;  %v7336_v51 = vld [vmem:[%s11695_s12 + $0x60] sm:$0xff] }
0x1508   : > { %8422 = vmatprep.subr.mxu0 %v11680_v26  ;;  %v7338_v54 = vld [vmem:[%s11695_s12 + $0x70] sm:$0xff] }
0x150a   : > { %8420 = vmatmul.mubr.msk.f32.vlgmr.msra.gmra.mrb[52].mxu0 %vm964_vm1, %v3612_v11  ;;  %v7339_v11 = vld [vmem:[%s11695_s12 + $0x78] sm:$0xff] }
0x150b   : > { %8424 = vmatprep.mubr.msk.f32.mxu0 %vm9588_vm3, %v11680_v26  ;;  %v9016_v42 = vpack.c.bf16 %v7339_v11, %v7337_v35 }
0x150e   : > { %v3752_v23 = vpop.f32.mrb[50].mxu0 }
0x150f   : > { %v8416_v44 = vpop.f32.mrb[51].mxu0  ;;  %8423 = vmatpush3.msra.mxu0 %v3752_v23  ;;  %v9018_v23 = vpack.c.bf16 %v7338_v54, %v7336_v51 }
0x15dd   : > { %v3828_v28 = vpop.f32.mrb[52].mxu0 }
0x15de   : > { %v3832_v57 = vmul.f32 0.17677669, %v3828_v28  ;;  %v8421_v46 = vpop.f32.mrb[53].mxu0 }
0x15e0   : > { %v3833_v55 = vsel %vm3073_vm6, %v3832_v57, -inf }
0x15e1   : > { %3834 = vmax.xlane.f32.xlu0 %v3833_v55  ;;  %v7366_v55 = vld [vmem:[%s11697_s0 + $0x1] ss:$0 sm:$0xff] }
0x166e   : > { %v3835_v16 = vpop.xlane.xlu0 %3834 }
0x166f   : > { %v3836_v14 = vsub.f32 %v3832_v57, %v3835_v16 }
0x1671   : > { %v3837_v50 = vmul.f32 1.442695, %v3836_v14  ;;  %v7367_v14 = vld [vmem:[%s11699_s23 + $0x1] ss:$0 sm:$0xff] }
0x1673   : > { %9444 = vpow2.f32 %v3837_v50 }
0x167d   : > { %v9445_v45 = vpop.eup %9444 }
0x167e   : > { %v3839_v63 = vsel %vm3073_vm6, %v9445_v45, 0.0 }
0x167f   : > { %3840 = vadd.xlane.f32.xlu1 %v3839_v63  ;;  %v7341_v63 = vld [vmem:[%s9739_s27 + $0x80] sm:$0xff] }
0x1680   : > { %v9021_v4 = vpack.c.bf16 %v7342_v20, %v7341_v63 }
0x170c   : > { %v3841_v15 = vpop.xlane.xlu1 %3840 }
0x170d   : > { %9446 = vrcp.f32 %v3841_v15  ;;  %v7346_v15 = vld [vmem:[%s9739_s27 + $0xa8] sm:$0xff] }
0x1717   : > { %v9447_v18 = vpop.eup %9446 }
0x1718   : > { %v3843_v7 = vmul.f32 %v9447_v18, %v9445_v45  ;;  %v9027_v18 = vpack.c.bf16 %v7346_v15, %v7345_v38 }
0x171a   : > { %8425 = vmatmul.mubr.msk.f32.vlgmr.msra.gmra.mrb[54].mxu0 %vm3073_vm6, %v3843_v7  ;;  %v7347_v7 = vld [vmem:[%s9739_s27 + $0xb0] sm:$0xff] }
0x171b   : > { %4102 = vmatprep.mubr.f32.mxu0 %v11680_v26 }
0x17ed   : > { %v3913_v17 = vpop.f32.mrb[54].mxu0 }
0x17ee   : > { %v8426_v48 = vpop.f32.mrb[55].mxu0  ;;  %8436 = vmatmul.mubr.msk.f32.vlgmr.msra.gmra.mrb[46].mxu1 %vm964_vm1, %v3913_v17  ;;  %v7348_v17 = vld [vmem:[%s9739_s27 + $0xb8] sm:$0xff] }
0x17ef   : > { %8470 = vmatprep.mubr.msk.f32.mxu1 %vm9588_vm3, %v11680_v26  ;;  %9022 = vmatpush3.bf16.msra.mxu1 %v9021_v4  ;;  %v9030_v48 = vpack.c.bf16 %v7348_v17, %v7347_v7  ;;  %v10895_v7 = vld [vmem:[%s9619_s21 + $0x1] ss:$0 sm:$0xff]  ;;  %v4028_v17 = vrot.slane %v7340_v25, %v10675_v5 }
0x17f0   : > { %9023 = vmatprep.subr.bf16.mxu1 %v11667_v0  ;;  %v4262_v25 = vmul.f32 %v10895_v7, %v10235_v29 }
0x17f3   : > { %9025 = vmatpush3.bf16.msra.mxu1 %v9024_v27 }
0x17f4   : > { %9026 = vmatprep.subr.bf16.mxu1 %v11667_v0 }
0x17f7   : > { %9028 = vmatpush3.bf16.msra.mxu1 %v9027_v18 }
0x17f8   : > { %9029 = vmatprep.subr.bf16.mxu1 %v11667_v0 }
0x17fb   : > { %9031 = vmatpush3.bf16.msra.mxu1 %v9030_v48 }
0x17fc   : > { %9032 = vmatprep.subr.bf16.mxu1 %v11667_v0 }
0x18c1   : > { %v3992_v59 = vpop.f32.mrb[46].mxu1 }
0x18c2   : > { %v3993_v37 = vadd.f32 %v7364_v62, %v3992_v59  ;;  %v8437_v36 = vpop.f32.mrb[47].mxu1  ;;  %v7349_v62 = vld [vmem:[%s9739_s27 + $0xc0] sm:$0xff]  ;;  %v7350_v59 = vld [vmem:[%s9739_s27 + $0xc8] sm:$0xff] }
0x18c3   : > { %v7351_v36 = vld [vmem:[%s9739_s27 + $0xd0] sm:$0xff] }
0x18c4   : > { %v10846_v8 = vadd.f32 %v3993_v37, %v10791_v49  ;;  %v9012_v49 = vpack.c.bf16 %v7335_v52, %v7333_v41  ;;  %v9033_v37 = vpack.c.bf16 %v7350_v59, %v7349_v62  ;;  %v7356_v41 = vld [vmem:[%s9739_s27 + $0xf8] sm:$0xff] }
0x18c6   : > { %v3997_v24 = vsel %vm964_vm1, %v10846_v8, 0.0  ;;  %9013 = vmatprep.subr.bf16.mxu0 %v9012_v49  ;;  %9034 = vmatpush3.bf16.msra.mxu1 %v9033_v37  ;;  %v7383_v49 = vld [vmem:[%s11645_s8 + $0x4] sm:$0xf]  ;;  %v4256_v37 = vmul.f32 %v10895_v7, %v10168_v10 }
0x18c7   : > { %3998 = vadd.xlane.f32.xlu0 %v3997_v24  ;;  %9015 = vmatpush1.bf16.msra.mxu0 %v9014_v33  ;;  %v7352_v24 = vld [vmem:[%s9739_s27 + $0xd8] sm:$0xff] }
0x18c8   : > { %9017 = vmatprep.subr.bf16.mxu0 %v9016_v42  ;;  %9035 = vmatprep.subr.bf16.mxu1 %v11667_v0 }
0x18cb   : > { %9019 = vmatpush1.bf16.msra.mxu0 %v9018_v23 }
0x18cc   : > { %9044 = vmatprep.subr.bf16.mxu0 %v11667_v0 }
0x1954   : > { %v3999_v32 = vpop.xlane.xlu0 %3998 }
0x1955   : > { %v4000_v53 = vmul.f32 0.03125, %v3999_v32  ;;  %v9036_v32 = vpack.c.bf16 %v7352_v24, %v7351_v36 }
0x1957   : > { %v4001_v43 = vsub.f32 %v10846_v8, %v4000_v53  ;;  %9037 = vmatpush3.bf16.msra.mxu1 %v9036_v32  ;;  %v7353_v53 = vld [vmem:[%s9739_s27 + $0xe0] sm:$0xff] }
0x1958   : > { %9038 = vmatprep.subr.bf16.mxu1 %v11667_v0  ;;  %v10902_v32 = vld [vmem:[%s9624_s25 + $0x1] ss:$0 sm:$0xff] }
0x1959   : > { %v4002_v3 = vmul.f32 %v4001_v43, %v4001_v43 }
0x195b   : > { %v4003_v58 = vsel %vm964_vm1, %v4002_v3, 0.0 }
0x195c   : > { %4004 = vadd.xlane.f32.xlu1 %v4003_v58  ;;  %v7355_v58 = vld [vmem:[%s9739_s27 + $0xf0] sm:$0xff] }
0x195d   : > { %v9042_v52 = vpack.c.bf16 %v7356_v41, %v7355_v58  ;;  %v4258_v58 = vmul.f32 %v10895_v7, %v10189_v19  ;;  %v4259_v41 = vmul.f32 %v10895_v7, %v10179_v6 }
0x195f   : > { %v10929_v19 = vadd.f32 %v10902_v32, %v4259_v41 }
0x19e9   : > { %v4005_v44 = vpop.xlane.xlu1 %4004 }
0x19ea   : > { %v4006_v28 = vmul.f32 0.03125, %v4005_v44 }
0x19ec   : > { %v4007_v57 = vadd.f32 1e-05, %v4006_v28 }
0x19ee   : > { %9448 = vrsqrt.f32 %v4007_v57 }
0x19f8   : > { %v9449_v46 = vpop.eup %9448 }
0x19f9   : > { %v4009_v16 = vmul.f32 %v9449_v46, %v4001_v43  ;;  %v7354_v43 = vld [vmem:[%s9739_s27 + $0xe8] sm:$0xff] }
0x19fa   : > { %v9039_v3 = vpack.c.bf16 %v7354_v43, %v7353_v53  ;;  %v4257_v53 = vmul.f32 %v10895_v7, %v10182_v30  ;;  %v10920_v30 = vadd.f32 %v10902_v32, %v4258_v58  ;;  %v11710_v58 = vld [vmem:[#allocation42_spill] sm:$0xff] }
0x19fb   : > { %v4016_v50 = vmul.f32 %v7366_v55, %v4009_v16  ;;  %v4280_v41 = vmul.f32 %v10895_v7, %v11710_v58 }
0x19fc   : > { %9040 = vmatpush3.bf16.msra.mxu1 %v9039_v3  ;;  %v10907_v3 = vadd.f32 %v10902_v32, %v4256_v37  ;;  %v10915_v10 = vadd.f32 %v10902_v32, %v4257_v53  ;;  %v11708_v37 = vld [vmem:[#allocation40_spill] sm:$0xff] }
0x19fd   : > { %v4023_v45 = vadd.f32 %v7367_v14, %v4016_v50  ;;  %9041 = vmatprep.subr.bf16.mxu1 %v11667_v0 }
0x19ff   : > { %7368 = vmatmul.mubr.msk.f32.vlgmr.msra.gmra.mrb[56].mxu0 %vm964_vm1, %v4023_v45 }
0x1a00   : > { %8481 = vmatprep.mubr.msk.f32.mxu0 %vm9588_vm3, %v11680_v26  ;;  %9043 = vmatpush3.bf16.msra.mxu1 %v9042_v52  ;;  %v4260_v52 = vmul.f32 %v10895_v7, %v10207_v1 }
0x1a01   : > { %8534 = vmatprep.subr.msk.mxu1 %vm1697_vm2, %v7383_v49 }
0x1a02   : > { %v10934_v6 = vadd.f32 %v10902_v32, %v4260_v52 }
0x1ad2   : > { %v4104_v33 = vpop.f32.mrb[56].mxu0 }
0x1ad3   : > { %v4106_v35 = vpop.f32.mrb[57].mxu0  ;;  %v4105_v36 = vadd.f32 %v4104_v33, %v4028_v17  ;;  %v4264_v33 = vmul.f32 %v10895_v7, %v10259_v12  ;;  %v4275_v17 = vmul.f32 %v10895_v7, %v10371_v56 }
0x1ad4   : > { %v4107_v11 = vadd.f32 %v4106_v35, %v4032_v34  ;;  %v4263_v34 = vmul.f32 %v10895_v7, %v10227_v47  ;;  %v11700_v35 = vld [vmem:[#allocation33_spill] sm:$0xff] }
0x1ad5   : > { %v10962_v47 = vadd.f32 %v10902_v32, %v4264_v33  ;;  %v11712_v33 = vld [vmem:[#allocation44_spill] sm:$0xff] }
0x1ad6   : > { %v4110_v42 = vmul.f32 0.70710677, %v4107_v11  ;;  %v4109_v62 = vmul.f32 0.5, %v4107_v11  ;;  %v10957_v29 = vadd.f32 %v10902_v32, %v4263_v34  ;;  %v4265_v11 = vmul.f32 %v10895_v7, %v11700_v35 }
0x1ad7   : > { %v11074_v34 = vadd.f32 %v10902_v32, %v4280_v41  ;;  %v4282_v35 = vmul.f32 %v10895_v7, %v11712_v33 }
0x1ad8   : > { %vm4111_vm8 = vcmp.ge.f32.partialorder %v4110_v42, 0.0  ;;  %v4112_v51 = vsub.f32 0.0, %v4110_v42  ;;  %v10971_v12 = vadd.f32 %v10902_v32, %v4265_v11 }
0x1ada   : > { %v4113_v54 = vsel %vm4111_vm8, %v4110_v42, %v4112_v51  ;;  %v11701_v42 = vld [vmem:[#allocation34_spill] sm:$0xff] }
0x1adb   : > { %v4114_v23 = vmul.f32 0.3275911, %v4113_v54  ;;  %v4127_v28 = vmul.f32 %v4113_v54, %v4113_v54  ;;  %v4266_v51 = vmul.f32 %v10895_v7, %v11701_v42  ;;  %v11702_v54 = vld [vmem:[#allocation37_spill] sm:$0xff]  ;;  %v11713_v42 = vld [vmem:[#allocation47_spill] sm:$0xff] }
0x1add   : > { %v4115_v44 = vadd.f32 1.0, %v4114_v23  ;;  %v4128_v46 = vsub.f32 0.0, %v4127_v28  ;;  %v4267_v23 = vmul.f32 %v10895_v7, %v11702_v54  ;;  %v11703_v28 = vld [vmem:[#allocation35_spill] sm:$0xff]  ;;  %v11088_v54 = vadd.f32 %v10902_v32, %v4282_v35 }
0x1adf   : > { %9450 = vrcp.f32 %v4115_v44  ;;  %v4129_v14 = vmul.f32 1.442695, %v4128_v46  ;;  %v10976_v44 = vadd.f32 %v10902_v32, %v4266_v51  ;;  %v10985_v46 = vadd.f32 %v10902_v32, %v4267_v23  ;;  %v11714_v23 = vld [vmem:[#allocation46_spill] sm:$0xff] }
0x1ae0   : > { %v4283_v51 = vmul.f32 %v10895_v7, %v11713_v42 }
0x1ae1   : > { %9452 = vpow2.f32 %v4129_v14 }
0x1ae9   : > { %v9451_v57 = vpop.eup %9450 }
0x1aea   : > { %v4118_v55 = vmul.f32 1.0614054, %v9451_v57 }
0x1aeb   : > { %v9453_v27 = vpop.eup %9452 }
0x1aec   : > { %v4119_v16 = vadd.f32 -1.4531521, %v4118_v55  ;;  %v11704_v55 = vld [vmem:[#allocation39_spill] sm:$0xff] }
0x1aee   : > { %v4120_v50 = vmul.f32 %v9451_v57, %v4119_v16  ;;  %v4269_v16 = vmul.f32 %v10895_v7, %v11704_v55  ;;  %v11715_v55 = vld [vmem:[#allocation49_spill] sm:$0xff] }
0x1af0   : > { %v4121_v45 = vadd.f32 1.4214138, %v4120_v50  ;;  %v11705_v50 = vld [vmem:[#allocation36_spill] sm:$0xff] }
0x1af2   : > { %v4122_v63 = vmul.f32 %v9451_v57, %v4121_v45  ;;  %v4270_v45 = vmul.f32 %v10895_v7, %v11705_v50 }
0x1af4   : > { %v4123_v20 = vadd.f32 -0.28449672, %v4122_v63  ;;  %v10999_v63 = vadd.f32 %v10902_v32, %v4269_v16  ;;  %v4285_v16 = vmul.f32 %v10895_v7, %v11715_v55 }
0x1af6   : > { %v4124_v4 = vmul.f32 %v9451_v57, %v4123_v20  ;;  %v4271_v20 = vmul.f32 %v10895_v7, %v10328_v2 }
0x1af8   : > { %v4125_v40 = vadd.f32 0.2548296, %v4124_v4  ;;  %v11004_v4 = vadd.f32 %v10902_v32, %v4270_v45  ;;  %v11716_v45 = vld [vmem:[#allocation48_spill] sm:$0xff] }
0x1afa   : > { %v4126_v13 = vmul.f32 %v9451_v57, %v4125_v40  ;;  %v4268_v57 = vmul.f32 %v10895_v7, %v11703_v28  ;;  %v11706_v40 = vld [vmem:[#allocation38_spill] sm:$0xff]  ;;  %v4284_v28 = vmul.f32 %v10895_v7, %v11714_v23 }
0x1afc   : > { %v4131_v38 = vmul.f32 %v9453_v27, %v4126_v13  ;;  %v10990_v14 = vadd.f32 %v10902_v32, %v4268_v57  ;;  %v4272_v13 = vmul.f32 %v10895_v7, %v11706_v40  ;;  %v11013_v27 = vadd.f32 %v10902_v32, %v4271_v20 }
0x1afd   : > { %v11097_v57 = vadd.f32 %v10902_v32, %v4283_v51  ;;  %v11102_v50 = vadd.f32 %v10902_v32, %v4284_v28  ;;  %v4286_v20 = vmul.f32 %v10895_v7, %v11716_v45  ;;  %v11111_v40 = vadd.f32 %v10902_v32, %v4285_v16 }
0x1afe   : > { %v4132_v15 = vsub.f32 1.0, %v4131_v38  ;;  %v4273_v38 = vmul.f32 %v10895_v7, %v10348_v21  ;;  %v11018_v2 = vadd.f32 %v10902_v32, %v4272_v13  ;;  %v4287_v13 = vmul.f32 %v10895_v7, %v10497_v31 }
0x1b00   : > { %v4133_v18 = vsub.f32 0.0, %v4132_v15 }
0x1b02   : > { %v4134_v48 = vsel %vm4111_vm8, %v4132_v15, %v4133_v18  ;;  %v4274_v15 = vmul.f32 %v10895_v7, %v10338_v39  ;;  %v11027_v18 = vadd.f32 %v10902_v32, %v4273_v38  ;;  %v11041_v39 = vadd.f32 %v10902_v32, %v4275_v17  ;;  %v7369_v17 = vld [vmem:[%s11644_s4 + $0x1] ss:$0 sm:$0xff] }
0x1b03   : > { %v4135_v59 = vadd.f32 1.0, %v4134_v48  ;;  %v4276_v48 = vmul.f32 %v10895_v7, %v10352_v22  ;;  %v11116_v38 = vadd.f32 %v10902_v32, %v4286_v20 }
0x1b04   : > { %v11032_v21 = vadd.f32 %v10902_v32, %v4274_v15  ;;  %v11123_v15 = vadd.f32 %v10902_v32, %v4287_v13 }
0x1b05   : > { %v4136_v24 = vmul.f32 %v4135_v59, %v4109_v62  ;;  %v11707_v62 = vld [vmem:[#allocation41_spill] sm:$0xff]  ;;  %v11046_v56 = vadd.f32 %v10902_v32, %v4276_v48 }
0x1b06   : > { %v4277_v59 = vmul.f32 %v10895_v7, %v11707_v62 }
0x1b07   : > { %v4137_v43 = vmul.f32 %v4136_v24, %v4105_v36  ;;  %v4278_v36 = vmul.f32 %v10895_v7, %v11708_v37  ;;  %v11709_v24 = vld [vmem:[#allocation43_spill] sm:$0xff] }
0x1b08   : > { %v11055_v22 = vadd.f32 %v10902_v32, %v4277_v59  ;;  %v4279_v53 = vmul.f32 %v10895_v7, %v11709_v24 }
0x1b09   : > { %8471 = vmatmul.mubr.f32.vlgmr.msra.gmra.mrb[48].mxu1 %v4137_v43  ;;  %v11060_v43 = vadd.f32 %v10902_v32, %v4278_v36 }
0x1b0a   : > { %8536 = vmatprep.mubr.msk.f32.mxu1 %vm995_vm0, %v10907_v3  ;;  %8535 = vmatpush3.msk.msra.mxu1 %vm1697_vm2, %v7383_v49  ;;  %v4261_v49 = vmul.f32 %v10895_v7, %v10224_v9  ;;  %v10948_v9 = vadd.f32 %v10902_v32, %v4262_v25  ;;  %v11069_v52 = vadd.f32 %v10902_v32, %v4279_v53 }
0x1b0c   : > { %v10943_v1 = vadd.f32 %v10902_v32, %v4261_v49  ;;  %v11711_v49 = vld [vmem:[#allocation45_spill] sm:$0xff] }
0x1b0d   : > { %8537 = vmatmul.mubr.msk.f32.vlgmr.msra.gmra.mrb[50].mxu1 %vm995_vm0, %v10915_v10  ;;  %v4281_v25 = vmul.f32 %v10895_v7, %v11711_v49 }
0x1b0e   : > { %8539 = vmatprep.mubr.msk.f32.mxu1 %vm995_vm0, %v10920_v30 }
0x1b0f   : > { %v11083_v11 = vadd.f32 %v10902_v32, %v4281_v25 }
0x1b11   : > { %8540 = vmatmul.mubr.msk.f32.gmra.mrb[52].mxu1 %vm995_vm0, %v10929_v19 }
0x1b12   : > { %8542 = vmatprep.mubr.msk.f32.mxu1 %vm995_vm0, %v10934_v6 }
0x1b15   : > { %8543 = vmatmul.mubr.msk.f32.gmra.mrb[54].mxu1 %vm995_vm0, %v10943_v1 }
0x1b16   : > { %8545 = vmatprep.mubr.msk.f32.mxu1 %vm995_vm0, %v10948_v9 }
0x1b19   : > { %8546 = vmatmul.mubr.msk.f32.gmra.mrb[56].mxu1 %vm995_vm0, %v10957_v29 }
0x1b1a   : > { %8548 = vmatprep.mubr.msk.f32.mxu1 %vm995_vm0, %v10962_v47 }
0x1b1d   : > { %8549 = vmatmul.mubr.msk.f32.gmra.mrb[58].mxu1 %vm995_vm0, %v10971_v12 }
0x1b1e   : > { %8551 = vmatprep.mubr.msk.f32.mxu1 %vm995_vm0, %v10976_v44 }
0x1b21   : > { %8552 = vmatmul.mubr.msk.f32.gmra.mrb[60].mxu1 %vm995_vm0, %v10985_v46 }
0x1b22   : > { %8554 = vmatprep.mubr.msk.f32.mxu1 %vm995_vm0, %v10990_v14 }
0x1b25   : > { %8555 = vmatmul.mubr.msk.f32.gmra.mrb[62].mxu1 %vm995_vm0, %v10999_v63 }
0x1b26   : > { %8557 = vmatprep.mubr.msk.f32.mxu1 %vm995_vm0, %v11004_v4 }
0x1b29   : > { %8558 = vmatmul.mubr.msk.f32.gmra.mrb[64].mxu1 %vm995_vm0, %v11013_v27 }
0x1b2a   : > { %8560 = vmatprep.mubr.msk.f32.mxu1 %vm995_vm0, %v11018_v2 }
0x1b2d   : > { %8561 = vmatmul.mubr.msk.f32.gmra.mrb[66].mxu1 %vm995_vm0, %v11027_v18 }
0x1b2e   : > { %8563 = vmatprep.mubr.msk.f32.mxu1 %vm995_vm0, %v11032_v21 }
0x1b31   : > { %8564 = vmatmul.mubr.msk.f32.gmra.mrb[68].mxu1 %vm995_vm0, %v11041_v39 }
0x1b32   : > { %8566 = vmatprep.mubr.msk.f32.mxu1 %vm995_vm0, %v11046_v56 }
0x1b35   : > { %8567 = vmatmul.mubr.msk.f32.gmra.mrb[70].mxu1 %vm995_vm0, %v11055_v22 }
0x1b36   : > { %8569 = vmatprep.mubr.msk.f32.mxu1 %vm995_vm0, %v11060_v43 }
0x1b39   : > { %8570 = vmatmul.mubr.msk.f32.gmra.mrb[72].mxu1 %vm995_vm0, %v11069_v52 }
0x1b3a   : > { %8572 = vmatprep.mubr.msk.f32.mxu1 %vm995_vm0, %v11074_v34 }
0x1b3d   : > { %8573 = vmatmul.mubr.msk.f32.gmra.mrb[74].mxu1 %vm995_vm0, %v11083_v11 }
0x1b3e   : > { %8575 = vmatprep.mubr.msk.f32.mxu1 %vm995_vm0, %v11088_v54 }
0x1b41   : > { %8576 = vmatmul.mubr.msk.f32.gmra.mrb[76].mxu1 %vm995_vm0, %v11097_v57 }
0x1b42   : > { %8578 = vmatprep.mubr.msk.f32.mxu1 %vm995_vm0, %v11102_v50 }
0x1b45   : > { %8579 = vmatmul.mubr.msk.f32.gmra.mrb[78].mxu1 %vm995_vm0, %v11111_v40 }
0x1b46   : > { %8581 = vmatprep.mubr.msk.f32.mxu1 %vm995_vm0, %v11116_v38 }
0x1b49   : > { %8582 = vmatmul.mubr.msk.f32.gmra.mrb[80].mxu1 %vm995_vm0, %v11123_v15 }
0x1bdc   : > { %v4210_v48 = vpop.f32.mrb[48].mxu1 }
0x1bdd   : > { %v4211_v62 = vadd.f32 %v7369_v17, %v4210_v48  ;;  %v8472_v59 = vpop.f32.mrb[49].mxu1 }
0x1bdf   : > { %v11129_v31 = vadd.f32 %v4211_v62, %v10846_v8 }
0x1be0   : > { %v8538_v7 = vpop.f32.mrb[50].mxu1 }
0x1be1   : > { %v4842_v37 = vpop.f32.mrb[51].mxu1  ;;  %v4219_v36 = vsel %vm964_vm1, %v11129_v31, 0.0 }
0x1be2   : > { %v9100_v24 = vpack.c.bf16 %v8538_v7, %v4842_v37  ;;  %4220 = vadd.xlane.f32.xlu0 %v4219_v36 }
0x1be4   : > { %v8541_v53 = vpop.f32.mrb[52].mxu1 }
0x1be5   : > { %v4852_v32 = vpop.f32.mrb[53].mxu1 }
0x1be6   : > { %v9104_v58 = vpack.c.bf16 %v8541_v53, %v4852_v32 }
0x1be8   : > { %v8544_v41 = vpop.f32.mrb[54].mxu1 }
0x1be9   : > { %v4862_v49 = vpop.f32.mrb[55].mxu1 }
0x1bea   : > { %v9108_v25 = vpack.c.bf16 %v8544_v41, %v4862_v49 }
0x1bec   : > { %v8547_v33 = vpop.f32.mrb[56].mxu1 }
0x1bed   : > { %v4872_v35 = vpop.f32.mrb[57].mxu1 }
0x1bee   : > { %v9112_v42 = vpack.c.bf16 %v8547_v33, %v4872_v35 }
0x1bf0   : > { %v8550_v51 = vpop.f32.mrb[58].mxu1 }
0x1bf1   : > { %v4882_v23 = vpop.f32.mrb[59].mxu1 }
0x1bf2   : > { %v9116_v8 = vpack.c.bf16 %v8550_v51, %v4882_v23 }
0x1bf4   : > { %v8553_v28 = vpop.f32.mrb[60].mxu1 }
0x1bf5   : > { %v4892_v55 = vpop.f32.mrb[61].mxu1 }
0x1bf6   : > { %v9120_v16 = vpack.c.bf16 %v8553_v28, %v4892_v55 }
0x1bf8   : > { %v8556_v45 = vpop.f32.mrb[62].mxu1 }
0x1bf9   : > { %v4902_v20 = vpop.f32.mrb[63].mxu1 }
0x1bfa   : > { %v9124_v13 = vpack.c.bf16 %v8556_v45, %v4902_v20 }
0x1bfc   : > { %v8559_v17 = vpop.f32.mrb[64].mxu1 }
0x1bfd   : > { %v4912_v48 = vpop.f32.mrb[65].mxu1 }
0x1bfe   : > { %v9128_v62 = vpack.c.bf16 %v8559_v17, %v4912_v48 }
0x1c00   : > { %v8562_v59 = vpop.f32.mrb[66].mxu1 }
0x1c01   : > { %v4922_v7 = vpop.f32.mrb[67].mxu1 }
0x1c02   : > { %v9098_v37 = vpack.c.bf16 %v8562_v59, %v4922_v7 }
0x1c04   : > { %v8565_v36 = vpop.f32.mrb[68].mxu1  ;;  %9099 = vmatprep.subr.bf16.mxu1 %v9098_v37 }
0x1c05   : > { %v4932_v53 = vpop.f32.mrb[69].mxu1  ;;  %9101 = vmatpush3.bf16.msra.mxu1 %v9100_v24 }
0x1c06   : > { %v9102_v32 = vpack.c.bf16 %v8565_v36, %v4932_v53 }
0x1c08   : > { %v8568_v41 = vpop.f32.mrb[70].mxu1  ;;  %9103 = vmatprep.subr.bf16.mxu1 %v9102_v32  ;;  %v7378_v32 = vld [vmem:[%s9629_s29 + $0x20] sm:$0xff] }
0x1c09   : > { %v4942_v49 = vpop.f32.mrb[71].mxu1  ;;  %9105 = vmatpush3.bf16.msra.mxu1 %v9104_v58 }
0x1c0a   : > { %v9106_v33 = vpack.c.bf16 %v8568_v41, %v4942_v49  ;;  %v7379_v41 = vld [vmem:[%s9629_s29 + $0x28] sm:$0xff]  ;;  %v7380_v49 = vld [vmem:[%s9629_s29 + $0x30] sm:$0xff] }
0x1c0c   : > { %v8571_v35 = vpop.f32.mrb[72].mxu1  ;;  %9107 = vmatprep.subr.bf16.mxu1 %v9106_v33  ;;  %v7381_v33 = vld [vmem:[%s9629_s29 + $0x38] sm:$0xff] }
0x1c0d   : > { %v4952_v51 = vpop.f32.mrb[73].mxu1  ;;  %9109 = vmatpush3.bf16.msra.mxu1 %v9108_v25 }
0x1c0e   : > { %v9110_v23 = vpack.c.bf16 %v8571_v35, %v4952_v51  ;;  %v7382_v35 = vld [vmem:[%s11647_s3 + $0x4] sm:$0xf]  ;;  %s7646_s3 = sshll.u32 %s11718_s18, 7 }
0x1c10   : > { %v8574_v28 = vpop.f32.mrb[74].mxu1  ;;  %9111 = vmatprep.subr.bf16.mxu1 %v9110_v23 }
0x1c11   : > { %v4962_v55 = vpop.f32.mrb[75].mxu1  ;;  %9113 = vmatpush3.bf16.msra.mxu1 %v9112_v42 }
0x1c12   : > { %v9114_v45 = vpack.c.bf16 %v8574_v28, %v4962_v55 }
0x1c14   : > { %v8577_v20 = vpop.f32.mrb[76].mxu1  ;;  %9115 = vmatprep.subr.bf16.mxu1 %v9114_v45  ;;  %v7372_v45 = vld [vmem:[%s9609_s13 + $0x1] ss:$0 sm:$0xff] }
0x1c15   : > { %v4972_v17 = vpop.f32.mrb[77].mxu1  ;;  %9117 = vmatpush3.bf16.msra.mxu1 %v9116_v8 }
0x1c16   : > { %v9118_v24 = vpack.c.bf16 %v8577_v20, %v4972_v17  ;;  %v7373_v17 = vld [vmem:[%s9614_s17 + $0x1] ss:$0 sm:$0xff] }
0x1c18   : > { %v8580_v48 = vpop.f32.mrb[78].mxu1  ;;  %9119 = vmatprep.subr.bf16.mxu1 %v9118_v24 }
0x1c19   : > { %v4982_v59 = vpop.f32.mrb[79].mxu1  ;;  %9121 = vmatpush3.bf16.msra.mxu1 %v9120_v16 }
0x1c1a   : > { %v9122_v58 = vpack.c.bf16 %v8580_v48, %v4982_v59 }
0x1c1c   : > { %v8583_v7 = vpop.f32.mrb[80].mxu1  ;;  %9123 = vmatprep.subr.bf16.mxu1 %v9122_v58 }
0x1c1d   : > { %v4992_v25 = vpop.f32.mrb[81].mxu1  ;;  %9125 = vmatpush3.bf16.msra.mxu1 %v9124_v13  ;;  %v9045_v13 = vpack.c.bf16 %v7379_v41, %v7378_v32 }
0x1c1e   : > { %v9126_v42 = vpack.c.bf16 %v8583_v7, %v4992_v25 }
0x1c1f   : > { %9046 = vmatpush3.bf16.msra.mxu0 %v9045_v13 }
0x1c20   : > { %9127 = vmatprep.subr.bf16.mxu1 %v9126_v42  ;;  %9047 = vmatprep.subr.bf16.mxu0 %v11667_v0 }
0x1c21   : > { %9129 = vmatpush3.bf16.msra.mxu1 %v9128_v62  ;;  %v9048_v62 = vpack.c.bf16 %v7381_v33, %v7380_v49 }
0x1c22   : > { %9168 = vmatprep.subr.bf16.mxu1 %v11667_v0 }
0x1c23   : > { %9049 = vmatpush3.bf16.msra.mxu0 %v9048_v62 }
0x1c24   : > { %8484 = vmatprep.subr.msk.mxu0 %vm1697_vm2, %v7382_v35 }
0x1c6f   : > { %v4221_v8 = vpop.xlane.xlu0 %4220 }
0x1c70   : > { %v4222_v37 = vmul.f32 0.03125, %v4221_v8 }
0x1c72   : > { %v4223_v36 = vsub.f32 %v11129_v31, %v4222_v37 }
0x1c74   : > { %v4224_v16 = vmul.f32 %v4223_v36, %v4223_v36 }
0x1c76   : > { %v4225_v53 = vsel %vm964_vm1, %v4224_v16, 0.0 }
0x1c77   : > { %4226 = vadd.xlane.f32.xlu1 %v4225_v53 }
0x1d04   : > { %v4227_v51 = vpop.xlane.xlu1 %4226 }
0x1d05   : > { %v4228_v23 = vmul.f32 0.03125, %v4227_v51 }
0x1d07   : > { %v4229_v28 = vadd.f32 1e-05, %v4228_v23 }
0x1d09   : > { %9454 = vrsqrt.f32 %v4229_v28 }
0x1d13   : > { %v9455_v55 = vpop.eup %9454 }
0x1d14   : > { %v4231_v20 = vmul.f32 %v9455_v55, %v4223_v36 }
0x1d16   : > { %v4238_v24 = vmul.f32 %v7372_v45, %v4231_v20 }
0x1d18   : > { %v4245_v48 = vadd.f32 %v7373_v17, %v4238_v24 }
0x1d1a   : > { %8482 = vmatmul.mubr.msk.f32.vlgmr.msra.gmra.mrb[58].mxu0 %vm964_vm1, %v4245_v48 }
0x1d1b   : > { %8485 = vmatpush3.msk.msra.mxu0 %vm1697_vm2, %v7382_v35  ;;  %8486 = vmatprep.mubr.msk.f32.mxu0 %vm995_vm0, %v10907_v3 }
0x1d1e   : > { %8487 = vmatmul.mubr.msk.f32.vlgmr.msra.gmra.mrb[60].mxu0 %vm995_vm0, %v10915_v10 }
0x1d1f   : > { %8489 = vmatprep.mubr.msk.f32.mxu0 %vm995_vm0, %v10920_v30 }
0x1d22   : > { %8490 = vmatmul.mubr.msk.f32.gmra.mrb[62].mxu0 %vm995_vm0, %v10929_v19 }
0x1d23   : > { %8492 = vmatprep.mubr.msk.f32.mxu0 %vm995_vm0, %v10934_v6 }
0x1d26   : > { %8493 = vmatmul.mubr.msk.f32.gmra.mrb[64].mxu0 %vm995_vm0, %v10943_v1 }
0x1d27   : > { %8495 = vmatprep.mubr.msk.f32.mxu0 %vm995_vm0, %v10948_v9 }
0x1d2a   : > { %8496 = vmatmul.mubr.msk.f32.gmra.mrb[66].mxu0 %vm995_vm0, %v10957_v29 }
0x1d2b   : > { %8498 = vmatprep.mubr.msk.f32.mxu0 %vm995_vm0, %v10962_v47 }
0x1d2e   : > { %8499 = vmatmul.mubr.msk.f32.gmra.mrb[68].mxu0 %vm995_vm0, %v10971_v12 }
0x1d2f   : > { %8501 = vmatprep.mubr.msk.f32.mxu0 %vm995_vm0, %v10976_v44 }
0x1d32   : > { %8502 = vmatmul.mubr.msk.f32.gmra.mrb[70].mxu0 %vm995_vm0, %v10985_v46 }
0x1d33   : > { %8504 = vmatprep.mubr.msk.f32.mxu0 %vm995_vm0, %v10990_v14 }
0x1d36   : > { %8505 = vmatmul.mubr.msk.f32.gmra.mrb[72].mxu0 %vm995_vm0, %v10999_v63 }
0x1d37   : > { %8507 = vmatprep.mubr.msk.f32.mxu0 %vm995_vm0, %v11004_v4 }
0x1d3a   : > { %8508 = vmatmul.mubr.msk.f32.gmra.mrb[74].mxu0 %vm995_vm0, %v11013_v27 }
0x1d3b   : > { %8510 = vmatprep.mubr.msk.f32.mxu0 %vm995_vm0, %v11018_v2 }
0x1d3e   : > { %8511 = vmatmul.mubr.msk.f32.gmra.mrb[76].mxu0 %vm995_vm0, %v11027_v18 }
0x1d3f   : > { %8513 = vmatprep.mubr.msk.f32.mxu0 %vm995_vm0, %v11032_v21 }
0x1d42   : > { %8514 = vmatmul.mubr.msk.f32.gmra.mrb[78].mxu0 %vm995_vm0, %v11041_v39 }
0x1d43   : > { %8516 = vmatprep.mubr.msk.f32.mxu0 %vm995_vm0, %v11046_v56 }
0x1d46   : > { %8517 = vmatmul.mubr.msk.f32.gmra.mrb[80].mxu0 %vm995_vm0, %v11055_v22 }
0x1d47   : > { %8519 = vmatprep.mubr.msk.f32.mxu0 %vm995_vm0, %v11060_v43 }
0x1d4a   : > { %8520 = vmatmul.mubr.msk.f32.gmra.mrb[82].mxu0 %vm995_vm0, %v11069_v52 }
0x1d4b   : > { %8522 = vmatprep.mubr.msk.f32.mxu0 %vm995_vm0, %v11074_v34 }
0x1d4e   : > { %8523 = vmatmul.mubr.msk.f32.gmra.mrb[84].mxu0 %vm995_vm0, %v11083_v11 }
0x1d4f   : > { %8525 = vmatprep.mubr.msk.f32.mxu0 %vm995_vm0, %v11088_v54 }
0x1d52   : > { %8526 = vmatmul.mubr.msk.f32.gmra.mrb[86].mxu0 %vm995_vm0, %v11097_v57 }
0x1d53   : > { %8528 = vmatprep.mubr.msk.f32.mxu0 %vm995_vm0, %v11102_v50 }
0x1d56   : > { %8529 = vmatmul.mubr.msk.f32.gmra.mrb[88].mxu0 %vm995_vm0, %v11111_v40 }
0x1d57   : > { %8531 = vmatprep.mubr.msk.f32.mxu0 %vm995_vm0, %v11116_v38 }
0x1d5a   : > { %8532 = vmatmul.mubr.msk.f32.gmra.mrb[90].mxu0 %vm995_vm0, %v11123_v15 }
0x1ded   : > { %v11211_v3 = vpop.f32.mrb[58].mxu0 }
0x1dee   : > { %v8483_v10 = vpop.f32.mrb[59].mxu0  ;;  %7997 = vmatprep.mubr.msk.f32.mxu0 %vm964_vm1, %v11211_v3 }
0x1df1   : > { %v8488_v30 = vpop.f32.mrb[60].mxu0 }
0x1df2   : > { %v4614_v19 = vpop.f32.mrb[61].mxu0 }
0x1df3   : > { %v9053_v6 = vpack.c.bf16 %v8488_v30, %v4614_v19 }
0x1df5   : > { %v8491_v1 = vpop.f32.mrb[62].mxu0 }
0x1df6   : > { %v4624_v9 = vpop.f32.mrb[63].mxu0 }
0x1df7   : > { %v9059_v29 = vpack.c.bf16 %v8491_v1, %v4624_v9  ;;  %v7385_v1 = vld [vmem:[%s9644_s14 + $0x28] sm:$0xff] }
0x1df9   : > { %v8494_v47 = vpop.f32.mrb[64].mxu0 }
0x1dfa   : > { %v4634_v12 = vpop.f32.mrb[65].mxu0 }
0x1dfb   : > { %v9065_v44 = vpack.c.bf16 %v8494_v47, %v4634_v12 }
0x1dfd   : > { %v8497_v46 = vpop.f32.mrb[66].mxu0 }
0x1dfe   : > { %v4644_v14 = vpop.f32.mrb[67].mxu0 }
0x1dff   : > { %v9071_v63 = vpack.c.bf16 %v8497_v46, %v4644_v14  ;;  %v7386_v46 = vld [vmem:[%s9644_s14 + $0x30] sm:$0xff]  ;;  %v7387_v14 = vld [vmem:[%s9644_s14 + $0x38] sm:$0xff] }
0x1e01   : > { %v8500_v4 = vpop.f32.mrb[68].mxu0 }
0x1e02   : > { %v4654_v27 = vpop.f32.mrb[69].mxu0 }
0x1e03   : > { %v9077_v2 = vpack.c.bf16 %v8500_v4, %v4654_v27 }
0x1e05   : > { %v8503_v18 = vpop.f32.mrb[70].mxu0 }
0x1e06   : > { %v4664_v21 = vpop.f32.mrb[71].mxu0 }
0x1e07   : > { %v9083_v39 = vpack.c.bf16 %v8503_v18, %v4664_v21  ;;  %v7517_v18 = vld [vmem:[%s9649_s19 + $0x1] ss:$0 sm:$0xff] }
0x1e09   : > { %v8506_v56 = vpop.f32.mrb[72].mxu0 }
0x1e0a   : > { %v4674_v22 = vpop.f32.mrb[73].mxu0 }
0x1e0b   : > { %v9089_v43 = vpack.c.bf16 %v8506_v56, %v4674_v22 }
0x1e0d   : > { %v8509_v52 = vpop.f32.mrb[74].mxu0 }
0x1e0e   : > { %v4684_v34 = vpop.f32.mrb[75].mxu0 }
0x1e0f   : > { %v9095_v11 = vpack.c.bf16 %v8509_v52, %v4684_v34 }
0x1e11   : > { %v8512_v54 = vpop.f32.mrb[76].mxu0 }
0x1e12   : > { %v4694_v57 = vpop.f32.mrb[77].mxu0 }
0x1e13   : > { %v9050_v50 = vpack.c.bf16 %v8512_v54, %v4694_v57 }
0x1e15   : > { %v8515_v40 = vpop.f32.mrb[78].mxu0  ;;  %9052 = vmatprep.subr.msk.bf16.mxu0 %vm10573_vm4, %v9050_v50  ;;  %v7392_v50 = vld [vmem:[%s11646_s6 + $0x48] sm:$0xff] }
0x1e16   : > { %v4704_v38 = vpop.f32.mrb[79].mxu0  ;;  %9055 = vmatpush3.bf16.xpose.msk.msra.mxu0 %vm10573_vm4, %v9053_v6  ;;  %v7384_v6 = vld [vmem:[%s9644_s14 + $0x20] sm:$0xff] }
0x1e17   : > { %v9056_v15 = vpack.c.bf16 %v8515_v40, %v4704_v38  ;;  %v9131_v9 = vpack.c.bf16 %v7385_v1, %v7384_v6  ;;  %v7394_v40 = vld [vmem:[%s11646_s6 + $0x58] sm:$0xff]  ;;  %v7410_v6 = vld [vmem:[%s11681_s1 + $0xd0] sm:$0xff] }
0x1e18   : > { %v9136_v38 = vpack.c.bf16 %v7394_v40, %v7392_v50  ;;  %v7411_v1 = vld [vmem:[%s11681_s1 + $0xd8] sm:$0xff] }
0x1e19   : > { %v8518_v59 = vpop.f32.mrb[80].mxu0  ;;  %9058 = vmatprep.subr.msk.bf16.mxu0 %vm10573_vm4, %v9056_v15  ;;  %v7393_v15 = vld [vmem:[%s11646_s6 + $0x50] sm:$0xff] }
0x1e1a   : > { %v4714_v58 = vpop.f32.mrb[81].mxu0 }
0x1e1b   : > { %v9062_v7 = vpack.c.bf16 %v8518_v59, %v4714_v58  ;;  %v7396_v59 = vld [vmem:[%s11646_s6 + $0x68] sm:$0xff] }
0x1e1d   : > { %v8521_v25 = vpop.f32.mrb[82].mxu0 }
0x1e1e   : > { %v4724_v42 = vpop.f32.mrb[83].mxu0  ;;  %9061 = vmatpush3.bf16.xpose.msk.msra.mxu0 %vm10573_vm4, %v9059_v29 }
0x1e1f   : > { %v9068_v8 = vpack.c.bf16 %v8521_v25, %v4724_v42  ;;  %9064 = vmatprep.subr.msk.bf16.mxu0 %vm10573_vm4, %v9062_v7  ;;  %v7398_v7 = vld [vmem:[%s11646_s6 + $0x78] sm:$0xff]  ;;  %v7395_v25 = vld [vmem:[%s11646_s6 + $0x60] sm:$0xff]  ;;  %v7397_v42 = vld [vmem:[%s11646_s6 + $0x70] sm:$0xff] }
0x1e21   : > { %v8524_v37 = vpop.f32.mrb[84].mxu0 }
0x1e22   : > { %v4734_v36 = vpop.f32.mrb[85].mxu0 }
0x1e23   : > { %v9074_v16 = vpack.c.bf16 %v8524_v37, %v4734_v36  ;;  %v9142_v37 = vpack.c.bf16 %v7397_v42, %v7395_v25 }
0x1e25   : > { %v8527_v53 = vpop.f32.mrb[86].mxu0 }
0x1e26   : > { %v4744_v32 = vpop.f32.mrb[87].mxu0  ;;  %9067 = vmatpush3.bf16.xpose.msk.msra.mxu0 %vm10573_vm4, %v9065_v44 }
0x1e27   : > { %v9080_v41 = vpack.c.bf16 %v8527_v53, %v4744_v32  ;;  %9070 = vmatprep.subr.msk.bf16.mxu0 %vm10573_vm4, %v9068_v8  ;;  %v9140_v8 = vpack.c.bf16 %v7398_v7, %v7396_v59 }
0x1e29   : > { %v8530_v49 = vpop.f32.mrb[88].mxu0 }
0x1e2a   : > { %v4754_v13 = vpop.f32.mrb[89].mxu0 }
0x1e2b   : > { %v9086_v33 = vpack.c.bf16 %v8530_v49, %v4754_v13  ;;  %v7520_v13 = vld [vmem:[%s9659_s30 + $0x1] ss:$0 sm:$0xff] }
0x1e2d   : > { %v8533_v62 = vpop.f32.mrb[90].mxu0 }
0x1e2e   : > { %v4764_v35 = vpop.f32.mrb[91].mxu0  ;;  %9073 = vmatpush3.bf16.xpose.msk.msra.mxu0 %vm10573_vm4, %v9071_v63  ;;  %v9134_v63 = vpack.c.bf16 %v7387_v14, %v7386_v46  ;;  %v7415_v46 = vld [vmem:[%s11681_s1 + $0xf8] sm:$0xff] }
0x1e2f   : > { %v9092_v51 = vpack.c.bf16 %v8533_v62, %v4764_v35  ;;  %9076 = vmatprep.subr.msk.bf16.mxu0 %vm10573_vm4, %v9074_v16  ;;  %v7400_v35 = vld [vmem:[%s11681_s1 + $0x80] sm:$0xff] }
0x1e36   : > { %9079 = vmatpush3.bf16.xpose.msk.msra.mxu0 %vm10573_vm4, %v9077_v2 }
0x1e37   : > { %9082 = vmatprep.subr.msk.bf16.mxu0 %vm10573_vm4, %v9080_v41  ;;  %v7519_v41 = vld [vmem:[%s9654_s24 + $0x1] ss:$0 sm:$0xff] }
0x1e3e   : > { %9085 = vmatpush3.bf16.xpose.msk.msra.mxu0 %vm10573_vm4, %v9083_v39 }
0x1e3f   : > { %9088 = vmatprep.subr.msk.bf16.mxu0 %vm10573_vm4, %v9086_v33 }
0x1e46   : > { %9091 = vmatpush3.bf16.xpose.msk.msra.mxu0 %vm10573_vm4, %v9089_v43 }
0x1e47   : > { %9094 = vmatprep.subr.msk.bf16.mxu0 %vm10573_vm4, %v9092_v51  ;;  %v7401_v51 = vld [vmem:[%s11681_s1 + $0x88] sm:$0xff] }
0x1e4e   : > { %9097 = vmatpush3.bf16.xpose.msk.msra.mxu0 %vm10573_vm4, %v9095_v11 }
0x1e4f   : > { %9130 = vmatprep.subr.bf16.mxu0 %v11667_v0 }
0x1e55   : > { %7998 = vmatmul.mubr.msk.f32.vlgmr.msra.gmra.mrb[92].mxu0 %vm964_vm1, %v11211_v3 }
0x1e56   : > { %8592 = vmatprep.mubr.msk.f32.mxu0 %vm9588_vm3, %v11680_v26  ;;  %9132 = vmatpush3.bf16.msra.mxu0 %v9131_v9  ;;  %v9160_v9 = vpack.c.bf16 %v7411_v1, %v7410_v6 }
0x1e57   : > { %9133 = vmatprep.subr.bf16.mxu0 %v11667_v0 }
0x1e5a   : > { %9135 = vmatpush3.bf16.msra.mxu0 %v9134_v63  ;;  %v7399_v63 = vld [vmem:[%s11682_s11 + $0x2] sm:$0x3] }
0x1e5b   : > { %9137 = vmatprep.subr.bf16.mxu0 %v9136_v38 }
0x1f28   : > { %v5166_v23 = vpop.f32.mrb[92].mxu0 }
0x1f29   : > { %v5171_v28 = vmul.f32 0.17677669, %v5166_v23  ;;  %v5168_v55 = vpop.f32.mrb[93].mxu0  ;;  %v9145_v23 = vpack.c.bf16 %v7401_v51, %v7400_v35 }
0x1f2a   : > { %v5172_v45 = vmul.f32 0.17677669, %v5168_v55  ;;  %v7403_v55 = vld [vmem:[%s11681_s1 + $0x98] sm:$0xff] }
0x1f2c   : > { %v5173_v20 = vmax.f32 %v5171_v28, %v5172_v45 }
0x1f2e   : > { %5174 = vmax.xlane.f32.xlu0 %v5173_v20  ;;  %v7404_v20 = vld [vmem:[%s11681_s1 + $0xa0] sm:$0xff] }
0x1fbb   : > { %v5175_v17 = vpop.xlane.xlu0 %5174 }
0x1fbc   : > { %v5176_v24 = vsub.f32 %v5171_v28, %v5175_v17  ;;  %v5177_v61 = vsub.f32 %v5172_v45, %v5175_v17  ;;  %v7402_v28 = vld [vmem:[%s11681_s1 + $0x90] sm:$0xff]  ;;  %v7405_v17 = vld [vmem:[%s11681_s1 + $0xa8] sm:$0xff] }
0x1fbd   : > { %v9148_v45 = vpack.c.bf16 %v7403_v55, %v7402_v28 }
0x1fbe   : > { %v5178_v48 = vmul.f32 1.442695, %v5176_v24  ;;  %v5180_v10 = vmul.f32 1.442695, %v5177_v61  ;;  %v9151_v24 = vpack.c.bf16 %v7405_v17, %v7404_v20  ;;  %v7406_v61 = vld [vmem:[%s11681_s1 + $0xb0] sm:$0xff] }
0x1fc0   : > { %9456 = vpow2.f32 %v5178_v48  ;;  %v7407_v48 = vld [vmem:[%s11681_s1 + $0xb8] sm:$0xff] }
0x1fc1   : > { %9458 = vpow2.f32 %v5180_v10  ;;  %v9154_v10 = vpack.c.bf16 %v7407_v48, %v7406_v61  ;;  %v7527_v48 = vld [vmem:[%s11684_s28 + $0x40] sm:$0xff] }
0x1fca   : > { %v9457_v30 = vpop.eup %9456 }
0x1fcb   : > { %v9459_v3 = vpop.eup %9458 }
0x1fcc   : > { %v5182_v19 = vadd.f32 %v9459_v3, %v9457_v30 }
0x1fce   : > { %5183 = vadd.xlane.f32.xlu1 %v5182_v19 }
0x205b   : > { %v5184_v29 = vpop.xlane.xlu1 %5183 }
0x205c   : > { %9460 = vrcp.f32 %v5184_v29  ;;  %v7412_v29 = vld [vmem:[%s11681_s1 + $0xe0] sm:$0xff] }
0x2066   : > { %v9461_v47 = vpop.eup %9460 }
0x2067   : > { %v5186_v12 = vmul.f32 %v9461_v47, %v9457_v30  ;;  %v5187_v44 = vmul.f32 %v9461_v47, %v9459_v3  ;;  %v7408_v30 = vld [vmem:[%s11681_s1 + $0xc0] sm:$0xff]  ;;  %v7409_v3 = vld [vmem:[%s11681_s1 + $0xc8] sm:$0xff] }
0x2068   : > { %v9157_v19 = vpack.c.bf16 %v7409_v3, %v7408_v30  ;;  %v7413_v47 = vld [vmem:[%s11681_s1 + $0xe8] sm:$0xff]  ;;  %v7530_v3 = vld [vmem:[%s11684_s28 + $0x58] sm:$0xff] }
0x2069   : > { %5252 = vmatprep.mubr.f32.mxu1 %v5187_v44  ;;  %v7414_v44 = vld [vmem:[%s11681_s1 + $0xf0] sm:$0xff] }
0x206a   : > { %5253 = vmatmul.mubr.f32.vlgmr.msra.gmra.mrb[82].mxu1 %v5186_v12  ;;  %v9163_v12 = vpack.c.bf16 %v7413_v47, %v7412_v29  ;;  %v9166_v14 = vpack.c.bf16 %v7415_v46, %v7414_v44  ;;  %v7525_v47 = vld [vmem:[%s11685_s5 + $0x2] ss:$0 sm:$0xff]  ;;  %v7532_v46 = vld [vmem:[%s11686_s9 + $0x48] sm:$0xff] }
0x206b   : > { %8638 = vmatprep.mubr.msk.f32.mxu1 %vm9588_vm3, %v11680_v26  ;;  %v7531_v44 = vld [vmem:[%s11686_s9 + $0x40] sm:$0xff] }
0x213d   : > { %v8031_v4 = vpop.f32.mrb[82].mxu1 }
0x213e   : > { %v8032_v27 = vpop.f32.mrb[83].mxu1 }
0x213f   : > { %v8033_v2 = vadd.f32 %v8032_v27, %v8031_v4  ;;  %v5373_v4 = vrot.slane %v7399_v63, %v10670_v60 }
0x2141   : > { %8593 = vmatmul.mubr.msk.f32.vlgmr.msra.gmra.mrb[94].mxu0 %vm964_vm1, %v8033_v2 }
0x2142   : > { %5443 = vmatprep.mubr.f32.mxu0 %v11680_v26 }
0x2214   : > { %v5333_v21 = vpop.f32.mrb[94].mxu0 }
0x2215   : > { %v5334_v39 = vadd.f32 %v7517_v18, %v5333_v21  ;;  %v8594_v56 = vpop.f32.mrb[95].mxu0 }
0x2217   : > { %v11263_v22 = vadd.f32 %v5334_v39, %v11129_v31  ;;  %v7391_v31 = vld [vmem:[%s11646_s6 + $0x40] sm:$0xff] }
0x2218   : > { %v9138_v58 = vpack.c.bf16 %v7393_v15, %v7391_v31 }
0x2219   : > { %v5338_v43 = vsel %vm964_vm1, %v11263_v22, 0.0 }
0x221a   : > { %5339 = vadd.xlane.f32.xlu0 %v5338_v43  ;;  %9139 = vmatpush1.bf16.msra.mxu0 %v9138_v58 }
0x221b   : > { %9141 = vmatprep.subr.bf16.mxu0 %v9140_v8 }
0x221e   : > { %9143 = vmatpush1.bf16.msra.mxu0 %v9142_v37 }
0x221f   : > { %9144 = vmatprep.subr.bf16.mxu0 %v11667_v0 }
0x22a7   : > { %v5340_v52 = vpop.xlane.xlu0 %5339 }
0x22a8   : > { %v5341_v34 = vmul.f32 0.03125, %v5340_v52 }
0x22aa   : > { %v5342_v11 = vsub.f32 %v11263_v22, %v5341_v34 }
0x22ac   : > { %v5343_v54 = vmul.f32 %v5342_v11, %v5342_v11 }
0x22ae   : > { %v5344_v57 = vsel %vm964_vm1, %v5343_v54, 0.0 }
0x22af   : > { %5345 = vadd.xlane.f32.xlu1 %v5344_v57 }
0x233c   : > { %v5346_v36 = vpop.xlane.xlu1 %5345 }
0x233d   : > { %v5347_v16 = vmul.f32 0.03125, %v5346_v36 }
0x233f   : > { %v5348_v53 = vadd.f32 1e-05, %v5347_v16  ;;  %v5369_v16 = vrot.slane %v7399_v63, %v10675_v5 }
0x2341   : > { %9462 = vrsqrt.f32 %v5348_v53 }
0x234b   : > { %v9463_v32 = vpop.eup %9462 }
0x234c   : > { %v5350_v49 = vmul.f32 %v9463_v32, %v5342_v11 }
0x234e   : > { %v5357_v33 = vmul.f32 %v7519_v41, %v5350_v49 }
0x2350   : > { %v5364_v62 = vadd.f32 %v7520_v13, %v5357_v33 }
0x2352   : > { %7521 = vmatmul.mubr.msk.f32.vlgmr.msra.gmra.mrb[96].mxu0 %vm964_vm1, %v5364_v62  ;;  %v7522_v62 = vld [vmem:[%s11717_s22 + $0x1] ss:$0 sm:$0xff]  ;;  %s921_s22 = sand.u32 1, %s9547_s16  }
0x2353   : > { %8627 = vmatprep.mubr.msk.f32.mxu0 %vm9588_vm3, %v11680_v26  ;;  %9146 = vmatpush3.bf16.msra.mxu0 %v9145_v23  ;;  %s7076_s8 = scalar_lea.sflag [#allocation3], %s921_s22 }
0x2354   : > { %9147 = vmatprep.subr.bf16.mxu0 %v11667_v0 }
0x2357   : > { %9149 = vmatpush3.bf16.msra.mxu0 %v9148_v45 }
0x2358   : > { %9150 = vmatprep.subr.bf16.mxu0 %v11667_v0 }
0x235b   : > { %9152 = vmatpush3.bf16.msra.mxu0 %v9151_v24 }
0x235c   : > { %9153 = vmatprep.subr.bf16.mxu0 %v11667_v0 }
0x235f   : > { %9155 = vmatpush3.bf16.msra.mxu0 %v9154_v10  ;;  %v7528_v10 = vld [vmem:[%s11684_s28 + $0x48] sm:$0xff] }
0x2360   : > { %9156 = vmatprep.subr.bf16.mxu0 %v11667_v0  ;;  %v9169_v30 = vpack.c.bf16 %v7528_v10, %v7527_v48 }
0x2362   : > { %9170 = vmatpush3.bf16.msra.mxu1 %v9169_v30 }
0x2363   : > { %9158 = vmatpush3.bf16.msra.mxu0 %v9157_v19  ;;  %9171 = vmatprep.subr.bf16.mxu1 %v11667_v0 }
0x2364   : > { %9159 = vmatprep.subr.bf16.mxu0 %v11667_v0 }
0x2367   : > { %9161 = vmatpush3.bf16.msra.mxu0 %v9160_v9 }
0x2368   : > { %9162 = vmatprep.subr.bf16.mxu0 %v11667_v0 }
0x236b   : > { %9164 = vmatpush3.bf16.msra.mxu0 %v9163_v12 }
0x236c   : > { %9165 = vmatprep.subr.bf16.mxu0 %v11667_v0 }
0x236f   : > { %9167 = vmatpush3.bf16.msra.mxu0 %v9166_v14  ;;  %v7526_v14 = vld [vmem:[%s11687_s2 + $0x2] ss:$0 sm:$0xff] }
0x2370   : > { %8668 = vmatprep.subr.mxu0 %v11680_v26 }
0x2425   : > { %v5445_v27 = vpop.f32.mrb[96].mxu0 }
0x2426   : > { %v5447_v2 = vpop.f32.mrb[97].mxu0  ;;  %v5446_v49 = vadd.f32 %v5445_v27, %v5369_v16  ;;  %v7539_v16 = vld [vmem:[%s11691_s10 + $0x40] sm:$0xff] }
0x2427   : > { %v5448_v18 = vadd.f32 %v5447_v2, %v5373_v4  ;;  %v9175_v4 = vpack.c.bf16 %v7532_v46, %v7531_v44  ;;  %v7533_v2 = vld [vmem:[%s11686_s9 + $0x50] sm:$0xff]  ;;  %v7550_v44 = vld [vmem:[%s11695_s12 + $0xa0] sm:$0xff] }
0x2429   : > { %v5451_v21 = vmul.f32 0.70710677, %v5448_v18  ;;  %v5450_v32 = vmul.f32 0.5, %v5448_v18  ;;  %v7534_v18 = vld [vmem:[%s11686_s9 + $0x58] sm:$0xff] }
0x242b   : > { %vm5452_vm9 = vcmp.ge.f32.partialorder %v5451_v21, 0.0  ;;  %v5453_v39 = vsub.f32 0.0, %v5451_v21 }
0x242d   : > { %v5454_v56 = vsel %vm5452_vm9, %v5451_v21, %v5453_v39  ;;  %v9178_v21 = vpack.c.bf16 %v7534_v18, %v7533_v2  ;;  %v7535_v39 = vld [vmem:[%s11689_s26 + $0x40] sm:$0xff] }
0x242e   : > { %v5455_v43 = vmul.f32 0.3275911, %v5454_v56  ;;  %v5468_v34 = vmul.f32 %v5454_v56, %v5454_v56  ;;  %v7536_v56 = vld [vmem:[%s11689_s26 + $0x48] sm:$0xff] }
0x2430   : > { %v5456_v52 = vadd.f32 1.0, %v5455_v43  ;;  %v5469_v54 = vsub.f32 0.0, %v5468_v34  ;;  %v9181_v43 = vpack.c.bf16 %v7536_v56, %v7535_v39  ;;  %v7538_v34 = vld [vmem:[%s11689_s26 + $0x58] sm:$0xff]  ;;  %v7581_v56 = vld [vmem:[%s11699_s23 + $0x2] ss:$0 sm:$0xff] }
0x2432   : > { %9464 = vrcp.f32 %v5456_v52  ;;  %v5470_v40 = vmul.f32 1.442695, %v5469_v54  ;;  %v7537_v52 = vld [vmem:[%s11689_s26 + $0x50] sm:$0xff] }
0x2434   : > { %9466 = vpow2.f32 %v5470_v40 }
0x243c   : > { %v9465_v11 = vpop.eup %9464 }
0x243d   : > { %v5459_v57 = vmul.f32 1.0614054, %v9465_v11 }
0x243e   : > { %v9467_v42 = vpop.eup %9466 }
0x243f   : > { %v5460_v50 = vadd.f32 -1.4531521, %v5459_v57 }
0x2441   : > { %v5461_v38 = vmul.f32 %v9465_v11, %v5460_v50 }
0x2443   : > { %v5462_v31 = vadd.f32 1.4214138, %v5461_v38 }
0x2445   : > { %v5463_v15 = vmul.f32 %v9465_v11, %v5462_v31 }
0x2447   : > { %v5464_v59 = vadd.f32 -0.28449672, %v5463_v15 }
0x2449   : > { %v5465_v58 = vmul.f32 %v9465_v11, %v5464_v59 }
0x244b   : > { %v5466_v7 = vadd.f32 0.2548296, %v5465_v58 }
0x244d   : > { %v5467_v25 = vmul.f32 %v9465_v11, %v5466_v7  ;;  %v9184_v11 = vpack.c.bf16 %v7538_v34, %v7537_v52  ;;  %v7555_v34 = vld [vmem:[%s9739_s27 + $0x100] sm:$0xff] }
0x244f   : > { %v5472_v8 = vmul.f32 %v9467_v42, %v5467_v25 }
0x2451   : > { %v5473_v37 = vsub.f32 1.0, %v5472_v8 }
0x2453   : > { %v5474_v36 = vsub.f32 0.0, %v5473_v37 }
0x2455   : > { %v5475_v53 = vsel %vm5452_vm9, %v5473_v37, %v5474_v36 }
0x2456   : > { %v5476_v41 = vadd.f32 1.0, %v5475_v53  ;;  %v7540_v53 = vld [vmem:[%s11691_s10 + $0x48] sm:$0xff] }
0x2458   : > { %v5477_v13 = vmul.f32 %v5476_v41, %v5450_v32  ;;  %v7541_v32 = vld [vmem:[%s11691_s10 + $0x50] sm:$0xff]  ;;  %v9187_v41 = vpack.c.bf16 %v7540_v53, %v7539_v16  ;;  %v7567_v53 = vld [vmem:[%s9739_s27 + $0x160] sm:$0xff] }
0x245a   : > { %v5478_v33 = vmul.f32 %v5477_v13, %v5446_v49  ;;  %v7542_v49 = vld [vmem:[%s11691_s10 + $0x58] sm:$0xff] }
0x245b   : > { %v9190_v13 = vpack.c.bf16 %v7542_v49, %v7541_v32  ;;  %v7568_v32 = vld [vmem:[%s9739_s27 + $0x168] sm:$0xff]  ;;  %v7569_v49 = vld [vmem:[%s9739_s27 + $0x170] sm:$0xff] }
0x245c   : > { %8628 = vmatmul.mubr.f32.vlgmr.msra.gmra.mrb[98].mxu0 %v5478_v33 }
0x245d   : > { %8670 = vmatprep.mubr.msk.f32.mxu0 %vm9588_vm3, %v11680_v26 }
0x252f   : > { %v5551_v35 = vpop.f32.mrb[98].mxu0 }
0x2530   : > { %v5552_v51 = vadd.f32 %v7522_v62, %v5551_v35  ;;  %v8629_v23 = vpop.f32.mrb[99].mxu0 }
0x2532   : > { %v11316_v28 = vadd.f32 %v5552_v51, %v11263_v22  ;;  %v7529_v22 = vld [vmem:[%s11684_s28 + $0x50] sm:$0xff] }
0x2533   : > { %v9172_v19 = vpack.c.bf16 %v7530_v3, %v7529_v22 }
0x2534   : > { %v5560_v55 = vsel %vm964_vm1, %v11316_v28, 0.0 }
0x2535   : > { %5561 = vadd.xlane.f32.xlu0 %v5560_v55  ;;  %9173 = vmatpush3.bf16.msra.mxu1 %v9172_v19  ;;  %v7578_v55 = vld [vmem:[%s11693_s7 + $0x2] ss:$0 sm:$0xff]  ;;  %v7547_v19 = vld [vmem:[%s11695_s12 + $0x88] sm:$0xff] }
0x2536   : > { %9174 = vmatprep.subr.bf16.mxu1 %v11667_v0 }
0x25c2   : > { %v5562_v45 = vpop.xlane.xlu0 %5561 }
0x25c3   : > { %v5563_v20 = vmul.f32 0.03125, %v5562_v45 }
0x25c5   : > { %v5564_v17 = vsub.f32 %v11316_v28, %v5563_v20 }
0x25c7   : > { %v5565_v24 = vmul.f32 %v5564_v17, %v5564_v17 }
0x25c9   : > { %v5566_v61 = vsel %vm964_vm1, %v5565_v24, 0.0 }
0x25ca   : > { %5567 = vadd.xlane.f32.xlu1 %v5566_v61 }
0x2657   : > { %v5568_v6 = vpop.xlane.xlu1 %5567 }
0x2658   : > { %v5569_v1 = vmul.f32 0.03125, %v5568_v6  ;;  %v7549_v6 = vld [vmem:[%s11695_s12 + $0x98] sm:$0xff] }
0x265a   : > { %v5570_v9 = vadd.f32 1e-05, %v5569_v1  ;;  %v9192_v1 = vpack.c.bf16 %v7549_v6, %v7547_v19 }
0x265c   : > { %9468 = vrsqrt.f32 %v5570_v9  ;;  %v7548_v9 = vld [vmem:[%s11695_s12 + $0x90] sm:$0xff] }
0x2666   : > { %v9469_v29 = vpop.eup %9468 }
0x2667   : > { %v5572_v12 = vmul.f32 %v9469_v29, %v5564_v17 }
0x2669   : > { %v5579_v63 = vmul.f32 %v7525_v47, %v5572_v12  ;;  %v7551_v47 = vld [vmem:[%s11695_s12 + $0xa8] sm:$0xff]  ;;  %v7553_v12 = vld [vmem:[%s11695_s12 + $0xb8] sm:$0xff] }
0x266a   : > { %v9196_v46 = vpack.c.bf16 %v7553_v12, %v7551_v47 }
0x266b   : > { %v5586_v27 = vadd.f32 %v7526_v14, %v5579_v63  ;;  %v7552_v14 = vld [vmem:[%s11695_s12 + $0xb0] sm:$0xff] }
0x266c   : > { %v9198_v63 = vpack.c.bf16 %v7552_v14, %v7550_v44 }
0x266d   : > { %8639 = vmatmul.mubr.msk.f32.vlgmr.msra.gmra.mrb[84].mxu1 %vm964_vm1, %v5586_v27 }
0x266e   : > { %9176 = vmatpush3.bf16.msra.mxu1 %v9175_v4  ;;  %8649 = vmatprep.mubr.msk.f32.mxu1 %vm9588_vm3, %v11680_v26 }
0x266f   : > { %9177 = vmatprep.subr.bf16.mxu1 %v11667_v0 }
0x2672   : > { %9179 = vmatpush3.bf16.msra.mxu1 %v9178_v21  ;;  %v7580_v21 = vld [vmem:[%s11697_s0 + $0x2] ss:$0 sm:$0xff] }
0x2673   : > { %9180 = vmatprep.subr.bf16.mxu1 %v11667_v0 }
0x2675   : > { %8650 = vmatmul.mubr.msk.f32.vlgmr.msra.gmra.mrb[86].mxu1 %vm964_vm1, %v5586_v27 }
0x2676   : > { %9182 = vmatpush3.bf16.msra.mxu1 %v9181_v43  ;;  %8660 = vmatprep.mubr.msk.f32.mxu1 %vm9588_vm3, %v11680_v26 }
0x2677   : > { %9183 = vmatprep.subr.bf16.mxu1 %v11667_v0 }
0x267a   : > { %9185 = vmatpush3.bf16.msra.mxu1 %v9184_v11  ;;  %v7556_v11 = vld [vmem:[%s9739_s27 + $0x108] sm:$0xff] }
0x267b   : > { %8663 = vmatprep.subr.mxu1 %v11680_v26 }
0x267d   : > { %8661 = vmatmul.mubr.msk.f32.vlgmr.msra.gmra.mrb[88].mxu1 %vm964_vm1, %v5586_v27 }
0x267e   : > { %8665 = vmatprep.mubr.msk.f32.mxu1 %vm9588_vm3, %v11680_v26 }
0x2740   : > { %v5712_v54 = vpop.f32.mrb[84].mxu1 }
0x2741   : > { %v8640_v57 = vpop.f32.mrb[85].mxu1 }
0x2742   : > { %v7557_v57 = vld [vmem:[%s9739_s27 + $0x110] sm:$0xff] }
0x2748   : > { %v5782_v50 = vpop.f32.mrb[86].mxu1 }
0x2749   : > { %v8651_v40 = vpop.f32.mrb[87].mxu1  ;;  %8664 = vmatpush3.xpose.msk.msra.mxu1 %vm964_vm1, %v5782_v50  ;;  %v7558_v50 = vld [vmem:[%s9739_s27 + $0x118] sm:$0xff] }
0x274a   : > { %9186 = vmatprep.subr.bf16.mxu1 %v11667_v0  ;;  %v9204_v40 = vpack.c.bf16 %v7558_v50, %v7557_v57 }
0x274c   : > { %8666 = vmatmul.mubr.msk.f32.vlgmr.msra.gmra.mrb[90].mxu1 %vm964_vm1, %v5712_v54  ;;  %v9201_v54 = vpack.c.bf16 %v7556_v11, %v7555_v34 }
0x274d   : > { %8681 = vmatprep.mubr.msk.f32.mxu1 %vm9588_vm3, %v11680_v26  ;;  %9188 = vmatpush3.bf16.msra.mxu1 %v9187_v41  ;;  %v9219_v41 = vpack.c.bf16 %v7568_v32, %v7567_v53  ;;  %v7586_v32 = vld [vmem:[%s11685_s5 + $0x3] ss:$0 sm:$0xff] }
0x274e   : > { %9189 = vmatprep.subr.bf16.mxu1 %v11667_v0 }
0x2750   : > { %v5852_v38 = vpop.f32.mrb[88].mxu1 }
0x2751   : > { %v8662_v31 = vpop.f32.mrb[89].mxu1  ;;  %8669 = vmatpush3.msra.mxu0 %v5852_v38  ;;  %9191 = vmatpush3.bf16.msra.mxu1 %v9190_v13  ;;  %v7559_v38 = vld [vmem:[%s9739_s27 + $0x120] sm:$0xff]  ;;  %v7570_v13 = vld [vmem:[%s9739_s27 + $0x178] sm:$0xff] }
0x2752   : > { %9200 = vmatprep.subr.bf16.mxu1 %v11667_v0  ;;  %9193 = vmatprep.subr.bf16.mxu0 %v9192_v1  ;;  %v7560_v31 = vld [vmem:[%s9739_s27 + $0x128] sm:$0xff] }
0x281f   : > { %v5928_v15 = vpop.f32.mrb[90].mxu1 }
0x2820   : > { %v5932_v59 = vmul.f32 0.17677669, %v5928_v15  ;;  %v8667_v58 = vpop.f32.mrb[91].mxu1  ;;  %v9207_v15 = vpack.c.bf16 %v7560_v31, %v7559_v38 }
0x2821   : > { %v7562_v58 = vld [vmem:[%s9739_s27 + $0x138] sm:$0xff] }
0x2822   : > { %v5933_v7 = vsel %vm3073_vm6, %v5932_v59, -inf }
0x2823   : > { %5934 = vmax.xlane.f32.xlu0 %v5933_v7 }
0x28b0   : > { %v5935_v25 = vpop.xlane.xlu0 %5934 }
0x28b1   : > { %v5936_v42 = vsub.f32 %v5932_v59, %v5935_v25  ;;  %v7561_v59 = vld [vmem:[%s9739_s27 + $0x130] sm:$0xff]  ;;  %v7563_v25 = vld [vmem:[%s9739_s27 + $0x140] sm:$0xff] }
0x28b2   : > { %v9210_v7 = vpack.c.bf16 %v7562_v58, %v7561_v59  ;;  %v7588_v58 = vld [vmem:[%s11684_s28 + $0x60] sm:$0xff] }
0x28b3   : > { %v5937_v8 = vmul.f32 1.442695, %v5936_v42  ;;  %v7564_v42 = vld [vmem:[%s9739_s27 + $0x148] sm:$0xff] }
0x28b5   : > { %9470 = vpow2.f32 %v5937_v8  ;;  %v9213_v8 = vpack.c.bf16 %v7564_v42, %v7563_v25  ;;  %v7591_v42 = vld [vmem:[%s11684_s28 + $0x78] sm:$0xff] }
0x28bf   : > { %v9471_v37 = vpop.eup %9470 }
0x28c0   : > { %v5939_v36 = vsel %vm3073_vm6, %v9471_v37, 0.0 }
0x28c1   : > { %5940 = vadd.xlane.f32.xlu1 %v5939_v36  ;;  %v7566_v36 = vld [vmem:[%s9739_s27 + $0x158] sm:$0xff] }
0x294e   : > { %v5941_v33 = vpop.xlane.xlu1 %5940 }
0x294f   : > { %9472 = vrcp.f32 %v5941_v33  ;;  %v9222_v33 = vpack.c.bf16 %v7570_v13, %v7569_v49  ;;  %v7592_v49 = vld [vmem:[%s11686_s9 + $0x60] sm:$0xff]  ;;  %v7593_v13 = vld [vmem:[%s11686_s9 + $0x68] sm:$0xff] }
0x2959   : > { %v9473_v62 = vpop.eup %9472 }
0x295a   : > { %v5943_v35 = vmul.f32 %v9473_v62, %v9471_v37  ;;  %v7565_v37 = vld [vmem:[%s9739_s27 + $0x150] sm:$0xff]  ;;  %v7554_v62 = vld [vmem:[%s9734_s20 + $0x4] sm:$0x3] }
0x295b   : > { %v9216_v16 = vpack.c.bf16 %v7566_v36, %v7565_v37 }
0x295c   : > { %8671 = vmatmul.mubr.msk.f32.vlgmr.msra.gmra.mrb[100].mxu0 %vm3073_vm6, %v5943_v35  ;;  %v6132_v35 = vrot.slane %v7554_v62, %v10670_v60 }
0x295d   : > { %6202 = vmatprep.mubr.f32.mxu0 %v11680_v26 }
0x2a2f   : > { %v6013_v51 = vpop.f32.mrb[100].mxu0 }
0x2a30   : > { %v8672_v23 = vpop.f32.mrb[101].mxu0  ;;  %8682 = vmatmul.mubr.msk.f32.vlgmr.msra.gmra.mrb[92].mxu1 %vm964_vm1, %v6013_v51 }
0x2a31   : > { %8716 = vmatprep.mubr.msk.f32.mxu1 %vm9588_vm3, %v11680_v26  ;;  %9202 = vmatpush3.bf16.msra.mxu1 %v9201_v54 }
0x2a32   : > { %9203 = vmatprep.subr.bf16.mxu1 %v11667_v0 }
0x2a35   : > { %9205 = vmatpush3.bf16.msra.mxu1 %v9204_v40 }
0x2a36   : > { %9206 = vmatprep.subr.bf16.mxu1 %v11667_v0 }
0x2a39   : > { %9208 = vmatpush3.bf16.msra.mxu1 %v9207_v15 }
0x2a3a   : > { %9209 = vmatprep.subr.bf16.mxu1 %v11667_v0 }
0x2a3d   : > { %9211 = vmatpush3.bf16.msra.mxu1 %v9210_v7  ;;  %v7589_v7 = vld [vmem:[%s11684_s28 + $0x68] sm:$0xff] }
0x2a3e   : > { %9212 = vmatprep.subr.bf16.mxu1 %v11667_v0  ;;  %v9225_v25 = vpack.c.bf16 %v7589_v7, %v7588_v58 }
0x2a41   : > { %9214 = vmatpush3.bf16.msra.mxu1 %v9213_v8 }
0x2a42   : > { %9215 = vmatprep.subr.bf16.mxu1 %v11667_v0 }
0x2a45   : > { %9217 = vmatpush3.bf16.msra.mxu1 %v9216_v16 }
0x2a46   : > { %9218 = vmatprep.subr.bf16.mxu1 %v11667_v0 }
0x2a49   : > { %9220 = vmatpush3.bf16.msra.mxu1 %v9219_v41 }
0x2a4a   : > { %9221 = vmatprep.subr.bf16.mxu1 %v11667_v0 }
0x2a4d   : > { %9223 = vmatpush3.bf16.msra.mxu1 %v9222_v33  ;;  %v7587_v33 = vld [vmem:[%s11687_s2 + $0x3] ss:$0 sm:$0xff]  ;;  %s7182_s2 = sshll.u32 %s921_s22, 3 }
0x2a4e   : > { %9242 = vmatprep.subr.bf16.mxu1 %v11667_v0  ;;  %s923_s5 = scalar_lea.vmem [#allocation2], %s7182_s2  ;;  %s9590_s2 = smov [#allocation2]  }
0x2a4f   : > { %s7089_s6 = sshll.u32 %s923_s5, 4  ;;  %s9497_s18 = sshll.u32 %s9590_s2, 4  ;;  %s11531_s6 = int_to_ptr.vmem [resolvable:$true] %s7089_s6  ;;  %s9498_s18 = int_to_ptr.vmem [resolvable:$false] %s9497_s18 }
0x2a50   : > { %p9500_p0 = scmp.lt.s32.totalorder %s11531_s6, %s9498_s18 }
0x2b03   : > { %v6092_v45 = vpop.f32.mrb[92].mxu1 }
0x2b04   : > { %v6093_v20 = vadd.f32 %v7578_v55, %v6092_v45  ;;  %v8683_v17 = vpop.f32.mrb[93].mxu1 }
0x2b06   : > { %v11371_v24 = vadd.f32 %v6093_v20, %v11316_v28  ;;  %v7546_v28 = vld [vmem:[%s11695_s12 + $0x80] sm:$0xff] }
0x2b07   : > { %v9194_v29 = vpack.c.bf16 %v7548_v9, %v7546_v28 }
0x2b08   : > { %v6097_v61 = vsel %vm964_vm1, %v11371_v24, 0.0 }
0x2b09   : > { %6098 = vadd.xlane.f32.xlu0 %v6097_v61  ;;  %9195 = vmatpush1.bf16.msra.mxu0 %v9194_v29 }
0x2b0a   : > { %9197 = vmatprep.subr.bf16.mxu0 %v9196_v46 }
0x2b0d   : > { %9199 = vmatpush1.bf16.msra.mxu0 %v9198_v63 }
0x2b0e   : > { %9224 = vmatprep.subr.bf16.mxu0 %v11667_v0 }
0x2b96   : > { %v6099_v48 = vpop.xlane.xlu0 %6098 }
0x2b97   : > { %v6100_v10 = vmul.f32 0.03125, %v6099_v48 }
0x2b99   : > { %v6101_v30 = vsub.f32 %v11371_v24, %v6100_v10 }
0x2b9b   : > { %v6102_v22 = vmul.f32 %v6101_v30, %v6101_v30 }
0x2b9d   : > { %v6103_v3 = vsel %vm964_vm1, %v6102_v22, 0.0 }
0x2b9e   : > { %6104 = vadd.xlane.f32.xlu1 %v6103_v3 }
0x2c2b   : > { %v6105_v4 = vpop.xlane.xlu1 %6104 }
0x2c2c   : > { %v6106_v27 = vmul.f32 0.03125, %v6105_v4 }
0x2c2e   : > { %v6107_v2 = vadd.f32 1e-05, %v6106_v27  ;;  %v6128_v27 = vrot.slane %v7554_v62, %v10675_v5 }
0x2c30   : > { %9474 = vrsqrt.f32 %v6107_v2 }
0x2c3a   : > { %v9475_v18 = vpop.eup %9474 }
0x2c3b   : > { %v6109_v39 = vmul.f32 %v9475_v18, %v6101_v30 }
0x2c3d   : > { %v6116_v43 = vmul.f32 %v7580_v21, %v6109_v39 }
0x2c3f   : > { %v6123_v52 = vadd.f32 %v7581_v56, %v6116_v43 }
0x2c41   : > { %7582 = vmatmul.mubr.msk.f32.vlgmr.msra.gmra.mrb[102].mxu0 %vm964_vm1, %v6123_v52  ;;  %v7583_v52 = vld [vmem:[%s11644_s4 + $0x2] ss:$0 sm:$0xff] }
0x2c42   : > { %8727 = vmatprep.mubr.msk.f32.mxu0 %vm9588_vm3, %v11680_v26  ;;  %9226 = vmatpush3.bf16.msra.mxu0 %v9225_v25 }
0x2c43   : > { %9227 = vmatprep.subr.bf16.mxu0 %v11667_v0 }
0x2d14   : > { %v6204_v51 = vpop.f32.mrb[102].mxu0 }
0x2d15   : > { %v6206_v23 = vpop.f32.mrb[103].mxu0  ;;  %v6205_v39 = vadd.f32 %v6204_v51, %v6128_v27  ;;  %v7600_v27 = vld [vmem:[%s11691_s10 + $0x60] sm:$0xff] }
0x2d16   : > { %v6207_v55 = vadd.f32 %v6206_v23, %v6132_v35  ;;  %v9231_v35 = vpack.c.bf16 %v7593_v13, %v7592_v49  ;;  %v7594_v23 = vld [vmem:[%s11686_s9 + $0x70] sm:$0xff]  ;;  %v7611_v49 = vld [vmem:[%s11695_s12 + $0xe0] sm:$0xff] }
0x2d17   : > { %v7613_v13 = vld [vmem:[%s11695_s12 + $0xf0] sm:$0xff] }
0x2d18   : > { %v6210_v45 = vmul.f32 0.70710677, %v6207_v55  ;;  %v6209_v18 = vmul.f32 0.5, %v6207_v55  ;;  %v7595_v55 = vld [vmem:[%s11686_s9 + $0x78] sm:$0xff]  ;;  %s9493_s9 = scalar_lea.vmem %s11531_s6, 128 }
0x2d19   : > { %p9494_p11 = scmp.ne.s32.totalorder %s11531_s6, %s9493_s9 }
0x2d1a   : > { %vm6211_vm10 = vcmp.ge.f32.partialorder %v6210_v45, 0.0  ;;  %v6212_v20 = vsub.f32 0.0, %v6210_v45 }
0x2d1b   : > { %p9495_p12 = pnand %p9494_p11, %p9789_p5 }
0x2d1c   : > { %v6213_v17 = vsel %vm6211_vm10, %v6210_v45, %v6212_v20  ;;  %v9234_v45 = vpack.c.bf16 %v7595_v55, %v7594_v23  ;;  %v7596_v20 = vld [vmem:[%s11689_s26 + $0x60] sm:$0xff] }
0x2d1d   : > { %v6214_v61 = vmul.f32 0.3275911, %v6213_v17  ;;  %v6227_v10 = vmul.f32 %v6213_v17, %v6213_v17  ;;  %v7597_v17 = vld [vmem:[%s11689_s26 + $0x68] sm:$0xff]  ;;  %v7641_v55 = vld [vmem:[%s11697_s0 + $0x3] ss:$0 sm:$0xff]  ;;  %s11720_s0 = smov %s11719_s15  ;;  %p9496_p13 = pneg %p9495_p12 }
0x2d1f   : > { %v6215_v48 = vadd.f32 1.0, %v6214_v61  ;;  %v6228_v22 = vsub.f32 0.0, %v6227_v10  ;;  %v9237_v61 = vpack.c.bf16 %v7597_v17, %v7596_v20  ;;  %v7599_v10 = vld [vmem:[%s11689_s26 + $0x78] sm:$0xff]  ;;  %v7642_v20 = vld [vmem:[%s11699_s23 + $0x3] ss:$0 sm:$0xff] }
0x2d21   : > { %9476 = vrcp.f32 %v6215_v48  ;;  %v6229_v6 = vmul.f32 1.442695, %v6228_v22  ;;  %v7598_v48 = vld [vmem:[%s11689_s26 + $0x70] sm:$0xff] }
0x2d23   : > { %9478 = vpow2.f32 %v6229_v6 }
0x2d2b   : > { %v9477_v30 = vpop.eup %9476 }
0x2d2c   : > { %v6218_v3 = vmul.f32 1.0614054, %v9477_v30 }
0x2d2d   : > { %v9479_v46 = vpop.eup %9478 }
0x2d2e   : > { %v6219_v19 = vadd.f32 -1.4531521, %v6218_v3 }
0x2d30   : > { %v6220_v1 = vmul.f32 %v9477_v30, %v6219_v19 }
0x2d32   : > { %v6221_v28 = vadd.f32 1.4214138, %v6220_v1 }
0x2d34   : > { %v6222_v9 = vmul.f32 %v9477_v30, %v6221_v28 }
0x2d36   : > { %v6223_v29 = vadd.f32 -0.28449672, %v6222_v9 }
0x2d38   : > { %v6224_v47 = vmul.f32 %v9477_v30, %v6223_v29 }
0x2d3a   : > { %v6225_v12 = vadd.f32 0.2548296, %v6224_v47 }
0x2d3c   : > { %v6226_v44 = vmul.f32 %v9477_v30, %v6225_v12  ;;  %v9240_v30 = vpack.c.bf16 %v7599_v10, %v7598_v48  ;;  %v7616_v48 = vld [vmem:[%s9739_s27 + $0x180] sm:$0xff]  ;;  %v7617_v10 = vld [vmem:[%s9739_s27 + $0x188] sm:$0xff] }
0x2d3e   : > { %v6231_v14 = vmul.f32 %v9479_v46, %v6226_v44 }
0x2d40   : > { %v6232_v63 = vsub.f32 1.0, %v6231_v14 }
0x2d42   : > { %v6233_v4 = vsub.f32 0.0, %v6232_v63 }
0x2d44   : > { %v6234_v2 = vsel %vm6211_vm10, %v6232_v63, %v6233_v4 }
0x2d45   : > { %v6235_v21 = vadd.f32 1.0, %v6234_v2  ;;  %v7601_v2 = vld [vmem:[%s11691_s10 + $0x68] sm:$0xff] }
0x2d47   : > { %v6236_v56 = vmul.f32 %v6235_v21, %v6209_v18  ;;  %v7602_v18 = vld [vmem:[%s11691_s10 + $0x70] sm:$0xff]  ;;  %v9243_v21 = vpack.c.bf16 %v7601_v2, %v7600_v27  ;;  %v7628_v27 = vld [vmem:[%s9739_s27 + $0x1e0] sm:$0xff]  ;;  %v7629_v2 = vld [vmem:[%s9739_s27 + $0x1e8] sm:$0xff] }
0x2d49   : > { %v6237_v43 = vmul.f32 %v6236_v56, %v6205_v39  ;;  %v7603_v39 = vld [vmem:[%s11691_s10 + $0x78] sm:$0xff] }
0x2d4a   : > { %v9246_v56 = vpack.c.bf16 %v7603_v39, %v7602_v18  ;;  %v9275_v18 = vpack.c.bf16 %v7629_v2, %v7628_v27  ;;  %v7631_v39 = vld [vmem:[%s9739_s27 + $0x1f8] sm:$0xff] }
0x2d4b   : > { %8717 = vmatmul.mubr.f32.vlgmr.msra.gmra.mrb[94].mxu1 %v6237_v43 }
0x2d4c   : > { %8770 = vmatprep.mubr.msk.f32.mxu1 %vm9588_vm3, %v11680_v26  ;;  %9244 = vmatpush3.bf16.msra.mxu1 %v9243_v21  ;;  %v7630_v21 = vld [vmem:[%s9739_s27 + $0x1f0] sm:$0xff] }
0x2d4d   : > { %9245 = vmatprep.subr.bf16.mxu1 %v11667_v0 }
0x2d50   : > { %9247 = vmatpush3.bf16.msra.mxu1 %v9246_v56  ;;  %v9278_v56 = vpack.c.bf16 %v7631_v39, %v7630_v21 }
0x2d51   : > { %9256 = vmatprep.subr.bf16.mxu1 %v11667_v0 }
0x2e1e   : > { %v6310_v34 = vpop.f32.mrb[94].mxu1 }
0x2e1f   : > { %v6311_v11 = vadd.f32 %v7583_v52, %v6310_v34  ;;  %v8718_v54 = vpop.f32.mrb[95].mxu1 }
0x2e21   : > { %v11424_v57 = vadd.f32 %v6311_v11, %v11371_v24  ;;  %v7590_v24 = vld [vmem:[%s11684_s28 + $0x70] sm:$0xff] }
0x2e22   : > { %v9228_v8 = vpack.c.bf16 %v7591_v42, %v7590_v24  ;;  %v7608_v42 = vld [vmem:[%s11695_s12 + $0xc8] sm:$0xff] }
0x2e23   : > { %v6319_v50 = vsel %vm964_vm1, %v11424_v57, 0.0 }
0x2e24   : > { %6320 = vadd.xlane.f32.xlu0 %v6319_v50  ;;  %9229 = vmatpush3.bf16.msra.mxu0 %v9228_v8  ;;  %v7639_v50 = vld [vmem:[%s11693_s7 + $0x3] ss:$0 sm:$0xff]  ;;  %v7610_v8 = vld [vmem:[%s11695_s12 + $0xd8] sm:$0xff]  ;;  %s11529_s7 = scalar_lea.hbm %s11719_s15, %s7646_s3 }
0x2e25   : > { %9230 = vmatprep.subr.bf16.mxu0 %v11667_v0 }
0x2eb1   : > { %v6321_v40 = vpop.xlane.xlu0 %6320 }
0x2eb2   : > { %v6322_v38 = vmul.f32 0.03125, %v6321_v40 }
0x2eb4   : > { %v6323_v31 = vsub.f32 %v11424_v57, %v6322_v38 }
0x2eb6   : > { %v6324_v15 = vmul.f32 %v6323_v31, %v6323_v31 }
0x2eb8   : > { %v6325_v59 = vsel %vm964_vm1, %v6324_v15, 0.0 }
0x2eb9   : > { %6326 = vadd.xlane.f32.xlu1 %v6325_v59 }
0x2f46   : > { %v6327_v37 = vpop.xlane.xlu1 %6326 }
0x2f47   : > { %v6328_v36 = vmul.f32 0.03125, %v6327_v37  ;;  %v7607_v37 = vld [vmem:[%s11695_s12 + $0xc0] sm:$0xff] }
0x2f49   : > { %v6329_v16 = vadd.f32 1e-05, %v6328_v36  ;;  %v7609_v36 = vld [vmem:[%s11695_s12 + $0xd0] sm:$0xff] }
0x2f4b   : > { %9480 = vrsqrt.f32 %v6329_v16  ;;  %v9250_v16 = vpack.c.bf16 %v7609_v36, %v7607_v37 }
0x2f55   : > { %v9481_v53 = vpop.eup %9480 }
0x2f56   : > { %v6331_v41 = vmul.f32 %v9481_v53, %v6323_v31  ;;  %v7612_v53 = vld [vmem:[%s11695_s12 + $0xe8] sm:$0xff] }
0x2f58   : > { %v6338_v62 = vmul.f32 %v7586_v32, %v6331_v41  ;;  %v7614_v32 = vld [vmem:[%s11695_s12 + $0xf8] sm:$0xff] }
0x2f59   : > { %v9252_v41 = vpack.c.bf16 %v7614_v32, %v7612_v53 }
0x2f5a   : > { %v6345_v51 = vadd.f32 %v7587_v33, %v6338_v62  ;;  %v9254_v33 = vpack.c.bf16 %v7613_v13, %v7611_v49 }
0x2f5c   : > { %8728 = vmatmul.mubr.msk.f32.vlgmr.msra.gmra.mrb[104].mxu0 %vm964_vm1, %v6345_v51 }
0x2f5d   : > { %9232 = vmatpush3.bf16.msra.mxu0 %v9231_v35  ;;  %8738 = vmatprep.mubr.msk.f32.mxu0 %vm9588_vm3, %v11680_v26 }
0x2f5e   : > { %9233 = vmatprep.subr.bf16.mxu0 %v11667_v0 }
0x2f61   : > { %9235 = vmatpush3.bf16.msra.mxu0 %v9234_v45 }
0x2f62   : > { %9236 = vmatprep.subr.bf16.mxu0 %v11667_v0 }
0x2f64   : > { %8739 = vmatmul.mubr.msk.f32.vlgmr.msra.gmra.mrb[106].mxu0 %vm964_vm1, %v6345_v51 }
0x2f65   : > { %9238 = vmatpush3.bf16.msra.mxu0 %v9237_v61  ;;  %8749 = vmatprep.mubr.msk.f32.mxu0 %vm9588_vm3, %v11680_v26 }
0x2f66   : > { %9239 = vmatprep.subr.bf16.mxu0 %v11667_v0 }
0x2f69   : > { %9241 = vmatpush3.bf16.msra.mxu0 %v9240_v30  ;;  %v9257_v30 = vpack.c.bf16 %v7617_v10, %v7616_v48 }
0x2f6a   : > { %8752 = vmatprep.subr.mxu0 %v11680_v26 }
0x2f6c   : > { %8750 = vmatmul.mubr.msk.f32.vlgmr.msra.gmra.mrb[108].mxu0 %vm964_vm1, %v6345_v51 }
0x2f6d   : > { %8754 = vmatprep.mubr.msk.f32.mxu0 %vm9588_vm3, %v11680_v26 }
0x302f   : > { %v6471_v22 = vpop.f32.mrb[104].mxu0 }
0x3030   : > { %v8729_v3 = vpop.f32.mrb[105].mxu0 }
0x3031   : > { %v7619_v3 = vld [vmem:[%s9739_s27 + $0x198] sm:$0xff] }
0x3037   : > { %v6541_v19 = vpop.f32.mrb[106].mxu0 }
0x3038   : > { %v8740_v6 = vpop.f32.mrb[107].mxu0  ;;  %8753 = vmatpush3.xpose.msk.msra.mxu0 %vm964_vm1, %v6541_v19 }
0x3039   : > { %8757 = vmatprep.subr.mxu0 %v11680_v26  ;;  %v7620_v6 = vld [vmem:[%s9739_s27 + $0x1a0] sm:$0xff] }
0x303b   : > { %8755 = vmatmul.mubr.msk.f32.vlgmr.msra.gmra.mrb[110].mxu0 %vm964_vm1, %v6471_v22  ;;  %v7618_v22 = vld [vmem:[%s9739_s27 + $0x190] sm:$0xff] }
0x303c   : > { %8759 = vmatprep.mubr.msk.f32.mxu0 %vm9588_vm3, %v11680_v26  ;;  %v9260_v19 = vpack.c.bf16 %v7619_v3, %v7618_v22 }
0x303f   : > { %v6611_v1 = vpop.f32.mrb[108].mxu0 }
0x3040   : > { %v8751_v28 = vpop.f32.mrb[109].mxu0  ;;  %8758 = vmatpush3.msra.mxu0 %v6611_v1  ;;  %v7621_v1 = vld [vmem:[%s9739_s27 + $0x1a8] sm:$0xff] }
0x3041   : > { %v9263_v28 = vpack.c.bf16 %v7621_v1, %v7620_v6 }
0x310e   : > { %v6687_v9 = vpop.f32.mrb[110].mxu0 }
0x310f   : > { %v6691_v29 = vmul.f32 0.17677669, %v6687_v9  ;;  %v8756_v47 = vpop.f32.mrb[111].mxu0  ;;  %v7622_v9 = vld [vmem:[%s9739_s27 + $0x1b0] sm:$0xff] }
0x3111   : > { %v6692_v12 = vsel %vm3073_vm6, %v6691_v29, -inf }
0x3112   : > { %6693 = vmax.xlane.f32.xlu0 %v6692_v12  ;;  %v7624_v12 = vld [vmem:[%s9739_s27 + $0x1c0] sm:$0xff] }
0x319f   : > { %v6694_v44 = vpop.xlane.xlu0 %6693 }
0x31a0   : > { %v6695_v46 = vsub.f32 %v6691_v29, %v6694_v44  ;;  %v7623_v29 = vld [vmem:[%s9739_s27 + $0x1b8] sm:$0xff]  ;;  %v7625_v44 = vld [vmem:[%s9739_s27 + $0x1c8] sm:$0xff] }
0x31a1   : > { %v9266_v47 = vpack.c.bf16 %v7623_v29, %v7622_v9 }
0x31a2   : > { %v6696_v14 = vmul.f32 1.442695, %v6695_v46  ;;  %v9269_v46 = vpack.c.bf16 %v7625_v44, %v7624_v12 }
0x31a4   : > { %9482 = vpow2.f32 %v6696_v14  ;;  %v7626_v14 = vld [vmem:[%s9739_s27 + $0x1d0] sm:$0xff] }
0x31ae   : > { %v9483_v63 = vpop.eup %9482 }
0x31af   : > { %v6698_v4 = vsel %vm3073_vm6, %v9483_v63, 0.0 }
0x31b0   : > { %6699 = vadd.xlane.f32.xlu1 %v6698_v4 }
0x323d   : > { %v6700_v43 = vpop.xlane.xlu1 %6699 }
0x323e   : > { %9484 = vrcp.f32 %v6700_v43  ;;  %v7615_v43 = vld [vmem:[%s9734_s20 + $0x6] sm:$0x3] }
0x323f   : > { %v6887_v13 = vrot.slane %v7615_v43, %v10675_v5 }
0x3248   : > { %v9485_v52 = vpop.eup %9484 }
0x3249   : > { %v6702_v34 = vmul.f32 %v9485_v52, %v9483_v63  ;;  %v7627_v63 = vld [vmem:[%s9739_s27 + $0x1d8] sm:$0xff]  ;;  %v6891_v52 = vrot.slane %v7615_v43, %v10670_v60 }
0x324a   : > { %v9272_v4 = vpack.c.bf16 %v7627_v63, %v7626_v14 }
0x324b   : > { %8760 = vmatmul.mubr.msk.f32.vlgmr.msra.gmra.mrb[112].mxu0 %vm3073_vm6, %v6702_v34 }
0x324c   : > { %6961 = vmatprep.mubr.f32.mxu0 %v11680_v26 }
0x331e   : > { %v6772_v11 = vpop.f32.mrb[112].mxu0 }
0x331f   : > { %v8761_v54 = vpop.f32.mrb[113].mxu0  ;;  %8771 = vmatmul.mubr.msk.f32.vlgmr.msra.gmra.mrb[96].mxu1 %vm964_vm1, %v6772_v11 }
0x3320   : > { %8805 = vmatprep.mubr.msk.f32.mxu1 %vm9588_vm3, %v11680_v26  ;;  %9258 = vmatpush3.bf16.msra.mxu1 %v9257_v30 }
0x3321   : > { %9259 = vmatprep.subr.bf16.mxu1 %v11667_v0 }
0x3324   : > { %9261 = vmatpush3.bf16.msra.mxu1 %v9260_v19 }
0x3325   : > { %9262 = vmatprep.subr.bf16.mxu1 %v11667_v0 }
0x3328   : > { %9264 = vmatpush3.bf16.msra.mxu1 %v9263_v28 }
0x3329   : > { %9265 = vmatprep.subr.bf16.mxu1 %v11667_v0 }
0x332c   : > { %9267 = vmatpush3.bf16.msra.mxu1 %v9266_v47 }
0x332d   : > { %9268 = vmatprep.subr.bf16.mxu1 %v11667_v0 }
0x3330   : > { %9270 = vmatpush3.bf16.msra.mxu1 %v9269_v46 }
0x3331   : > { %9271 = vmatprep.subr.bf16.mxu1 %v11667_v0 }
0x3334   : > { %9273 = vmatpush3.bf16.msra.mxu1 %v9272_v4 }
0x3335   : > { %9274 = vmatprep.subr.bf16.mxu1 %v11667_v0 }
0x3338   : > { %9276 = vmatpush3.bf16.msra.mxu1 %v9275_v18 }
0x3339   : > { %9277 = vmatprep.subr.bf16.mxu1 %v11667_v0 }
0x333c   : > { %9279 = vmatpush3.bf16.msra.mxu1 %v9278_v56 }
0x33f2   : > { %v6851_v40 = vpop.f32.mrb[96].mxu1 }
0x33f3   : > { %v6852_v38 = vadd.f32 %v7639_v50, %v6851_v40  ;;  %v8772_v31 = vpop.f32.mrb[97].mxu1 }
0x33f5   : > { %v11479_v15 = vadd.f32 %v6852_v38, %v11424_v57  ;;  %v9248_v57 = vpack.c.bf16 %v7610_v8, %v7608_v42 }
0x33f7   : > { %v6856_v59 = vsel %vm964_vm1, %v11479_v15, 0.0  ;;  %9249 = vmatprep.subr.bf16.mxu0 %v9248_v57 }
0x33f8   : > { %6857 = vadd.xlane.f32.xlu0 %v6856_v59  ;;  %9251 = vmatpush1.bf16.msra.mxu0 %v9250_v16 }
0x33f9   : > { %9253 = vmatprep.subr.bf16.mxu0 %v9252_v41 }
0x33fc   : > { %9255 = vmatpush1.bf16.msra.mxu0 %v9254_v33 }
0x3485   : > { %v6858_v58 = vpop.xlane.xlu0 %6857 }
0x3486   : > { %v6859_v7 = vmul.f32 0.03125, %v6858_v58 }
0x3488   : > { %v6860_v26 = vsub.f32 %v11479_v15, %v6859_v7 }
0x348a   : > { %v6861_v25 = vmul.f32 %v6860_v26, %v6860_v26 }
0x348c   : > { %v6862_v24 = vsel %vm964_vm1, %v6861_v25, 0.0 }
0x348d   : > { %6863 = vadd.xlane.f32.xlu1 %v6862_v24 }
0x351a   : > { %v6864_v62 = vpop.xlane.xlu1 %6863 }
0x351b   : > { %v6865_v35 = vmul.f32 0.03125, %v6864_v62 }
0x351d   : > { %v6866_v51 = vadd.f32 1e-05, %v6865_v35 }
0x351f   : > { %9486 = vrsqrt.f32 %v6866_v51 }
0x3529   : > { %v9487_v23 = vpop.eup %9486 }
0x352a   : > { %v6868_v45 = vmul.f32 %v9487_v23, %v6860_v26 }
0x352c   : > { %v6875_v17 = vmul.f32 %v7641_v55, %v6868_v45  ;;  %v7644_v45 = vld [vmem:[%s11644_s4 + $0x3] ss:$0 sm:$0xff]  ;;  %s9499_s4 = scalar_lea.vmem %s9498_s18, 256 }
0x352d   : > { %p9501_p1 = scmp.lt.s32.totalorder %s9499_s4, %s9493_s9 }
0x352e   : > { %v6882_v61 = vadd.f32 %v7642_v20, %v6875_v17 }
0x352f   : > { %p9502_p2 = por %p9501_p1, %p9500_p0 }
0x3530   : > { %7643 = vmatmul.mubr.msk.f32.vlgmr.msra.gmra.mrb[114].mxu0 %vm964_vm1, %v6882_v61 }
0x3531   : > { %p9503_p3 = pnand %p9502_p2, %p9496_p13 }
0x3603   : > { %v6963_v34 = vpop.f32.mrb[114].mxu0 }
0x3604   : > { %v6965_v11 = vpop.f32.mrb[115].mxu0  ;;  %v6964_v51 = vadd.f32 %v6963_v34, %v6887_v13 }
0x3605   : > { %v6966_v54 = vadd.f32 %v6965_v11, %v6891_v52 }
0x3607   : > { %v6969_v50 = vmul.f32 0.70710677, %v6966_v54  ;;  %v6968_v62 = vmul.f32 0.5, %v6966_v54 }
0x3609   : > { %vm6970_vm11 = vcmp.ge.f32.partialorder %v6969_v50, 0.0  ;;  %v6971_v40 = vsub.f32 0.0, %v6969_v50 }
0x360b   : > { %v6972_v38 = vsel %vm6970_vm11, %v6969_v50, %v6971_v40 }
0x360c   : > { %v6973_v31 = vmul.f32 0.3275911, %v6972_v38  ;;  %v6986_v58 = vmul.f32 %v6972_v38, %v6972_v38 }
0x360e   : > { %v6974_v59 = vadd.f32 1.0, %v6973_v31  ;;  %v6987_v7 = vsub.f32 0.0, %v6986_v58 }
0x3610   : > { %9488 = vrcp.f32 %v6974_v59  ;;  %v6988_v24 = vmul.f32 1.442695, %v6987_v7 }
0x3612   : > { %9490 = vpow2.f32 %v6988_v24 }
0x361a   : > { %v9489_v0 = vpop.eup %9488 }
0x361b   : > { %v6977_v26 = vmul.f32 1.0614054, %v9489_v0 }
0x361c   : > { %v9491_v53 = vpop.eup %9490 }
0x361d   : > { %v6978_v25 = vadd.f32 -1.4531521, %v6977_v26 }
0x361f   : > { %v6979_v42 = vmul.f32 %v9489_v0, %v6978_v25 }
0x3621   : > { %v6980_v8 = vadd.f32 1.4214138, %v6979_v42 }
0x3623   : > { %v6981_v60 = vmul.f32 %v9489_v0, %v6980_v8 }
0x3625   : > { %v6982_v57 = vadd.f32 -0.28449672, %v6981_v60 }
0x3627   : > { %v6983_v37 = vmul.f32 %v9489_v0, %v6982_v57 }
0x3629   : > { %v6984_v36 = vadd.f32 0.2548296, %v6983_v37 }
0x362b   : > { %v6985_v16 = vmul.f32 %v9489_v0, %v6984_v36 }
0x362d   : > { %v6990_v32 = vmul.f32 %v9491_v53, %v6985_v16 }
0x362f   : > { %v6991_v41 = vsub.f32 1.0, %v6990_v32 }
0x3631   : > { %v6992_v49 = vsub.f32 0.0, %v6991_v41 }
0x3633   : > { %v6993_v33 = vsel %vm6970_vm11, %v6991_v41, %v6992_v49 }
0x3634   : > { %v6994_v35 = vadd.f32 1.0, %v6993_v33 }
0x3636   : > { %v6995_v23 = vmul.f32 %v6994_v35, %v6968_v62 }
0x3638   : > { %v6996_v55 = vmul.f32 %v6995_v23, %v6964_v51 }
0x363a   : > { %8806 = vmatmul.mubr.f32.vlgmr.msra.gmra.mrb[98].mxu1 %v6996_v55 }
0x370d   : > { %v7069_v20 = vpop.f32.mrb[98].mxu1 }
0x370e   : > { %v7070_v17 = vadd.f32 %v7644_v45, %v7069_v20  ;;  %v8807_v61 = vpop.f32.mrb[99].mxu1 }
0x3710   : > { %v7073_v5 = vadd.f32 %v7070_v17, %v11479_v15 }
0x3712   : > { %7074 = vst.msk [vmem:[%s923_s5] sm:$0xff] %vm964_vm1, %v7073_v5 }
0x3713   : > { %9506 = shalt.err (!%p9503_p3)
}
0x3714   : > { %s9507_s5 = scalar_lea.hbm %s11529_s7, 128  ;;  %s9511_s3 = scalar_lea.hbm %s11720_s0, 256 }
0x3715   : > { %p9508_p4 = scmp.ne.s32.totalorder %s11529_s7, %s9507_s5  ;;  %p9512_p9 = scmp.lt.u32.totalorder %s11529_s7, %s11720_s0 }
0x3716   : > { %p9513_p10 = scmp.lt.u32.totalorder %s9511_s3, %s9507_s5  ;;  %p9515_p12 = scmp.lt.u32.totalorder %s9507_s5, %s11529_s7 }
0x3717   : > { %p9509_p7 = pnand %p9508_p4, %p9789_p5 }
0x3718   : > { %p9514_p11 = por %p9513_p10, %p9512_p9 }
0x3719   : > { %p9510_p8 = pneg %p9509_p7 }
0x371a   : > { %p9516_p0 = por %p9515_p12, %p9514_p11 }
0x371c   : > { %p9517_p13 = pnand %p9516_p0, %p9510_p8 }
0x371e   : > { %9520 = shalt.err (!%p9517_p13)
}
0x371f   : > { %9280 = dma.vmem_to_hbm [thread:$0]  (%p9789_p5), %s11531_s6, 128, %s11529_s7, %s7076_s8  }
0x3720 PF: > { %s11722_s9 = sld [smem:[#allocation27_spill]]  ;;  %s11723_s4 = sld [smem:[#allocation25_spill]] }
0x3726   : > { %p9286_p1 = scmp.ge.s32.totalorder %s11722_s9, 2  ;;  %s7101_s22 = sand.u32 1, %s11723_s4  }
0x3727   : > { %s7102_s2 = scalar_lea.sflag [#allocation3], %s7101_s22 }
0x3728   : > { %p9283_p2 = pnand %p9286_p1, %p9793_p6 }
0x372a   : > { %9538 = dma.done.wait (!%p9283_p2), %s7102_s2, 128  }
0x372b   : > { %9540 = vsyncadd (!%p9283_p2), %s7102_s2, 4294967168  ;;  %s11725_s22 = sld [smem:[#allocation29_spill]]  ;;  %s11726_s18 = sld [smem:[#allocation26_spill]] }
0x372c   : > { %s11727_s5 = sld [smem:[#allocation30_spill]]  ;;  %s11728_s15 = smov %s9547_s16 }
0x3731   : > { %p71_p3 = scmp.ge.s32.totalorder %s11725_s22, 4   ;;  %s11729_s16 = smov %s11726_s18 }
0x3732   : > { %s11730_s18 = smov %s11727_s5 }
0x3733   :  { %73 = sbr.rel (!%p71_p3) target bundleno = 66 (0x42), region = 259 }
0x373a   :  { %7107 = vsyncpa [#allocation3], 1 }
0x373b   :  { %7109 = vsyncpa [#allocation3 + $0x1], 1 }

</bundles_post_ra>
